<compile_context>
chip_gen: v5e
topology: v5e:2x2
jax: 0.10.0
libtpu: 0.0.40
codegen_flags: <defaults>
</compile_context>

<pallas_src>
import jax
import jax.numpy as jnp
from jax.experimental import pallas as pl
from jax.experimental.pallas import tpu as pltpu

VMEM_SPEC = pl.BlockSpec(memory_space=pltpu.MemorySpace.VMEM)

TDNN_OUT = 256
HIDDEN = 128
BN_EPS = 1e-5


# ----------------------------------------------------------------------------
# Kernel 1: fused per-channel TDNN stack (frame1 -> frame2 -> frame3 -> pool)
# ----------------------------------------------------------------------------
def _tdnn_layer(xs, wt, b, gamma, beta, ctx, dil):
    """One TDNN layer on a list of per-batch-element 2D frames.

    xs: list (len B) of (T, Din).  wt: (ctx*Din, Dout) (pre-transposed Linear
    weight).  The unfold is realised as `ctx` per-tap partial matmuls
    y += x[k*dil : k*dil+L] @ W_k, so no unfolded copy is ever materialised.
    BatchNorm1d is training mode: biased stats over all B*L rows of this
    channel.  Everything stays 2D (no in-kernel reshapes).  Returns B x (L, Dout).
    """
    din = wt.shape[0] // ctx
    t_in = xs[0].shape[0]
    length = t_in - dil * (ctx - 1)

    ys = []
    for xb in xs:
        acc = b  # (1, Dout) bias, broadcasts over rows
        for k in range(ctx):
            acc = acc + jnp.dot(xb[k * dil:k * dil + length, :],
                                wt[k * din:(k + 1) * din, :],
                                preferred_element_type=jnp.float32)
        ys.append(acc)

    # BatchNorm1d (train): per-feature biased stats over the B*L rows of this channel.
    n_rows = float(len(ys) * length)
    mean = sum(jnp.sum(y, axis=0, keepdims=True) for y in ys) / n_rows
    var = sum(jnp.sum((y - mean) ** 2, axis=0, keepdims=True) for y in ys) / n_rows
    inv = jax.lax.rsqrt(var + BN_EPS) * gamma
    return [jnp.maximum((y - mean) * inv + beta, 0.0) for y in ys]  # ReLU


def _tdnn_stack_kernel(x_ref,
                       w1_ref, b1_ref, g1_ref, be1_ref,
                       w2_ref, b2_ref, g2_ref, be2_ref,
                       w3_ref, b3_ref, g3_ref, be3_ref,
                       o_ref):
    """Grid axis = EEG channel.  x block (1, B, T, D) -> o block (1, B, 256)."""
    x = x_ref[...]                                  # (1, B, T, D)
    batch = x.shape[1]
    xs = [x[0, b] for b in range(batch)]            # B x (T, D)

    xs = _tdnn_layer(xs, w1_ref[...], b1_ref[...], g1_ref[...], be1_ref[...], 2, 1)
    xs = _tdnn_layer(xs, w2_ref[...], b2_ref[...], g2_ref[...], be2_ref[...], 4, 2)
    xs = _tdnn_layer(xs, w3_ref[...], b3_ref[...], g3_ref[...], be3_ref[...], 1, 1)

    # AdaptiveAvgPool1d(1) over time, assembled as a (B, 256) row block.
    pooled = jnp.concatenate([jnp.mean(y, axis=0, keepdims=True) for y in xs],
                             axis=0)
    o_ref[0] = pooled


def tdnn_block(x, params):
    """x: (C, B, T, D) -> (C, B, 256) time-major pooled sequence. One pallas_call."""
    C, B, T, D = x.shape

    weight_args = []
    for name in ("f1", "f2", "f3"):
        lp = params[name]
        weight_args += [lp["wt"], lp["b"], lp["gamma"], lp["beta"]]

    def const_spec(a):
        nd = a.ndim
        return pl.BlockSpec(a.shape, lambda c, _nd=nd: (0,) * _nd)

    return pl.pallas_call(
        _tdnn_stack_kernel,
        out_shape=jax.ShapeDtypeStruct((C, B, TDNN_OUT), jnp.float32),
        grid=(C,),
        in_specs=[pl.BlockSpec((1, B, T, D), lambda c: (c, 0, 0, 0))]
                 + [const_spec(a) for a in weight_args],
        out_specs=pl.BlockSpec((1, B, TDNN_OUT), lambda c: (c, 0, 0)),
        compiler_params=pltpu.CompilerParams(
            dimension_semantics=("parallel",)),  # channels independent (2 TCs on v7x)
    )(x, *weight_args)


# ----------------------------------------------------------------------------
# Kernel 2: fused 2-layer LSTM recurrence + 3-layer classifier head
# ----------------------------------------------------------------------------
def _lstm_classifier_kernel(seq_ref,
                            wih0_ref, whh0_ref, b0_ref,
                            wih1_ref, whh1_ref, b1_ref,
                            wc1_ref, bc1_ref, wc2_ref, bc2_ref, wc3_ref, bc3_ref,
                            logit_ref, hn_ref, cn_ref):
    seq_len, batch = seq_ref.shape[0], seq_ref.shape[1]
    H = whh0_ref.shape[0]

    whh0 = whh0_ref[...]
    wih1 = wih1_ref[...]
    whh1 = whh1_ref[...]
    b1 = b1_ref[...]

    # Layer-0 input projection hoisted off the serial recurrence (no h/c dep).
    wih0 = wih0_ref[...]
    b0 = b0_ref[...]
    gx0 = [jnp.dot(seq_ref[t], wih0, preferred_element_type=jnp.float32) + b0
           for t in range(seq_len)]

    def cell(gates, c_prev):
        # PyTorch gate order: i, f, g, o
        i = jax.nn.sigmoid(gates[:, 0:H])
        f = jax.nn.sigmoid(gates[:, H:2 * H])
        g = jnp.tanh(gates[:, 2 * H:3 * H])
        o = jax.nn.sigmoid(gates[:, 3 * H:4 * H])
        c_new = f * c_prev + i * g
        return o * jnp.tanh(c_new), c_new

    zeros = jnp.zeros((batch, H), jnp.float32)  # zero initial hidden state
    h0, c0, h1, c1 = zeros, zeros, zeros, zeros
    for t in range(seq_len):  # short static sequence (== num EEG channels): unrolled
        g0 = gx0[t] + jnp.dot(h0, whh0, preferred_element_type=jnp.float32)
        h0, c0 = cell(g0, c0)
        # TODO(synk): nn.LSTM inter-layer dropout(p=0.1) is stochastic; omitted (eval).
        g1 = (jnp.dot(h0, wih1, preferred_element_type=jnp.float32)
              + jnp.dot(h1, whh1, preferred_element_type=jnp.float32) + b1)
        h1, c1 = cell(g1, c1)

    # Classifier: Linear->Sigmoid->Dropout->Linear->Sigmoid->Linear, fused;
    # 32-wide intermediates never leave VMEM/vregs.
    z = jax.nn.sigmoid(jnp.dot(h1, wc1_ref[...], preferred_element_type=jnp.float32)
                       + bc1_ref[...])
    # TODO(synk): nn.Dropout(0.2) in the classifier is stochastic; omitted (eval).
    z = jax.nn.sigmoid(jnp.dot(z, wc2_ref[...], preferred_element_type=jnp.float32)
                       + bc2_ref[...])
    logit_ref[...] = (jnp.dot(z, wc3_ref[...], preferred_element_type=jnp.float32)
                      + bc3_ref[...])

    hn_ref[0] = h0
    hn_ref[1] = h1
    cn_ref[0] = c0
    cn_ref[1] = c1


def lstm_classifier(seq, params):
    """seq: (C, B, 256) time-major.  Returns (logit, h_n, c_n) in one pallas_call."""
    _, B, _ = seq.shape
    lp0, lp1 = params["lstm"]
    out_dim = params["cls3_wt"].shape[1]
    return pl.pallas_call(
        _lstm_classifier_kernel,
        out_shape=(jax.ShapeDtypeStruct((B, out_dim), jnp.float32),
                   jax.ShapeDtypeStruct((2, B, HIDDEN), jnp.float32),
                   jax.ShapeDtypeStruct((2, B, HIDDEN), jnp.float32)),
        in_specs=[VMEM_SPEC] * 13,
        out_specs=(VMEM_SPEC, VMEM_SPEC, VMEM_SPEC),
    )(seq, lp0["wih_t"], lp0["whh_t"], lp0["b"],
      lp1["wih_t"], lp1["whh_t"], lp1["b"],
      params["cls1_wt"], params["cls1_b"],
      params["cls2_wt"], params["cls2_b"],
      params["cls3_wt"], params["cls3_b"])


# ----------------------------------------------------------------------------
# Forward
# ----------------------------------------------------------------------------
def tdnn_lstm_forward(feat, params):
    """feat: (B, C, F, T) extracted features.  Returns (logit, (h_n, c_n))."""
    # Per-channel TDNN input is (B, T, F); lay out channel-major so the pooled
    # sequence comes out time-major (C, B, 256), ready for the LSTM (seq_len=C).
    x = jnp.transpose(feat, (1, 0, 3, 2))
    seq = tdnn_block(x, params)                       # (C, B, 256)
    logit, h_n, c_n = lstm_classifier(seq, params)
    return logit, (h_n, c_n)


# ----------------------------------------------------------------------------
# Parameters: pre-transposed weights / combined LSTM biases (hoisted to init)
# ----------------------------------------------------------------------------
def init_params(key, feat_dim, out_dim):
    keys = jax.random.split(key, 8)

    def lin_t(k, fan_in, fan_out):
        bound = 1.0 / (fan_in ** 0.5)
        kw, kb = jax.random.split(k)
        wt = jax.random.uniform(kw, (fan_in, fan_out), jnp.float32, -bound, bound)
        b = jax.random.uniform(kb, (1, fan_out), jnp.float32, -bound, bound)
        return wt, b

    p = {}
    for name, k, cin, cout in (("f1", keys[0], feat_dim * 2, TDNN_OUT),
                               ("f2", keys[1], TDNN_OUT * 4, TDNN_OUT),
                               ("f3", keys[2], TDNN_OUT * 1, TDNN_OUT)):
        wt, b = lin_t(k, cin, cout)
        p[name] = dict(wt=wt, b=b,
                       gamma=jnp.ones((1, cout), jnp.float32),
                       beta=jnp.zeros((1, cout), jnp.float32))

    lstm = []
    for layer, k in enumerate((keys[3], keys[4])):
        in_sz = TDNN_OUT if layer == 0 else HIDDEN
        k1, k2, k3, k4 = jax.random.split(k, 4)
        bound = 1.0 / (HIDDEN ** 0.5)
        wih_t = jax.random.uniform(k1, (in_sz, 4 * HIDDEN), jnp.float32, -bound, bound)
        whh_t = jax.random.uniform(k2, (HIDDEN, 4 * HIDDEN), jnp.float32, -bound, bound)
        b_ih = jax.random.uniform(k3, (4 * HIDDEN,), jnp.float32, -bound, bound)
        b_hh = jax.random.uniform(k4, (4 * HIDDEN,), jnp.float32, -bound, bound)
        lstm.append(dict(wih_t=wih_t, whh_t=whh_t,
                         b=(b_ih + b_hh).reshape(1, 4 * HIDDEN)))
    p["lstm"] = lstm

    p["cls1_wt"], p["cls1_b"] = lin_t(keys[5], HIDDEN, 32)
    p["cls2_wt"], p["cls2_b"] = lin_t(keys[6], 32, 32)
    p["cls3_wt"], p["cls3_b"] = lin_t(keys[7], 32, out_dim)
    return p


if __name__ == "__main__":
    B, C, Fd, T, OUT = 2, 4, 16, 16, 8  # batch, eeg channels, bands, frames, classes
    key = jax.random.PRNGKey(0)
    kx, kp = jax.random.split(key)
    feat = jax.random.normal(kx, (B, C, Fd, T), jnp.float32)
    params = init_params(kp, Fd, OUT)

    logit, (h_n, c_n) = jax.jit(tdnn_lstm_forward)(feat, params)
    jax.block_until_ready((logit, h_n, c_n))

    assert logit.shape == (B, OUT)
    assert h_n.shape == (2, B, HIDDEN) and c_n.shape == (2, B, HIDDEN)
    assert bool(jnp.all(jnp.isfinite(logit)))
    print("KERNEL_OK")
</pallas_src>

<mosaic_0001>
module attributes {stable_mosaic.version = 11 : i64} {
  func.func @_tdnn_stack_kernel(%arg0: i32, %arg1: memref<1x2x16x16xf32, #tpu.memory_space<vmem>>, %arg2: memref<32x256xf32, #tpu.memory_space<vmem>>, %arg3: memref<1x256xf32, #tpu.memory_space<vmem>>, %arg4: memref<1x256xf32, #tpu.memory_space<vmem>>, %arg5: memref<1x256xf32, #tpu.memory_space<vmem>>, %arg6: memref<1024x256xf32, #tpu.memory_space<vmem>>, %arg7: memref<1x256xf32, #tpu.memory_space<vmem>>, %arg8: memref<1x256xf32, #tpu.memory_space<vmem>>, %arg9: memref<1x256xf32, #tpu.memory_space<vmem>>, %arg10: memref<256x256xf32, #tpu.memory_space<vmem>>, %arg11: memref<1x256xf32, #tpu.memory_space<vmem>>, %arg12: memref<1x256xf32, #tpu.memory_space<vmem>>, %arg13: memref<1x256xf32, #tpu.memory_space<vmem>>, %arg14: memref<1x2x256xf32, #tpu.memory_space<vmem>>) attributes {dimension_semantics = [#tpu.dimension_semantics<parallel>], iteration_bounds = array<i64: 4>, scalar_prefetch = 0 : i64, scratch_operands = 0 : i64, tpu.core_type = #tpu.core_type<tc>, window_params = [{transform_indices = @transform_0, window_bounds = array<i64: 1, 2, 16, 16>}, {pipeline_mode = #tpu.pipeline_mode<synchronous>, transform_indices = @transform_1, window_bounds = array<i64: 32, 256>}, {pipeline_mode = #tpu.pipeline_mode<synchronous>, transform_indices = @transform_2, window_bounds = array<i64: 1, 256>}, {pipeline_mode = #tpu.pipeline_mode<synchronous>, transform_indices = @transform_3, window_bounds = array<i64: 1, 256>}, {pipeline_mode = #tpu.pipeline_mode<synchronous>, transform_indices = @transform_4, window_bounds = array<i64: 1, 256>}, {pipeline_mode = #tpu.pipeline_mode<synchronous>, transform_indices = @transform_5, window_bounds = array<i64: 1024, 256>}, {pipeline_mode = #tpu.pipeline_mode<synchronous>, transform_indices = @transform_6, window_bounds = array<i64: 1, 256>}, {pipeline_mode = #tpu.pipeline_mode<synchronous>, transform_indices = @transform_7, window_bounds = array<i64: 1, 256>}, {pipeline_mode = #tpu.pipeline_mode<synchronous>, transform_indices = @transform_8, window_bounds = array<i64: 1, 256>}, {pipeline_mode = #tpu.pipeline_mode<synchronous>, transform_indices = @transform_9, window_bounds = array<i64: 256, 256>}, {pipeline_mode = #tpu.pipeline_mode<synchronous>, transform_indices = @transform_10, window_bounds = array<i64: 1, 256>}, {pipeline_mode = #tpu.pipeline_mode<synchronous>, transform_indices = @transform_11, window_bounds = array<i64: 1, 256>}, {pipeline_mode = #tpu.pipeline_mode<synchronous>, transform_indices = @transform_12, window_bounds = array<i64: 1, 256>}, {transform_indices = @transform_13, window_bounds = array<i64: 1, 2, 256>}]} {
    %c0 = arith.constant 0 : index
    %c0_0 = arith.constant 0 : index
    %c0_1 = arith.constant 0 : index
    %c0_2 = arith.constant 0 : index
    %0 = vector.load %arg1[%c0, %c0_0, %c0_1, %c0_2] : memref<1x2x16x16xf32, #tpu.memory_space<vmem>>, vector<1x2x16x16xf32>
    %1 = vector.extract_strided_slice %0 {offsets = [0, 0, 0, 0], sizes = [1, 1, 16, 16], strides = [1, 1, 1, 1]} : vector<1x2x16x16xf32> to vector<1x1x16x16xf32>
    %2 = vector.shape_cast %1 : vector<1x1x16x16xf32> to vector<16x16xf32>
    %3 = vector.extract_strided_slice %0 {offsets = [0, 1, 0, 0], sizes = [1, 1, 16, 16], strides = [1, 1, 1, 1]} : vector<1x2x16x16xf32> to vector<1x1x16x16xf32>
    %4 = vector.shape_cast %3 : vector<1x1x16x16xf32> to vector<16x16xf32>
    %c0_3 = arith.constant 0 : index
    %c0_4 = arith.constant 0 : index
    %5 = vector.load %arg2[%c0_3, %c0_4] : memref<32x256xf32, #tpu.memory_space<vmem>>, vector<32x256xf32>
    %c0_5 = arith.constant 0 : index
    %c0_6 = arith.constant 0 : index
    %6 = vector.load %arg3[%c0_5, %c0_6] : memref<1x256xf32, #tpu.memory_space<vmem>>, vector<1x256xf32>
    %c0_7 = arith.constant 0 : index
    %c0_8 = arith.constant 0 : index
    %7 = vector.load %arg4[%c0_7, %c0_8] : memref<1x256xf32, #tpu.memory_space<vmem>>, vector<1x256xf32>
    %c0_9 = arith.constant 0 : index
    %c0_10 = arith.constant 0 : index
    %8 = vector.load %arg5[%c0_9, %c0_10] : memref<1x256xf32, #tpu.memory_space<vmem>>, vector<1x256xf32>
    %9 = vector.extract_strided_slice %2 {offsets = [0, 0], sizes = [15, 16], strides = [1, 1]} : vector<16x16xf32> to vector<15x16xf32>
    %10 = vector.extract_strided_slice %5 {offsets = [0, 0], sizes = [16, 256], strides = [1, 1]} : vector<32x256xf32> to vector<16x256xf32>
    %cst = arith.constant dense<0.000000e+00> : vector<15x256xf32>
    %11 = tpu.matmul %9, %10, %cst {dimension_numbers = #tpu.dot_dimension_numbers<[1], [0], [0], [1], [0, 0, 1, 1], [], []>} : vector<15x16xf32>, vector<16x256xf32>, vector<15x256xf32> -> vector<15x256xf32>
    %12 = vector.broadcast %6 : vector<1x256xf32> to vector<15x256xf32>
    %13 = arith.addf %12, %11 : vector<15x256xf32>
    %14 = vector.extract_strided_slice %2 {offsets = [1, 0], sizes = [15, 16], strides = [1, 1]} : vector<16x16xf32> to vector<15x16xf32>
    %15 = vector.extract_strided_slice %5 {offsets = [16, 0], sizes = [16, 256], strides = [1, 1]} : vector<32x256xf32> to vector<16x256xf32>
    %cst_11 = arith.constant dense<0.000000e+00> : vector<15x256xf32>
    %16 = tpu.matmul %14, %15, %cst_11 {dimension_numbers = #tpu.dot_dimension_numbers<[1], [0], [0], [1], [0, 0, 1, 1], [], []>} : vector<15x16xf32>, vector<16x256xf32>, vector<15x256xf32> -> vector<15x256xf32>
    %17 = arith.addf %13, %16 : vector<15x256xf32>
    %18 = vector.extract_strided_slice %4 {offsets = [0, 0], sizes = [15, 16], strides = [1, 1]} : vector<16x16xf32> to vector<15x16xf32>
    %19 = vector.extract_strided_slice %5 {offsets = [0, 0], sizes = [16, 256], strides = [1, 1]} : vector<32x256xf32> to vector<16x256xf32>
    %cst_12 = arith.constant dense<0.000000e+00> : vector<15x256xf32>
    %20 = tpu.matmul %18, %19, %cst_12 {dimension_numbers = #tpu.dot_dimension_numbers<[1], [0], [0], [1], [0, 0, 1, 1], [], []>} : vector<15x16xf32>, vector<16x256xf32>, vector<15x256xf32> -> vector<15x256xf32>
    %21 = vector.broadcast %6 : vector<1x256xf32> to vector<15x256xf32>
    %22 = arith.addf %21, %20 : vector<15x256xf32>
    %23 = vector.extract_strided_slice %4 {offsets = [1, 0], sizes = [15, 16], strides = [1, 1]} : vector<16x16xf32> to vector<15x16xf32>
    %24 = vector.extract_strided_slice %5 {offsets = [16, 0], sizes = [16, 256], strides = [1, 1]} : vector<32x256xf32> to vector<16x256xf32>
    %cst_13 = arith.constant dense<0.000000e+00> : vector<15x256xf32>
    %25 = tpu.matmul %23, %24, %cst_13 {dimension_numbers = #tpu.dot_dimension_numbers<[1], [0], [0], [1], [0, 0, 1, 1], [], []>} : vector<15x16xf32>, vector<16x256xf32>, vector<15x256xf32> -> vector<15x256xf32>
    %26 = arith.addf %22, %25 : vector<15x256xf32>
    %cst_14 = arith.constant dense<0.000000e+00> : vector<256xf32>
    %27 = vector.multi_reduction <add>, %17, %cst_14 [0] : vector<15x256xf32> to vector<256xf32>
    %28 = vector.shape_cast %27 : vector<256xf32> to vector<1x256xf32>
    %cst_15 = arith.constant 0.000000e+00 : f32
    %29 = vector.broadcast %cst_15 : f32 to vector<1x256xf32>
    %30 = arith.addf %29, %28 : vector<1x256xf32>
    %cst_16 = arith.constant dense<0.000000e+00> : vector<256xf32>
    %31 = vector.multi_reduction <add>, %26, %cst_16 [0] : vector<15x256xf32> to vector<256xf32>
    %32 = vector.shape_cast %31 : vector<256xf32> to vector<1x256xf32>
    %33 = arith.addf %30, %32 : vector<1x256xf32>
    %cst_17 = arith.constant 3.000000e+01 : f32
    %34 = vector.broadcast %cst_17 : f32 to vector<1x256xf32>
    %35 = arith.divf %33, %34 : vector<1x256xf32>
    %36 = vector.broadcast %35 : vector<1x256xf32> to vector<15x256xf32>
    %37 = arith.subf %17, %36 : vector<15x256xf32>
    %38 = arith.mulf %37, %37 : vector<15x256xf32>
    %cst_18 = arith.constant dense<0.000000e+00> : vector<256xf32>
    %39 = vector.multi_reduction <add>, %38, %cst_18 [0] : vector<15x256xf32> to vector<256xf32>
    %40 = vector.shape_cast %39 : vector<256xf32> to vector<1x256xf32>
    %cst_19 = arith.constant 0.000000e+00 : f32
    %41 = vector.broadcast %cst_19 : f32 to vector<1x256xf32>
    %42 = arith.addf %41, %40 : vector<1x256xf32>
    %43 = vector.broadcast %35 : vector<1x256xf32> to vector<15x256xf32>
    %44 = arith.subf %26, %43 : vector<15x256xf32>
    %45 = arith.mulf %44, %44 : vector<15x256xf32>
    %cst_20 = arith.constant dense<0.000000e+00> : vector<256xf32>
    %46 = vector.multi_reduction <add>, %45, %cst_20 [0] : vector<15x256xf32> to vector<256xf32>
    %47 = vector.shape_cast %46 : vector<256xf32> to vector<1x256xf32>
    %48 = arith.addf %42, %47 : vector<1x256xf32>
    %cst_21 = arith.constant 3.000000e+01 : f32
    %49 = vector.broadcast %cst_21 : f32 to vector<1x256xf32>
    %50 = arith.divf %48, %49 : vector<1x256xf32>
    %cst_22 = arith.constant 9.99999974E-6 : f32
    %51 = vector.broadcast %cst_22 : f32 to vector<1x256xf32>
    %52 = arith.addf %50, %51 : vector<1x256xf32>
    %53 = math.rsqrt %52 : vector<1x256xf32>
    %54 = arith.mulf %53, %7 : vector<1x256xf32>
    %55 = vector.broadcast %35 : vector<1x256xf32> to vector<15x256xf32>
    %56 = arith.subf %17, %55 : vector<15x256xf32>
    %57 = vector.broadcast %54 : vector<1x256xf32> to vector<15x256xf32>
    %58 = arith.mulf %56, %57 : vector<15x256xf32>
    %59 = vector.broadcast %8 : vector<1x256xf32> to vector<15x256xf32>
    %60 = arith.addf %58, %59 : vector<15x256xf32>
    %cst_23 = arith.constant 0.000000e+00 : f32
    %61 = vector.broadcast %cst_23 : f32 to vector<15x256xf32>
    %62 = arith.maximumf %60, %61 : vector<15x256xf32>
    %63 = vector.broadcast %35 : vector<1x256xf32> to vector<15x256xf32>
    %64 = arith.subf %26, %63 : vector<15x256xf32>
    %65 = vector.broadcast %54 : vector<1x256xf32> to vector<15x256xf32>
    %66 = arith.mulf %64, %65 : vector<15x256xf32>
    %67 = vector.broadcast %8 : vector<1x256xf32> to vector<15x256xf32>
    %68 = arith.addf %66, %67 : vector<15x256xf32>
    %cst_24 = arith.constant 0.000000e+00 : f32
    %69 = vector.broadcast %cst_24 : f32 to vector<15x256xf32>
    %70 = arith.maximumf %68, %69 : vector<15x256xf32>
    %c0_25 = arith.constant 0 : index
    %c0_26 = arith.constant 0 : index
    %71 = vector.load %arg6[%c0_25, %c0_26] : memref<1024x256xf32, #tpu.memory_space<vmem>>, vector<1024x256xf32>
    %c0_27 = arith.constant 0 : index
    %c0_28 = arith.constant 0 : index
    %72 = vector.load %arg7[%c0_27, %c0_28] : memref<1x256xf32, #tpu.memory_space<vmem>>, vector<1x256xf32>
    %c0_29 = arith.constant 0 : index
    %c0_30 = arith.constant 0 : index
    %73 = vector.load %arg8[%c0_29, %c0_30] : memref<1x256xf32, #tpu.memory_space<vmem>>, vector<1x256xf32>
    %c0_31 = arith.constant 0 : index
    %c0_32 = arith.constant 0 : index
    %74 = vector.load %arg9[%c0_31, %c0_32] : memref<1x256xf32, #tpu.memory_space<vmem>>, vector<1x256xf32>
    %75 = vector.extract_strided_slice %62 {offsets = [0, 0], sizes = [9, 256], strides = [1, 1]} : vector<15x256xf32> to vector<9x256xf32>
    %76 = vector.extract_strided_slice %71 {offsets = [0, 0], sizes = [256, 256], strides = [1, 1]} : vector<1024x256xf32> to vector<256x256xf32>
    %cst_33 = arith.constant dense<0.000000e+00> : vector<9x256xf32>
    %77 = tpu.matmul %75, %76, %cst_33 {dimension_numbers = #tpu.dot_dimension_numbers<[1], [0], [0], [1], [0, 0, 1, 1], [], []>} : vector<9x256xf32>, vector<256x256xf32>, vector<9x256xf32> -> vector<9x256xf32>
    %78 = vector.broadcast %72 : vector<1x256xf32> to vector<9x256xf32>
    %79 = arith.addf %78, %77 : vector<9x256xf32>
    %80 = vector.extract_strided_slice %62 {offsets = [2, 0], sizes = [9, 256], strides = [1, 1]} : vector<15x256xf32> to vector<9x256xf32>
    %81 = vector.extract_strided_slice %71 {offsets = [256, 0], sizes = [256, 256], strides = [1, 1]} : vector<1024x256xf32> to vector<256x256xf32>
    %cst_34 = arith.constant dense<0.000000e+00> : vector<9x256xf32>
    %82 = tpu.matmul %80, %81, %cst_34 {dimension_numbers = #tpu.dot_dimension_numbers<[1], [0], [0], [1], [0, 0, 1, 1], [], []>} : vector<9x256xf32>, vector<256x256xf32>, vector<9x256xf32> -> vector<9x256xf32>
    %83 = arith.addf %79, %82 : vector<9x256xf32>
    %84 = vector.extract_strided_slice %62 {offsets = [4, 0], sizes = [9, 256], strides = [1, 1]} : vector<15x256xf32> to vector<9x256xf32>
    %85 = vector.extract_strided_slice %71 {offsets = [512, 0], sizes = [256, 256], strides = [1, 1]} : vector<1024x256xf32> to vector<256x256xf32>
    %cst_35 = arith.constant dense<0.000000e+00> : vector<9x256xf32>
    %86 = tpu.matmul %84, %85, %cst_35 {dimension_numbers = #tpu.dot_dimension_numbers<[1], [0], [0], [1], [0, 0, 1, 1], [], []>} : vector<9x256xf32>, vector<256x256xf32>, vector<9x256xf32> -> vector<9x256xf32>
    %87 = arith.addf %83, %86 : vector<9x256xf32>
    %88 = vector.extract_strided_slice %62 {offsets = [6, 0], sizes = [9, 256], strides = [1, 1]} : vector<15x256xf32> to vector<9x256xf32>
    %89 = vector.extract_strided_slice %71 {offsets = [768, 0], sizes = [256, 256], strides = [1, 1]} : vector<1024x256xf32> to vector<256x256xf32>
    %cst_36 = arith.constant dense<0.000000e+00> : vector<9x256xf32>
    %90 = tpu.matmul %88, %89, %cst_36 {dimension_numbers = #tpu.dot_dimension_numbers<[1], [0], [0], [1], [0, 0, 1, 1], [], []>} : vector<9x256xf32>, vector<256x256xf32>, vector<9x256xf32> -> vector<9x256xf32>
    %91 = arith.addf %87, %90 : vector<9x256xf32>
    %92 = vector.extract_strided_slice %70 {offsets = [0, 0], sizes = [9, 256], strides = [1, 1]} : vector<15x256xf32> to vector<9x256xf32>
    %93 = vector.extract_strided_slice %71 {offsets = [0, 0], sizes = [256, 256], strides = [1, 1]} : vector<1024x256xf32> to vector<256x256xf32>
    %cst_37 = arith.constant dense<0.000000e+00> : vector<9x256xf32>
    %94 = tpu.matmul %92, %93, %cst_37 {dimension_numbers = #tpu.dot_dimension_numbers<[1], [0], [0], [1], [0, 0, 1, 1], [], []>} : vector<9x256xf32>, vector<256x256xf32>, vector<9x256xf32> -> vector<9x256xf32>
    %95 = vector.broadcast %72 : vector<1x256xf32> to vector<9x256xf32>
    %96 = arith.addf %95, %94 : vector<9x256xf32>
    %97 = vector.extract_strided_slice %70 {offsets = [2, 0], sizes = [9, 256], strides = [1, 1]} : vector<15x256xf32> to vector<9x256xf32>
    %98 = vector.extract_strided_slice %71 {offsets = [256, 0], sizes = [256, 256], strides = [1, 1]} : vector<1024x256xf32> to vector<256x256xf32>
    %cst_38 = arith.constant dense<0.000000e+00> : vector<9x256xf32>
    %99 = tpu.matmul %97, %98, %cst_38 {dimension_numbers = #tpu.dot_dimension_numbers<[1], [0], [0], [1], [0, 0, 1, 1], [], []>} : vector<9x256xf32>, vector<256x256xf32>, vector<9x256xf32> -> vector<9x256xf32>
    %100 = arith.addf %96, %99 : vector<9x256xf32>
    %101 = vector.extract_strided_slice %70 {offsets = [4, 0], sizes = [9, 256], strides = [1, 1]} : vector<15x256xf32> to vector<9x256xf32>
    %102 = vector.extract_strided_slice %71 {offsets = [512, 0], sizes = [256, 256], strides = [1, 1]} : vector<1024x256xf32> to vector<256x256xf32>
    %cst_39 = arith.constant dense<0.000000e+00> : vector<9x256xf32>
    %103 = tpu.matmul %101, %102, %cst_39 {dimension_numbers = #tpu.dot_dimension_numbers<[1], [0], [0], [1], [0, 0, 1, 1], [], []>} : vector<9x256xf32>, vector<256x256xf32>, vector<9x256xf32> -> vector<9x256xf32>
    %104 = arith.addf %100, %103 : vector<9x256xf32>
    %105 = vector.extract_strided_slice %70 {offsets = [6, 0], sizes = [9, 256], strides = [1, 1]} : vector<15x256xf32> to vector<9x256xf32>
    %106 = vector.extract_strided_slice %71 {offsets = [768, 0], sizes = [256, 256], strides = [1, 1]} : vector<1024x256xf32> to vector<256x256xf32>
    %cst_40 = arith.constant dense<0.000000e+00> : vector<9x256xf32>
    %107 = tpu.matmul %105, %106, %cst_40 {dimension_numbers = #tpu.dot_dimension_numbers<[1], [0], [0], [1], [0, 0, 1, 1], [], []>} : vector<9x256xf32>, vector<256x256xf32>, vector<9x256xf32> -> vector<9x256xf32>
    %108 = arith.addf %104, %107 : vector<9x256xf32>
    %cst_41 = arith.constant dense<0.000000e+00> : vector<256xf32>
    %109 = vector.multi_reduction <add>, %91, %cst_41 [0] : vector<9x256xf32> to vector<256xf32>
    %110 = vector.shape_cast %109 : vector<256xf32> to vector<1x256xf32>
    %cst_42 = arith.constant 0.000000e+00 : f32
    %111 = vector.broadcast %cst_42 : f32 to vector<1x256xf32>
    %112 = arith.addf %111, %110 : vector<1x256xf32>
    %cst_43 = arith.constant dense<0.000000e+00> : vector<256xf32>
    %113 = vector.multi_reduction <add>, %108, %cst_43 [0] : vector<9x256xf32> to vector<256xf32>
    %114 = vector.shape_cast %113 : vector<256xf32> to vector<1x256xf32>
    %115 = arith.addf %112, %114 : vector<1x256xf32>
    %cst_44 = arith.constant 1.800000e+01 : f32
    %116 = vector.broadcast %cst_44 : f32 to vector<1x256xf32>
    %117 = arith.divf %115, %116 : vector<1x256xf32>
    %118 = vector.broadcast %117 : vector<1x256xf32> to vector<9x256xf32>
    %119 = arith.subf %91, %118 : vector<9x256xf32>
    %120 = arith.mulf %119, %119 : vector<9x256xf32>
    %cst_45 = arith.constant dense<0.000000e+00> : vector<256xf32>
    %121 = vector.multi_reduction <add>, %120, %cst_45 [0] : vector<9x256xf32> to vector<256xf32>
    %122 = vector.shape_cast %121 : vector<256xf32> to vector<1x256xf32>
    %cst_46 = arith.constant 0.000000e+00 : f32
    %123 = vector.broadcast %cst_46 : f32 to vector<1x256xf32>
    %124 = arith.addf %123, %122 : vector<1x256xf32>
    %125 = vector.broadcast %117 : vector<1x256xf32> to vector<9x256xf32>
    %126 = arith.subf %108, %125 : vector<9x256xf32>
    %127 = arith.mulf %126, %126 : vector<9x256xf32>
    %cst_47 = arith.constant dense<0.000000e+00> : vector<256xf32>
    %128 = vector.multi_reduction <add>, %127, %cst_47 [0] : vector<9x256xf32> to vector<256xf32>
    %129 = vector.shape_cast %128 : vector<256xf32> to vector<1x256xf32>
    %130 = arith.addf %124, %129 : vector<1x256xf32>
    %cst_48 = arith.constant 1.800000e+01 : f32
    %131 = vector.broadcast %cst_48 : f32 to vector<1x256xf32>
    %132 = arith.divf %130, %131 : vector<1x256xf32>
    %cst_49 = arith.constant 9.99999974E-6 : f32
    %133 = vector.broadcast %cst_49 : f32 to vector<1x256xf32>
    %134 = arith.addf %132, %133 : vector<1x256xf32>
    %135 = math.rsqrt %134 : vector<1x256xf32>
    %136 = arith.mulf %135, %73 : vector<1x256xf32>
    %137 = vector.broadcast %117 : vector<1x256xf32> to vector<9x256xf32>
    %138 = arith.subf %91, %137 : vector<9x256xf32>
    %139 = vector.broadcast %136 : vector<1x256xf32> to vector<9x256xf32>
    %140 = arith.mulf %138, %139 : vector<9x256xf32>
    %141 = vector.broadcast %74 : vector<1x256xf32> to vector<9x256xf32>
    %142 = arith.addf %140, %141 : vector<9x256xf32>
    %cst_50 = arith.constant 0.000000e+00 : f32
    %143 = vector.broadcast %cst_50 : f32 to vector<9x256xf32>
    %144 = arith.maximumf %142, %143 : vector<9x256xf32>
    %145 = vector.broadcast %117 : vector<1x256xf32> to vector<9x256xf32>
    %146 = arith.subf %108, %145 : vector<9x256xf32>
    %147 = vector.broadcast %136 : vector<1x256xf32> to vector<9x256xf32>
    %148 = arith.mulf %146, %147 : vector<9x256xf32>
    %149 = vector.broadcast %74 : vector<1x256xf32> to vector<9x256xf32>
    %150 = arith.addf %148, %149 : vector<9x256xf32>
    %cst_51 = arith.constant 0.000000e+00 : f32
    %151 = vector.broadcast %cst_51 : f32 to vector<9x256xf32>
    %152 = arith.maximumf %150, %151 : vector<9x256xf32>
    %c0_52 = arith.constant 0 : index
    %c0_53 = arith.constant 0 : index
    %153 = vector.load %arg10[%c0_52, %c0_53] : memref<256x256xf32, #tpu.memory_space<vmem>>, vector<256x256xf32>
    %c0_54 = arith.constant 0 : index
    %c0_55 = arith.constant 0 : index
    %154 = vector.load %arg11[%c0_54, %c0_55] : memref<1x256xf32, #tpu.memory_space<vmem>>, vector<1x256xf32>
    %c0_56 = arith.constant 0 : index
    %c0_57 = arith.constant 0 : index
    %155 = vector.load %arg12[%c0_56, %c0_57] : memref<1x256xf32, #tpu.memory_space<vmem>>, vector<1x256xf32>
    %c0_58 = arith.constant 0 : index
    %c0_59 = arith.constant 0 : index
    %156 = vector.load %arg13[%c0_58, %c0_59] : memref<1x256xf32, #tpu.memory_space<vmem>>, vector<1x256xf32>
    %cst_60 = arith.constant dense<0.000000e+00> : vector<9x256xf32>
    %157 = tpu.matmul %144, %153, %cst_60 {dimension_numbers = #tpu.dot_dimension_numbers<[1], [0], [0], [1], [0, 0, 1, 1], [], []>} : vector<9x256xf32>, vector<256x256xf32>, vector<9x256xf32> -> vector<9x256xf32>
    %158 = vector.broadcast %154 : vector<1x256xf32> to vector<9x256xf32>
    %159 = arith.addf %158, %157 : vector<9x256xf32>
    %cst_61 = arith.constant dense<0.000000e+00> : vector<9x256xf32>
    %160 = tpu.matmul %152, %153, %cst_61 {dimension_numbers = #tpu.dot_dimension_numbers<[1], [0], [0], [1], [0, 0, 1, 1], [], []>} : vector<9x256xf32>, vector<256x256xf32>, vector<9x256xf32> -> vector<9x256xf32>
    %161 = vector.broadcast %154 : vector<1x256xf32> to vector<9x256xf32>
    %162 = arith.addf %161, %160 : vector<9x256xf32>
    %cst_62 = arith.constant dense<0.000000e+00> : vector<256xf32>
    %163 = vector.multi_reduction <add>, %159, %cst_62 [0] : vector<9x256xf32> to vector<256xf32>
    %164 = vector.shape_cast %163 : vector<256xf32> to vector<1x256xf32>
    %cst_63 = arith.constant 0.000000e+00 : f32
    %165 = vector.broadcast %cst_63 : f32 to vector<1x256xf32>
    %166 = arith.addf %165, %164 : vector<1x256xf32>
    %cst_64 = arith.constant dense<0.000000e+00> : vector<256xf32>
    %167 = vector.multi_reduction <add>, %162, %cst_64 [0] : vector<9x256xf32> to vector<256xf32>
    %168 = vector.shape_cast %167 : vector<256xf32> to vector<1x256xf32>
    %169 = arith.addf %166, %168 : vector<1x256xf32>
    %cst_65 = arith.constant 1.800000e+01 : f32
    %170 = vector.broadcast %cst_65 : f32 to vector<1x256xf32>
    %171 = arith.divf %169, %170 : vector<1x256xf32>
    %172 = vector.broadcast %171 : vector<1x256xf32> to vector<9x256xf32>
    %173 = arith.subf %159, %172 : vector<9x256xf32>
    %174 = arith.mulf %173, %173 : vector<9x256xf32>
    %cst_66 = arith.constant dense<0.000000e+00> : vector<256xf32>
    %175 = vector.multi_reduction <add>, %174, %cst_66 [0] : vector<9x256xf32> to vector<256xf32>
    %176 = vector.shape_cast %175 : vector<256xf32> to vector<1x256xf32>
    %cst_67 = arith.constant 0.000000e+00 : f32
    %177 = vector.broadcast %cst_67 : f32 to vector<1x256xf32>
    %178 = arith.addf %177, %176 : vector<1x256xf32>
    %179 = vector.broadcast %171 : vector<1x256xf32> to vector<9x256xf32>
    %180 = arith.subf %162, %179 : vector<9x256xf32>
    %181 = arith.mulf %180, %180 : vector<9x256xf32>
    %cst_68 = arith.constant dense<0.000000e+00> : vector<256xf32>
    %182 = vector.multi_reduction <add>, %181, %cst_68 [0] : vector<9x256xf32> to vector<256xf32>
    %183 = vector.shape_cast %182 : vector<256xf32> to vector<1x256xf32>
    %184 = arith.addf %178, %183 : vector<1x256xf32>
    %cst_69 = arith.constant 1.800000e+01 : f32
    %185 = vector.broadcast %cst_69 : f32 to vector<1x256xf32>
    %186 = arith.divf %184, %185 : vector<1x256xf32>
    %cst_70 = arith.constant 9.99999974E-6 : f32
    %187 = vector.broadcast %cst_70 : f32 to vector<1x256xf32>
    %188 = arith.addf %186, %187 : vector<1x256xf32>
    %189 = math.rsqrt %188 : vector<1x256xf32>
    %190 = arith.mulf %189, %155 : vector<1x256xf32>
    %191 = vector.broadcast %171 : vector<1x256xf32> to vector<9x256xf32>
    %192 = arith.subf %159, %191 : vector<9x256xf32>
    %193 = vector.broadcast %190 : vector<1x256xf32> to vector<9x256xf32>
    %194 = arith.mulf %192, %193 : vector<9x256xf32>
    %195 = vector.broadcast %156 : vector<1x256xf32> to vector<9x256xf32>
    %196 = arith.addf %194, %195 : vector<9x256xf32>
    %cst_71 = arith.constant 0.000000e+00 : f32
    %197 = vector.broadcast %cst_71 : f32 to vector<9x256xf32>
    %198 = arith.maximumf %196, %197 : vector<9x256xf32>
    %199 = vector.broadcast %171 : vector<1x256xf32> to vector<9x256xf32>
    %200 = arith.subf %162, %199 : vector<9x256xf32>
    %201 = vector.broadcast %190 : vector<1x256xf32> to vector<9x256xf32>
    %202 = arith.mulf %200, %201 : vector<9x256xf32>
    %203 = vector.broadcast %156 : vector<1x256xf32> to vector<9x256xf32>
    %204 = arith.addf %202, %203 : vector<9x256xf32>
    %cst_72 = arith.constant 0.000000e+00 : f32
    %205 = vector.broadcast %cst_72 : f32 to vector<9x256xf32>
    %206 = arith.maximumf %204, %205 : vector<9x256xf32>
    %cst_73 = arith.constant dense<0.000000e+00> : vector<256xf32>
    %207 = vector.multi_reduction <add>, %198, %cst_73 [0] : vector<9x256xf32> to vector<256xf32>
    %208 = vector.shape_cast %207 : vector<256xf32> to vector<1x256xf32>
    %cst_74 = arith.constant 9.000000e+00 : f32
    %209 = vector.broadcast %cst_74 : f32 to vector<1x256xf32>
    %210 = arith.divf %208, %209 : vector<1x256xf32>
    %cst_75 = arith.constant dense<0.000000e+00> : vector<256xf32>
    %211 = vector.multi_reduction <add>, %206, %cst_75 [0] : vector<9x256xf32> to vector<256xf32>
    %212 = vector.shape_cast %211 : vector<256xf32> to vector<1x256xf32>
    %cst_76 = arith.constant 9.000000e+00 : f32
    %213 = vector.broadcast %cst_76 : f32 to vector<1x256xf32>
    %214 = arith.divf %212, %213 : vector<1x256xf32>
    %215 = tpu.concatenate %210, %214 in 0 : vector<1x256xf32>, vector<1x256xf32> -> vector<2x256xf32>
    %c0_77 = arith.constant 0 : index
    %c0_78 = arith.constant 0 : index
    %c0_79 = arith.constant 0 : index
    %216 = vector.load %arg14[%c0_77, %c0_78, %c0_79] : memref<1x2x256xf32, #tpu.memory_space<vmem>>, vector<1x2x256xf32>
    %217 = vector.shape_cast %216 : vector<1x2x256xf32> to vector<2x256xf32>
    %218 = vector.shape_cast %215 : vector<2x256xf32> to vector<1x2x256xf32>
    tpu.vector_store %arg14[%c0_77, %c0_78, %c0_79], %218 {strides = array<i32>} : memref<1x2x256xf32, #tpu.memory_space<vmem>>, vector<1x2x256xf32>,
    return
  }
  func.func @transform_0(%arg0: i32) -> (i32, i32, i32, i32) {
    %c0_i32 = arith.constant 0 : i32
    %c0_i32_0 = arith.constant 0 : i32
    %c0_i32_1 = arith.constant 0 : i32
    %c0_i32_2 = arith.constant 0 : i32
    return %arg0, %c0_i32, %c0_i32_0, %c0_i32_1 : i32, i32, i32, i32
  }
  func.func @transform_1(%arg0: i32) -> (i32, i32) {
    %c0_i32 = arith.constant 0 : i32
    %c0_i32_0 = arith.constant 0 : i32
    %c0_i32_1 = arith.constant 0 : i32
    return %c0_i32, %c0_i32_0 : i32, i32
  }
  func.func @transform_2(%arg0: i32) -> (i32, i32) {
    %c0_i32 = arith.constant 0 : i32
    %c0_i32_0 = arith.constant 0 : i32
    %c0_i32_1 = arith.constant 0 : i32
    return %c0_i32, %c0_i32_0 : i32, i32
  }
  func.func @transform_3(%arg0: i32) -> (i32, i32) {
    %c0_i32 = arith.constant 0 : i32
    %c0_i32_0 = arith.constant 0 : i32
    %c0_i32_1 = arith.constant 0 : i32
    return %c0_i32, %c0_i32_0 : i32, i32
  }
  func.func @transform_4(%arg0: i32) -> (i32, i32) {
    %c0_i32 = arith.constant 0 : i32
    %c0_i32_0 = arith.constant 0 : i32
    %c0_i32_1 = arith.constant 0 : i32
    return %c0_i32, %c0_i32_0 : i32, i32
  }
  func.func @transform_5(%arg0: i32) -> (i32, i32) {
    %c0_i32 = arith.constant 0 : i32
    %c0_i32_0 = arith.constant 0 : i32
    %c0_i32_1 = arith.constant 0 : i32
    return %c0_i32, %c0_i32_0 : i32, i32
  }
  func.func @transform_6(%arg0: i32) -> (i32, i32) {
    %c0_i32 = arith.constant 0 : i32
    %c0_i32_0 = arith.constant 0 : i32
    %c0_i32_1 = arith.constant 0 : i32
    return %c0_i32, %c0_i32_0 : i32, i32
  }
  func.func @transform_7(%arg0: i32) -> (i32, i32) {
    %c0_i32 = arith.constant 0 : i32
    %c0_i32_0 = arith.constant 0 : i32
    %c0_i32_1 = arith.constant 0 : i32
    return %c0_i32, %c0_i32_0 : i32, i32
  }
  func.func @transform_8(%arg0: i32) -> (i32, i32) {
    %c0_i32 = arith.constant 0 : i32
    %c0_i32_0 = arith.constant 0 : i32
    %c0_i32_1 = arith.constant 0 : i32
    return %c0_i32, %c0_i32_0 : i32, i32
  }
  func.func @transform_9(%arg0: i32) -> (i32, i32) {
    %c0_i32 = arith.constant 0 : i32
    %c0_i32_0 = arith.constant 0 : i32
    %c0_i32_1 = arith.constant 0 : i32
    return %c0_i32, %c0_i32_0 : i32, i32
  }
  func.func @transform_10(%arg0: i32) -> (i32, i32) {
    %c0_i32 = arith.constant 0 : i32
    %c0_i32_0 = arith.constant 0 : i32
    %c0_i32_1 = arith.constant 0 : i32
    return %c0_i32, %c0_i32_0 : i32, i32
  }
  func.func @transform_11(%arg0: i32) -> (i32, i32) {
    %c0_i32 = arith.constant 0 : i32
    %c0_i32_0 = arith.constant 0 : i32
    %c0_i32_1 = arith.constant 0 : i32
    return %c0_i32, %c0_i32_0 : i32, i32
  }
  func.func @transform_12(%arg0: i32) -> (i32, i32) {
    %c0_i32 = arith.constant 0 : i32
    %c0_i32_0 = arith.constant 0 : i32
    %c0_i32_1 = arith.constant 0 : i32
    return %c0_i32, %c0_i32_0 : i32, i32
  }
  func.func @transform_13(%arg0: i32) -> (i32, i32, i32) {
    %c0_i32 = arith.constant 0 : i32
    %c0_i32_0 = arith.constant 0 : i32
    %c0_i32_1 = arith.constant 0 : i32
    return %arg0, %c0_i32, %c0_i32_0 : i32, i32, i32
  }
}

module attributes {stable_mosaic.version = 11 : i64} {
  func.func @_lstm_classifier_kernel(%arg0: memref<4x2x256xf32, #tpu.memory_space<vmem>>, %arg1: memref<256x512xf32, #tpu.memory_space<vmem>>, %arg2: memref<128x512xf32, #tpu.memory_space<vmem>>, %arg3: memref<1x512xf32, #tpu.memory_space<vmem>>, %arg4: memref<128x512xf32, #tpu.memory_space<vmem>>, %arg5: memref<128x512xf32, #tpu.memory_space<vmem>>, %arg6: memref<1x512xf32, #tpu.memory_space<vmem>>, %arg7: memref<128x32xf32, #tpu.memory_space<vmem>>, %arg8: memref<1x32xf32, #tpu.memory_space<vmem>>, %arg9: memref<32x32xf32, #tpu.memory_space<vmem>>, %arg10: memref<1x32xf32, #tpu.memory_space<vmem>>, %arg11: memref<32x8xf32, #tpu.memory_space<vmem>>, %arg12: memref<1x8xf32, #tpu.memory_space<vmem>>, %arg13: memref<2x8xf32, #tpu.memory_space<vmem>>, %arg14: memref<2x2x128xf32, #tpu.memory_space<vmem>>, %arg15: memref<2x2x128xf32, #tpu.memory_space<vmem>>) attributes {dimension_semantics = [], scalar_prefetch = 0 : i64, scratch_operands = 0 : i64, tpu.core_type = #tpu.core_type<tc>} {
    %c0 = arith.constant 0 : index
    %c0_0 = arith.constant 0 : index
    %0 = vector.load %arg2[%c0, %c0_0] : memref<128x512xf32, #tpu.memory_space<vmem>>, vector<128x512xf32>
    %c0_1 = arith.constant 0 : index
    %c0_2 = arith.constant 0 : index
    %1 = vector.load %arg4[%c0_1, %c0_2] : memref<128x512xf32, #tpu.memory_space<vmem>>, vector<128x512xf32>
    %c0_3 = arith.constant 0 : index
    %c0_4 = arith.constant 0 : index
    %2 = vector.load %arg5[%c0_3, %c0_4] : memref<128x512xf32, #tpu.memory_space<vmem>>, vector<128x512xf32>
    %c0_5 = arith.constant 0 : index
    %c0_6 = arith.constant 0 : index
    %3 = vector.load %arg6[%c0_5, %c0_6] : memref<1x512xf32, #tpu.memory_space<vmem>>, vector<1x512xf32>
    %c0_7 = arith.constant 0 : index
    %c0_8 = arith.constant 0 : index
    %4 = vector.load %arg1[%c0_7, %c0_8] : memref<256x512xf32, #tpu.memory_space<vmem>>, vector<256x512xf32>
    %c0_9 = arith.constant 0 : index
    %c0_10 = arith.constant 0 : index
    %5 = vector.load %arg3[%c0_9, %c0_10] : memref<1x512xf32, #tpu.memory_space<vmem>>, vector<1x512xf32>
    %c0_11 = arith.constant 0 : index
    %c0_12 = arith.constant 0 : index
    %c0_13 = arith.constant 0 : index
    %6 = vector.load %arg0[%c0_11, %c0_12, %c0_13] : memref<4x2x256xf32, #tpu.memory_space<vmem>>, vector<1x2x256xf32>
    %7 = vector.shape_cast %6 : vector<1x2x256xf32> to vector<2x256xf32>
    %cst = arith.constant dense<0.000000e+00> : vector<2x512xf32>
    %8 = tpu.matmul %7, %4, %cst {dimension_numbers = #tpu.dot_dimension_numbers<[1], [0], [0], [1], [0, 0, 1, 1], [], []>} : vector<2x256xf32>, vector<256x512xf32>, vector<2x512xf32> -> vector<2x512xf32>
    %9 = vector.broadcast %5 : vector<1x512xf32> to vector<2x512xf32>
    %10 = arith.addf %8, %9 : vector<2x512xf32>
    %c1 = arith.constant 1 : index
    %c0_14 = arith.constant 0 : index
    %c0_15 = arith.constant 0 : index
    %11 = vector.load %arg0[%c1, %c0_14, %c0_15] : memref<4x2x256xf32, #tpu.memory_space<vmem>>, vector<1x2x256xf32>
    %12 = vector.shape_cast %11 : vector<1x2x256xf32> to vector<2x256xf32>
    %cst_16 = arith.constant dense<0.000000e+00> : vector<2x512xf32>
    %13 = tpu.matmul %12, %4, %cst_16 {dimension_numbers = #tpu.dot_dimension_numbers<[1], [0], [0], [1], [0, 0, 1, 1], [], []>} : vector<2x256xf32>, vector<256x512xf32>, vector<2x512xf32> -> vector<2x512xf32>
    %14 = vector.broadcast %5 : vector<1x512xf32> to vector<2x512xf32>
    %15 = arith.addf %13, %14 : vector<2x512xf32>
    %c2 = arith.constant 2 : index
    %c0_17 = arith.constant 0 : index
    %c0_18 = arith.constant 0 : index
    %16 = vector.load %arg0[%c2, %c0_17, %c0_18] : memref<4x2x256xf32, #tpu.memory_space<vmem>>, vector<1x2x256xf32>
    %17 = vector.shape_cast %16 : vector<1x2x256xf32> to vector<2x256xf32>
    %cst_19 = arith.constant dense<0.000000e+00> : vector<2x512xf32>
    %18 = tpu.matmul %17, %4, %cst_19 {dimension_numbers = #tpu.dot_dimension_numbers<[1], [0], [0], [1], [0, 0, 1, 1], [], []>} : vector<2x256xf32>, vector<256x512xf32>, vector<2x512xf32> -> vector<2x512xf32>
    %19 = vector.broadcast %5 : vector<1x512xf32> to vector<2x512xf32>
    %20 = arith.addf %18, %19 : vector<2x512xf32>
    %c3 = arith.constant 3 : index
    %c0_20 = arith.constant 0 : index
    %c0_21 = arith.constant 0 : index
    %21 = vector.load %arg0[%c3, %c0_20, %c0_21] : memref<4x2x256xf32, #tpu.memory_space<vmem>>, vector<1x2x256xf32>
    %22 = vector.shape_cast %21 : vector<1x2x256xf32> to vector<2x256xf32>
    %cst_22 = arith.constant dense<0.000000e+00> : vector<2x512xf32>
    %23 = tpu.matmul %22, %4, %cst_22 {dimension_numbers = #tpu.dot_dimension_numbers<[1], [0], [0], [1], [0, 0, 1, 1], [], []>} : vector<2x256xf32>, vector<256x512xf32>, vector<2x512xf32> -> vector<2x512xf32>
    %24 = vector.broadcast %5 : vector<1x512xf32> to vector<2x512xf32>
    %25 = arith.addf %23, %24 : vector<2x512xf32>
    %cst_23 = arith.constant 0.000000e+00 : f32
    %26 = vector.broadcast %cst_23 : f32 to vector<2x128xf32>
    %cst_24 = arith.constant dense<0.000000e+00> : vector<2x512xf32>
    %27 = tpu.matmul %26, %0, %cst_24 {dimension_numbers = #tpu.dot_dimension_numbers<[1], [0], [0], [1], [0, 0, 1, 1], [], []>} : vector<2x128xf32>, vector<128x512xf32>, vector<2x512xf32> -> vector<2x512xf32>
    %28 = arith.addf %10, %27 : vector<2x512xf32>
    %29 = vector.extract_strided_slice %28 {offsets = [0, 0], sizes = [2, 128], strides = [1, 1]} : vector<2x512xf32> to vector<2x128xf32>
    %30 = arith.negf %29 : vector<2x128xf32>
    %31 = math.exp %30 : vector<2x128xf32>
    %cst_25 = arith.constant 1.000000e+00 : f32
    %32 = vector.broadcast %cst_25 : f32 to vector<2x128xf32>
    %33 = arith.addf %32, %31 : vector<2x128xf32>
    %34 = arith.divf %32, %33 : vector<2x128xf32>
    %35 = vector.extract_strided_slice %28 {offsets = [0, 128], sizes = [2, 128], strides = [1, 1]} : vector<2x512xf32> to vector<2x128xf32>
    %36 = arith.negf %35 : vector<2x128xf32>
    %37 = math.exp %36 : vector<2x128xf32>
    %cst_26 = arith.constant 1.000000e+00 : f32
    %38 = vector.broadcast %cst_26 : f32 to vector<2x128xf32>
    %39 = arith.addf %38, %37 : vector<2x128xf32>
    %40 = arith.divf %38, %39 : vector<2x128xf32>
    %41 = vector.extract_strided_slice %28 {offsets = [0, 256], sizes = [2, 128], strides = [1, 1]} : vector<2x512xf32> to vector<2x128xf32>
    %42 = math.tanh %41 : vector<2x128xf32>
    %43 = vector.extract_strided_slice %28 {offsets = [0, 384], sizes = [2, 128], strides = [1, 1]} : vector<2x512xf32> to vector<2x128xf32>
    %44 = arith.negf %43 : vector<2x128xf32>
    %45 = math.exp %44 : vector<2x128xf32>
    %cst_27 = arith.constant 1.000000e+00 : f32
    %46 = vector.broadcast %cst_27 : f32 to vector<2x128xf32>
    %47 = arith.addf %46, %45 : vector<2x128xf32>
    %48 = arith.divf %46, %47 : vector<2x128xf32>
    %49 = arith.mulf %40, %26 : vector<2x128xf32>
    %50 = arith.mulf %34, %42 : vector<2x128xf32>
    %51 = arith.addf %49, %50 : vector<2x128xf32>
    %52 = math.tanh %51 : vector<2x128xf32>
    %53 = arith.mulf %48, %52 : vector<2x128xf32>
    %cst_28 = arith.constant dense<0.000000e+00> : vector<2x512xf32>
    %54 = tpu.matmul %53, %1, %cst_28 {dimension_numbers = #tpu.dot_dimension_numbers<[1], [0], [0], [1], [0, 0, 1, 1], [], []>} : vector<2x128xf32>, vector<128x512xf32>, vector<2x512xf32> -> vector<2x512xf32>
    %cst_29 = arith.constant dense<0.000000e+00> : vector<2x512xf32>
    %55 = tpu.matmul %26, %2, %cst_29 {dimension_numbers = #tpu.dot_dimension_numbers<[1], [0], [0], [1], [0, 0, 1, 1], [], []>} : vector<2x128xf32>, vector<128x512xf32>, vector<2x512xf32> -> vector<2x512xf32>
    %56 = arith.addf %54, %55 : vector<2x512xf32>
    %57 = vector.broadcast %3 : vector<1x512xf32> to vector<2x512xf32>
    %58 = arith.addf %56, %57 : vector<2x512xf32>
    %59 = vector.extract_strided_slice %58 {offsets = [0, 0], sizes = [2, 128], strides = [1, 1]} : vector<2x512xf32> to vector<2x128xf32>
    %60 = arith.negf %59 : vector<2x128xf32>
    %61 = math.exp %60 : vector<2x128xf32>
    %cst_30 = arith.constant 1.000000e+00 : f32
    %62 = vector.broadcast %cst_30 : f32 to vector<2x128xf32>
    %63 = arith.addf %62, %61 : vector<2x128xf32>
    %64 = arith.divf %62, %63 : vector<2x128xf32>
    %65 = vector.extract_strided_slice %58 {offsets = [0, 128], sizes = [2, 128], strides = [1, 1]} : vector<2x512xf32> to vector<2x128xf32>
    %66 = arith.negf %65 : vector<2x128xf32>
    %67 = math.exp %66 : vector<2x128xf32>
    %cst_31 = arith.constant 1.000000e+00 : f32
    %68 = vector.broadcast %cst_31 : f32 to vector<2x128xf32>
    %69 = arith.addf %68, %67 : vector<2x128xf32>
    %70 = arith.divf %68, %69 : vector<2x128xf32>
    %71 = vector.extract_strided_slice %58 {offsets = [0, 256], sizes = [2, 128], strides = [1, 1]} : vector<2x512xf32> to vector<2x128xf32>
    %72 = math.tanh %71 : vector<2x128xf32>
    %73 = vector.extract_strided_slice %58 {offsets = [0, 384], sizes = [2, 128], strides = [1, 1]} : vector<2x512xf32> to vector<2x128xf32>
    %74 = arith.negf %73 : vector<2x128xf32>
    %75 = math.exp %74 : vector<2x128xf32>
    %cst_32 = arith.constant 1.000000e+00 : f32
    %76 = vector.broadcast %cst_32 : f32 to vector<2x128xf32>
    %77 = arith.addf %76, %75 : vector<2x128xf32>
    %78 = arith.divf %76, %77 : vector<2x128xf32>
    %79 = arith.mulf %70, %26 : vector<2x128xf32>
    %80 = arith.mulf %64, %72 : vector<2x128xf32>
    %81 = arith.addf %79, %80 : vector<2x128xf32>
    %82 = math.tanh %81 : vector<2x128xf32>
    %83 = arith.mulf %78, %82 : vector<2x128xf32>
    %cst_33 = arith.constant dense<0.000000e+00> : vector<2x512xf32>
    %84 = tpu.matmul %53, %0, %cst_33 {dimension_numbers = #tpu.dot_dimension_numbers<[1], [0], [0], [1], [0, 0, 1, 1], [], []>} : vector<2x128xf32>, vector<128x512xf32>, vector<2x512xf32> -> vector<2x512xf32>
    %85 = arith.addf %15, %84 : vector<2x512xf32>
    %86 = vector.extract_strided_slice %85 {offsets = [0, 0], sizes = [2, 128], strides = [1, 1]} : vector<2x512xf32> to vector<2x128xf32>
    %87 = arith.negf %86 : vector<2x128xf32>
    %88 = math.exp %87 : vector<2x128xf32>
    %cst_34 = arith.constant 1.000000e+00 : f32
    %89 = vector.broadcast %cst_34 : f32 to vector<2x128xf32>
    %90 = arith.addf %89, %88 : vector<2x128xf32>
    %91 = arith.divf %89, %90 : vector<2x128xf32>
    %92 = vector.extract_strided_slice %85 {offsets = [0, 128], sizes = [2, 128], strides = [1, 1]} : vector<2x512xf32> to vector<2x128xf32>
    %93 = arith.negf %92 : vector<2x128xf32>
    %94 = math.exp %93 : vector<2x128xf32>
    %cst_35 = arith.constant 1.000000e+00 : f32
    %95 = vector.broadcast %cst_35 : f32 to vector<2x128xf32>
    %96 = arith.addf %95, %94 : vector<2x128xf32>
    %97 = arith.divf %95, %96 : vector<2x128xf32>
    %98 = vector.extract_strided_slice %85 {offsets = [0, 256], sizes = [2, 128], strides = [1, 1]} : vector<2x512xf32> to vector<2x128xf32>
    %99 = math.tanh %98 : vector<2x128xf32>
    %100 = vector.extract_strided_slice %85 {offsets = [0, 384], sizes = [2, 128], strides = [1, 1]} : vector<2x512xf32> to vector<2x128xf32>
    %101 = arith.negf %100 : vector<2x128xf32>
    %102 = math.exp %101 : vector<2x128xf32>
    %cst_36 = arith.constant 1.000000e+00 : f32
    %103 = vector.broadcast %cst_36 : f32 to vector<2x128xf32>
    %104 = arith.addf %103, %102 : vector<2x128xf32>
    %105 = arith.divf %103, %104 : vector<2x128xf32>
    %106 = arith.mulf %97, %51 : vector<2x128xf32>
    %107 = arith.mulf %91, %99 : vector<2x128xf32>
    %108 = arith.addf %106, %107 : vector<2x128xf32>
    %109 = math.tanh %108 : vector<2x128xf32>
    %110 = arith.mulf %105, %109 : vector<2x128xf32>
    %cst_37 = arith.constant dense<0.000000e+00> : vector<2x512xf32>
    %111 = tpu.matmul %110, %1, %cst_37 {dimension_numbers = #tpu.dot_dimension_numbers<[1], [0], [0], [1], [0, 0, 1, 1], [], []>} : vector<2x128xf32>, vector<128x512xf32>, vector<2x512xf32> -> vector<2x512xf32>
    %cst_38 = arith.constant dense<0.000000e+00> : vector<2x512xf32>
    %112 = tpu.matmul %83, %2, %cst_38 {dimension_numbers = #tpu.dot_dimension_numbers<[1], [0], [0], [1], [0, 0, 1, 1], [], []>} : vector<2x128xf32>, vector<128x512xf32>, vector<2x512xf32> -> vector<2x512xf32>
    %113 = arith.addf %111, %112 : vector<2x512xf32>
    %114 = vector.broadcast %3 : vector<1x512xf32> to vector<2x512xf32>
    %115 = arith.addf %113, %114 : vector<2x512xf32>
    %116 = vector.extract_strided_slice %115 {offsets = [0, 0], sizes = [2, 128], strides = [1, 1]} : vector<2x512xf32> to vector<2x128xf32>
    %117 = arith.negf %116 : vector<2x128xf32>
    %118 = math.exp %117 : vector<2x128xf32>
    %cst_39 = arith.constant 1.000000e+00 : f32
    %119 = vector.broadcast %cst_39 : f32 to vector<2x128xf32>
    %120 = arith.addf %119, %118 : vector<2x128xf32>
    %121 = arith.divf %119, %120 : vector<2x128xf32>
    %122 = vector.extract_strided_slice %115 {offsets = [0, 128], sizes = [2, 128], strides = [1, 1]} : vector<2x512xf32> to vector<2x128xf32>
    %123 = arith.negf %122 : vector<2x128xf32>
    %124 = math.exp %123 : vector<2x128xf32>
    %cst_40 = arith.constant 1.000000e+00 : f32
    %125 = vector.broadcast %cst_40 : f32 to vector<2x128xf32>
    %126 = arith.addf %125, %124 : vector<2x128xf32>
    %127 = arith.divf %125, %126 : vector<2x128xf32>
    %128 = vector.extract_strided_slice %115 {offsets = [0, 256], sizes = [2, 128], strides = [1, 1]} : vector<2x512xf32> to vector<2x128xf32>
    %129 = math.tanh %128 : vector<2x128xf32>
    %130 = vector.extract_strided_slice %115 {offsets = [0, 384], sizes = [2, 128], strides = [1, 1]} : vector<2x512xf32> to vector<2x128xf32>
    %131 = arith.negf %130 : vector<2x128xf32>
    %132 = math.exp %131 : vector<2x128xf32>
    %cst_41 = arith.constant 1.000000e+00 : f32
    %133 = vector.broadcast %cst_41 : f32 to vector<2x128xf32>
    %134 = arith.addf %133, %132 : vector<2x128xf32>
    %135 = arith.divf %133, %134 : vector<2x128xf32>
    %136 = arith.mulf %127, %81 : vector<2x128xf32>
    %137 = arith.mulf %121, %129 : vector<2x128xf32>
    %138 = arith.addf %136, %137 : vector<2x128xf32>
    %139 = math.tanh %138 : vector<2x128xf32>
    %140 = arith.mulf %135, %139 : vector<2x128xf32>
    %cst_42 = arith.constant dense<0.000000e+00> : vector<2x512xf32>
    %141 = tpu.matmul %110, %0, %cst_42 {dimension_numbers = #tpu.dot_dimension_numbers<[1], [0], [0], [1], [0, 0, 1, 1], [], []>} : vector<2x128xf32>, vector<128x512xf32>, vector<2x512xf32> -> vector<2x512xf32>
    %142 = arith.addf %20, %141 : vector<2x512xf32>
    %143 = vector.extract_strided_slice %142 {offsets = [0, 0], sizes = [2, 128], strides = [1, 1]} : vector<2x512xf32> to vector<2x128xf32>
    %144 = arith.negf %143 : vector<2x128xf32>
    %145 = math.exp %144 : vector<2x128xf32>
    %cst_43 = arith.constant 1.000000e+00 : f32
    %146 = vector.broadcast %cst_43 : f32 to vector<2x128xf32>
    %147 = arith.addf %146, %145 : vector<2x128xf32>
    %148 = arith.divf %146, %147 : vector<2x128xf32>
    %149 = vector.extract_strided_slice %142 {offsets = [0, 128], sizes = [2, 128], strides = [1, 1]} : vector<2x512xf32> to vector<2x128xf32>
    %150 = arith.negf %149 : vector<2x128xf32>
    %151 = math.exp %150 : vector<2x128xf32>
    %cst_44 = arith.constant 1.000000e+00 : f32
    %152 = vector.broadcast %cst_44 : f32 to vector<2x128xf32>
    %153 = arith.addf %152, %151 : vector<2x128xf32>
    %154 = arith.divf %152, %153 : vector<2x128xf32>
    %155 = vector.extract_strided_slice %142 {offsets = [0, 256], sizes = [2, 128], strides = [1, 1]} : vector<2x512xf32> to vector<2x128xf32>
    %156 = math.tanh %155 : vector<2x128xf32>
    %157 = vector.extract_strided_slice %142 {offsets = [0, 384], sizes = [2, 128], strides = [1, 1]} : vector<2x512xf32> to vector<2x128xf32>
    %158 = arith.negf %157 : vector<2x128xf32>
    %159 = math.exp %158 : vector<2x128xf32>
    %cst_45 = arith.constant 1.000000e+00 : f32
    %160 = vector.broadcast %cst_45 : f32 to vector<2x128xf32>
    %161 = arith.addf %160, %159 : vector<2x128xf32>
    %162 = arith.divf %160, %161 : vector<2x128xf32>
    %163 = arith.mulf %154, %108 : vector<2x128xf32>
    %164 = arith.mulf %148, %156 : vector<2x128xf32>
    %165 = arith.addf %163, %164 : vector<2x128xf32>
    %166 = math.tanh %165 : vector<2x128xf32>
    %167 = arith.mulf %162, %166 : vector<2x128xf32>
    %cst_46 = arith.constant dense<0.000000e+00> : vector<2x512xf32>
    %168 = tpu.matmul %167, %1, %cst_46 {dimension_numbers = #tpu.dot_dimension_numbers<[1], [0], [0], [1], [0, 0, 1, 1], [], []>} : vector<2x128xf32>, vector<128x512xf32>, vector<2x512xf32> -> vector<2x512xf32>
    %cst_47 = arith.constant dense<0.000000e+00> : vector<2x512xf32>
    %169 = tpu.matmul %140, %2, %cst_47 {dimension_numbers = #tpu.dot_dimension_numbers<[1], [0], [0], [1], [0, 0, 1, 1], [], []>} : vector<2x128xf32>, vector<128x512xf32>, vector<2x512xf32> -> vector<2x512xf32>
    %170 = arith.addf %168, %169 : vector<2x512xf32>
    %171 = vector.broadcast %3 : vector<1x512xf32> to vector<2x512xf32>
    %172 = arith.addf %170, %171 : vector<2x512xf32>
    %173 = vector.extract_strided_slice %172 {offsets = [0, 0], sizes = [2, 128], strides = [1, 1]} : vector<2x512xf32> to vector<2x128xf32>
    %174 = arith.negf %173 : vector<2x128xf32>
    %175 = math.exp %174 : vector<2x128xf32>
    %cst_48 = arith.constant 1.000000e+00 : f32
    %176 = vector.broadcast %cst_48 : f32 to vector<2x128xf32>
    %177 = arith.addf %176, %175 : vector<2x128xf32>
    %178 = arith.divf %176, %177 : vector<2x128xf32>
    %179 = vector.extract_strided_slice %172 {offsets = [0, 128], sizes = [2, 128], strides = [1, 1]} : vector<2x512xf32> to vector<2x128xf32>
    %180 = arith.negf %179 : vector<2x128xf32>
    %181 = math.exp %180 : vector<2x128xf32>
    %cst_49 = arith.constant 1.000000e+00 : f32
    %182 = vector.broadcast %cst_49 : f32 to vector<2x128xf32>
    %183 = arith.addf %182, %181 : vector<2x128xf32>
    %184 = arith.divf %182, %183 : vector<2x128xf32>
    %185 = vector.extract_strided_slice %172 {offsets = [0, 256], sizes = [2, 128], strides = [1, 1]} : vector<2x512xf32> to vector<2x128xf32>
    %186 = math.tanh %185 : vector<2x128xf32>
    %187 = vector.extract_strided_slice %172 {offsets = [0, 384], sizes = [2, 128], strides = [1, 1]} : vector<2x512xf32> to vector<2x128xf32>
    %188 = arith.negf %187 : vector<2x128xf32>
    %189 = math.exp %188 : vector<2x128xf32>
    %cst_50 = arith.constant 1.000000e+00 : f32
    %190 = vector.broadcast %cst_50 : f32 to vector<2x128xf32>
    %191 = arith.addf %190, %189 : vector<2x128xf32>
    %192 = arith.divf %190, %191 : vector<2x128xf32>
    %193 = arith.mulf %184, %138 : vector<2x128xf32>
    %194 = arith.mulf %178, %186 : vector<2x128xf32>
    %195 = arith.addf %193, %194 : vector<2x128xf32>
    %196 = math.tanh %195 : vector<2x128xf32>
    %197 = arith.mulf %192, %196 : vector<2x128xf32>
    %cst_51 = arith.constant dense<0.000000e+00> : vector<2x512xf32>
    %198 = tpu.matmul %167, %0, %cst_51 {dimension_numbers = #tpu.dot_dimension_numbers<[1], [0], [0], [1], [0, 0, 1, 1], [], []>} : vector<2x128xf32>, vector<128x512xf32>, vector<2x512xf32> -> vector<2x512xf32>
    %199 = arith.addf %25, %198 : vector<2x512xf32>
    %200 = vector.extract_strided_slice %199 {offsets = [0, 0], sizes = [2, 128], strides = [1, 1]} : vector<2x512xf32> to vector<2x128xf32>
    %201 = arith.negf %200 : vector<2x128xf32>
    %202 = math.exp %201 : vector<2x128xf32>
    %cst_52 = arith.constant 1.000000e+00 : f32
    %203 = vector.broadcast %cst_52 : f32 to vector<2x128xf32>
    %204 = arith.addf %203, %202 : vector<2x128xf32>
    %205 = arith.divf %203, %204 : vector<2x128xf32>
    %206 = vector.extract_strided_slice %199 {offsets = [0, 128], sizes = [2, 128], strides = [1, 1]} : vector<2x512xf32> to vector<2x128xf32>
    %207 = arith.negf %206 : vector<2x128xf32>
    %208 = math.exp %207 : vector<2x128xf32>
    %cst_53 = arith.constant 1.000000e+00 : f32
    %209 = vector.broadcast %cst_53 : f32 to vector<2x128xf32>
    %210 = arith.addf %209, %208 : vector<2x128xf32>
    %211 = arith.divf %209, %210 : vector<2x128xf32>
    %212 = vector.extract_strided_slice %199 {offsets = [0, 256], sizes = [2, 128], strides = [1, 1]} : vector<2x512xf32> to vector<2x128xf32>
    %213 = math.tanh %212 : vector<2x128xf32>
    %214 = vector.extract_strided_slice %199 {offsets = [0, 384], sizes = [2, 128], strides = [1, 1]} : vector<2x512xf32> to vector<2x128xf32>
    %215 = arith.negf %214 : vector<2x128xf32>
    %216 = math.exp %215 : vector<2x128xf32>
    %cst_54 = arith.constant 1.000000e+00 : f32
    %217 = vector.broadcast %cst_54 : f32 to vector<2x128xf32>
    %218 = arith.addf %217, %216 : vector<2x128xf32>
    %219 = arith.divf %217, %218 : vector<2x128xf32>
    %220 = arith.mulf %211, %165 : vector<2x128xf32>
    %221 = arith.mulf %205, %213 : vector<2x128xf32>
    %222 = arith.addf %220, %221 : vector<2x128xf32>
    %223 = math.tanh %222 : vector<2x128xf32>
    %224 = arith.mulf %219, %223 : vector<2x128xf32>
    %cst_55 = arith.constant dense<0.000000e+00> : vector<2x512xf32>
    %225 = tpu.matmul %224, %1, %cst_55 {dimension_numbers = #tpu.dot_dimension_numbers<[1], [0], [0], [1], [0, 0, 1, 1], [], []>} : vector<2x128xf32>, vector<128x512xf32>, vector<2x512xf32> -> vector<2x512xf32>
    %cst_56 = arith.constant dense<0.000000e+00> : vector<2x512xf32>
    %226 = tpu.matmul %197, %2, %cst_56 {dimension_numbers = #tpu.dot_dimension_numbers<[1], [0], [0], [1], [0, 0, 1, 1], [], []>} : vector<2x128xf32>, vector<128x512xf32>, vector<2x512xf32> -> vector<2x512xf32>
    %227 = arith.addf %225, %226 : vector<2x512xf32>
    %228 = vector.broadcast %3 : vector<1x512xf32> to vector<2x512xf32>
    %229 = arith.addf %227, %228 : vector<2x512xf32>
    %230 = vector.extract_strided_slice %229 {offsets = [0, 0], sizes = [2, 128], strides = [1, 1]} : vector<2x512xf32> to vector<2x128xf32>
    %231 = arith.negf %230 : vector<2x128xf32>
    %232 = math.exp %231 : vector<2x128xf32>
    %cst_57 = arith.constant 1.000000e+00 : f32
    %233 = vector.broadcast %cst_57 : f32 to vector<2x128xf32>
    %234 = arith.addf %233, %232 : vector<2x128xf32>
    %235 = arith.divf %233, %234 : vector<2x128xf32>
    %236 = vector.extract_strided_slice %229 {offsets = [0, 128], sizes = [2, 128], strides = [1, 1]} : vector<2x512xf32> to vector<2x128xf32>
    %237 = arith.negf %236 : vector<2x128xf32>
    %238 = math.exp %237 : vector<2x128xf32>
    %cst_58 = arith.constant 1.000000e+00 : f32
    %239 = vector.broadcast %cst_58 : f32 to vector<2x128xf32>
    %240 = arith.addf %239, %238 : vector<2x128xf32>
    %241 = arith.divf %239, %240 : vector<2x128xf32>
    %242 = vector.extract_strided_slice %229 {offsets = [0, 256], sizes = [2, 128], strides = [1, 1]} : vector<2x512xf32> to vector<2x128xf32>
    %243 = math.tanh %242 : vector<2x128xf32>
    %244 = vector.extract_strided_slice %229 {offsets = [0, 384], sizes = [2, 128], strides = [1, 1]} : vector<2x512xf32> to vector<2x128xf32>
    %245 = arith.negf %244 : vector<2x128xf32>
    %246 = math.exp %245 : vector<2x128xf32>
    %cst_59 = arith.constant 1.000000e+00 : f32
    %247 = vector.broadcast %cst_59 : f32 to vector<2x128xf32>
    %248 = arith.addf %247, %246 : vector<2x128xf32>
    %249 = arith.divf %247, %248 : vector<2x128xf32>
    %250 = arith.mulf %241, %195 : vector<2x128xf32>
    %251 = arith.mulf %235, %243 : vector<2x128xf32>
    %252 = arith.addf %250, %251 : vector<2x128xf32>
    %253 = math.tanh %252 : vector<2x128xf32>
    %254 = arith.mulf %249, %253 : vector<2x128xf32>
    %c0_60 = arith.constant 0 : index
    %c0_61 = arith.constant 0 : index
    %255 = vector.load %arg7[%c0_60, %c0_61] : memref<128x32xf32, #tpu.memory_space<vmem>>, vector<128x32xf32>
    %cst_62 = arith.constant dense<0.000000e+00> : vector<2x32xf32>
    %256 = tpu.matmul %254, %255, %cst_62 {dimension_numbers = #tpu.dot_dimension_numbers<[1], [0], [0], [1], [0, 0, 1, 1], [], []>} : vector<2x128xf32>, vector<128x32xf32>, vector<2x32xf32> -> vector<2x32xf32>
    %c0_63 = arith.constant 0 : index
    %c0_64 = arith.constant 0 : index
    %257 = vector.load %arg8[%c0_63, %c0_64] : memref<1x32xf32, #tpu.memory_space<vmem>>, vector<1x32xf32>
    %258 = vector.broadcast %257 : vector<1x32xf32> to vector<2x32xf32>
    %259 = arith.addf %256, %258 : vector<2x32xf32>
    %260 = arith.negf %259 : vector<2x32xf32>
    %261 = math.exp %260 : vector<2x32xf32>
    %cst_65 = arith.constant 1.000000e+00 : f32
    %262 = vector.broadcast %cst_65 : f32 to vector<2x32xf32>
    %263 = arith.addf %262, %261 : vector<2x32xf32>
    %264 = arith.divf %262, %263 : vector<2x32xf32>
    %c0_66 = arith.constant 0 : index
    %c0_67 = arith.constant 0 : index
    %265 = vector.load %arg9[%c0_66, %c0_67] : memref<32x32xf32, #tpu.memory_space<vmem>>, vector<32x32xf32>
    %cst_68 = arith.constant dense<0.000000e+00> : vector<2x32xf32>
    %266 = tpu.matmul %264, %265, %cst_68 {dimension_numbers = #tpu.dot_dimension_numbers<[1], [0], [0], [1], [0, 0, 1, 1], [], []>} : vector<2x32xf32>, vector<32x32xf32>, vector<2x32xf32> -> vector<2x32xf32>
    %c0_69 = arith.constant 0 : index
    %c0_70 = arith.constant 0 : index
    %267 = vector.load %arg10[%c0_69, %c0_70] : memref<1x32xf32, #tpu.memory_space<vmem>>, vector<1x32xf32>
    %268 = vector.broadcast %267 : vector<1x32xf32> to vector<2x32xf32>
    %269 = arith.addf %266, %268 : vector<2x32xf32>
    %270 = arith.negf %269 : vector<2x32xf32>
    %271 = math.exp %270 : vector<2x32xf32>
    %cst_71 = arith.constant 1.000000e+00 : f32
    %272 = vector.broadcast %cst_71 : f32 to vector<2x32xf32>
    %273 = arith.addf %272, %271 : vector<2x32xf32>
    %274 = arith.divf %272, %273 : vector<2x32xf32>
    %c0_72 = arith.constant 0 : index
    %c0_73 = arith.constant 0 : index
    %275 = vector.load %arg11[%c0_72, %c0_73] : memref<32x8xf32, #tpu.memory_space<vmem>>, vector<32x8xf32>
    %cst_74 = arith.constant dense<0.000000e+00> : vector<2x8xf32>
    %276 = tpu.matmul %274, %275, %cst_74 {dimension_numbers = #tpu.dot_dimension_numbers<[1], [0], [0], [1], [0, 0, 1, 1], [], []>} : vector<2x32xf32>, vector<32x8xf32>, vector<2x8xf32> -> vector<2x8xf32>
    %c0_75 = arith.constant 0 : index
    %c0_76 = arith.constant 0 : index
    %277 = vector.load %arg12[%c0_75, %c0_76] : memref<1x8xf32, #tpu.memory_space<vmem>>, vector<1x8xf32>
    %278 = vector.broadcast %277 : vector<1x8xf32> to vector<2x8xf32>
    %279 = arith.addf %276, %278 : vector<2x8xf32>
    %c0_77 = arith.constant 0 : index
    %c0_78 = arith.constant 0 : index
    %280 = vector.load %arg13[%c0_77, %c0_78] : memref<2x8xf32, #tpu.memory_space<vmem>>, vector<2x8xf32>
    tpu.vector_store %arg13[%c0_77, %c0_78], %279 {strides = array<i32>} : memref<2x8xf32, #tpu.memory_space<vmem>>, vector<2x8xf32>,
    %c0_79 = arith.constant 0 : index
    %c0_80 = arith.constant 0 : index
    %c0_81 = arith.constant 0 : index
    %281 = vector.load %arg14[%c0_79, %c0_80, %c0_81] : memref<2x2x128xf32, #tpu.memory_space<vmem>>, vector<1x2x128xf32>
    %282 = vector.shape_cast %281 : vector<1x2x128xf32> to vector<2x128xf32>
    %283 = vector.shape_cast %224 : vector<2x128xf32> to vector<1x2x128xf32>
    tpu.vector_store %arg14[%c0_79, %c0_80, %c0_81], %283 {strides = array<i32>} : memref<2x2x128xf32, #tpu.memory_space<vmem>>, vector<1x2x128xf32>,
    %c1_82 = arith.constant 1 : index
    %c0_83 = arith.constant 0 : index
    %c0_84 = arith.constant 0 : index
    %284 = vector.load %arg14[%c1_82, %c0_83, %c0_84] : memref<2x2x128xf32, #tpu.memory_space<vmem>>, vector<1x2x128xf32>
    %285 = vector.shape_cast %284 : vector<1x2x128xf32> to vector<2x128xf32>
    %286 = vector.shape_cast %254 : vector<2x128xf32> to vector<1x2x128xf32>
    tpu.vector_store %arg14[%c1_82, %c0_83, %c0_84], %286 {strides = array<i32>} : memref<2x2x128xf32, #tpu.memory_space<vmem>>, vector<1x2x128xf32>,
    %c0_85 = arith.constant 0 : index
    %c0_86 = arith.constant 0 : index
    %c0_87 = arith.constant 0 : index
    %287 = vector.load %arg15[%c0_85, %c0_86, %c0_87] : memref<2x2x128xf32, #tpu.memory_space<vmem>>, vector<1x2x128xf32>
    %288 = vector.shape_cast %287 : vector<1x2x128xf32> to vector<2x128xf32>
    %289 = vector.shape_cast %222 : vector<2x128xf32> to vector<1x2x128xf32>
    tpu.vector_store %arg15[%c0_85, %c0_86, %c0_87], %289 {strides = array<i32>} : memref<2x2x128xf32, #tpu.memory_space<vmem>>, vector<1x2x128xf32>,
    %c1_88 = arith.constant 1 : index
    %c0_89 = arith.constant 0 : index
    %c0_90 = arith.constant 0 : index
    %290 = vector.load %arg15[%c1_88, %c0_89, %c0_90] : memref<2x2x128xf32, #tpu.memory_space<vmem>>, vector<1x2x128xf32>
    %291 = vector.shape_cast %290 : vector<1x2x128xf32> to vector<2x128xf32>
    %292 = vector.shape_cast %252 : vector<2x128xf32> to vector<1x2x128xf32>
    tpu.vector_store %arg15[%c1_88, %c0_89, %c0_90], %292 {strides = array<i32>} : memref<2x2x128xf32, #tpu.memory_space<vmem>>, vector<1x2x128xf32>,
    return
  }
}

</mosaic_0001>

<bundles_post_ra>
// kernel: tdnn_lstm_forward.2
= control target key start
LH: loop header
LB: loop body
LE: loop exit
PB: predicated region body
PF: predicated region fallthrough
CT: control target
= control target key end

     0   :  { %18 = vsyncpa [#allocation3], 0  ;;  %s4354_s0 = inlined_call_operand.vmem [shape: f32[4,2,16,16], index: 0, kind: input, shape index: {}]   ;;  %s4355_s1 = inlined_call_operand.vmem [shape: f32[32,256], index: 1, kind: input, shape index: {}]   ;;  %s4356_s2 = inlined_call_operand.vmem [shape: f32[1,256], index: 2, kind: input, shape index: {}]   ;;  %s4357_s3 = inlined_call_operand.vmem [shape: f32[1,256], index: 3, kind: input, shape index: {}]   ;;  %s4358_s4 = inlined_call_operand.vmem [shape: f32[1,256], index: 4, kind: input, shape index: {}]   ;;  %s4359_s5 = inlined_call_operand.hbm [shape: f32[1024,256], index: 5, kind: input, shape index: {}]   ;;  %s4360_s6 = inlined_call_operand.vmem [shape: f32[1,256], index: 6, kind: input, shape index: {}]   ;;  %s4361_s7 = inlined_call_operand.vmem [shape: f32[1,256], index: 7, kind: input, shape index: {}]   ;;  %s4362_s8 = inlined_call_operand.vmem [shape: f32[1,256], index: 8, kind: input, shape index: {}]   ;;  %s4363_s9 = inlined_call_operand.hbm [shape: f32[256,256], index: 9, kind: input, shape index: {}]   ;;  %s4364_s10 = inlined_call_operand.vmem [shape: f32[1,256], index: 10, kind: input, shape index: {}]   ;;  %s4365_s11 = inlined_call_operand.vmem [shape: f32[1,256], index: 11, kind: input, shape index: {}]   ;;  %s4366_s12 = inlined_call_operand.vmem [shape: f32[1,256], index: 12, kind: input, shape index: {}]   ;;  %s4367_s13 = inlined_call_operand.vmem [shape: f32[4,2,256], index: 13, kind: output, shape index: {}]  }
   0x1   :  { %19 = vsyncpa [#allocation5], 0  ;;  %s3055_s25 = smov 0  }
   0x2 LB: > { %s357_s28 = sshll.u32 %s4359_s5, 4  ;;  %s2689_s29 = sadd.s32 4294967295, %s2976_s25   ;;  %s2976_s25 = sphi %s3055_s25, %s25_s25   ;;  %s358_s28 = int_to_ptr.hbm [resolvable:$true] %s357_s28 }
   0x3   : > { %p2691_p0 = scmp.ge.s32.totalorder %s2976_s25, 1  ;;  %p334_p1 = scmp.lt.s32.totalorder %s2976_s25, 5 }
   0x4   : > { %p2737_p2 = scmp.eq.s32.totalorder %s2689_s29, 0  ;;  %s2978_s14 = smov [#allocation2]  }
   0x5   : > { %p3066_p3 = pnand %p2691_p0, %p334_p1  ;;  %s359_s15 = sshll.u32 %s2978_s14, 4  ;;  %s360_s15 = int_to_ptr.vmem [resolvable:$true] %s359_s15 }
   0x6   : > { %s380_s18 = sshll.u32 %s4363_s9, 4  ;;  %s2979_s19 = smov [#allocation4]   ;;  %s381_s18 = int_to_ptr.hbm [resolvable:$true] %s380_s18 }
   0x7   : > { %p2730_p4 = pneg %p3066_p3  ;;  %s382_s20 = sshll.u32 %s2979_s19, 4  ;;  %s383_s20 = int_to_ptr.vmem [resolvable:$true] %s382_s20 }
   0x8   : > { %s2980_s21 = smov 256   ;;  %s2981_s22 = smov 16  }
   0x9   : > { %p2731_p5 = pnand %p2737_p2, %p2730_p4  ;;  %415 = sbr.rel (%p3066_p3) target bundleno = 972 (0x3cc), region = 72 }
   0xb   : > { %2733 = dma.hbm_to_vmem [thread:$0]  (!%p2731_p5), %s358_s28, 32768, %s360_s15, [#allocation3], %s2980_s21, %s2980_s21, %s2981_s22  }
   0xc   : > { %2736 = dma.hbm_to_vmem [thread:$0]  (!%p2731_p5), %s381_s18, 8192, %s383_s20, [#allocation5], %s2980_s21, %s2980_s21, %s2981_s22  }
   0xe   : > { %2967 = dma.done.wait (%p2737_p2), [#allocation3], 32768  }
   0xf   : > { %2969 = vsyncadd (%p2737_p2), [#allocation3], 4294934528 }
  0x10   : > { %2971 = dma.done.wait (%p2737_p2), [#allocation5], 8192  }
  0x11   : > { %2973 = vsyncadd (%p2737_p2), [#allocation5], 4294959104  ;;  %p465_p6 = scmp.lt.s32.totalorder %s2689_s29, 3  ;;  %v485_v0 = vld [vmem:[%s4355_s1 + $0x30] sm:$0xff]  ;;  %v486_v1 = vld [vmem:[%s4355_s1 + $0x38] sm:$0xff]  ;;  %vm552_vm0 = vcmask 1046528  }
  0x12   : > { %v483_v2 = vld [vmem:[%s4355_s1 + $0x20] sm:$0xff]  ;;  %574 = vmatpush.msra.mxu2 %v485_v0  ;;  %597 = vmatpush.msra.mxu3 %v486_v1  ;;  %v484_v3 = vld [vmem:[%s4355_s1 + $0x28] sm:$0xff]  ;;  %vm490_vm1 = vcmask 130048   ;;  %v481_v8 = vld [vmem:[%s4355_s1 + $0x10] sm:$0xff]  ;;  %vm1460_vm9 = vcmask 1041408   ;;  %vm1246_vm10 = vcmask 1045504  }
  0x13   : > { %s4698_s29 = smov (!%p465_p6, %s2689_s29), 3  ;;  %v482_v9 = vld [vmem:[%s4355_s1 + $0x18] sm:$0xff]  ;;  %v479_v10 = vld [vmem:[%s4355_s1] sm:$0xff]  ;;  %v480_v11 = vld [vmem:[%s4355_s1 + $0x8] sm:$0xff]  ;;  %511 = vmatpush.msra.mxu0 %v481_v8  ;;  %vm1353_vm11 = vcmask 1043456   ;;  %vm1985_vm12 = vcmask 1040384  }
  0x14   : > { %s2720_s23 = sshll.u32 %s4698_s29, 5  ;;  %575 = vmatpush.msra.mxu2 %v483_v2  ;;  %598 = vmatpush.msra.mxu3 %v484_v3  ;;  %v487_v20 = vld [vmem:[%s4356_s2] sm:$0x3]  ;;  %v912_v29 = vld [vmem:[#allocation2 + $0xf0] sm:$0xff]  ;;  %v913_v31 = vld [vmem:[#allocation2 + $0xf8] sm:$0xff]  ;;  %s2721_s16 = sshll.u32 %s4698_s29, 2 }
  0x15   : > { %s3088_s27 = scalar_lea.vmem %s4354_s0, %s2720_s23  ;;  %534 = vmatpush.msra.mxu1 %v482_v9  ;;  %512 = vmatpush.msra.mxu0 %v479_v10  ;;  %v3139_v23 = vperm.slane %v487_v20, 0  ;;  %v3141_v24 = vperm.slane %v487_v20, 1  ;;  %v944_v30 = vld [vmem:[#allocation2 + $0x1f0] sm:$0xff]  ;;  %v945_v32 = vld [vmem:[#allocation2 + $0x1f8] sm:$0xff]  ;;  %v910_v33 = vld [vmem:[#allocation2 + $0xe0] sm:$0xff]  ;;  %s474_s19 = scalar_lea.vmem %s4367_s13, %s2721_s16 }
  0x16   : > { %v475_v4 = vld [vmem:[%s3088_s27] sm:$0xff]  ;;  %v476_v5 = vld [vmem:[%s3088_s27 + $0x8] sm:$0xff]  ;;  %687 = vmatpush.msrb.mxu2 %v485_v0  ;;  %710 = vmatpush.msrb.mxu3 %v486_v1  ;;  %v477_v13 = vld [vmem:[%s3088_s27 + $0x10] sm:$0xff] }
  0x17   : > { %v553_v6 = vrot.slane %v475_v4, 1  ;;  %v554_v7 = vrot.slane %v476_v5, 1  ;;  %535 = vmatpush.msra.mxu1 %v480_v11  ;;  %2702 = vmatmul.msk.f32.vlgmr.msra.gmra.mxu0 %vm490_vm1, %v475_v4  ;;  %v478_v14 = vld [vmem:[%s3088_s27 + $0x18] sm:$0xff]  ;;  %v666_v15 = vrot.slane %v477_v13, 1  ;;  %v942_v34 = vld [vmem:[#allocation2 + $0x1e0] sm:$0xff]  ;;  %v911_v35 = vld [vmem:[#allocation2 + $0xe8] sm:$0xff] }
  0x18   : > { %2704 = vmatmul.msk.f32.vlgmr.msra.gmra.mxu1 %vm490_vm1, %v475_v4  ;;  %630 = vmatpush.msrb.mxu0 %v481_v8  ;;  %v667_v16 = vrot.slane %v478_v14, 1  ;;  %v943_v38 = vld [vmem:[#allocation2 + $0x1e8] sm:$0xff]  ;;  %v908_v42 = vld [vmem:[#allocation2 + $0xd0] sm:$0xff]  ;;  %v909_v44 = vld [vmem:[#allocation2 + $0xd8] sm:$0xff]  ;;  %v2982_v4 = vmov 30.0  }
  0x19   : > { %v555_v12 = vsel %vm552_vm0, %v553_v6, %v554_v7  ;;  %653 = vmatpush.msrb.mxu1 %v482_v9  ;;  %688 = vmatpush.msrb.mxu2 %v483_v2  ;;  %v940_v43 = vld [vmem:[#allocation2 + $0x1d0] sm:$0xff]  ;;  %v941_v46 = vld [vmem:[#allocation2 + $0x1d8] sm:$0xff]  ;;  %v906_v47 = vld [vmem:[#allocation2 + $0xc0] sm:$0xff]  ;;  %2756 = vrcp.f32 %v2982_v4 }
  0x1a   : > { %2706 = vmatmul.msk.f32.vlgmr.msra.gmra.mxu2 %vm490_vm1, %v555_v12  ;;  %2708 = vmatmul.msk.f32.vlgmr.msra.gmra.mxu3 %vm490_vm1, %v555_v12  ;;  %v668_v17 = vsel %vm552_vm0, %v666_v15, %v667_v16  ;;  %v938_v48 = vld [vmem:[#allocation2 + $0x1c0] sm:$0xff]  ;;  %v907_v49 = vld [vmem:[#allocation2 + $0xc8] sm:$0xff]  ;;  %v904_v56 = vld [vmem:[#allocation2 + $0xb0] sm:$0xff] }
  0x1b   : > { %711 = vmatpush.msrb.mxu3 %v484_v3  ;;  %631 = vmatpush.msrb.mxu0 %v479_v10  ;;  %v939_v53 = vld [vmem:[#allocation2 + $0x1c8] sm:$0xff]  ;;  %v936_v57 = vld [vmem:[#allocation2 + $0x1b0] sm:$0xff]  ;;  %v905_v58 = vld [vmem:[#allocation2 + $0xb8] sm:$0xff] }
  0x1c   : > { %654 = vmatpush.msrb.mxu1 %v480_v11  ;;  %1187 = vmatpush.msra.mxu2 %v913_v31  ;;  %v937_v60 = vld [vmem:[#allocation2 + $0x1b8] sm:$0xff]  ;;  %v902_v62 = vld [vmem:[#allocation2 + $0xa0] sm:$0xff]  ;;  %v903_v0 = vld [vmem:[#allocation2 + $0xa8] sm:$0xff] }
  0x1d   : > { %1141 = vmatpush.msra.mxu0 %v912_v29  ;;  %1210 = vmatpush.msra.mxu3 %v945_v32  ;;  %v934_v63 = vld [vmem:[#allocation2 + $0x1a0] sm:$0xff]  ;;  %v900_v6 = vld [vmem:[#allocation2 + $0x90] sm:$0xff]  ;;  %v901_v8 = vld [vmem:[#allocation2 + $0x98] sm:$0xff] }
  0x1e   : > { %1164 = vmatpush.msra.mxu1 %v944_v30  ;;  %1188 = vmatpush.msra.mxu2 %v911_v35  ;;  %v933_v9 = vld [vmem:[#allocation2 + $0x198] sm:$0xff]  ;;  %v898_v11 = vld [vmem:[#allocation2 + $0x80] sm:$0xff]  ;;  %v896_v20 = vld [vmem:[#allocation2 + $0x70] sm:$0xff] }
  0x1f   : > { %2703 = vmatmul.msk.f32.gmra.mxu0 %vm490_vm1, %v476_v5  ;;  %1211 = vmatpush.msra.mxu3 %v943_v38  ;;  %v930_v12 = vld [vmem:[#allocation2 + $0x180] sm:$0xff]  ;;  %v895_v32 = vld [vmem:[#allocation2 + $0x68] sm:$0xff]  ;;  %v892_v38 = vld [vmem:[#allocation2 + $0x50] sm:$0xff] }
  0x20   : > { %2705 = vmatmul.msk.f32.gmra.mxu1 %vm490_vm1, %v476_v5  ;;  %1142 = vmatpush.msra.mxu0 %v910_v33  ;;  %v935_v5 = vld [vmem:[#allocation2 + $0x1a8] sm:$0xff]  ;;  %v894_v30 = vld [vmem:[#allocation2 + $0x60] sm:$0xff] }
  0x21   : > { %1165 = vmatpush.msra.mxu1 %v942_v34  ;;  %1189 = vmatpush.msra.mxu2 %v909_v44  ;;  %v926_v31 = vld [vmem:[#allocation2 + $0x160] sm:$0xff]  ;;  %v887_v4 = vld [vmem:[#allocation2 + $0x28] sm:$0xff] }
  0x22   : > { %2707 = vmatmul.msk.f32.gmra.mxu2 %vm490_vm1, %v554_v7  ;;  %2709 = vmatmul.msk.f32.gmra.mxu3 %vm490_vm1, %v554_v7  ;;  %v932_v7 = vld [vmem:[#allocation2 + $0x190] sm:$0xff] }
  0x23   : > { %1143 = vmatpush.msra.mxu0 %v908_v42  ;;  %1166 = vmatpush.msra.mxu1 %v940_v43  ;;  %v893_v42 = vld [vmem:[#allocation2 + $0x58] sm:$0xff] }
  0x24   : > { %1212 = vmatpush.msra.mxu3 %v941_v46  ;;  %1190 = vmatpush.msra.mxu2 %v907_v49  ;;  %v890_v49 = vld [vmem:[#allocation2 + $0x40] sm:$0xff] }
  0x25   : > { %1144 = vmatpush.msra.mxu0 %v906_v47  ;;  %1167 = vmatpush.msra.mxu1 %v938_v48 }
  0x26   : > { %1213 = vmatpush.msra.mxu3 %v939_v53  ;;  %1191 = vmatpush.msra.mxu2 %v905_v58  ;;  %v888_v58 = vld [vmem:[#allocation2 + $0x30] sm:$0xff] }
  0x27   : > { %2710 = vmatmul.msk.f32.vlgmr.msrb.gmra.mxu0 %vm490_vm1, %v477_v13  ;;  %1168 = vmatpush.msra.mxu1 %v936_v57 }
  0x28   : > { %2712 = vmatmul.msk.f32.vlgmr.msrb.gmra.mxu1 %vm490_vm1, %v477_v13  ;;  %1145 = vmatpush.msra.mxu0 %v904_v56  ;;  %v899_v13 = vld [vmem:[#allocation2 + $0x88] sm:$0xff] }
  0x29   : > { %1214 = vmatpush.msra.mxu3 %v937_v60  ;;  %1169 = vmatpush.msra.mxu1 %v934_v63  ;;  %v923_v56 = vld [vmem:[#allocation2 + $0x148] sm:$0xff]  ;;  %v920_v60 = vld [vmem:[#allocation2 + $0x130] sm:$0xff] }
  0x2a   : > { %2714 = vmatmul.msk.f32.vlgmr.msrb.gmra.mxu2 %vm490_vm1, %v668_v17  ;;  %2716 = vmatmul.msk.f32.vlgmr.msrb.gmra.mxu3 %vm490_vm1, %v668_v17  ;;  %v931_v17 = vld [vmem:[#allocation2 + $0x188] sm:$0xff] }
  0x2b   : > { %1146 = vmatpush.msra.mxu0 %v902_v62  ;;  %1192 = vmatpush.msra.mxu2 %v903_v0  ;;  %v921_v0 = vld [vmem:[#allocation2 + $0x138] sm:$0xff] }
  0x2c   : > { %1215 = vmatpush.msra.mxu3 %v935_v5  ;;  %1170 = vmatpush.msra.mxu1 %v932_v7 }
  0x2d   : > { %1147 = vmatpush.msra.mxu0 %v900_v6  ;;  %1193 = vmatpush.msra.mxu2 %v901_v8  ;;  %v919_v8 = vld [vmem:[#allocation2 + $0x128] sm:$0xff] }
  0x2e   : > { %1216 = vmatpush.msra.mxu3 %v933_v9  ;;  %1171 = vmatpush.msra.mxu1 %v930_v12  ;;  %v885_v12 = vld [vmem:[#allocation2 + $0x18] sm:$0xff] }
  0x2f   : > { %2711 = vmatmul.msk.f32.gmra.mxu0 %vm490_vm1, %v478_v14  ;;  %1194 = vmatpush.msra.mxu2 %v899_v13 }
  0x30   : > { %2713 = vmatmul.msk.f32.gmra.mxu1 %vm490_vm1, %v478_v14  ;;  %1148 = vmatpush.msra.mxu0 %v898_v11  ;;  %v916_v11 = vld [vmem:[#allocation2 + $0x110] sm:$0xff] }
  0x31   : > { %1217 = vmatpush.msra.mxu3 %v931_v17  ;;  %v882_v17 = vld [vmem:[#allocation2] sm:$0xff] }
  0x32   : > { %2715 = vmatmul.msk.f32.gmra.mxu2 %vm490_vm1, %v667_v16  ;;  %2717 = vmatmul.msk.f32.gmra.mxu3 %vm490_vm1, %v667_v16 }
  0x33   : > { %1149 = vmatpush.msra.mxu0 %v896_v20 }
  0x35   : > { %1150 = vmatpush.msra.mxu0 %v894_v30  ;;  %v977_v30 = vld [vmem:[#allocation2 + $0x2f8] sm:$0xff] }
  0x37   : > { %1151 = vmatpush.msra.mxu0 %v892_v38  ;;  %v1007_v38 = vld [vmem:[#allocation2 + $0x3e8] sm:$0xff] }
  0x39   : > { %1152 = vmatpush.msra.mxu0 %v890_v49 }
  0x3b   : > { %1153 = vmatpush.msra.mxu0 %v888_v58 }
  0x94   : > { %v514_v18 = vpop.f32.mrf.mxu0 }
  0x95   : > { %v537_v19 = vpop.f32.mrf.mxu1  ;;  %v548_v39 = vadd.f32 %v3139_v23, %v514_v18 }
  0x96   : > { %v549_v45 = vadd.f32 %v3141_v24, %v537_v19 }
  0x9c   : > { %v517_v25 = vpop.f32.mrf.mxu0 }
  0x9d   : > { %v577_v21 = vpop.f32.mrf.mxu2  ;;  %v600_v22 = vpop.f32.mrf.mxu3  ;;  %v550_v27 = vadd.f32 %v3139_v23, %v517_v25 }
  0x9e   : > { %v540_v26 = vpop.f32.mrf.mxu1  ;;  %v3153_v54 = vadd.f32 %v577_v21, %v548_v39  ;;  %v3157_v59 = vadd.f32 %v600_v22, %v549_v45  ;;  %v928_v21 = vld [vmem:[#allocation2 + $0x170] sm:$0xff]  ;;  %v897_v22 = vld [vmem:[#allocation2 + $0x78] sm:$0xff]  ;;  %v3163_v25 = vpop.eup %2756 }
  0x9f   : > { %v551_v28 = vadd.f32 %v3141_v24, %v540_v26  ;;  %1172 = vmatpush.msra.mxu1 %v928_v21  ;;  %1195 = vmatpush.msra.mxu2 %v897_v22  ;;  %v924_v39 = vld [vmem:[#allocation2 + $0x150] sm:$0xff]  ;;  %v925_v45 = vld [vmem:[#allocation2 + $0x158] sm:$0xff]  ;;  %vm764_vm2 = vweird.f32 %v3163_v25 }
  0xa1   : > { %1173 = vmatpush.msra.mxu1 %v926_v31  ;;  %1196 = vmatpush.msra.mxu2 %v895_v32  ;;  %v1009_v31 = vld [vmem:[#allocation2 + $0x3f8] sm:$0xff] }
  0xa3   : > { %1174 = vmatpush.msra.mxu1 %v924_v39  ;;  %1197 = vmatpush.msra.mxu2 %v893_v42 }
  0xa4   : > { %v633_v51 = vpop.f32.mrf.mxu0 }
  0xa5   : > { %v580_v36 = vpop.f32.mrf.mxu2  ;;  %v603_v37 = vpop.f32.mrf.mxu3  ;;  %v662_v26 = vadd.f32 %v633_v51, %v3139_v23  ;;  %v891_v51 = vld [vmem:[#allocation2 + $0x48] sm:$0xff] }
  0xa6   : > { %v3146_v40 = vadd.f32 %v580_v36, %v550_v27  ;;  %v3148_v41 = vadd.f32 %v603_v37, %v551_v28  ;;  %v656_v52 = vpop.f32.mrf.mxu1  ;;  %v929_v28 = vld [vmem:[#allocation2 + $0x178] sm:$0xff]  ;;  %v927_v36 = vld [vmem:[#allocation2 + $0x168] sm:$0xff]  ;;  %1198 = vmatpush.msra.mxu2 %v891_v51 }
  0xa7   : > { %v663_v27 = vadd.f32 %v656_v52, %v3141_v24  ;;  %1218 = vmatpush.msra.mxu3 %v929_v28  ;;  %v1008_v28 = vld [vmem:[#allocation2 + $0x3f0] sm:$0xff] }
  0xa8   : > { %v723_v50 = vsel %vm552_vm0, %v3146_v40, 0.0  ;;  %v731_v55 = vsel %vm552_vm0, %v3148_v41, 0.0 }
  0xa9   : > { %v724_v61 = vadd.f32 %v723_v50, %v3153_v54  ;;  %v732_v1 = vadd.f32 %v731_v55, %v3157_v59  ;;  %1219 = vmatpush.msra.mxu3 %v927_v36  ;;  %v922_v50 = vld [vmem:[#allocation2 + $0x140] sm:$0xff]  ;;  %v975_v36 = vld [vmem:[#allocation2 + $0x2e8] sm:$0xff] }
  0xaa   : > { %1175 = vmatpush.msra.mxu1 %v922_v50  ;;  %v1005_v50 = vld [vmem:[#allocation2 + $0x3d8] sm:$0xff] }
  0xab   : > { %v725_v10 = vrot.slane %v724_v61, 4  ;;  %v733_v14 = vrot.slane %v732_v1, 4  ;;  %1220 = vmatpush.msra.mxu3 %v925_v45 }
  0xac   : > { %v636_v15 = vpop.f32.mrf.mxu0  ;;  %1176 = vmatpush.msra.mxu1 %v920_v60 }
  0xad   : > { %v690_v2 = vpop.f32.mrf.mxu2  ;;  %v713_v3 = vpop.f32.mrf.mxu3  ;;  %v664_v18 = vadd.f32 %v636_v15, %v3139_v23  ;;  %v726_v29 = vadd.f32 %v725_v10, %v724_v61  ;;  %v734_v33 = vadd.f32 %v733_v14, %v732_v1  ;;  %v760_v23 = vmul.f32 30.0, %v3163_v25  ;;  %1221 = vmatpush.msra.mxu3 %v923_v56  ;;  %v889_v61 = vld [vmem:[#allocation2 + $0x38] sm:$0xff]  ;;  %v884_v10 = vld [vmem:[#allocation2 + $0x10] sm:$0xff]  ;;  %v971_v56 = vld [vmem:[#allocation2 + $0x2c8] sm:$0xff] }
  0xae   : > { %v659_v16 = vpop.f32.mrf.mxu1  ;;  %v3172_v43 = vadd.f32 %v690_v2, %v662_v26  ;;  %v3174_v44 = vadd.f32 %v713_v3, %v663_v27  ;;  %1199 = vmatpush.msra.mxu2 %v889_v61  ;;  %v886_v2 = vld [vmem:[#allocation2 + $0x20] sm:$0xff]  ;;  %v917_v15 = vld [vmem:[#allocation2 + $0x118] sm:$0xff]  ;;  %v915_v26 = vld [vmem:[#allocation2 + $0x108] sm:$0xff] }
  0xaf   : > { %v665_v19 = vadd.f32 %v659_v16, %v3141_v24  ;;  %v727_v46 = vrot.slane %v726_v29, 2  ;;  %v735_v52 = vrot.slane %v734_v33, 2  ;;  %v761_v57 = vsub.f32 1.0, %v760_v23  ;;  %1222 = vmatpush.msra.mxu3 %v921_v0  ;;  %v918_v3 = vld [vmem:[#allocation2 + $0x120] sm:$0xff]  ;;  %1154 = vmatpush.msra.mxu0 %v886_v2  ;;  %v976_v27 = vld [vmem:[#allocation2 + $0x2f0] sm:$0xff] }
  0xb0   : > { %1177 = vmatpush.msra.mxu1 %v918_v3  ;;  %1200 = vmatpush.msra.mxu2 %v887_v4  ;;  %v1000_v61 = vld [vmem:[#allocation2 + $0x3b0] sm:$0xff]  ;;  %v1001_v3 = vld [vmem:[#allocation2 + $0x3b8] sm:$0xff] }
  0xb1   : > { %v728_v1 = vadd.f32 %v727_v46, %v726_v29  ;;  %v736_v5 = vadd.f32 %v735_v52, %v734_v33  ;;  %v762_v9 = vmul.f32 %v3163_v25, %v761_v57  ;;  %1223 = vmatpush.msra.mxu3 %v919_v8  ;;  %1155 = vmatpush.msra.mxu0 %v884_v10  ;;  %v972_v46 = vld [vmem:[#allocation2 + $0x2d0] sm:$0xff]  ;;  %v1003_v57 = vld [vmem:[#allocation2 + $0x3c8] sm:$0xff] }
  0xb2   : > { %1178 = vmatpush.msra.mxu1 %v916_v11  ;;  %1201 = vmatpush.msra.mxu2 %v885_v12  ;;  %v999_v8 = vld [vmem:[#allocation2 + $0x3a8] sm:$0xff]  ;;  %v964_v12 = vld [vmem:[#allocation2 + $0x290] sm:$0xff] }
  0xb3   : > { %v729_v16 = vrot.slane %v728_v1, 1  ;;  %1224 = vmatpush.msra.mxu3 %v917_v15  ;;  %v737_v20 = vrot.slane %v736_v5, 1  ;;  %1156 = vmatpush.msra.mxu0 %v882_v17  ;;  %v763_v29 = vadd.f32 %v3163_v25, %v762_v9  ;;  %v997_v17 = vld [vmem:[#allocation2 + $0x398] sm:$0xff] }
  0xb5   : > { %v693_v34 = vpop.f32.mrf.mxu2  ;;  %v716_v35 = vpop.f32.mrf.mxu3  ;;  %1225 = vmatpush.msra.mxu3 %v915_v26  ;;  %1257 = vmatpush.msrb.mxu0 %v976_v27  ;;  %v730_v23 = vadd.f32 %v729_v16, %v728_v1  ;;  %v738_v39 = vadd.f32 %v737_v20, %v736_v5  ;;  %v3188_v49 = vsel %vm764_vm2, %v3163_v25, %v763_v29  ;;  %v968_v25 = vld [vmem:[#allocation2 + $0x2b0] sm:$0xff]  ;;  %v965_v16 = vld [vmem:[#allocation2 + $0x298] sm:$0xff]  ;;  %v994_v26 = vld [vmem:[#allocation2 + $0x380] sm:$0xff] }
  0xb6   : > { %v3167_v37 = vadd.f32 %v693_v34, %v664_v18  ;;  %v3170_v24 = vadd.f32 %v716_v35, %v665_v19  ;;  %v914_v18 = vld [vmem:[#allocation2 + $0x100] sm:$0xff]  ;;  %v883_v19 = vld [vmem:[#allocation2 + $0x8] sm:$0xff] }
  0xb7   : > { %1179 = vmatpush.msra.mxu1 %v914_v18  ;;  %1202 = vmatpush.msra.mxu2 %v883_v19  ;;  %v974_v34 = vld [vmem:[#allocation2 + $0x2e0] sm:$0xff]  ;;  %v963_v29 = vld [vmem:[#allocation2 + $0x288] sm:$0xff] }
  0xb8   : > { %v741_v47 = vsel %vm552_vm0, %v3167_v37, 0.0  ;;  %v749_v48 = vsel %vm552_vm0, %v3170_v24, 0.0  ;;  %v1006_v35 = vld [vmem:[#allocation2 + $0x3e0] sm:$0xff]  ;;  %1326 = vmatpush.msrb.mxu3 %v1009_v31  ;;  %1258 = vmatpush.msrb.mxu0 %v974_v34  ;;  %v992_v34 = vld [vmem:[#allocation2 + $0x370] sm:$0xff] }
  0xb9   : > { %v742_v53 = vadd.f32 %v741_v47, %v3172_v43  ;;  %v750_v55 = vadd.f32 %v749_v48, %v3174_v44  ;;  %1280 = vmatpush.msrb.mxu1 %v1008_v28  ;;  %1303 = vmatpush.msrb.mxu2 %v977_v30  ;;  %v1004_v47 = vld [vmem:[#allocation2 + $0x3d0] sm:$0xff]  ;;  %v973_v48 = vld [vmem:[#allocation2 + $0x2d8] sm:$0xff]  ;;  %v995_v30 = vld [vmem:[#allocation2 + $0x388] sm:$0xff] }
  0xba   : > { %1327 = vmatpush.msrb.mxu3 %v1007_v38  ;;  %1259 = vmatpush.msrb.mxu0 %v972_v46  ;;  %v993_v38 = vld [vmem:[#allocation2 + $0x378] sm:$0xff]  ;;  %v990_v46 = vld [vmem:[#allocation2 + $0x360] sm:$0xff] }
  0xbb   : > { %v743_v62 = vrot.slane %v742_v53, 4  ;;  %v751_v63 = vrot.slane %v750_v55, 4  ;;  %1281 = vmatpush.msrb.mxu1 %v1006_v35  ;;  %1304 = vmatpush.msrb.mxu2 %v975_v36 }
  0xbc   : > { %1328 = vmatpush.msrb.mxu3 %v1005_v50  ;;  %v959_v50 = vld [vmem:[#allocation2 + $0x268] sm:$0xff] }
  0xbd   : > { %v744_v6 = vadd.f32 %v743_v62, %v742_v53  ;;  %v752_v7 = vadd.f32 %v751_v63, %v750_v55  ;;  %1282 = vmatpush.msrb.mxu1 %v1004_v47  ;;  %v970_v53 = vld [vmem:[#allocation2 + $0x2c0] sm:$0xff]  ;;  %1305 = vmatpush.msrb.mxu2 %v973_v48  ;;  %v969_v62 = vld [vmem:[#allocation2 + $0x2b8] sm:$0xff] }
  0xbe   : > { %v1002_v55 = vld [vmem:[#allocation2 + $0x3c0] sm:$0xff]  ;;  %1260 = vmatpush.msrb.mxu0 %v970_v53  ;;  %1329 = vmatpush.msrb.mxu3 %v1003_v57 }
  0xbf   : > { %v745_v13 = vrot.slane %v744_v6, 2  ;;  %v753_v14 = vrot.slane %v752_v7, 2  ;;  %1283 = vmatpush.msrb.mxu1 %v1002_v55  ;;  %1306 = vmatpush.msrb.mxu2 %v971_v56  ;;  %v956_v55 = vld [vmem:[#allocation2 + $0x250] sm:$0xff] }
  0xc0   : > { %1261 = vmatpush.msrb.mxu0 %v968_v25  ;;  %1330 = vmatpush.msrb.mxu3 %v1001_v3  ;;  %v988_v56 = vld [vmem:[#allocation2 + $0x350] sm:$0xff]  ;;  %v989_v25 = vld [vmem:[#allocation2 + $0x358] sm:$0xff]  ;;  %v954_v3 = vld [vmem:[#allocation2 + $0x240] sm:$0xff] }
  0xc1   : > { %v746_v21 = vadd.f32 %v745_v13, %v744_v6  ;;  %v754_v22 = vadd.f32 %v753_v14, %v752_v7  ;;  %1284 = vmatpush.msrb.mxu1 %v1000_v61  ;;  %v998_v6 = vld [vmem:[#allocation2 + $0x3a0] sm:$0xff]  ;;  %1307 = vmatpush.msrb.mxu2 %v969_v62  ;;  %v996_v13 = vld [vmem:[#allocation2 + $0x390] sm:$0xff] }
  0xc2   : > { %1331 = vmatpush.msrb.mxu3 %v999_v8  ;;  %v952_v8 = vld [vmem:[#allocation2 + $0x230] sm:$0xff] }
  0xc3   : > { %v747_v32 = vrot.slane %v746_v21, 1  ;;  %v755_v33 = vrot.slane %v754_v22, 1  ;;  %1285 = vmatpush.msrb.mxu1 %v998_v6 }
  0xc4   : > { %1332 = vmatpush.msrb.mxu3 %v997_v17 }
  0xc5   : > { %v748_v42 = vadd.f32 %v747_v32, %v746_v21  ;;  %v756_v45 = vadd.f32 %v755_v33, %v754_v22  ;;  %v962_v22 = vld [vmem:[#allocation2 + $0x280] sm:$0xff]  ;;  %1286 = vmatpush.msrb.mxu1 %v996_v13  ;;  %v960_v33 = vld [vmem:[#allocation2 + $0x270] sm:$0xff] }
  0xc6   : > { %1333 = vmatpush.msrb.mxu3 %v995_v30 }
  0xc7   : > { %v757_v51 = vadd.f32 %v748_v42, %v730_v23  ;;  %v758_v52 = vadd.f32 %v756_v45, %v738_v39  ;;  %1287 = vmatpush.msrb.mxu1 %v994_v26  ;;  %v961_v23 = vld [vmem:[#allocation2 + $0x278] sm:$0xff]  ;;  %v958_v45 = vld [vmem:[#allocation2 + $0x260] sm:$0xff]  ;;  %v980_v26 = vld [vmem:[#allocation2 + $0x310] sm:$0xff] }
  0xc8   : > { %1334 = vmatpush.msrb.mxu3 %v993_v38 }
  0xc9   : > { %v766_v58 = vmul.f32 %v3188_v49, %v757_v51  ;;  %v767_v60 = vmul.f32 %v3188_v49, %v758_v52  ;;  %1288 = vmatpush.msrb.mxu1 %v992_v34  ;;  %v991_v51 = vld [vmem:[#allocation2 + $0x368] sm:$0xff] }
  0xca   : > { %1335 = vmatpush.msrb.mxu3 %v991_v51  ;;  %v947_v34 = vld [vmem:[#allocation2 + $0x208] sm:$0xff] }
  0xcb   : > { %v3193_v63 = vsub.f32 %v3153_v54, %v766_v58  ;;  %v3196_v0 = vsub.f32 %v3146_v40, %v766_v58  ;;  %v3199_v1 = vsub.f32 %v3172_v43, %v766_v58  ;;  %v3202_v2 = vsub.f32 %v3167_v37, %v766_v58  ;;  %v966_v43 = vld [vmem:[#allocation2 + $0x2a0] sm:$0xff]  ;;  %1289 = vmatpush.msrb.mxu1 %v990_v46 }
  0xcc   : > { %v3205_v4 = vsub.f32 %v3157_v59, %v767_v60  ;;  %v3208_v5 = vsub.f32 %v3148_v41, %v767_v60  ;;  %v3211_v54 = vsub.f32 %v3174_v44, %v767_v60  ;;  %v3214_v40 = vsub.f32 %v3170_v24, %v767_v60  ;;  %v967_v44 = vld [vmem:[#allocation2 + $0x2a8] sm:$0xff]  ;;  %1262 = vmatpush.msrb.mxu0 %v966_v43  ;;  %v957_v60 = vld [vmem:[#allocation2 + $0x258] sm:$0xff]  ;;  %v986_v43 = vld [vmem:[#allocation2 + $0x340] sm:$0xff] }
  0xcd   : > { %v772_v37 = vmul.f32 %v3193_v63, %v3193_v63  ;;  %v774_v7 = vmul.f32 %v3196_v0, %v3196_v0  ;;  %v798_v59 = vmul.f32 %v3199_v1, %v3199_v1  ;;  %v800_v41 = vmul.f32 %v3202_v2, %v3202_v2  ;;  %1308 = vmatpush.msrb.mxu2 %v967_v44 }
  0xce   : > { %v773_v24 = vmul.f32 %v3205_v4, %v3205_v4  ;;  %v775_v9 = vmul.f32 %v3208_v5, %v3208_v5  ;;  %v799_v10 = vmul.f32 %v3211_v54, %v3211_v54  ;;  %v801_v11 = vmul.f32 %v3214_v40, %v3214_v40  ;;  %1263 = vmatpush.msrb.mxu0 %v964_v12  ;;  %v985_v12 = vld [vmem:[#allocation2 + $0x338] sm:$0xff] }
  0xcf   : > { %v776_v14 = vsel %vm552_vm0, %v774_v7, 0.0  ;;  %v802_v15 = vsel %vm552_vm0, %v800_v41, 0.0  ;;  %1309 = vmatpush.msrb.mxu2 %v965_v16  ;;  %1290 = vmatpush.msrb.mxu1 %v988_v56  ;;  %v955_v7 = vld [vmem:[#allocation2 + $0x248] sm:$0xff]  ;;  %v982_v16 = vld [vmem:[#allocation2 + $0x320] sm:$0xff] }
  0xd0   : > { %v777_v18 = vadd.f32 %v776_v14, %v772_v37  ;;  %v803_v19 = vadd.f32 %v802_v15, %v798_v59  ;;  %v784_v20 = vsel %vm552_vm0, %v775_v9, 0.0  ;;  %v810_v21 = vsel %vm552_vm0, %v801_v11, 0.0  ;;  %1264 = vmatpush.msrb.mxu0 %v962_v22  ;;  %v987_v59 = vld [vmem:[#allocation2 + $0x348] sm:$0xff]  ;;  %1336 = vmatpush.msrb.mxu3 %v989_v25  ;;  %v953_v11 = vld [vmem:[#allocation2 + $0x238] sm:$0xff]  ;;  %v950_v15 = vld [vmem:[#allocation2 + $0x220] sm:$0xff] }
  0xd1   : > { %v785_v27 = vadd.f32 %v784_v20, %v773_v24  ;;  %v811_v28 = vadd.f32 %v810_v21, %v799_v10  ;;  %1310 = vmatpush.msrb.mxu2 %v963_v29  ;;  %v984_v24 = vld [vmem:[#allocation2 + $0x330] sm:$0xff]  ;;  %1291 = vmatpush.msrb.mxu1 %v986_v43  ;;  %v983_v20 = vld [vmem:[#allocation2 + $0x328] sm:$0xff]  ;;  %v981_v29 = vld [vmem:[#allocation2 + $0x318] sm:$0xff] }
  0xd2   : > { %v778_v31 = vrot.slane %v777_v18, 4  ;;  %v804_v32 = vrot.slane %v803_v19, 4  ;;  %1265 = vmatpush.msrb.mxu0 %v960_v33  ;;  %1337 = vmatpush.msrb.mxu3 %v987_v59  ;;  %v948_v22 = vld [vmem:[#allocation2 + $0x210] sm:$0xff] }
  0xd3   : > { %v786_v35 = vrot.slane %v785_v27, 4  ;;  %v812_v36 = vrot.slane %v811_v28, 4  ;;  %1311 = vmatpush.msrb.mxu2 %v961_v23  ;;  %1292 = vmatpush.msrb.mxu1 %v984_v24 }
  0xd4   : > { %v779_v39 = vadd.f32 %v778_v31, %v777_v18  ;;  %v805_v42 = vadd.f32 %v804_v32, %v803_v19  ;;  %1266 = vmatpush.msrb.mxu0 %v958_v45  ;;  %v951_v19 = vld [vmem:[#allocation2 + $0x228] sm:$0xff]  ;;  %1338 = vmatpush.msrb.mxu3 %v985_v12  ;;  %v946_v31 = vld [vmem:[#allocation2 + $0x200] sm:$0xff] }
  0xd5   : > { %v787_v47 = vadd.f32 %v786_v35, %v785_v27  ;;  %v813_v48 = vadd.f32 %v812_v36, %v811_v28  ;;  %1312 = vmatpush.msrb.mxu2 %v959_v50  ;;  %1293 = vmatpush.msrb.mxu1 %v982_v16  ;;  %v949_v28 = vld [vmem:[#allocation2 + $0x218] sm:$0xff]  ;;  %v978_v32 = vld [vmem:[#allocation2 + $0x300] sm:$0xff]  ;;  %v979_v35 = vld [vmem:[#allocation2 + $0x308] sm:$0xff] }
  0xd6   : > { %v780_v52 = vrot.slane %v779_v39, 2  ;;  %v806_v53 = vrot.slane %v805_v42, 2  ;;  %1267 = vmatpush.msrb.mxu0 %v956_v55  ;;  %1339 = vmatpush.msrb.mxu3 %v983_v20  ;;  %v3282_v20 = vld [vmem:[#allocation2 + $0x5e0] sm:$0xff] }
  0xd7   : > { %v788_v57 = vrot.slane %v787_v47, 2  ;;  %v814_v58 = vrot.slane %v813_v48, 2  ;;  %1313 = vmatpush.msrb.mxu2 %v957_v60  ;;  %1294 = vmatpush.msrb.mxu1 %v980_v26 }
  0xd8   : > { %v781_v61 = vadd.f32 %v780_v52, %v779_v39  ;;  %v807_v62 = vadd.f32 %v806_v53, %v805_v42  ;;  %1268 = vmatpush.msrb.mxu0 %v954_v3  ;;  %1340 = vmatpush.msrb.mxu3 %v981_v29  ;;  %v3298_v29 = vld [vmem:[#allocation2 + $0x5d0] sm:$0xff] }
  0xd9   : > { %v789_v6 = vadd.f32 %v788_v57, %v787_v47  ;;  %v815_v37 = vadd.f32 %v814_v58, %v813_v48  ;;  %1314 = vmatpush.msrb.mxu2 %v955_v7  ;;  %1295 = vmatpush.msrb.mxu1 %v978_v32  ;;  %v488_v47 = vld [vmem:[%s4357_s3] sm:$0x3]  ;;  %v3306_v32 = vld [vmem:[#allocation2 + $0x4d8] sm:$0xff] }
  0xda   : > { %v782_v41 = vrot.slane %v781_v61, 1  ;;  %v808_v44 = vrot.slane %v807_v62, 1  ;;  %1269 = vmatpush.msrb.mxu0 %v952_v8  ;;  %1341 = vmatpush.msrb.mxu3 %v979_v35  ;;  %v845_v52 = vperm.slane %v488_v47, 0  ;;  %v846_v56 = vperm.slane %v488_v47, 1  ;;  %v489_v58 = vld [vmem:[%s4358_s4] sm:$0x3] }
  0xdb   : > { %v790_v9 = vrot.slane %v789_v6, 1  ;;  %v816_v10 = vrot.slane %v815_v37, 1  ;;  %1315 = vmatpush.msrb.mxu2 %v953_v11  ;;  %v858_v43 = vperm.slane %v489_v58, 0  ;;  %v3316_v35 = vld [vmem:[#allocation2 + $0x4c0] sm:$0xff] }
  0xdc   : > { %v783_v13 = vadd.f32 %v782_v41, %v781_v61  ;;  %v809_v14 = vadd.f32 %v808_v44, %v807_v62  ;;  %1270 = vmatpush.msrb.mxu0 %v950_v15  ;;  %v3348_v47 = vld [vmem:[#allocation2 + $0x4a0] sm:$0xff] }
  0xdd   : > { %v791_v17 = vadd.f32 %v790_v9, %v789_v6  ;;  %v817_v18 = vadd.f32 %v816_v10, %v815_v37  ;;  %1316 = vmatpush.msrb.mxu2 %v951_v19  ;;  %v859_v37 = vperm.slane %v489_v58, 1  ;;  %v3280_v19 = vld [vmem:[#allocation2 + $0x4e0] sm:$0xff] }
  0xde   : > { %v818_v21 = vadd.f32 %v809_v14, %v783_v13  ;;  %1271 = vmatpush.msrb.mxu0 %v948_v22  ;;  %v3288_v22 = vld [vmem:[#allocation2 + $0x5e8] sm:$0xff]  ;;  %v3374_v58 = vld [vmem:[#allocation2 + $0x580] sm:$0xff] }
  0xdf   : > { %v819_v27 = vadd.f32 %v817_v18, %v791_v17  ;;  %1317 = vmatpush.msrb.mxu2 %v949_v28  ;;  %v3274_v17 = vld [vmem:[#allocation2 + $0x4f8] sm:$0xff]  ;;  %v3296_v28 = vld [vmem:[#allocation2 + $0x4d0] sm:$0xff] }
  0xe0   : > { %v820_v30 = vmul.f32 %v818_v21, %v3188_v49  ;;  %1272 = vmatpush.msrb.mxu0 %v946_v31  ;;  %v3276_v18 = vld [vmem:[#allocation2 + $0x5f8] sm:$0xff]  ;;  %v3286_v21 = vld [vmem:[#allocation2 + $0x4e8] sm:$0xff] }
  0xe1   : > { %v821_v33 = vmul.f32 %v819_v27, %v3188_v49  ;;  %1318 = vmatpush.msrb.mxu2 %v947_v34 }
  0xe2   : > { %v822_v36 = vadd.f32 1e-05, %v820_v30 }
  0xe3   : > { %v823_v23 = vadd.f32 1e-05, %v821_v33  ;;  %v3308_v33 = vld [vmem:[#allocation2 + $0x5d8] sm:$0xff] }
  0xe4   : > { %2758 = vrsqrt.f32 %v822_v36  ;;  %vm830_vm5 = vweird.f32 %v822_v36 }
  0xe5   : > { %2760 = vrsqrt.f32 %v823_v23  ;;  %vm840_vm7 = vweird.f32 %v823_v23 }
  0xea   : > { %v2759_v38 = vpop.eup %2758 }
  0xeb   : > { %v2761_v39 = vpop.eup %2760  ;;  %v825_v42 = vmul.f32 %v2759_v38, %v822_v36  ;;  %vm831_vm3 = vweird.f32 %v2759_v38  ;;  %v3318_v36 = vld [vmem:[#allocation2 + $0x5c0] sm:$0xff] }
  0xec   : > { %v835_v45 = vmul.f32 %v2761_v39, %v823_v23  ;;  %vm841_vm4 = vweird.f32 %v2761_v39  ;;  %vm832_vm6 = vmor %vm830_vm5, %vm831_vm3 }
  0xed   : > { %v826_v46 = vmul.f32 %v2759_v38, %v825_v42  ;;  %vm842_vm8 = vmor %vm840_vm7, %vm841_vm4  ;;  %v3336_v42 = vld [vmem:[#allocation2 + $0x4b0] sm:$0xff] }
  0xee   : > { %v836_v49 = vmul.f32 %v2761_v39, %v835_v45  ;;  %v3338_v45 = vld [vmem:[#allocation2 + $0x5b0] sm:$0xff] }
  0xef   : > { %v827_v48 = vmul.f32 0.5, %v826_v46  ;;  %v3342_v46 = vld [vmem:[#allocation2 + $0x4b8] sm:$0xff] }
  0xf0   : > { %v837_v50 = vmul.f32 0.5, %v836_v49  ;;  %v3344_v49 = vld [vmem:[#allocation2 + $0x5b8] sm:$0xff] }
  0xf1   : > { %v828_v51 = vsub.f32 1.5, %v827_v48  ;;  %v3350_v48 = vld [vmem:[#allocation2 + $0x5a0] sm:$0xff] }
  0xf2   : > { %v838_v53 = vsub.f32 1.5, %v837_v50  ;;  %v3354_v50 = vld [vmem:[#allocation2 + $0x4a8] sm:$0xff] }
  0xf3   : > { %v829_v55 = vmul.f32 %v2759_v38, %v828_v51  ;;  %v3356_v51 = vld [vmem:[#allocation2 + $0x5a8] sm:$0xff] }
  0xf4   : > { %v839_v57 = vmul.f32 %v2761_v39, %v838_v53  ;;  %v3362_v53 = vld [vmem:[#allocation2 + $0x590] sm:$0xff] }
  0xf5   : > { %v833_v60 = vsel %vm832_vm6, %v2759_v38, %v829_v55  ;;  %v3326_v38 = vld [vmem:[#allocation2 + $0x4c8] sm:$0xff]  ;;  %v3366_v55 = vld [vmem:[#allocation2 + $0x498] sm:$0xff] }
  0xf6   : > { %v849_v25 = vmul.f32 %v845_v52, %v833_v60  ;;  %v843_v61 = vsel %vm842_vm8, %v2761_v39, %v839_v57  ;;  %v3328_v39 = vld [vmem:[#allocation2 + $0x5c8] sm:$0xff]  ;;  %v3360_v52 = vld [vmem:[#allocation2 + $0x490] sm:$0xff]  ;;  %v3372_v57 = vld [vmem:[#allocation2 + $0x480] sm:$0xff] }
  0xf7   : > { %v850_v62 = vmul.f32 %v846_v56, %v843_v61  ;;  %v3368_v56 = vld [vmem:[#allocation2 + $0x598] sm:$0xff] }
  0xf8   : > { %v851_v3 = vperm.slane %v849_v25, 0 }
  0xf9   : > { %v852_v6 = vperm.slane %v850_v62, 0 }
  0xfa   : > { %v870_v7 = vmul.f32 %v851_v3, %v3199_v1  ;;  %v872_v59 = vmul.f32 %v851_v3, %v3202_v2  ;;  %v853_v41 = vmul.f32 %v851_v3, %v3193_v63  ;;  %v855_v44 = vmul.f32 %v851_v3, %v3196_v0  ;;  %v3382_v3 = vld [vmem:[#allocation2 + $0x488] sm:$0xff] }
  0xfb   : > { %v871_v8 = vmul.f32 %v852_v6, %v3211_v54  ;;  %v873_v24 = vmul.f32 %v852_v6, %v3214_v40  ;;  %v854_v9 = vmul.f32 %v852_v6, %v3205_v4  ;;  %v856_v10 = vmul.f32 %v852_v6, %v3208_v5  ;;  %v3266_v4 = vld [vmem:[#allocation2 + $0x4f0] sm:$0xff] }
  0xfc   : > { %v3252_v11 = vadd.f32 %v872_v59, %v858_v43  ;;  %v862_v12 = vadd.f32 %v858_v43, %v853_v41  ;;  %v864_v13 = vadd.f32 %v858_v43, %v855_v44  ;;  %v3254_v14 = vadd.f32 %v870_v7, %v858_v43  ;;  %v3268_v5 = vld [vmem:[#allocation2 + $0x5f0] sm:$0xff]  ;;  %v3384_v43 = vld [vmem:[#allocation2 + $0x588] sm:$0xff]  ;;  %v3398_v41 = vld [vmem:[#allocation2 + $0x478] sm:$0xff] }
  0xfd   : > { %v3256_v1 = vadd.f32 %v873_v24, %v859_v37  ;;  %v863_v2 = vadd.f32 %v859_v37, %v854_v9  ;;  %v865_v63 = vadd.f32 %v859_v37, %v856_v10  ;;  %v3258_v15 = vadd.f32 %v871_v8, %v859_v37  ;;  %v3394_v7 = vld [vmem:[#allocation2 + $0x470] sm:$0xff]  ;;  %v3400_v44 = vld [vmem:[#allocation2 + $0x578] sm:$0xff]  ;;  %v3402_v8 = vld [vmem:[#allocation2 + $0x460] sm:$0xff] }
  0xfe   : > { %v3260_v0 = vmax.f32 %v862_v12, 0.0  ;;  %v3262_v54 = vmax.f32 %v864_v13, 0.0  ;;  %v3396_v59 = vld [vmem:[#allocation2 + $0x570] sm:$0xff]  ;;  %v3404_v24 = vld [vmem:[#allocation2 + $0x560] sm:$0xff]  ;;  %v3408_v9 = vld [vmem:[#allocation2 + $0x468] sm:$0xff] }
  0xff   : > { %v3264_v40 = vmax.f32 %v863_v2, 0.0  ;;  %v3270_v16 = vmax.f32 %v865_v63, 0.0  ;;  %v3410_v10 = vld [vmem:[#allocation2 + $0x568] sm:$0xff]  ;;  %v3414_v12 = vld [vmem:[#allocation2 + $0x450] sm:$0xff]  ;;  %v3420_v2 = vld [vmem:[#allocation2 + $0x458] sm:$0xff] }
 0x100   : > { %1157 = vmatmul.f32.vlgmr.msra.gmra.mxu0 %v3260_v0  ;;  %1203 = vmatmul.f32.vlgmr.msra.gmra.mxu2 %v3260_v0  ;;  %v1461_v26 = vrot.slane %v3260_v0, 6  ;;  %v3292_v27 = vrot.slane %v3262_v54, 6  ;;  %v1247_v60 = vrot.slane %v3260_v0, 2  ;;  %v1248_v25 = vrot.slane %v3262_v54, 2  ;;  %4479 = vst [vmem:[#allocation8_spill] sm:$0xff] %v3410_v10  ;;  %v3416_v13 = vld [vmem:[#allocation2 + $0x550] sm:$0xff] }
 0x101   : > { %1180 = vmatmul.f32.vlgmr.msra.gmra.mxu1 %v3264_v40  ;;  %1226 = vmatmul.f32.vlgmr.msra.gmra.mxu3 %v3264_v40  ;;  %v1464_v30 = vrot.slane %v3264_v40, 6  ;;  %v3302_v31 = vrot.slane %v3270_v16, 6  ;;  %v1250_v61 = vrot.slane %v3264_v40, 2  ;;  %v1251_v62 = vrot.slane %v3270_v16, 2  ;;  %4480 = vst [vmem:[#allocation9_spill] sm:$0xff] %v3414_v12  ;;  %v3422_v63 = vld [vmem:[#allocation2 + $0x558] sm:$0xff] }
 0x102   : > { %1364 = vmatpush.msra.mxu0 %v3266_v4  ;;  %1387 = vmatpush.msra.mxu1 %v3268_v5  ;;  %v3312_v34 = vsel %vm1460_vm9, %v1461_v26, %v3292_v27  ;;  %v1249_v6 = vsel %vm1246_vm10, %v1247_v60, %v1248_v25  ;;  %4481 = vst [vmem:[#allocation10_spill] sm:$0xff] %v3416_v13  ;;  %v3426_v26 = vld [vmem:[#allocation2 + $0x440] sm:$0xff]  ;;  %v3432_v60 = vld [vmem:[#allocation2 + $0x448] sm:$0xff] }
 0x103   : > { %1410 = vmatpush.msra.mxu2 %v3274_v17  ;;  %1433 = vmatpush.msra.mxu3 %v3276_v18  ;;  %v3322_v23 = vsel %vm1460_vm9, %v1464_v30, %v3302_v31  ;;  %v1252_v37 = vsel %vm1246_vm10, %v1250_v61, %v1251_v62  ;;  %4482 = vst [vmem:[#allocation11_spill] sm:$0xff] %v3420_v2  ;;  %v3428_v30 = vld [vmem:[#allocation2 + $0x540] sm:$0xff]  ;;  %v3434_v61 = vld [vmem:[#allocation2 + $0x548] sm:$0xff] }
 0x104   : > { %1365 = vmatpush.msra.mxu0 %v3280_v19  ;;  %1388 = vmatpush.msra.mxu1 %v3282_v20  ;;  %4483 = vst [vmem:[#allocation12_spill] sm:$0xff] %v3422_v63 }
 0x105   : > { %1411 = vmatpush.msra.mxu2 %v3286_v21  ;;  %1434 = vmatpush.msra.mxu3 %v3288_v22  ;;  %4484 = vst [vmem:[#allocation13_spill] sm:$0xff] %v3426_v26 }
 0x106   : > { %1366 = vmatpush.msra.mxu0 %v3296_v28  ;;  %1389 = vmatpush.msra.mxu1 %v3298_v29  ;;  %4485 = vst [vmem:[#allocation14_spill] sm:$0xff] %v3428_v30 }
 0x107   : > { %1412 = vmatpush.msra.mxu2 %v3306_v32  ;;  %1435 = vmatpush.msra.mxu3 %v3308_v33  ;;  %4486 = vst [vmem:[#allocation15_spill] sm:$0xff] %v3432_v60 }
 0x108   : > { %1367 = vmatpush.msra.mxu0 %v3316_v35  ;;  %1390 = vmatpush.msra.mxu1 %v3318_v36  ;;  %4487 = vst [vmem:[#allocation16_spill] sm:$0xff] %v3434_v61 }
 0x109   : > { %1413 = vmatpush.msra.mxu2 %v3326_v38  ;;  %1436 = vmatpush.msra.mxu3 %v3328_v39 }
 0x10a   : > { %1160 = vmatmul.f32.gmra.mxu0 %v3262_v54  ;;  %1183 = vmatmul.f32.gmra.mxu1 %v3270_v16 }
 0x10b   : > { %1206 = vmatmul.f32.gmra.mxu2 %v3262_v54  ;;  %1229 = vmatmul.f32.gmra.mxu3 %v3270_v16 }
 0x10c   : > { %1368 = vmatpush.msra.mxu0 %v3336_v42  ;;  %1391 = vmatpush.msra.mxu1 %v3338_v45 }
 0x10d   : > { %1414 = vmatpush.msra.mxu2 %v3342_v46  ;;  %1437 = vmatpush.msra.mxu3 %v3344_v49 }
 0x10e   : > { %1369 = vmatpush.msra.mxu0 %v3348_v47  ;;  %1392 = vmatpush.msra.mxu1 %v3350_v48 }
 0x10f   : > { %1415 = vmatpush.msra.mxu2 %v3354_v50  ;;  %1438 = vmatpush.msra.mxu3 %v3356_v51 }
 0x110   : > { %1370 = vmatpush.msra.mxu0 %v3360_v52  ;;  %1393 = vmatpush.msra.mxu1 %v3362_v53 }
 0x111   : > { %1416 = vmatpush.msra.mxu2 %v3366_v55  ;;  %1439 = vmatpush.msra.mxu3 %v3368_v56 }
 0x112   : > { %1371 = vmatpush.msra.mxu0 %v3372_v57  ;;  %1394 = vmatpush.msra.mxu1 %v3374_v58 }
 0x113   : > { %1417 = vmatpush.msra.mxu2 %v3382_v3  ;;  %1440 = vmatpush.msra.mxu3 %v3384_v43 }
 0x114   : > { %1273 = vmatmul.f32.vlgmr.msrb.gmra.mxu0 %v1249_v6  ;;  %1296 = vmatmul.f32.vlgmr.msrb.gmra.mxu1 %v1252_v37 }
 0x115   : > { %1319 = vmatmul.f32.vlgmr.msrb.gmra.mxu2 %v1249_v6  ;;  %1342 = vmatmul.f32.vlgmr.msrb.gmra.mxu3 %v1252_v37  ;;  %v3442_v6 = vld [vmem:[#allocation2 + $0x430] sm:$0xff] }
 0x116   : > { %1372 = vmatpush.msra.mxu0 %v3394_v7  ;;  %1395 = vmatpush.msra.mxu1 %v3396_v59  ;;  %4488 = vst [vmem:[#allocation17_spill] sm:$0xff] %v3442_v6  ;;  %v3444_v37 = vld [vmem:[#allocation2 + $0x530] sm:$0xff] }
 0x117   : > { %1418 = vmatpush.msra.mxu2 %v3398_v41  ;;  %1441 = vmatpush.msra.mxu3 %v3400_v44  ;;  %4489 = vst [vmem:[#allocation18_spill] sm:$0xff] %v3444_v37 }
 0x118   : > { %1373 = vmatpush.msra.mxu0 %v3402_v8  ;;  %1396 = vmatpush.msra.mxu1 %v3404_v24 }
 0x119   : > { %1419 = vmatpush.msra.mxu2 %v3408_v9  ;;  %1442 = vmatpush.msra.mxu3 %v3410_v10  ;;  %v3496_v10 = vld [vmem:[#allocation2 + $0x6f8] sm:$0xff] }
 0x11a   : > { %1374 = vmatpush.msra.mxu0 %v3414_v12  ;;  %1397 = vmatpush.msra.mxu1 %v3416_v13  ;;  %v3446_v13 = vld [vmem:[#allocation2 + $0x438] sm:$0xff]  ;;  %4506 = vst [vmem:[#allocation35_spill] sm:$0xff] %v3496_v10 }
 0x11b   : > { %1420 = vmatpush.msra.mxu2 %v3420_v2  ;;  %1443 = vmatpush.msra.mxu3 %v3422_v63  ;;  %4490 = vst [vmem:[#allocation19_spill] sm:$0xff] %v3446_v13  ;;  %v3448_v12 = vld [vmem:[#allocation2 + $0x538] sm:$0xff]  ;;  %v3450_v63 = vld [vmem:[#allocation2 + $0x420] sm:$0xff]  ;;  %v1355_v2 = vrot.slane %v3262_v54, 4 }
 0x11c   : > { %1375 = vmatpush.msra.mxu0 %v3426_v26  ;;  %1398 = vmatpush.msra.mxu1 %v3428_v30  ;;  %4491 = vst [vmem:[#allocation20_spill] sm:$0xff] %v3448_v12  ;;  %v3452_v26 = vld [vmem:[#allocation2 + $0x520] sm:$0xff]  ;;  %v3462_v30 = vld [vmem:[#allocation2 + $0x410] sm:$0xff] }
 0x11d   : > { %1421 = vmatpush.msra.mxu2 %v3432_v60  ;;  %1444 = vmatpush.msra.mxu3 %v3434_v61  ;;  %4492 = vst [vmem:[#allocation21_spill] sm:$0xff] %v3450_v63  ;;  %v3456_v61 = vld [vmem:[#allocation2 + $0x428] sm:$0xff] }
 0x11e   : > { %1276 = vmatmul.f32.gmra.mxu0 %v1248_v25  ;;  %1299 = vmatmul.f32.gmra.mxu1 %v1251_v62  ;;  %4493 = vst [vmem:[#allocation22_spill] sm:$0xff] %v3452_v26  ;;  %v3458_v60 = vld [vmem:[#allocation2 + $0x528] sm:$0xff] }
 0x11f   : > { %1322 = vmatmul.f32.gmra.mxu2 %v1248_v25  ;;  %1345 = vmatmul.f32.gmra.mxu3 %v1251_v62  ;;  %4494 = vst [vmem:[#allocation23_spill] sm:$0xff] %v3456_v61  ;;  %v3464_v25 = vld [vmem:[#allocation2 + $0x510] sm:$0xff]  ;;  %v3468_v62 = vld [vmem:[#allocation2 + $0x418] sm:$0xff] }
 0x120   : > { %1376 = vmatpush.msra.mxu0 %v3442_v6  ;;  %1399 = vmatpush.msra.mxu1 %v3444_v37  ;;  %4495 = vst [vmem:[#allocation24_spill] sm:$0xff] %v3458_v60  ;;  %v3470_v6 = vld [vmem:[#allocation2 + $0x518] sm:$0xff]  ;;  %v3474_v37 = vld [vmem:[#allocation2 + $0x400] sm:$0xff] }
 0x121   : > { %1422 = vmatpush.msra.mxu2 %v3446_v13  ;;  %1445 = vmatpush.msra.mxu3 %v3448_v12  ;;  %4496 = vst [vmem:[#allocation25_spill] sm:$0xff] %v3462_v30  ;;  %v3476_v13 = vld [vmem:[#allocation2 + $0x500] sm:$0xff]  ;;  %v3480_v12 = vld [vmem:[#allocation2 + $0x408] sm:$0xff] }
 0x122   : > { %4497 = vst [vmem:[#allocation26_spill] sm:$0xff] %v3464_v25  ;;  %1377 = vmatpush.msra.mxu0 %v3450_v63  ;;  %1400 = vmatpush.msra.mxu1 %v3452_v26  ;;  %v3482_v63 = vld [vmem:[#allocation2 + $0x508] sm:$0xff]  ;;  %v3486_v26 = vld [vmem:[#allocation2 + $0x6f0] sm:$0xff] }
 0x123   : > { %4498 = vst [vmem:[#allocation27_spill] sm:$0xff] %v3468_v62  ;;  %1423 = vmatpush.msra.mxu2 %v3456_v61  ;;  %1446 = vmatpush.msra.mxu3 %v3458_v60  ;;  %v3488_v61 = vld [vmem:[#allocation2 + $0x7f0] sm:$0xff]  ;;  %v1354_v60 = vrot.slane %v3260_v0, 4 }
 0x124   : > { %4499 = vst [vmem:[#allocation28_spill] sm:$0xff] %v3470_v6  ;;  %1378 = vmatpush.msra.mxu0 %v3462_v30  ;;  %1401 = vmatpush.msra.mxu1 %v3464_v25  ;;  %v1357_v30 = vrot.slane %v3264_v40, 4  ;;  %v1358_v25 = vrot.slane %v3270_v16, 4  ;;  %v3508_v40 = vld [vmem:[#allocation2 + $0x6e0] sm:$0xff] }
 0x125   : > { %4500 = vst [vmem:[#allocation29_spill] sm:$0xff] %v3474_v37  ;;  %1424 = vmatpush.msra.mxu2 %v3468_v62  ;;  %1447 = vmatpush.msra.mxu3 %v3470_v6  ;;  %v3498_v62 = vld [vmem:[#allocation2 + $0x7f8] sm:$0xff]  ;;  %v1356_v0 = vsel %vm1353_vm11, %v1354_v60, %v1355_v2  ;;  %v3510_v16 = vld [vmem:[#allocation2 + $0x7e0] sm:$0xff] }
 0x126   : > { %4501 = vst [vmem:[#allocation30_spill] sm:$0xff] %v3476_v13  ;;  %1379 = vmatpush.msra.mxu0 %v3474_v37  ;;  %1402 = vmatpush.msra.mxu1 %v3476_v13  ;;  %v1359_v54 = vsel %vm1353_vm11, %v1357_v30, %v1358_v25  ;;  %v3522_v30 = vld [vmem:[#allocation2 + $0x6d8] sm:$0xff]  ;;  %v2898_v37 = vld [vmem:[#allocation2 + $0x200] sm:$0xff] }
 0x127   : > { %4502 = vst [vmem:[#allocation31_spill] sm:$0xff] %v3480_v12  ;;  %1425 = vmatpush.msra.mxu2 %v3480_v12  ;;  %1448 = vmatpush.msra.mxu3 %v3482_v63  ;;  %v3512_v12 = vld [vmem:[#allocation2 + $0x6e8] sm:$0xff]  ;;  %v3524_v60 = vld [vmem:[#allocation2 + $0x7d8] sm:$0xff] }
 0x128   : > { %4503 = vst [vmem:[#allocation32_spill] sm:$0xff] %v3482_v63  ;;  %1471 = vmatpush.msrb.mxu0 %v3486_v26  ;;  %1494 = vmatpush.msrb.mxu1 %v3488_v61  ;;  %v3514_v63 = vld [vmem:[#allocation2 + $0x7e8] sm:$0xff] }
 0x129   : > { %4504 = vst [vmem:[#allocation33_spill] sm:$0xff] %v3486_v26  ;;  %1517 = vmatpush.msrb.mxu2 %v3496_v10  ;;  %1540 = vmatpush.msrb.mxu3 %v3498_v62  ;;  %v3518_v10 = vld [vmem:[#allocation2 + $0x7d0] sm:$0xff]  ;;  %v2897_v26 = vld [vmem:[#allocation2 + $0x318] sm:$0xff] }
 0x12a   : > { %4505 = vst [vmem:[#allocation34_spill] sm:$0xff] %v3488_v61  ;;  %1380 = vmatmul.f32.vlgmr.msra.gmra.mxu0 %v1356_v0  ;;  %1403 = vmatmul.f32.vlgmr.msra.gmra.mxu1 %v1359_v54  ;;  %v3516_v61 = vld [vmem:[#allocation2 + $0x6d0] sm:$0xff] }
 0x12b   : > { %4507 = vst [vmem:[#allocation36_spill] sm:$0xff] %v3498_v62  ;;  %1426 = vmatmul.f32.vlgmr.msra.gmra.mxu2 %v1356_v0  ;;  %1449 = vmatmul.f32.vlgmr.msra.gmra.mxu3 %v1359_v54  ;;  %v3528_v62 = vld [vmem:[#allocation2 + $0x6c0] sm:$0xff]  ;;  %v3534_v54 = vld [vmem:[#allocation2 + $0x6c8] sm:$0xff] }
 0x12c   : > { %4508 = vst [vmem:[#allocation37_spill] sm:$0xff] %v3508_v40  ;;  %1472 = vmatpush.msrb.mxu0 %v3508_v40  ;;  %1495 = vmatpush.msrb.mxu1 %v3510_v16  ;;  %v3530_v0 = vld [vmem:[#allocation2 + $0x7c0] sm:$0xff]  ;;  %v3536_v40 = vld [vmem:[#allocation2 + $0x7c8] sm:$0xff] }
 0x12d   : > { %4509 = vst [vmem:[#allocation38_spill] sm:$0xff] %v3510_v16  ;;  %1518 = vmatpush.msrb.mxu2 %v3512_v12  ;;  %1541 = vmatpush.msrb.mxu3 %v3514_v63  ;;  %v3540_v16 = vld [vmem:[#allocation2 + $0x6b0] sm:$0xff] }
 0x12e   : > { %4510 = vst [vmem:[#allocation39_spill] sm:$0xff] %v3512_v12  ;;  %1473 = vmatpush.msrb.mxu0 %v3516_v61  ;;  %1496 = vmatpush.msrb.mxu1 %v3518_v10  ;;  %v3542_v12 = vld [vmem:[#allocation2 + $0x7b0] sm:$0xff] }
 0x12f   : > { %4511 = vst [vmem:[#allocation40_spill] sm:$0xff] %v3514_v63  ;;  %1519 = vmatpush.msrb.mxu2 %v3522_v30  ;;  %1542 = vmatpush.msrb.mxu3 %v3524_v60  ;;  %v3546_v63 = vld [vmem:[#allocation2 + $0x6b8] sm:$0xff] }
 0x130   : > { %4512 = vst [vmem:[#allocation41_spill] sm:$0xff] %v3516_v61  ;;  %1474 = vmatpush.msrb.mxu0 %v3528_v62  ;;  %1497 = vmatpush.msrb.mxu1 %v3530_v0  ;;  %v3548_v61 = vld [vmem:[#allocation2 + $0x7b8] sm:$0xff] }
 0x131   : > { %4513 = vst [vmem:[#allocation42_spill] sm:$0xff] %v3518_v10  ;;  %1520 = vmatpush.msrb.mxu2 %v3534_v54  ;;  %1543 = vmatpush.msrb.mxu3 %v3536_v40  ;;  %v2896_v10 = vld [vmem:[#allocation2 + $0x218] sm:$0xff] }
 0x132   : > { %4514 = vst [vmem:[#allocation43_spill] sm:$0xff] %v3522_v30  ;;  %1475 = vmatpush.msrb.mxu0 %v3540_v16  ;;  %1498 = vmatpush.msrb.mxu1 %v3542_v12  ;;  %v3562_v30 = vld [vmem:[#allocation2 + $0x7a8] sm:$0xff] }
 0x133   : > { %4515 = vst [vmem:[#allocation44_spill] sm:$0xff] %v3524_v60  ;;  %1521 = vmatpush.msrb.mxu2 %v3546_v63  ;;  %1544 = vmatpush.msrb.mxu3 %v3548_v61  ;;  %v3556_v60 = vld [vmem:[#allocation2 + $0x6a0] sm:$0xff] }
 0x134   : > { %4516 = vst [vmem:[#allocation45_spill] sm:$0xff] %v3528_v62  ;;  %v3558_v62 = vld [vmem:[#allocation2 + $0x7a0] sm:$0xff]  ;;  %1383 = vmatmul.f32.gmra.mxu0 %v1355_v2  ;;  %1406 = vmatmul.f32.gmra.mxu1 %v1358_v25 }
 0x135   : > { %4517 = vst [vmem:[#allocation46_spill] sm:$0xff] %v3530_v0  ;;  %v3560_v0 = vld [vmem:[#allocation2 + $0x6a8] sm:$0xff]  ;;  %1429 = vmatmul.f32.gmra.mxu2 %v1355_v2  ;;  %1452 = vmatmul.f32.gmra.mxu3 %v1358_v25  ;;  %v3578_v2 = vld [vmem:[#allocation2 + $0x780] sm:$0xff] }
 0x136   : > { %4518 = vst [vmem:[#allocation47_spill] sm:$0xff] %v3534_v54  ;;  %1476 = vmatpush.msrb.mxu0 %v3556_v60  ;;  %1499 = vmatpush.msrb.mxu1 %v3558_v62  ;;  %v3582_v25 = vld [vmem:[#allocation2 + $0x688] sm:$0xff] }
 0x137   : > { %4519 = vst [vmem:[#allocation48_spill] sm:$0xff] %v3536_v40  ;;  %v3564_v40 = vld [vmem:[#allocation2 + $0x690] sm:$0xff]  ;;  %1522 = vmatpush.msrb.mxu2 %v3560_v0  ;;  %1545 = vmatpush.msrb.mxu3 %v3562_v30  ;;  %v2893_v54 = vld [vmem:[#allocation2 + $0x328] sm:$0xff] }
 0x138   : > { %4520 = vst [vmem:[#allocation49_spill] sm:$0xff] %v3540_v16  ;;  %v3566_v16 = vld [vmem:[#allocation2 + $0x790] sm:$0xff]  ;;  %1477 = vmatpush.msrb.mxu0 %v3564_v40 }
 0x139   : > { %4521 = vst [vmem:[#allocation50_spill] sm:$0xff] %v3542_v12  ;;  %v3576_v12 = vld [vmem:[#allocation2 + $0x680] sm:$0xff]  ;;  %1500 = vmatpush.msrb.mxu1 %v3566_v16 }
 0x13a   : > { %4522 = vst [vmem:[#allocation51_spill] sm:$0xff] %v3546_v63  ;;  %v3572_v63 = vld [vmem:[#allocation2 + $0x798] sm:$0xff]  ;;  %1478 = vmatpush.msrb.mxu0 %v3576_v12 }
 0x13b   : > { %4523 = vst [vmem:[#allocation52_spill] sm:$0xff] %v3548_v61  ;;  %v3570_v61 = vld [vmem:[#allocation2 + $0x698] sm:$0xff]  ;;  %1546 = vmatpush.msrb.mxu3 %v3572_v63  ;;  %1501 = vmatpush.msrb.mxu1 %v3578_v2 }
 0x13c   : > { %4524 = vst [vmem:[#allocation53_spill] sm:$0xff] %v3556_v60  ;;  %v3584_v60 = vld [vmem:[#allocation2 + $0x788] sm:$0xff]  ;;  %1523 = vmatpush.msrb.mxu2 %v3570_v61 }
 0x13d   : > { %4525 = vst [vmem:[#allocation54_spill] sm:$0xff] %v3558_v62  ;;  %v3588_v62 = vld [vmem:[#allocation2 + $0x670] sm:$0xff]  ;;  %1547 = vmatpush.msrb.mxu3 %v3584_v60 }
 0x13e   : > { %4526 = vst [vmem:[#allocation55_spill] sm:$0xff] %v3560_v0  ;;  %v3590_v0 = vld [vmem:[#allocation2 + $0x770] sm:$0xff]  ;;  %1524 = vmatpush.msrb.mxu2 %v3582_v25  ;;  %1479 = vmatpush.msrb.mxu0 %v3588_v62 }
 0x13f   : > { %4527 = vst [vmem:[#allocation56_spill] sm:$0xff] %v3562_v30  ;;  %v3594_v30 = vld [vmem:[#allocation2 + $0x678] sm:$0xff]  ;;  %1502 = vmatpush.msrb.mxu1 %v3590_v0 }
 0x140   : > { %4528 = vst [vmem:[#allocation57_spill] sm:$0xff] %v3564_v40  ;;  %v3596_v40 = vld [vmem:[#allocation2 + $0x778] sm:$0xff]  ;;  %1525 = vmatpush.msrb.mxu2 %v3594_v30 }
 0x141   : > { %4529 = vst [vmem:[#allocation58_spill] sm:$0xff] %v3566_v16  ;;  %v3600_v16 = vld [vmem:[#allocation2 + $0x660] sm:$0xff]  ;;  %1548 = vmatpush.msrb.mxu3 %v3596_v40 }
 0x142   : > { %4530 = vst [vmem:[#allocation59_spill] sm:$0xff] %v3570_v61  ;;  %v3602_v61 = vld [vmem:[#allocation2 + $0x760] sm:$0xff]  ;;  %1480 = vmatpush.msrb.mxu0 %v3600_v16 }
 0x143   : > { %4531 = vst [vmem:[#allocation60_spill] sm:$0xff] %v3572_v63  ;;  %v3606_v63 = vld [vmem:[#allocation2 + $0x668] sm:$0xff]  ;;  %1503 = vmatpush.msrb.mxu1 %v3602_v61 }
 0x144   : > { %4532 = vst [vmem:[#allocation61_spill] sm:$0xff] %v3576_v12  ;;  %v3608_v12 = vld [vmem:[#allocation2 + $0x768] sm:$0xff]  ;;  %1526 = vmatpush.msrb.mxu2 %v3606_v63 }
 0x145   : > { %4533 = vst [vmem:[#allocation62_spill] sm:$0xff] %v3578_v2  ;;  %v3612_v2 = vld [vmem:[#allocation2 + $0x650] sm:$0xff]  ;;  %1549 = vmatpush.msrb.mxu3 %v3608_v12 }
 0x146   : > { %4534 = vst [vmem:[#allocation63_spill] sm:$0xff] %v3582_v25  ;;  %v3614_v25 = vld [vmem:[#allocation2 + $0x750] sm:$0xff]  ;;  %1481 = vmatpush.msrb.mxu0 %v3612_v2 }
 0x147   : > { %4535 = vst [vmem:[#allocation64_spill] sm:$0xff] %v3584_v60  ;;  %v3618_v60 = vld [vmem:[#allocation2 + $0x658] sm:$0xff]  ;;  %1504 = vmatpush.msrb.mxu1 %v3614_v25 }
 0x148   : > { %4536 = vst [vmem:[#allocation65_spill] sm:$0xff] %v3588_v62  ;;  %v3620_v62 = vld [vmem:[#allocation2 + $0x758] sm:$0xff]  ;;  %1527 = vmatpush.msrb.mxu2 %v3618_v60 }
 0x149   : > { %4537 = vst [vmem:[#allocation66_spill] sm:$0xff] %v3590_v0  ;;  %v3624_v0 = vld [vmem:[#allocation2 + $0x640] sm:$0xff]  ;;  %1550 = vmatpush.msrb.mxu3 %v3620_v62 }
 0x14a   : > { %4538 = vst [vmem:[#allocation67_spill] sm:$0xff] %v3594_v30  ;;  %v3626_v30 = vld [vmem:[#allocation2 + $0x740] sm:$0xff]  ;;  %1482 = vmatpush.msrb.mxu0 %v3624_v0 }
 0x14b   : > { %4539 = vst [vmem:[#allocation68_spill] sm:$0xff] %v3596_v40  ;;  %v3630_v40 = vld [vmem:[#allocation2 + $0x648] sm:$0xff]  ;;  %1505 = vmatpush.msrb.mxu1 %v3626_v30 }
 0x14c   : > { %4540 = vst [vmem:[#allocation69_spill] sm:$0xff] %v3600_v16  ;;  %v3632_v16 = vld [vmem:[#allocation2 + $0x748] sm:$0xff]  ;;  %1528 = vmatpush.msrb.mxu2 %v3630_v40 }
 0x14d   : > { %4541 = vst [vmem:[#allocation70_spill] sm:$0xff] %v3602_v61  ;;  %v3636_v61 = vld [vmem:[#allocation2 + $0x630] sm:$0xff]  ;;  %1551 = vmatpush.msrb.mxu3 %v3632_v16 }
 0x14e   : > { %4542 = vst [vmem:[#allocation71_spill] sm:$0xff] %v3606_v63  ;;  %v3638_v63 = vld [vmem:[#allocation2 + $0x730] sm:$0xff]  ;;  %1483 = vmatpush.msrb.mxu0 %v3636_v61 }
 0x14f   : > { %4543 = vst [vmem:[#allocation72_spill] sm:$0xff] %v3608_v12  ;;  %v3642_v12 = vld [vmem:[#allocation2 + $0x638] sm:$0xff]  ;;  %1506 = vmatpush.msrb.mxu1 %v3638_v63 }
 0x150   : > { %4544 = vst [vmem:[#allocation73_spill] sm:$0xff] %v3612_v2  ;;  %v3644_v2 = vld [vmem:[#allocation2 + $0x738] sm:$0xff]  ;;  %1529 = vmatpush.msrb.mxu2 %v3642_v12 }
 0x151   : > { %4545 = vst [vmem:[#allocation74_spill] sm:$0xff] %v3614_v25  ;;  %v3648_v25 = vld [vmem:[#allocation2 + $0x620] sm:$0xff]  ;;  %1552 = vmatpush.msrb.mxu3 %v3644_v2 }
 0x152   : > { %4546 = vst [vmem:[#allocation75_spill] sm:$0xff] %v3618_v60  ;;  %v3650_v60 = vld [vmem:[#allocation2 + $0x720] sm:$0xff]  ;;  %1484 = vmatpush.msrb.mxu0 %v3648_v25 }
 0x153   : > { %4547 = vst [vmem:[#allocation76_spill] sm:$0xff] %v3620_v62  ;;  %v3654_v62 = vld [vmem:[#allocation2 + $0x628] sm:$0xff]  ;;  %1507 = vmatpush.msrb.mxu1 %v3650_v60 }
 0x154   : > { %4548 = vst [vmem:[#allocation77_spill] sm:$0xff] %v3624_v0  ;;  %v3656_v0 = vld [vmem:[#allocation2 + $0x728] sm:$0xff]  ;;  %1530 = vmatpush.msrb.mxu2 %v3654_v62 }
 0x155   : > { %4549 = vst [vmem:[#allocation78_spill] sm:$0xff] %v3626_v30  ;;  %v3660_v30 = vld [vmem:[#allocation2 + $0x610] sm:$0xff]  ;;  %1553 = vmatpush.msrb.mxu3 %v3656_v0 }
 0x156   : > { %4550 = vst [vmem:[#allocation79_spill] sm:$0xff] %v3630_v40  ;;  %v3662_v40 = vld [vmem:[#allocation2 + $0x710] sm:$0xff]  ;;  %1485 = vmatpush.msrb.mxu0 %v3660_v30 }
 0x157   : > { %4551 = vst [vmem:[#allocation80_spill] sm:$0xff] %v3632_v16  ;;  %v3666_v16 = vld [vmem:[#allocation2 + $0x618] sm:$0xff]  ;;  %1508 = vmatpush.msrb.mxu1 %v3662_v40 }
 0x158   : > { %4552 = vst [vmem:[#allocation81_spill] sm:$0xff] %v3636_v61  ;;  %v3668_v61 = vld [vmem:[#allocation2 + $0x718] sm:$0xff]  ;;  %1531 = vmatpush.msrb.mxu2 %v3666_v16 }
 0x159   : > { %4553 = vst [vmem:[#allocation82_spill] sm:$0xff] %v3638_v63  ;;  %v3672_v63 = vld [vmem:[#allocation2 + $0x600] sm:$0xff]  ;;  %1554 = vmatpush.msrb.mxu3 %v3668_v61 }
 0x15a   : > { %4554 = vst [vmem:[#allocation83_spill] sm:$0xff] %v3642_v12  ;;  %v3674_v12 = vld [vmem:[#allocation2 + $0x700] sm:$0xff]  ;;  %1486 = vmatpush.msrb.mxu0 %v3672_v63 }
 0x15b   : > { %4555 = vst [vmem:[#allocation84_spill] sm:$0xff] %v3644_v2  ;;  %v3678_v2 = vld [vmem:[#allocation2 + $0x608] sm:$0xff]  ;;  %1509 = vmatpush.msrb.mxu1 %v3674_v12  ;;  %1487 = vmatmul.f32.vlgmr.msrb.gmra.mxu0 %v3312_v34 }
 0x15c   : > { %4556 = vst [vmem:[#allocation85_spill] sm:$0xff] %v3648_v25  ;;  %v3680_v25 = vld [vmem:[#allocation2 + $0x708] sm:$0xff]  ;;  %1532 = vmatpush.msrb.mxu2 %v3678_v2  ;;  %1510 = vmatmul.f32.vlgmr.msrb.gmra.mxu1 %v3322_v23 }
 0x15d   : > { %4557 = vst [vmem:[#allocation86_spill] sm:$0xff] %v3650_v60  ;;  %1555 = vmatpush.msrb.mxu3 %v3680_v25  ;;  %1533 = vmatmul.f32.vlgmr.msrb.gmra.mxu2 %v3312_v34  ;;  %v2783_v34 = vld [vmem:[#allocation2 + $0x1d0] sm:$0xff] }
 0x15e   : > { %4558 = vst [vmem:[#allocation87_spill] sm:$0xff] %v3654_v62  ;;  %1556 = vmatmul.f32.vlgmr.msrb.gmra.mxu3 %v3322_v23  ;;  %v2784_v23 = vld [vmem:[#allocation2 + $0xd8] sm:$0xff] }
 0x15f   : > { %4559 = vst [vmem:[#allocation88_spill] sm:$0xff] %v3656_v0  ;;  %v2782_v0 = vld [vmem:[#allocation2 + $0xd0] sm:$0xff] }
 0x160   : > { %4560 = vst [vmem:[#allocation89_spill] sm:$0xff] %v3660_v30  ;;  %v2781_v30 = vld [vmem:[#allocation2 + $0x1e8] sm:$0xff] }
 0x161   : > { %4561 = vst [vmem:[#allocation90_spill] sm:$0xff] %v3662_v40  ;;  %v2774_v40 = vld [vmem:[#allocation2 + $0xf0] sm:$0xff] }
 0x162   : > { %4562 = vst [vmem:[#allocation91_spill] sm:$0xff] %v3666_v16  ;;  %1567 = vmatpush.msra.mxu0 %v2774_v40  ;;  %v2775_v16 = vld [vmem:[#allocation2 + $0x1f0] sm:$0xff]  ;;  %v2785_v40 = vld [vmem:[#allocation2 + $0x1d8] sm:$0xff] }
 0x163   : > { %4563 = vst [vmem:[#allocation92_spill] sm:$0xff] %v3668_v61  ;;  %1590 = vmatpush.msra.mxu1 %v2775_v16  ;;  %v2776_v61 = vld [vmem:[#allocation2 + $0xf8] sm:$0xff]  ;;  %v2786_v16 = vld [vmem:[#allocation2 + $0xc0] sm:$0xff]  ;;  %1490 = vmatmul.f32.gmra.mxu0 %v3292_v27 }
 0x164   : > { %4564 = vst [vmem:[#allocation93_spill] sm:$0xff] %v3672_v63  ;;  %1613 = vmatpush.msra.mxu2 %v2776_v61  ;;  %v2777_v63 = vld [vmem:[#allocation2 + $0x1f8] sm:$0xff]  ;;  %v2787_v61 = vld [vmem:[#allocation2 + $0x1c0] sm:$0xff]  ;;  %1513 = vmatmul.f32.gmra.mxu1 %v3302_v31 }
 0x165   : > { %4565 = vst [vmem:[#allocation94_spill] sm:$0xff] %v3674_v12  ;;  %1636 = vmatpush.msra.mxu3 %v2777_v63  ;;  %v2778_v12 = vld [vmem:[#allocation2 + $0xe0] sm:$0xff]  ;;  %v2788_v63 = vld [vmem:[#allocation2 + $0xc8] sm:$0xff]  ;;  %1536 = vmatmul.f32.gmra.mxu2 %v3292_v27  ;;  %v2799_v27 = vld [vmem:[#allocation2 + $0x190] sm:$0xff] }
 0x166   : > { %4566 = vst [vmem:[#allocation95_spill] sm:$0xff] %v3678_v2  ;;  %1568 = vmatpush.msra.mxu0 %v2778_v12  ;;  %v2779_v2 = vld [vmem:[#allocation2 + $0x1e0] sm:$0xff]  ;;  %v2789_v12 = vld [vmem:[#allocation2 + $0x1c8] sm:$0xff]  ;;  %1559 = vmatmul.f32.gmra.mxu3 %v3302_v31  ;;  %v2800_v31 = vld [vmem:[#allocation2 + $0x98] sm:$0xff] }
 0x167   : > { %4567 = vst [vmem:[#allocation96_spill] sm:$0xff] %v3680_v25  ;;  %1591 = vmatpush.msra.mxu1 %v2779_v2  ;;  %v2780_v25 = vld [vmem:[#allocation2 + $0xe8] sm:$0xff]  ;;  %1637 = vmatpush.msra.mxu3 %v2781_v30  ;;  %v2790_v30 = vld [vmem:[#allocation2 + $0xb0] sm:$0xff]  ;;  %v2792_v2 = vld [vmem:[#allocation2 + $0xb8] sm:$0xff] }
 0x168   : > { %1614 = vmatpush.msra.mxu2 %v2780_v25  ;;  %1569 = vmatpush.msra.mxu0 %v2782_v0  ;;  %v2791_v0 = vld [vmem:[#allocation2 + $0x1b0] sm:$0xff]  ;;  %v2793_v25 = vld [vmem:[#allocation2 + $0x1b8] sm:$0xff] }
 0x169   : > { %1592 = vmatpush.msra.mxu1 %v2783_v34  ;;  %1638 = vmatpush.msra.mxu3 %v2785_v40  ;;  %v2794_v34 = vld [vmem:[#allocation2 + $0xa0] sm:$0xff]  ;;  %v2796_v40 = vld [vmem:[#allocation2 + $0xa8] sm:$0xff] }
 0x16a   : > { %1615 = vmatpush.msra.mxu2 %v2784_v23  ;;  %1570 = vmatpush.msra.mxu0 %v2786_v16  ;;  %v2795_v23 = vld [vmem:[#allocation2 + $0x1a0] sm:$0xff]  ;;  %v2797_v16 = vld [vmem:[#allocation2 + $0x1a8] sm:$0xff] }
 0x16b   : > { %1593 = vmatpush.msra.mxu1 %v2787_v61  ;;  %1639 = vmatpush.msra.mxu3 %v2789_v12  ;;  %v2798_v61 = vld [vmem:[#allocation2 + $0x90] sm:$0xff]  ;;  %v2802_v12 = vld [vmem:[#allocation2 + $0x80] sm:$0xff] }
 0x16c   : > { %1616 = vmatpush.msra.mxu2 %v2788_v63  ;;  %1571 = vmatpush.msra.mxu0 %v2790_v30  ;;  %v2801_v63 = vld [vmem:[#allocation2 + $0x198] sm:$0xff]  ;;  %v2803_v30 = vld [vmem:[#allocation2 + $0x180] sm:$0xff] }
 0x16d   : > { %1594 = vmatpush.msra.mxu1 %v2791_v0  ;;  %1640 = vmatpush.msra.mxu3 %v2793_v25  ;;  %v2804_v0 = vld [vmem:[#allocation2 + $0x88] sm:$0xff]  ;;  %v2806_v25 = vld [vmem:[#allocation2 + $0x70] sm:$0xff] }
 0x16e   : > { %1617 = vmatpush.msra.mxu2 %v2792_v2  ;;  %1572 = vmatpush.msra.mxu0 %v2794_v34  ;;  %v2805_v2 = vld [vmem:[#allocation2 + $0x188] sm:$0xff]  ;;  %v2807_v34 = vld [vmem:[#allocation2 + $0x170] sm:$0xff] }
 0x16f   : > { %1595 = vmatpush.msra.mxu1 %v2795_v23  ;;  %1641 = vmatpush.msra.mxu3 %v2797_v16  ;;  %v2808_v23 = vld [vmem:[#allocation2 + $0x78] sm:$0xff]  ;;  %v2810_v16 = vld [vmem:[#allocation2 + $0x60] sm:$0xff] }
 0x170   : > { %1618 = vmatpush.msra.mxu2 %v2796_v40  ;;  %1573 = vmatpush.msra.mxu0 %v2798_v61  ;;  %v2809_v40 = vld [vmem:[#allocation2 + $0x178] sm:$0xff]  ;;  %v2811_v61 = vld [vmem:[#allocation2 + $0x160] sm:$0xff] }
 0x171   : > { %1596 = vmatpush.msra.mxu1 %v2799_v27  ;;  %1642 = vmatpush.msra.mxu3 %v2801_v63  ;;  %v2812_v27 = vld [vmem:[#allocation2 + $0x68] sm:$0xff]  ;;  %v2814_v63 = vld [vmem:[#allocation2 + $0x50] sm:$0xff] }
 0x172   : > { %1619 = vmatpush.msra.mxu2 %v2800_v31  ;;  %1574 = vmatpush.msra.mxu0 %v2802_v12  ;;  %v2813_v31 = vld [vmem:[#allocation2 + $0x168] sm:$0xff]  ;;  %v2815_v12 = vld [vmem:[#allocation2 + $0x150] sm:$0xff] }
 0x173   : > { %1597 = vmatpush.msra.mxu1 %v2803_v30  ;;  %1643 = vmatpush.msra.mxu3 %v2805_v2  ;;  %v2816_v30 = vld [vmem:[#allocation2 + $0x58] sm:$0xff]  ;;  %v2818_v2 = vld [vmem:[#allocation2 + $0x40] sm:$0xff] }
 0x174   : > { %1620 = vmatpush.msra.mxu2 %v2804_v0  ;;  %1575 = vmatpush.msra.mxu0 %v2806_v25  ;;  %v2817_v0 = vld [vmem:[#allocation2 + $0x158] sm:$0xff]  ;;  %v2819_v25 = vld [vmem:[#allocation2 + $0x140] sm:$0xff] }
 0x175   : > { %1598 = vmatpush.msra.mxu1 %v2807_v34  ;;  %1644 = vmatpush.msra.mxu3 %v2809_v40  ;;  %v2820_v34 = vld [vmem:[#allocation2 + $0x48] sm:$0xff]  ;;  %v2822_v40 = vld [vmem:[#allocation2 + $0x30] sm:$0xff] }
 0x176   : > { %1621 = vmatpush.msra.mxu2 %v2808_v23  ;;  %1576 = vmatpush.msra.mxu0 %v2810_v16  ;;  %v2821_v23 = vld [vmem:[#allocation2 + $0x148] sm:$0xff]  ;;  %v2823_v16 = vld [vmem:[#allocation2 + $0x130] sm:$0xff] }
 0x177   : > { %1599 = vmatpush.msra.mxu1 %v2811_v61  ;;  %1645 = vmatpush.msra.mxu3 %v2813_v31  ;;  %v2824_v61 = vld [vmem:[#allocation2 + $0x38] sm:$0xff]  ;;  %v2826_v31 = vld [vmem:[#allocation2 + $0x20] sm:$0xff] }
 0x178   : > { %1622 = vmatpush.msra.mxu2 %v2812_v27  ;;  %1577 = vmatpush.msra.mxu0 %v2814_v63  ;;  %v2825_v27 = vld [vmem:[#allocation2 + $0x138] sm:$0xff]  ;;  %v2827_v63 = vld [vmem:[#allocation2 + $0x120] sm:$0xff] }
 0x179   : > { %1600 = vmatpush.msra.mxu1 %v2815_v12  ;;  %1646 = vmatpush.msra.mxu3 %v2817_v0  ;;  %v2828_v12 = vld [vmem:[#allocation2 + $0x28] sm:$0xff]  ;;  %v2830_v0 = vld [vmem:[#allocation2 + $0x10] sm:$0xff] }
 0x17a   : > { %1623 = vmatpush.msra.mxu2 %v2816_v30  ;;  %1578 = vmatpush.msra.mxu0 %v2818_v2  ;;  %v2829_v30 = vld [vmem:[#allocation2 + $0x128] sm:$0xff]  ;;  %v2831_v2 = vld [vmem:[#allocation2 + $0x110] sm:$0xff] }
 0x17b   : > { %1601 = vmatpush.msra.mxu1 %v2819_v25  ;;  %1647 = vmatpush.msra.mxu3 %v2821_v23  ;;  %v2832_v25 = vld [vmem:[#allocation2 + $0x18] sm:$0xff]  ;;  %v2834_v23 = vld [vmem:[#allocation2] sm:$0xff] }
 0x17c   : > { %1624 = vmatpush.msra.mxu2 %v2820_v34  ;;  %1579 = vmatpush.msra.mxu0 %v2822_v40  ;;  %v2833_v34 = vld [vmem:[#allocation2 + $0x118] sm:$0xff]  ;;  %v2835_v40 = vld [vmem:[#allocation2 + $0x100] sm:$0xff] }
 0x17d   : > { %1602 = vmatpush.msra.mxu1 %v2823_v16  ;;  %1648 = vmatpush.msra.mxu3 %v2825_v27  ;;  %v3697_v16 = vmax.f32 %v3254_v14, 0.0  ;;  %v2836_v27 = vld [vmem:[#allocation2 + $0x8] sm:$0xff]  ;;  %v2840_v14 = vld [vmem:[#allocation2 + $0x2f8] sm:$0xff] }
 0x17e   : > { %1625 = vmatpush.msra.mxu2 %v2824_v61  ;;  %1580 = vmatpush.msra.mxu0 %v2826_v31  ;;  %v3700_v61 = vmax.f32 %v3258_v15, 0.0  ;;  %v2837_v31 = vld [vmem:[#allocation2 + $0x108] sm:$0xff]  ;;  %v2841_v15 = vld [vmem:[#allocation2 + $0x3f8] sm:$0xff] }
 0x17f   : > { %1603 = vmatpush.msra.mxu1 %v2827_v63  ;;  %1649 = vmatpush.msra.mxu3 %v2829_v30  ;;  %v2838_v63 = vld [vmem:[#allocation2 + $0x2f0] sm:$0xff]  ;;  %v2842_v30 = vld [vmem:[#allocation2 + $0x2e0] sm:$0xff] }
 0x180   : > { %1626 = vmatpush.msra.mxu2 %v2828_v12  ;;  %1581 = vmatpush.msra.mxu0 %v2830_v0  ;;  %v2839_v12 = vld [vmem:[#allocation2 + $0x3f0] sm:$0xff]  ;;  %v2843_v0 = vld [vmem:[#allocation2 + $0x3e0] sm:$0xff] }
 0x181   : > { %1604 = vmatpush.msra.mxu1 %v2831_v2  ;;  %1650 = vmatpush.msra.mxu3 %v2833_v34  ;;  %v2844_v2 = vld [vmem:[#allocation2 + $0x2e8] sm:$0xff]  ;;  %v2846_v34 = vld [vmem:[#allocation2 + $0x2d0] sm:$0xff] }
 0x182   : > { %1627 = vmatpush.msra.mxu2 %v2832_v25  ;;  %1582 = vmatpush.msra.mxu0 %v2834_v23  ;;  %v2845_v25 = vld [vmem:[#allocation2 + $0x3e8] sm:$0xff]  ;;  %v2847_v23 = vld [vmem:[#allocation2 + $0x3d0] sm:$0xff] }
 0x183   : > { %1605 = vmatpush.msra.mxu1 %v2835_v40  ;;  %1651 = vmatpush.msra.mxu3 %v2837_v31  ;;  %v2848_v40 = vld [vmem:[#allocation2 + $0x2d8] sm:$0xff]  ;;  %v3707_v31 = vmax.f32 %v3252_v11, 0.0  ;;  %v2854_v11 = vld [vmem:[#allocation2 + $0x2b0] sm:$0xff] }
 0x184   : > { %1628 = vmatpush.msra.mxu2 %v2836_v27  ;;  %1583 = vmatmul.f32.vlgmr.msra.gmra.mxu0 %v3697_v16  ;;  %v2849_v27 = vld [vmem:[#allocation2 + $0x3d8] sm:$0xff] }
 0x185   : > { %1606 = vmatmul.f32.vlgmr.msra.gmra.mxu1 %v3700_v61  ;;  %1629 = vmatmul.f32.vlgmr.msra.gmra.mxu2 %v3697_v16 }
 0x186   : > { %1652 = vmatmul.f32.vlgmr.msra.gmra.mxu3 %v3700_v61  ;;  %1677 = vmatpush.msrb.mxu0 %v2838_v63  ;;  %v3710_v63 = vmax.f32 %v3256_v1, 0.0  ;;  %v2855_v1 = vld [vmem:[#allocation2 + $0x3b0] sm:$0xff] }
 0x187   : > { %1700 = vmatpush.msrb.mxu1 %v2839_v12  ;;  %1723 = vmatpush.msrb.mxu2 %v2840_v14  ;;  %v2850_v12 = vld [vmem:[#allocation2 + $0x2c0] sm:$0xff] }
 0x188   : > { %1746 = vmatpush.msrb.mxu3 %v2841_v15  ;;  %1678 = vmatpush.msrb.mxu0 %v2842_v30  ;;  %4568 = vst [vmem:[#allocation97_spill] sm:$0xff] %v3710_v63  ;;  %v2851_v14 = vld [vmem:[#allocation2 + $0x3c0] sm:$0xff]  ;;  %v2852_v15 = vld [vmem:[#allocation2 + $0x2c8] sm:$0xff] }
 0x189   : > { %1701 = vmatpush.msrb.mxu1 %v2843_v0  ;;  %1724 = vmatpush.msrb.mxu2 %v2844_v2  ;;  %v2853_v30 = vld [vmem:[#allocation2 + $0x3c8] sm:$0xff]  ;;  %v2856_v0 = vld [vmem:[#allocation2 + $0x2b8] sm:$0xff] }
 0x18a   : > { %1747 = vmatpush.msrb.mxu3 %v2845_v25  ;;  %1679 = vmatpush.msrb.mxu0 %v2846_v34  ;;  %v2857_v2 = vld [vmem:[#allocation2 + $0x3b8] sm:$0xff]  ;;  %v1158_v25 = vpop.f32.mrf.mxu0  ;;  %v2858_v34 = vld [vmem:[#allocation2 + $0x2a0] sm:$0xff] }
 0x18b   : > { %1702 = vmatpush.msrb.mxu1 %v2847_v23  ;;  %1725 = vmatpush.msrb.mxu2 %v2848_v40  ;;  %v2859_v23 = vld [vmem:[#allocation2 + $0x3a0] sm:$0xff]  ;;  %v1181_v40 = vpop.f32.mrf.mxu1 }
 0x18c   : > { %1748 = vmatpush.msrb.mxu3 %v2849_v27  ;;  %1680 = vmatpush.msrb.mxu0 %v2850_v12  ;;  %v2860_v27 = vld [vmem:[#allocation2 + $0x2a8] sm:$0xff] }
 0x18d   : > { %1703 = vmatpush.msrb.mxu1 %v2851_v14  ;;  %1726 = vmatpush.msrb.mxu2 %v2852_v15  ;;  %v2861_v12 = vld [vmem:[#allocation2 + $0x3a8] sm:$0xff]  ;;  %v3716_v14 = vadd.f32 %v1181_v40, %v1158_v25  ;;  %v2862_v15 = vld [vmem:[#allocation2 + $0x290] sm:$0xff]  ;;  %v1227_v40 = vpop.f32.mrf.mxu3 }
 0x18e   : > { %1749 = vmatpush.msrb.mxu3 %v2853_v30  ;;  %1586 = vmatmul.f32.gmra.mxu0 %v3707_v31  ;;  %v2863_v30 = vld [vmem:[#allocation2 + $0x390] sm:$0xff] }
 0x18f   : > { %1609 = vmatmul.f32.gmra.mxu1 %v3710_v63  ;;  %1632 = vmatmul.f32.gmra.mxu2 %v3707_v31  ;;  %v2871_v25 = vld [vmem:[#allocation2 + $0x370] sm:$0xff] }
 0x190   : > { %1655 = vmatmul.f32.gmra.mxu3 %v3710_v63  ;;  %1681 = vmatpush.msrb.mxu0 %v2854_v11  ;;  %v2864_v11 = vld [vmem:[#allocation2 + $0x298] sm:$0xff] }
 0x191   : > { %1704 = vmatpush.msrb.mxu1 %v2855_v1  ;;  %1727 = vmatpush.msrb.mxu2 %v2856_v0  ;;  %v2865_v1 = vld [vmem:[#allocation2 + $0x398] sm:$0xff]  ;;  %v2866_v0 = vld [vmem:[#allocation2 + $0x280] sm:$0xff] }
 0x192   : > { %1750 = vmatpush.msrb.mxu3 %v2857_v2  ;;  %1682 = vmatpush.msrb.mxu0 %v2858_v34  ;;  %v2867_v2 = vld [vmem:[#allocation2 + $0x380] sm:$0xff]  ;;  %v2868_v34 = vld [vmem:[#allocation2 + $0x288] sm:$0xff] }
 0x193   : > { %1705 = vmatpush.msrb.mxu1 %v2859_v23  ;;  %1728 = vmatpush.msrb.mxu2 %v2860_v27  ;;  %v2869_v23 = vld [vmem:[#allocation2 + $0x388] sm:$0xff]  ;;  %v1204_v27 = vpop.f32.mrf.mxu2  ;;  %v1184_v62 = vpop.f32.mrf.mxu1 }
 0x194   : > { %1751 = vmatpush.msrb.mxu3 %v2861_v12  ;;  %1683 = vmatpush.msrb.mxu0 %v2862_v15  ;;  %v2870_v12 = vld [vmem:[#allocation2 + $0x270] sm:$0xff]  ;;  %v2872_v15 = vld [vmem:[#allocation2 + $0x278] sm:$0xff] }
 0x195   : > { %1706 = vmatpush.msrb.mxu1 %v2863_v30  ;;  %1729 = vmatpush.msrb.mxu2 %v2864_v11  ;;  %v2873_v30 = vld [vmem:[#allocation2 + $0x378] sm:$0xff]  ;;  %v3718_v11 = vadd.f32 %v1227_v40, %v1204_v27  ;;  %v2882_v40 = vld [vmem:[#allocation2 + $0x240] sm:$0xff] }
 0x196   : > { %1752 = vmatpush.msrb.mxu3 %v2865_v1  ;;  %1684 = vmatpush.msrb.mxu0 %v2866_v0  ;;  %v2874_v1 = vld [vmem:[#allocation2 + $0x260] sm:$0xff]  ;;  %v2881_v27 = vld [vmem:[#allocation2 + $0x358] sm:$0xff] }
 0x197   : > { %1707 = vmatpush.msrb.mxu1 %v2867_v2  ;;  %1730 = vmatpush.msrb.mxu2 %v2868_v34  ;;  %v2875_v0 = vld [vmem:[#allocation2 + $0x360] sm:$0xff]  ;;  %v2876_v2 = vld [vmem:[#allocation2 + $0x268] sm:$0xff] }
 0x198   : > { %1753 = vmatpush.msrb.mxu3 %v2869_v23  ;;  %1685 = vmatpush.msrb.mxu0 %v2870_v12  ;;  %v2877_v34 = vld [vmem:[#allocation2 + $0x368] sm:$0xff]  ;;  %v1161_v23 = vpop.f32.mrf.mxu0  ;;  %v2878_v12 = vld [vmem:[#allocation2 + $0x250] sm:$0xff] }
 0x199   : > { %1708 = vmatpush.msrb.mxu1 %v2871_v25  ;;  %1731 = vmatpush.msrb.mxu2 %v2872_v15  ;;  %v2879_v25 = vld [vmem:[#allocation2 + $0x350] sm:$0xff]  ;;  %v3720_v60 = vadd.f32 %v1184_v62, %v1161_v23  ;;  %v2880_v15 = vld [vmem:[#allocation2 + $0x258] sm:$0xff] }
 0x19a   : > { %1754 = vmatpush.msrb.mxu3 %v2873_v30  ;;  %1686 = vmatpush.msrb.mxu0 %v2874_v1  ;;  %v2883_v30 = vld [vmem:[#allocation2 + $0x340] sm:$0xff]  ;;  %v2884_v1 = vld [vmem:[#allocation2 + $0x248] sm:$0xff]  ;;  %v2887_v62 = vld [vmem:[#allocation2 + $0x330] sm:$0xff] }
 0x19b   : > { %1709 = vmatpush.msrb.mxu1 %v2875_v0  ;;  %1732 = vmatpush.msrb.mxu2 %v2876_v2  ;;  %v2885_v0 = vld [vmem:[#allocation2 + $0x348] sm:$0xff]  ;;  %v1138_v2 = vld [vmem:[%s4360_s6] sm:$0x3]  ;;  %v2888_v23 = vld [vmem:[#allocation2 + $0x238] sm:$0xff] }
 0x19c   : > { %1755 = vmatpush.msrb.mxu3 %v2877_v34  ;;  %1687 = vmatpush.msrb.mxu0 %v2878_v12  ;;  %v2886_v34 = vld [vmem:[#allocation2 + $0x230] sm:$0xff]  ;;  %v2889_v12 = vld [vmem:[#allocation2 + $0x338] sm:$0xff] }
 0x19d   : > { %1710 = vmatpush.msrb.mxu1 %v2879_v25  ;;  %1733 = vmatpush.msrb.mxu2 %v2880_v15  ;;  %v2890_v25 = vld [vmem:[#allocation2 + $0x220] sm:$0xff] }
 0x19e   : > { %1756 = vmatpush.msrb.mxu3 %v2881_v27  ;;  %1688 = vmatpush.msrb.mxu0 %v2882_v40  ;;  %v2891_v15 = vld [vmem:[#allocation2 + $0x320] sm:$0xff]  ;;  %v1667_v27 = vrot.slane %v3697_v16, 2  ;;  %v3726_v40 = vperm.slane %v1138_v2, 0 }
 0x19f   : > { %1711 = vmatpush.msrb.mxu1 %v2883_v30  ;;  %1734 = vmatpush.msrb.mxu2 %v2884_v1  ;;  %v1207_v30 = vpop.f32.mrf.mxu2  ;;  %v1230_v1 = vpop.f32.mrf.mxu3 }
 0x1a0   : > { %1757 = vmatpush.msrb.mxu3 %v2885_v0  ;;  %1689 = vmatpush.msrb.mxu0 %v2886_v34  ;;  %v2892_v0 = vld [vmem:[#allocation2 + $0x228] sm:$0xff]  ;;  %v1668_v34 = vrot.slane %v3707_v31, 2  ;;  %v1274_v13 = vpop.f32.mrf.mxu0  ;;  %v1238_v6 = vadd.f32 %v3726_v40, %v3716_v14 }
 0x1a1   : > { %1712 = vmatpush.msrb.mxu1 %v2887_v62  ;;  %1735 = vmatpush.msrb.mxu2 %v2888_v23  ;;  %v1670_v62 = vrot.slane %v3700_v61, 2  ;;  %v1671_v23 = vrot.slane %v3710_v63, 2 }
 0x1a2   : > { %1758 = vmatpush.msrb.mxu3 %v2889_v12  ;;  %1690 = vmatpush.msrb.mxu0 %v2890_v25  ;;  %v3731_v12 = vadd.f32 %v1230_v1, %v1207_v30  ;;  %v2894_v25 = vld [vmem:[#allocation2 + $0x210] sm:$0xff]  ;;  %v2900_v30 = vld [vmem:[#allocation2 + $0x208] sm:$0xff] }
 0x1a3   : > { %1713 = vmatpush.msrb.mxu1 %v2891_v15  ;;  %1736 = vmatpush.msrb.mxu2 %v2892_v0  ;;  %v2895_v15 = vld [vmem:[#allocation2 + $0x310] sm:$0xff]  ;;  %v1297_v0 = vpop.f32.mrf.mxu1  ;;  %v2901_v1 = vld [vmem:[#allocation2 + $0x308] sm:$0xff] }
 0x1a4   : > { %1759 = vmatpush.msrb.mxu3 %v2893_v54  ;;  %1691 = vmatpush.msrb.mxu0 %v2894_v25  ;;  %v2899_v54 = vld [vmem:[#allocation2 + $0x300] sm:$0xff]  ;;  %v1298_v63 = vadd.f32 %v1297_v0, %v1274_v13  ;;  %v1669_v25 = vsel %vm1246_vm10, %v1667_v27, %v1668_v34  ;;  %v4586_v27 = vld [vmem:[#allocation97_spill] sm:$0xff] }
 0x1a5   : > { %1714 = vmatpush.msrb.mxu1 %v2895_v15  ;;  %1737 = vmatpush.msrb.mxu2 %v2896_v10  ;;  %v1672_v10 = vsel %vm1246_vm10, %v1670_v62, %v1671_v23  ;;  %v4587_v62 = vld [vmem:[#allocation25_spill] sm:$0xff]  ;;  %v4589_v15 = vld [vmem:[#allocation27_spill] sm:$0xff]  ;;  %v4590_v0 = vld [vmem:[#allocation28_spill] sm:$0xff] }
 0x1a6   : > { %1760 = vmatpush.msrb.mxu3 %v2897_v26  ;;  %1692 = vmatpush.msrb.mxu0 %v2898_v37  ;;  %v3737_v26 = vadd.f32 %v1298_v63, %v1238_v6  ;;  %v3739_v37 = vperm.slane %v1138_v2, 1  ;;  %v1773_v63 = vrot.slane %v3697_v16, 4  ;;  %v1776_v2 = vrot.slane %v3700_v61, 4 }
 0x1a7   : > { %1715 = vmatpush.msrb.mxu1 %v2899_v54  ;;  %1738 = vmatpush.msrb.mxu2 %v2900_v30  ;;  %v1320_v13 = vpop.f32.mrf.mxu2  ;;  %v1343_v14 = vpop.f32.mrf.mxu3  ;;  %v4591_v54 = vld [vmem:[#allocation29_spill] sm:$0xff]  ;;  %v4592_v30 = vld [vmem:[#allocation30_spill] sm:$0xff] }
 0x1a8   : > { %1761 = vmatpush.msrb.mxu3 %v2901_v1  ;;  %1693 = vmatmul.f32.vlgmr.msrb.gmra.mxu0 %v1669_v25  ;;  %v1239_v6 = vadd.f32 %v3739_v37, %v3718_v11  ;;  %v1774_v11 = vrot.slane %v3707_v31, 4  ;;  %v4593_v1 = vld [vmem:[#allocation31_spill] sm:$0xff] }
 0x1a9   : > { %1716 = vmatmul.f32.vlgmr.msrb.gmra.mxu1 %v1672_v10  ;;  %1739 = vmatmul.f32.vlgmr.msrb.gmra.mxu2 %v1669_v25  ;;  %v4594_v25 = vld [vmem:[#allocation32_spill] sm:$0xff] }
 0x1aa   : > { %1762 = vmatmul.f32.vlgmr.msrb.gmra.mxu3 %v1672_v10  ;;  %1783 = vmatpush.msra.mxu0 %v3266_v4  ;;  %v1344_v4 = vadd.f32 %v1343_v14, %v1320_v13  ;;  %v1775_v10 = vsel %vm1353_vm11, %v1773_v63, %v1774_v11 }
 0x1ab   : > { %1806 = vmatpush.msra.mxu1 %v3268_v5  ;;  %1829 = vmatpush.msra.mxu2 %v3274_v17  ;;  %v1277_v17 = vpop.f32.mrf.mxu0 }
 0x1ac   : > { %1852 = vmatpush.msra.mxu3 %v3276_v18  ;;  %1784 = vmatpush.msra.mxu0 %v3280_v19  ;;  %v1350_v5 = vadd.f32 %v1344_v4, %v1239_v6  ;;  %v1300_v18 = vpop.f32.mrf.mxu1  ;;  %v1240_v19 = vadd.f32 %v3726_v40, %v3720_v60  ;;  %v4585_v60 = vld [vmem:[#allocation24_spill] sm:$0xff]  ;;  %v4595_v4 = vld [vmem:[#allocation33_spill] sm:$0xff] }
 0x1ad   : > { %1807 = vmatpush.msra.mxu1 %v3282_v20  ;;  %1830 = vmatpush.msra.mxu2 %v3286_v21  ;;  %v1301_v20 = vadd.f32 %v1300_v18, %v1277_v17  ;;  %v4597_v17 = vld [vmem:[#allocation35_spill] sm:$0xff]  ;;  %v4598_v18 = vld [vmem:[#allocation36_spill] sm:$0xff] }
 0x1ae   : > { %1853 = vmatpush.msra.mxu3 %v3288_v22  ;;  %1785 = vmatpush.msra.mxu0 %v3296_v28 }
 0x1af   : > { %1808 = vmatpush.msra.mxu1 %v3298_v29  ;;  %1831 = vmatpush.msra.mxu2 %v3306_v32  ;;  %v3761_v21 = vadd.f32 %v1301_v20, %v1240_v19  ;;  %v1323_v22 = vpop.f32.mrf.mxu2  ;;  %v1346_v28 = vpop.f32.mrf.mxu3  ;;  %v1241_v29 = vadd.f32 %v3739_v37, %v3731_v12  ;;  %v4599_v20 = vld [vmem:[#allocation37_spill] sm:$0xff] }
 0x1b0   : > { %1854 = vmatpush.msra.mxu3 %v3308_v33  ;;  %1786 = vmatpush.msra.mxu0 %v3316_v35  ;;  %v1347_v32 = vadd.f32 %v1346_v28, %v1323_v22  ;;  %v4601_v22 = vld [vmem:[#allocation39_spill] sm:$0xff]  ;;  %v4602_v28 = vld [vmem:[#allocation40_spill] sm:$0xff] }
 0x1b1   : > { %1809 = vmatpush.msra.mxu1 %v3318_v36  ;;  %1832 = vmatpush.msra.mxu2 %v3326_v38 }
 0x1b2   : > { %1855 = vmatpush.msra.mxu3 %v3328_v39  ;;  %1696 = vmatmul.f32.gmra.mxu0 %v1668_v34  ;;  %v3777_v33 = vadd.f32 %v1347_v32, %v1241_v29  ;;  %v4603_v29 = vld [vmem:[#allocation41_spill] sm:$0xff]  ;;  %v4604_v32 = vld [vmem:[#allocation42_spill] sm:$0xff] }
 0x1b3   : > { %1719 = vmatmul.f32.gmra.mxu1 %v1671_v23  ;;  %1742 = vmatmul.f32.gmra.mxu2 %v1668_v34  ;;  %v1381_v35 = vpop.f32.mrf.mxu0  ;;  %v1777_v34 = vrot.slane %v4586_v27, 4 }
 0x1b4   : > { %1765 = vmatmul.f32.gmra.mxu3 %v1671_v23  ;;  %1787 = vmatpush.msra.mxu0 %v3336_v42  ;;  %v1404_v36 = vpop.f32.mrf.mxu1  ;;  %v4569_v42 = vld [vmem:[#allocation8_spill] sm:$0xff]  ;;  %v4588_v23 = vld [vmem:[#allocation26_spill] sm:$0xff] }
 0x1b5   : > { %1810 = vmatpush.msra.mxu1 %v3338_v45  ;;  %1833 = vmatpush.msra.mxu2 %v3342_v46  ;;  %v1405_v38 = vadd.f32 %v1404_v36, %v1381_v35  ;;  %v4570_v45 = vld [vmem:[#allocation9_spill] sm:$0xff]  ;;  %v4571_v46 = vld [vmem:[#allocation10_spill] sm:$0xff]  ;;  %v4605_v35 = vld [vmem:[#allocation43_spill] sm:$0xff] }
 0x1b6   : > { %1856 = vmatpush.msra.mxu3 %v3344_v49  ;;  %1788 = vmatpush.msra.mxu0 %v3348_v47  ;;  %v4572_v49 = vld [vmem:[#allocation11_spill] sm:$0xff]  ;;  %v4573_v47 = vld [vmem:[#allocation12_spill] sm:$0xff] }
 0x1b7   : > { %1811 = vmatpush.msra.mxu1 %v3350_v48  ;;  %1834 = vmatpush.msra.mxu2 %v3354_v50  ;;  %v3790_v39 = vadd.f32 %v1405_v38, %v3737_v26  ;;  %v4574_v48 = vld [vmem:[#allocation13_spill] sm:$0xff]  ;;  %v4575_v50 = vld [vmem:[#allocation14_spill] sm:$0xff]  ;;  %v1778_v26 = vsel %vm1353_vm11, %v1776_v2, %v1777_v34  ;;  %v4606_v36 = vld [vmem:[#allocation44_spill] sm:$0xff] }
 0x1b8   : > { %1857 = vmatpush.msra.mxu3 %v3356_v51  ;;  %1789 = vmatpush.msra.mxu0 %v3360_v52  ;;  %v1427_v51 = vpop.f32.mrf.mxu2  ;;  %v1450_v52 = vpop.f32.mrf.mxu3  ;;  %v4607_v38 = vld [vmem:[#allocation45_spill] sm:$0xff]  ;;  %v4630_v2 = vld [vmem:[#allocation68_spill] sm:$0xff] }
 0x1b9   : > { %1812 = vmatpush.msra.mxu1 %v3362_v53  ;;  %1835 = vmatpush.msra.mxu2 %v3366_v55  ;;  %v4576_v53 = vld [vmem:[#allocation15_spill] sm:$0xff]  ;;  %v4577_v55 = vld [vmem:[#allocation16_spill] sm:$0xff] }
 0x1ba   : > { %1858 = vmatpush.msra.mxu3 %v3368_v56  ;;  %1790 = vmatpush.msra.mxu0 %v3372_v57  ;;  %v1451_v56 = vadd.f32 %v1450_v52, %v1427_v51  ;;  %v4578_v57 = vld [vmem:[#allocation17_spill] sm:$0xff]  ;;  %v4616_v51 = vld [vmem:[#allocation54_spill] sm:$0xff]  ;;  %v4617_v52 = vld [vmem:[#allocation55_spill] sm:$0xff] }
 0x1bb   : > { %1813 = vmatpush.msra.mxu1 %v3374_v58  ;;  %1836 = vmatpush.msra.mxu2 %v3382_v3  ;;  %v4579_v58 = vld [vmem:[#allocation18_spill] sm:$0xff]  ;;  %v4580_v3 = vld [vmem:[#allocation19_spill] sm:$0xff] }
 0x1bc   : > { %1859 = vmatpush.msra.mxu3 %v3384_v43  ;;  %1791 = vmatpush.msra.mxu0 %v3394_v7  ;;  %v4581_v43 = vld [vmem:[#allocation20_spill] sm:$0xff]  ;;  %v3806_v7 = vadd.f32 %v1451_v56, %v1350_v5  ;;  %v4596_v5 = vld [vmem:[#allocation34_spill] sm:$0xff] }
 0x1bd   : > { %1814 = vmatpush.msra.mxu1 %v3396_v59  ;;  %1837 = vmatpush.msra.mxu2 %v3398_v41  ;;  %v1384_v59 = vpop.f32.mrf.mxu0  ;;  %v1407_v41 = vpop.f32.mrf.mxu1  ;;  %v4620_v56 = vld [vmem:[#allocation58_spill] sm:$0xff] }
 0x1be   : > { %1860 = vmatpush.msra.mxu3 %v3400_v44  ;;  %1792 = vmatpush.msra.mxu0 %v3402_v8  ;;  %v4582_v44 = vld [vmem:[#allocation21_spill] sm:$0xff]  ;;  %v4583_v8 = vld [vmem:[#allocation22_spill] sm:$0xff] }
 0x1bf   : > { %1815 = vmatpush.msra.mxu1 %v3404_v24  ;;  %1838 = vmatpush.msra.mxu2 %v3408_v9  ;;  %v1408_v24 = vadd.f32 %v1407_v41, %v1384_v59  ;;  %v4584_v9 = vld [vmem:[#allocation23_spill] sm:$0xff]  ;;  %v4623_v59 = vld [vmem:[#allocation61_spill] sm:$0xff]  ;;  %v4624_v41 = vld [vmem:[#allocation62_spill] sm:$0xff] }
 0x1c0   : > { %1861 = vmatpush.msra.mxu3 %v4569_v42  ;;  %1793 = vmatpush.msra.mxu0 %v4570_v45  ;;  %v1430_v13 = vpop.f32.mrf.mxu2  ;;  %v1453_v14 = vpop.f32.mrf.mxu3  ;;  %v4609_v42 = vld [vmem:[#allocation47_spill] sm:$0xff]  ;;  %v4610_v45 = vld [vmem:[#allocation48_spill] sm:$0xff] }
 0x1c1   : > { %1816 = vmatpush.msra.mxu1 %v4571_v46  ;;  %1839 = vmatpush.msra.mxu2 %v4572_v49  ;;  %v3819_v12 = vadd.f32 %v1408_v24, %v3761_v21  ;;  %v1454_v6 = vadd.f32 %v1453_v14, %v1430_v13  ;;  %v4600_v21 = vld [vmem:[#allocation38_spill] sm:$0xff]  ;;  %v4611_v46 = vld [vmem:[#allocation49_spill] sm:$0xff]  ;;  %v4626_v24 = vld [vmem:[#allocation64_spill] sm:$0xff] }
 0x1c2   : > { %1862 = vmatpush.msra.mxu3 %v4573_v47  ;;  %1794 = vmatpush.msra.mxu0 %v4574_v48  ;;  %v4612_v49 = vld [vmem:[#allocation50_spill] sm:$0xff]  ;;  %v4613_v47 = vld [vmem:[#allocation51_spill] sm:$0xff]  ;;  %v4614_v48 = vld [vmem:[#allocation52_spill] sm:$0xff] }
 0x1c3   : > { %1817 = vmatpush.msra.mxu1 %v4575_v50  ;;  %1840 = vmatpush.msra.mxu2 %v4576_v53  ;;  %v3834_v19 = vadd.f32 %v1454_v6, %v3777_v33  ;;  %v4608_v33 = vld [vmem:[#allocation46_spill] sm:$0xff]  ;;  %v4615_v50 = vld [vmem:[#allocation53_spill] sm:$0xff]  ;;  %v4618_v53 = vld [vmem:[#allocation56_spill] sm:$0xff] }
 0x1c4   : > { %1863 = vmatpush.msra.mxu3 %v4577_v55  ;;  %1795 = vmatpush.msra.mxu0 %v4578_v57  ;;  %v4619_v55 = vld [vmem:[#allocation57_spill] sm:$0xff]  ;;  %v4621_v57 = vld [vmem:[#allocation59_spill] sm:$0xff]  ;;  %v4640_v13 = vld [vmem:[#allocation78_spill] sm:$0xff] }
 0x1c5   : > { %1818 = vmatpush.msra.mxu1 %v4579_v58  ;;  %1841 = vmatpush.msra.mxu2 %v4580_v3  ;;  %v4622_v58 = vld [vmem:[#allocation60_spill] sm:$0xff]  ;;  %v4641_v14 = vld [vmem:[#allocation79_spill] sm:$0xff] }
 0x1c6   : > { %1864 = vmatpush.msra.mxu3 %v4581_v43  ;;  %1796 = vmatpush.msra.mxu0 %v4582_v44  ;;  %v4642_v6 = vld [vmem:[#allocation80_spill] sm:$0xff] }
 0x1c7   : > { %1819 = vmatpush.msra.mxu1 %v4583_v8  ;;  %1842 = vmatpush.msra.mxu2 %v4584_v9  ;;  %v4625_v8 = vld [vmem:[#allocation63_spill] sm:$0xff]  ;;  %v4627_v9 = vld [vmem:[#allocation65_spill] sm:$0xff] }
 0x1c8   : > { %1865 = vmatpush.msra.mxu3 %v4585_v60  ;;  %1797 = vmatpush.msra.mxu0 %v4587_v62  ;;  %v4628_v60 = vld [vmem:[#allocation66_spill] sm:$0xff] }
 0x1c9   : > { %1820 = vmatpush.msra.mxu1 %v4588_v23  ;;  %1843 = vmatpush.msra.mxu2 %v4589_v15  ;;  %v4632_v62 = vld [vmem:[#allocation70_spill] sm:$0xff]  ;;  %v4633_v23 = vld [vmem:[#allocation71_spill] sm:$0xff]  ;;  %v4634_v15 = vld [vmem:[#allocation72_spill] sm:$0xff] }
 0x1ca   : > { %1866 = vmatpush.msra.mxu3 %v4590_v0  ;;  %1798 = vmatpush.msra.mxu0 %v4591_v54  ;;  %v4635_v0 = vld [vmem:[#allocation73_spill] sm:$0xff]  ;;  %v4636_v54 = vld [vmem:[#allocation74_spill] sm:$0xff] }
 0x1cb   : > { %1821 = vmatpush.msra.mxu1 %v4592_v30  ;;  %1844 = vmatpush.msra.mxu2 %v4593_v1 }
 0x1cc   : > { %1867 = vmatpush.msra.mxu3 %v4594_v25  ;;  %1799 = vmatmul.f32.vlgmr.msra.gmra.mxu0 %v1775_v10  ;;  %v4638_v25 = vld [vmem:[#allocation76_spill] sm:$0xff] }
 0x1cd   : > { %1822 = vmatmul.f32.vlgmr.msra.gmra.mxu1 %v1778_v26  ;;  %1845 = vmatmul.f32.vlgmr.msra.gmra.mxu2 %v1775_v10 }
 0x1ce   : > { %1868 = vmatmul.f32.vlgmr.msra.gmra.mxu3 %v1778_v26  ;;  %1889 = vmatpush.msrb.mxu0 %v4595_v4  ;;  %v4639_v26 = vld [vmem:[#allocation77_spill] sm:$0xff] }
 0x1cf   : > { %1912 = vmatpush.msrb.mxu1 %v4596_v5  ;;  %1935 = vmatpush.msrb.mxu2 %v4597_v17 }
 0x1d0   : > { %1958 = vmatpush.msrb.mxu3 %v4598_v18  ;;  %1890 = vmatpush.msrb.mxu0 %v4599_v20  ;;  %v4643_v18 = vld [vmem:[#allocation81_spill] sm:$0xff]  ;;  %v4644_v20 = vld [vmem:[#allocation82_spill] sm:$0xff] }
 0x1d1   : > { %1913 = vmatpush.msrb.mxu1 %v4600_v21  ;;  %1936 = vmatpush.msrb.mxu2 %v4601_v22  ;;  %v4645_v22 = vld [vmem:[#allocation83_spill] sm:$0xff] }
 0x1d2   : > { %1959 = vmatpush.msrb.mxu3 %v4602_v28  ;;  %1891 = vmatpush.msrb.mxu0 %v4603_v29  ;;  %v4646_v28 = vld [vmem:[#allocation84_spill] sm:$0xff]  ;;  %v4647_v29 = vld [vmem:[#allocation85_spill] sm:$0xff] }
 0x1d3   : > { %1914 = vmatpush.msrb.mxu1 %v4604_v32  ;;  %1937 = vmatpush.msrb.mxu2 %v4605_v35  ;;  %v4648_v32 = vld [vmem:[#allocation86_spill] sm:$0xff] }
 0x1d4   : > { %1960 = vmatpush.msrb.mxu3 %v4606_v36  ;;  %1892 = vmatpush.msrb.mxu0 %v4607_v38  ;;  %v4650_v36 = vld [vmem:[#allocation88_spill] sm:$0xff]  ;;  %v1879_v38 = vrot.slane %v3697_v16, 6  ;;  %v4655_v16 = vld [vmem:[#allocation93_spill] sm:$0xff] }
 0x1d5   : > { %1915 = vmatpush.msrb.mxu1 %v4608_v33  ;;  %1938 = vmatpush.msrb.mxu2 %v4609_v42  ;;  %v1880_v33 = vrot.slane %v3707_v31, 6  ;;  %v1882_v42 = vrot.slane %v3700_v61, 6  ;;  %v4656_v31 = vld [vmem:[#allocation94_spill] sm:$0xff] }
 0x1d6   : > { %1961 = vmatpush.msrb.mxu3 %v4610_v45  ;;  %1802 = vmatmul.f32.gmra.mxu0 %v1774_v11  ;;  %v1883_v45 = vrot.slane %v4586_v27, 6 }
 0x1d7   : > { %1825 = vmatmul.f32.gmra.mxu1 %v1777_v34  ;;  %1848 = vmatmul.f32.gmra.mxu2 %v1774_v11  ;;  %v4629_v11 = vld [vmem:[#allocation67_spill] sm:$0xff] }
 0x1d8   : > { %1871 = vmatmul.f32.gmra.mxu3 %v1777_v34  ;;  %1893 = vmatpush.msrb.mxu0 %v4611_v46  ;;  %v1488_v3 = vpop.f32.mrf.mxu0  ;;  %v4631_v34 = vld [vmem:[#allocation69_spill] sm:$0xff] }
 0x1d9   : > { %1916 = vmatpush.msrb.mxu1 %v4612_v49  ;;  %1939 = vmatpush.msrb.mxu2 %v4613_v47  ;;  %v1511_v43 = vpop.f32.mrf.mxu1  ;;  %v4651_v46 = vld [vmem:[#allocation89_spill] sm:$0xff]  ;;  %v4652_v49 = vld [vmem:[#allocation90_spill] sm:$0xff]  ;;  %v4653_v47 = vld [vmem:[#allocation91_spill] sm:$0xff] }
 0x1da   : > { %1962 = vmatpush.msrb.mxu3 %v4614_v48  ;;  %1894 = vmatpush.msrb.mxu0 %v4615_v50  ;;  %v1512_v44 = vadd.f32 %v1511_v43, %v1488_v3  ;;  %v4654_v48 = vld [vmem:[#allocation92_spill] sm:$0xff] }
 0x1db   : > { %1917 = vmatpush.msrb.mxu1 %v4616_v51  ;;  %1940 = vmatpush.msrb.mxu2 %v4617_v52  ;;  %v4657_v51 = vld [vmem:[#allocation95_spill] sm:$0xff]  ;;  %v4658_v52 = vld [vmem:[#allocation96_spill] sm:$0xff] }
 0x1dc   : > { %1963 = vmatpush.msrb.mxu3 %v4618_v53  ;;  %1895 = vmatpush.msrb.mxu0 %v4619_v55  ;;  %v3867_v63 = vadd.f32 %v1512_v44, %v3790_v39  ;;  %v4637_v39 = vld [vmem:[#allocation75_spill] sm:$0xff]  ;;  %v1881_v53 = vsel %vm1460_vm9, %v1879_v38, %v1880_v33  ;;  %v1884_v55 = vsel %vm1460_vm9, %v1882_v42, %v1883_v45  ;;  %v3927_v42 = vld [vmem:[#allocation4 + $0xf0] sm:$0xff] }
 0x1dd   : > { %1918 = vmatpush.msrb.mxu1 %v4620_v56  ;;  %1941 = vmatpush.msrb.mxu2 %v4621_v57 }
 0x1de   : > { %1964 = vmatpush.msrb.mxu3 %v4622_v58  ;;  %1896 = vmatpush.msrb.mxu0 %v4623_v59 }
 0x1df   : > { %1919 = vmatpush.msrb.mxu1 %v4624_v41  ;;  %1942 = vmatpush.msrb.mxu2 %v4625_v8 }
 0x1e0   : > { %1965 = vmatpush.msrb.mxu3 %v4626_v24  ;;  %1897 = vmatpush.msrb.mxu0 %v4627_v9  ;;  %v1534_v30 = vpop.f32.mrf.mxu2  ;;  %v1491_v5 = vpop.f32.mrf.mxu0 }
 0x1e1   : > { %1920 = vmatpush.msrb.mxu1 %v4628_v60  ;;  %1943 = vmatpush.msrb.mxu2 %v4629_v11  ;;  %v1557_v1 = vpop.f32.mrf.mxu3  ;;  %v1514_v17 = vpop.f32.mrf.mxu1 }
 0x1e2   : > { %1966 = vmatpush.msrb.mxu3 %v4630_v2  ;;  %1898 = vmatpush.msrb.mxu0 %v4631_v34  ;;  %v1558_v10 = vadd.f32 %v1557_v1, %v1534_v30  ;;  %v1515_v21 = vadd.f32 %v1514_v17, %v1491_v5 }
 0x1e3   : > { %1921 = vmatpush.msrb.mxu1 %v4632_v62  ;;  %1944 = vmatpush.msrb.mxu2 %v4633_v23 }
 0x1e4   : > { %1967 = vmatpush.msrb.mxu3 %v4634_v15  ;;  %1899 = vmatpush.msrb.mxu0 %v4635_v0  ;;  %v3884_v4 = vadd.f32 %v1558_v10, %v3806_v7  ;;  %v3893_v35 = vadd.f32 %v1515_v21, %v3819_v12  ;;  %v4649_v7 = vld [vmem:[#allocation87_spill] sm:$0xff] }
 0x1e5   : > { %1922 = vmatpush.msrb.mxu1 %v4636_v54  ;;  %1945 = vmatpush.msrb.mxu2 %v4637_v39 }
 0x1e6   : > { %1968 = vmatpush.msrb.mxu3 %v4638_v25  ;;  %1900 = vmatpush.msrb.mxu0 %v4639_v26  ;;  %v1986_v12 = vsel %vm1985_vm12, %v3893_v35, 0.0 }
 0x1e7   : > { %1923 = vmatpush.msrb.mxu1 %v4640_v13  ;;  %1946 = vmatpush.msrb.mxu2 %v4641_v14  ;;  %v3908_v50 = vadd.f32 %v1986_v12, %v3867_v63 }
 0x1e8   : > { %1969 = vmatpush.msrb.mxu3 %v4642_v6  ;;  %1901 = vmatpush.msrb.mxu0 %v4643_v18  ;;  %v1537_v61 = vpop.f32.mrf.mxu2  ;;  %v2983_v18 = vmov 18.0  }
 0x1e9   : > { %1924 = vmatpush.msrb.mxu1 %v4644_v20  ;;  %1947 = vmatpush.msrb.mxu2 %v4645_v22  ;;  %v1560_v27 = vpop.f32.mrf.mxu3  ;;  %2762 = vrcp.f32 %v2983_v18 }
 0x1ea   : > { %1970 = vmatpush.msrb.mxu3 %v4646_v28  ;;  %1902 = vmatpush.msrb.mxu0 %v4647_v29  ;;  %v1561_v56 = vadd.f32 %v1560_v27, %v1537_v61  ;;  %v1988_v29 = vrot.slane %v3908_v50, 4  ;;  %v3935_v27 = vld [vmem:[#allocation4 + $0xe0] sm:$0xff] }
 0x1eb   : > { %1925 = vmatpush.msrb.mxu1 %v4648_v32  ;;  %1948 = vmatpush.msrb.mxu2 %v4649_v7 }
 0x1ec   : > { %1971 = vmatpush.msrb.mxu3 %v4650_v36  ;;  %1903 = vmatpush.msrb.mxu0 %v4651_v46  ;;  %v3917_v57 = vadd.f32 %v1561_v56, %v3834_v19 }
 0x1ed   : > { %1926 = vmatpush.msrb.mxu1 %v4652_v49  ;;  %1949 = vmatpush.msrb.mxu2 %v4653_v47 }
 0x1ee   : > { %1972 = vmatpush.msrb.mxu3 %v4654_v48  ;;  %1904 = vmatpush.msrb.mxu0 %v4655_v16  ;;  %v1994_v58 = vsel %vm1985_vm12, %v3917_v57, 0.0 }
 0x1ef   : > { %1927 = vmatpush.msrb.mxu1 %v4656_v31  ;;  %1950 = vmatpush.msrb.mxu2 %v4657_v51  ;;  %v3922_v3 = vadd.f32 %v1994_v58, %v3884_v4  ;;  %v3931_v46 = vpop.eup %2762  ;;  %v3937_v51 = vld [vmem:[#allocation4 + $0xe8] sm:$0xff] }
 0x1f0   : > { %1973 = vmatpush.msrb.mxu3 %v4658_v52  ;;  %1905 = vmatmul.f32.vlgmr.msrb.gmra.mxu0 %v1881_v53  ;;  %v1989_v52 = vadd.f32 %v1988_v29, %v3908_v50  ;;  %vm2027_vm13 = vweird.f32 %v3931_v46 }
 0x1f1   : > { %1928 = vmatmul.f32.vlgmr.msrb.gmra.mxu1 %v1884_v55  ;;  %1951 = vmatmul.f32.vlgmr.msrb.gmra.mxu2 %v1881_v53  ;;  %v1996_v50 = vrot.slane %v3922_v3, 4 }
 0x1f2   : > { %1974 = vmatmul.f32.vlgmr.msrb.gmra.mxu3 %v1884_v55  ;;  %2212 = vmatpush.msra.mxu0 %v3927_v42 }
 0x1f4   : > { %2213 = vmatpush.msra.mxu0 %v3935_v27 }
 0x1f8   : > { %1908 = vmatmul.f32.gmra.mxu0 %v1880_v33 }
 0x1f9   : > { %1931 = vmatmul.f32.gmra.mxu1 %v1883_v45  ;;  %1954 = vmatmul.f32.gmra.mxu2 %v1880_v33 }
 0x1fa   : > { %1977 = vmatmul.f32.gmra.mxu3 %v1883_v45  ;;  %v3929_v45 = vld [vmem:[#allocation4 + $0xf8] sm:$0xff] }
 0x1fb   : > { %2258 = vmatpush.msra.mxu2 %v3929_v45 }
 0x1fd   : > { %2259 = vmatpush.msra.mxu2 %v3937_v51 }
 0x201   : > { %v1584_v43 = vpop.f32.mrf.mxu0 }
 0x202   : > { %v1607_v59 = vpop.f32.mrf.mxu1 }
 0x203   : > { %v1608_v17 = vadd.f32 %v1607_v59, %v1584_v43  ;;  %v2023_v43 = vmul.f32 18.0, %v3931_v46  ;;  %v3945_v59 = vld [vmem:[#allocation4 + $0xd0] sm:$0xff] }
 0x204   : > { %2214 = vmatpush.msra.mxu0 %v3945_v59 }
 0x205   : > { %v1659_v32 = vadd.f32 %v1608_v17, %v3726_v40  ;;  %v1997_v17 = vadd.f32 %v1996_v50, %v3922_v3  ;;  %v3994_v3 = vld [vmem:[#allocation4 + $0x1d8] sm:$0xff]  ;;  %v4031_v50 = vld [vmem:[#allocation4 + $0x1a0] sm:$0xff] }
 0x208   : > { %v1630_v41 = vpop.f32.mrf.mxu2 }
 0x209   : > { %v1653_v44 = vpop.f32.mrf.mxu3 }
 0x20b   : > { %v1587_v8 = vpop.f32.mrf.mxu0 }
 0x20c   : > { %v1610_v24 = vpop.f32.mrf.mxu1 }
 0x20d   : > { %v1611_v5 = vadd.f32 %v1610_v24, %v1587_v8 }
 0x20f   : > { %v1661_v22 = vadd.f32 %v1611_v5, %v3726_v40  ;;  %v1654_v40 = vadd.f32 %v1653_v44, %v1630_v41  ;;  %v3947_v41 = vld [vmem:[#allocation4 + $0xd8] sm:$0xff]  ;;  %v3979_v5 = vld [vmem:[#allocation4 + $0x1e8] sm:$0xff] }
 0x210   : > { %2260 = vmatpush.msra.mxu2 %v3947_v41 }
 0x212   : > { %v1633_v9 = vpop.f32.mrf.mxu2 }
 0x213   : > { %v1656_v60 = vpop.f32.mrf.mxu3 }
 0x214   : > { %v1657_v49 = vadd.f32 %v1656_v60, %v1633_v9  ;;  %v1660_v9 = vadd.f32 %v1654_v40, %v3739_v37 }
 0x216   : > { %v1662_v44 = vadd.f32 %v1657_v49, %v3739_v37  ;;  %v4005_v49 = vld [vmem:[#allocation4 + $0x98] sm:$0xff] }
 0x225   : > { %v1694_v19 = vpop.f32.mrf.mxu0 }
 0x226   : > { %v1717_v11 = vpop.f32.mrf.mxu1 }
 0x227   : > { %v1718_v21 = vadd.f32 %v1717_v11, %v1694_v19  ;;  %v3958_v11 = vld [vmem:[#allocation4 + $0xc0] sm:$0xff] }
 0x228   : > { %2215 = vmatpush.msra.mxu0 %v3958_v11 }
 0x229   : > { %v1769_v12 = vadd.f32 %v1718_v21, %v1659_v32  ;;  %v3986_v21 = vld [vmem:[#allocation4 + $0x1d0] sm:$0xff] }
 0x22c   : > { %v1740_v2 = vpop.f32.mrf.mxu2 }
 0x22d   : > { %v1763_v34 = vpop.f32.mrf.mxu3 }
 0x22e   : > { %v1764_v56 = vadd.f32 %v1763_v34, %v1740_v2  ;;  %v3960_v2 = vld [vmem:[#allocation4 + $0x1f0] sm:$0xff]  ;;  %v3962_v34 = vld [vmem:[#allocation4 + $0xc8] sm:$0xff] }
 0x22f   : > { %v1697_v62 = vpop.f32.mrf.mxu0  ;;  %2235 = vmatpush.msra.mxu1 %v3960_v2  ;;  %2261 = vmatpush.msra.mxu2 %v3962_v34 }
 0x230   : > { %v1720_v23 = vpop.f32.mrf.mxu1  ;;  %v1770_v37 = vadd.f32 %v1764_v56, %v1660_v9  ;;  %v4024_v56 = vld [vmem:[#allocation4 + $0x1b8] sm:$0xff] }
 0x231   : > { %v1721_v20 = vadd.f32 %v1720_v23, %v1697_v62  ;;  %v1990_v62 = vrot.slane %v1989_v52, 2  ;;  %v4033_v9 = vld [vmem:[#allocation4 + $0x78] sm:$0xff] }
 0x233   : > { %v1771_v36 = vadd.f32 %v1721_v20, %v1661_v22  ;;  %v3984_v20 = vld [vmem:[#allocation4 + $0xa0] sm:$0xff]  ;;  %v3988_v22 = vld [vmem:[#allocation4 + $0xa8] sm:$0xff] }
 0x236   : > { %v1743_v15 = vpop.f32.mrf.mxu2 }
 0x237   : > { %v1766_v0 = vpop.f32.mrf.mxu3 }
 0x238   : > { %v1767_v53 = vadd.f32 %v1766_v0, %v1743_v15  ;;  %v3967_v0 = vld [vmem:[#allocation4 + $0x1f8] sm:$0xff] }
 0x239   : > { %2281 = vmatpush.msra.mxu3 %v3967_v0 }
 0x23a   : > { %v1772_v23 = vadd.f32 %v1767_v53, %v1662_v44 }
 0x23b   : > { %2282 = vmatpush.msra.mxu3 %v3979_v5 }
 0x23d   : > { %2283 = vmatpush.msra.mxu3 %v3994_v3 }
 0x249   : > { %v1800_v54 = vpop.f32.mrf.mxu0 }
 0x24a   : > { %v1823_v30 = vpop.f32.mrf.mxu1 }
 0x24b   : > { %v1824_v7 = vadd.f32 %v1823_v30, %v1800_v54  ;;  %v2024_v30 = vsub.f32 1.0, %v2023_v43 }
 0x24d   : > { %v1875_v55 = vadd.f32 %v1824_v7, %v1769_v12 }
 0x250   : > { %v1846_v1 = vpop.f32.mrf.mxu2 }
 0x251   : > { %v1869_v39 = vpop.f32.mrf.mxu3 }
 0x252   : > { %v1870_v60 = vadd.f32 %v1869_v39, %v1846_v1 }
 0x253   : > { %v1803_v25 = vpop.f32.mrf.mxu0 }
 0x254   : > { %v1826_v10 = vpop.f32.mrf.mxu1  ;;  %v1876_v18 = vadd.f32 %v1870_v60, %v1770_v37 }
 0x255   : > { %v1827_v28 = vadd.f32 %v1826_v10, %v1803_v25  ;;  %v3971_v25 = vld [vmem:[#allocation4 + $0xb0] sm:$0xff]  ;;  %v3973_v10 = vld [vmem:[#allocation4 + $0x1e0] sm:$0xff] }
 0x256   : > { %2216 = vmatpush.msra.mxu0 %v3971_v25  ;;  %2236 = vmatpush.msra.mxu1 %v3973_v10 }
 0x257   : > { %v1877_v31 = vadd.f32 %v1827_v28, %v1771_v36  ;;  %v1991_v28 = vadd.f32 %v1990_v62, %v1989_v52  ;;  %v2025_v36 = vmul.f32 %v3931_v46, %v2024_v30  ;;  %v4020_v52 = vld [vmem:[#allocation4 + $0x88] sm:$0xff]  ;;  %v4040_v62 = vld [vmem:[#allocation4 + $0x60] sm:$0xff]  ;;  %v4048_v30 = vld [vmem:[#allocation4 + $0x198] sm:$0xff] }
 0x258   : > { %2217 = vmatpush.msra.mxu0 %v3984_v20  ;;  %2237 = vmatpush.msra.mxu1 %v3986_v21 }
 0x259   : > { %v1992_v53 = vrot.slane %v1991_v28, 1  ;;  %v2026_v43 = vadd.f32 %v3931_v46, %v2025_v36  ;;  %v4069_v36 = vld [vmem:[#allocation4 + $0x170] sm:$0xff] }
 0x25a   : > { %v1849_v26 = vpop.f32.mrf.mxu2  ;;  %4661 = vst [vmem:[#allocation10_spill] sm:$0xff] %v4069_v36 }
 0x25b   : > { %v1872_v13 = vpop.f32.mrf.mxu3 }
 0x25c   : > { %v1873_v8 = vadd.f32 %v1872_v13, %v1849_v26  ;;  %v3975_v26 = vld [vmem:[#allocation4 + $0xb8] sm:$0xff] }
 0x25d   : > { %2262 = vmatpush.msra.mxu2 %v3975_v26 }
 0x25e   : > { %v1878_v13 = vadd.f32 %v1873_v8, %v1772_v23  ;;  %v4029_v8 = vld [vmem:[#allocation4 + $0x70] sm:$0xff] }
 0x25f   : > { %2263 = vmatpush.msra.mxu2 %v3988_v22  ;;  %v4042_v23 = vld [vmem:[#allocation4 + $0x190] sm:$0xff] }
 0x261   : > { %2264 = vmatpush.msra.mxu2 %v4005_v49 }
 0x263   : > { %2265 = vmatpush.msra.mxu2 %v4020_v52 }
 0x265   : > { %2266 = vmatpush.msra.mxu2 %v4033_v9 }
 0x26d   : > { %v1906_v14 = vpop.f32.mrf.mxu0 }
 0x26e   : > { %v1929_v6 = vpop.f32.mrf.mxu1 }
 0x26f   : > { %v1930_v47 = vadd.f32 %v1929_v6, %v1906_v14 }
 0x271   : > { %v3950_v24 = vadd.f32 %v1930_v47, %v1875_v55 }
 0x274   : > { %v1952_v38 = vpop.f32.mrf.mxu2 }
 0x275   : > { %v1975_v33 = vpop.f32.mrf.mxu3  ;;  %v1909_v48 = vpop.f32.mrf.mxu0 }
 0x276   : > { %v1932_v16 = vpop.f32.mrf.mxu1  ;;  %v1976_v54 = vadd.f32 %v1975_v33, %v1952_v38  ;;  %v4001_v38 = vld [vmem:[#allocation4 + $0x90] sm:$0xff]  ;;  %v4003_v33 = vld [vmem:[#allocation4 + $0x1c0] sm:$0xff] }
 0x277   : > { %v1933_v61 = vadd.f32 %v1932_v16, %v1909_v48  ;;  %2218 = vmatpush.msra.mxu0 %v4001_v38  ;;  %2238 = vmatpush.msra.mxu1 %v4003_v33  ;;  %v4011_v48 = vld [vmem:[#allocation4 + $0x1c8] sm:$0xff]  ;;  %v1998_v16 = vrot.slane %v1997_v17, 2 }
 0x278   : > { %v3996_v7 = vadd.f32 %v1976_v54, %v1876_v18  ;;  %2284 = vmatpush.msra.mxu3 %v4011_v48  ;;  %v4046_v54 = vld [vmem:[#allocation4 + $0x68] sm:$0xff]  ;;  %v4063_v18 = vsel %vm2027_vm13, %v3931_v46, %v2026_v43 }
 0x279   : > { %v3942_v58 = vadd.f32 %v1933_v61, %v1877_v31  ;;  %v4016_v31 = vld [vmem:[#allocation4 + $0x80] sm:$0xff]  ;;  %v4018_v61 = vld [vmem:[#allocation4 + $0x1b0] sm:$0xff]  ;;  %2267 = vmatpush.msra.mxu2 %v4046_v54 }
 0x27a   : > { %2219 = vmatpush.msra.mxu0 %v4016_v31  ;;  %2239 = vmatpush.msra.mxu1 %v4018_v61 }
 0x27b   : > { %v2004_v19 = vsel %vm1985_vm12, %v3942_v58, 0.0  ;;  %2285 = vmatpush.msra.mxu3 %v4024_v56 }
 0x27c   : > { %v2005_v15 = vadd.f32 %v2004_v19, %v3950_v24  ;;  %v1955_v1 = vpop.f32.mrf.mxu2  ;;  %2220 = vmatpush.msra.mxu0 %v4029_v8  ;;  %2240 = vmatpush.msra.mxu1 %v4031_v50  ;;  %v4038_v19 = vld [vmem:[#allocation4 + $0x1a8] sm:$0xff] }
 0x27d   : > { %v1978_v39 = vpop.f32.mrf.mxu3  ;;  %2286 = vmatpush.msra.mxu3 %v4038_v19 }
 0x27e   : > { %v2006_v14 = vrot.slane %v2005_v15, 4  ;;  %v1979_v6 = vadd.f32 %v1978_v39, %v1955_v1  ;;  %v4050_v1 = vld [vmem:[#allocation4 + $0x50] sm:$0xff]  ;;  %v1993_v39 = vadd.f32 %v1992_v53, %v1991_v28  ;;  %2221 = vmatpush.msra.mxu0 %v4040_v62  ;;  %2241 = vmatpush.msra.mxu1 %v4042_v23  ;;  %v4067_v28 = vld [vmem:[#allocation4 + $0x40] sm:$0xff] }
 0x27f   : > { %2287 = vmatpush.msra.mxu3 %v4048_v30  ;;  %4660 = vst [vmem:[#allocation9_spill] sm:$0xff] %v4067_v28  ;;  %v4079_v53 = vld [vmem:[#allocation4 + $0x30] sm:$0xff] }
 0x280   : > { %v2007_v29 = vadd.f32 %v2006_v14, %v2005_v15  ;;  %v3990_v32 = vadd.f32 %v1979_v6, %v1878_v13  ;;  %v1999_v15 = vadd.f32 %v1998_v16, %v1997_v17  ;;  %v4054_v14 = vld [vmem:[#allocation4 + $0x180] sm:$0xff]  ;;  %v4056_v6 = vld [vmem:[#allocation4 + $0x58] sm:$0xff]  ;;  %v4058_v17 = vld [vmem:[#allocation4 + $0x188] sm:$0xff]  ;;  %2222 = vmatpush.msra.mxu0 %v4050_v1  ;;  %4664 = vst [vmem:[#allocation13_spill] sm:$0xff] %v4079_v53 }
 0x281   : > { %4659 = vst [vmem:[#allocation8_spill] sm:$0xff] %v4058_v17  ;;  %2242 = vmatpush.msra.mxu1 %v4054_v14  ;;  %v4075_v16 = vld [vmem:[#allocation4 + $0x178] sm:$0xff]  ;;  %2268 = vmatpush.msra.mxu2 %v4056_v6 }
 0x282   : > { %v2008_v12 = vrot.slane %v2007_v29, 2  ;;  %v2012_v47 = vsel %vm1985_vm12, %v3990_v32, 0.0  ;;  %4663 = vst [vmem:[#allocation12_spill] sm:$0xff] %v4075_v16  ;;  %v2000_v46 = vrot.slane %v1999_v15, 1  ;;  %2288 = vmatpush.msra.mxu3 %v4058_v17  ;;  %2223 = vmatpush.msra.mxu0 %v4067_v28 }
 0x283   : > { %v2013_v40 = vadd.f32 %v2012_v47, %v3996_v7  ;;  %v4073_v47 = vld [vmem:[#allocation4 + $0x48] sm:$0xff]  ;;  %2243 = vmatpush.msra.mxu1 %v4069_v36 }
 0x284   : > { %v2009_v55 = vadd.f32 %v2008_v12, %v2007_v29  ;;  %4662 = vst [vmem:[#allocation11_spill] sm:$0xff] %v4073_v47  ;;  %2269 = vmatpush.msra.mxu2 %v4073_v47  ;;  %2289 = vmatpush.msra.mxu3 %v4075_v16  ;;  %v4107_v47 = vld [vmem:[#allocation4 + $0x28] sm:$0xff]  ;;  %v4109_v16 = vld [vmem:[#allocation4 + $0x158] sm:$0xff]  ;;  %v2001_v28 = vadd.f32 %v2000_v46, %v1999_v15 }
 0x285   : > { %v2014_v44 = vrot.slane %v2013_v40, 4  ;;  %2224 = vmatpush.msra.mxu0 %v4079_v53  ;;  %4670 = vst [vmem:[#allocation19_spill] sm:$0xff] %v4107_v47  ;;  %v4126_v15 = vld [vmem:[#allocation4 + $0x18] sm:$0xff]  ;;  %v4128_v46 = vld [vmem:[#allocation4 + $0x148] sm:$0xff] }
 0x286   : > { %v2010_v60 = vrot.slane %v2009_v55, 1  ;;  %4671 = vst [vmem:[#allocation20_spill] sm:$0xff] %v4109_v16 }
 0x287   : > { %v2015_v37 = vadd.f32 %v2014_v44, %v2013_v40  ;;  %v4086_v44 = vld [vmem:[#allocation4 + $0x38] sm:$0xff] }
 0x288   : > { %v2011_v13 = vadd.f32 %v2010_v60, %v2009_v55  ;;  %v4081_v55 = vld [vmem:[#allocation4 + $0x160] sm:$0xff]  ;;  %v4088_v60 = vld [vmem:[#allocation4 + $0x168] sm:$0xff]  ;;  %2270 = vmatpush.msra.mxu2 %v4086_v44 }
 0x289   : > { %v2016_v29 = vrot.slane %v2015_v37, 2  ;;  %4665 = vst [vmem:[#allocation14_spill] sm:$0xff] %v4081_v55  ;;  %2244 = vmatpush.msra.mxu1 %v4081_v55  ;;  %2290 = vmatpush.msra.mxu3 %v4088_v60 }
 0x28a   : > { %v2020_v12 = vadd.f32 %v2011_v13, %v1993_v39  ;;  %v4094_v13 = vld [vmem:[#allocation4 + $0x150] sm:$0xff]  ;;  %2271 = vmatpush.msra.mxu2 %v4107_v47 }
 0x28b   : > { %v2017_v40 = vadd.f32 %v2016_v29, %v2015_v37  ;;  %v4092_v37 = vld [vmem:[#allocation4 + $0x20] sm:$0xff]  ;;  %4666 = vst [vmem:[#allocation15_spill] sm:$0xff] %v4094_v13  ;;  %2245 = vmatpush.msra.mxu1 %v4094_v13  ;;  %2291 = vmatpush.msra.mxu3 %v4109_v16  ;;  %v4143_v13 = vld [vmem:[#allocation4 + $0x8] sm:$0xff] }
 0x28c   : > { %v2029_v43 = vmul.f32 %v4063_v18, %v2020_v12  ;;  %2225 = vmatpush.msra.mxu0 %v4092_v37  ;;  %2272 = vmatpush.msra.mxu2 %v4126_v15 }
 0x28d   : > { %v2018_v39 = vrot.slane %v2017_v40, 1  ;;  %2292 = vmatpush.msra.mxu3 %v4128_v46 }
 0x28e   : > { %v4097_v29 = vsub.f32 %v3893_v35, %v2029_v43  ;;  %v4100_v12 = vsub.f32 %v3950_v24, %v2029_v43  ;;  %v4103_v36 = vsub.f32 %v3942_v58, %v2029_v43  ;;  %v4113_v35 = vld [vmem:[#allocation4 + $0x10] sm:$0xff]  ;;  %v4115_v24 = vld [vmem:[#allocation4 + $0x140] sm:$0xff]  ;;  %v4118_v58 = vsub.f32 %v3867_v63, %v2029_v43  ;;  %2273 = vmatpush.msra.mxu2 %v4143_v13 }
 0x28f   : > { %v2019_v17 = vadd.f32 %v2018_v39, %v2017_v40  ;;  %4672 = vst [vmem:[#allocation21_spill] sm:$0xff] %v4113_v35  ;;  %v4134_v63 = vld [vmem:[#allocation4] sm:$0xff]  ;;  %v4136_v43 = vld [vmem:[#allocation4 + $0x130] sm:$0xff]  ;;  %2226 = vmatpush.msra.mxu0 %v4113_v35  ;;  %2246 = vmatpush.msra.mxu1 %v4115_v24 }
 0x290   : > { %4667 = vst [vmem:[#allocation16_spill] sm:$0xff] %v4097_v29  ;;  %v2061_v55 = vmul.f32 %v4100_v12, %v4100_v12  ;;  %v2063_v53 = vmul.f32 %v4103_v36, %v4103_v36  ;;  %v2037_v40 = vmul.f32 %v4097_v29, %v4097_v29  ;;  %2359 = vmatpush.msrb.mxu2 %v3929_v45  ;;  %v4187_v45 = vld [vmem:[#allocation4 + $0x108] sm:$0xff] }
 0x291   : > { %4668 = vst [vmem:[#allocation17_spill] sm:$0xff] %v4100_v12  ;;  %v2021_v39 = vadd.f32 %v2019_v17, %v2001_v28  ;;  %v4145_v17 = vld [vmem:[#allocation4 + $0x138] sm:$0xff]  ;;  %2227 = vmatpush.msra.mxu0 %v4134_v63  ;;  %2247 = vmatpush.msra.mxu1 %v4136_v43 }
 0x292   : > { %4669 = vst [vmem:[#allocation18_spill] sm:$0xff] %v4103_v36  ;;  %v2035_v36 = vmul.f32 %v4118_v58, %v4118_v58  ;;  %v2065_v12 = vsel %vm1985_vm12, %v2063_v53, 0.0  ;;  %v2039_v28 = vsel %vm1985_vm12, %v2037_v40, 0.0  ;;  %v4153_v53 = vld [vmem:[#allocation4 + $0x120] sm:$0xff]  ;;  %2293 = vmatpush.msra.mxu3 %v4145_v17  ;;  %v4172_v40 = vld [vmem:[#allocation4 + $0x118] sm:$0xff]  ;;  %2360 = vmatpush.msrb.mxu2 %v3937_v51 }
 0x293   : > { %4673 = vst [vmem:[#allocation22_spill] sm:$0xff] %v4115_v24  ;;  %v2066_v29 = vadd.f32 %v2065_v12, %v2061_v55  ;;  %v2030_v16 = vmul.f32 %v4063_v18, %v2021_v39  ;;  %v4155_v24 = vld [vmem:[#allocation4 + $0x128] sm:$0xff]  ;;  %2313 = vmatpush.msrb.mxu0 %v3927_v42  ;;  %2248 = vmatpush.msra.mxu1 %v4153_v53  ;;  %v4185_v42 = vld [vmem:[#allocation4 + $0x100] sm:$0xff] }
 0x294   : > { %4674 = vst [vmem:[#allocation23_spill] sm:$0xff] %v4118_v58  ;;  %v2040_v58 = vadd.f32 %v2039_v28, %v2035_v36  ;;  %v4170_v36 = vld [vmem:[#allocation4 + $0x110] sm:$0xff]  ;;  %2294 = vmatpush.msra.mxu3 %v4155_v24  ;;  %2361 = vmatpush.msrb.mxu2 %v3947_v41 }
 0x295   : > { %v2067_v35 = vrot.slane %v2066_v29, 4  ;;  %v4158_v47 = vsub.f32 %v3917_v57, %v2030_v16  ;;  %v4161_v55 = vsub.f32 %v3996_v7, %v2030_v16  ;;  %v4164_v12 = vsub.f32 %v3990_v32, %v2030_v16  ;;  %2314 = vmatpush.msrb.mxu0 %v3935_v27  ;;  %2249 = vmatpush.msra.mxu1 %v4170_v36 }
 0x296   : > { %v2041_v57 = vrot.slane %v2040_v58, 4  ;;  %v4175_v39 = vsub.f32 %v3884_v4, %v2030_v16  ;;  %2295 = vmatpush.msra.mxu3 %v4172_v40  ;;  %2362 = vmatpush.msrb.mxu2 %v3962_v34 }
 0x297   : > { %4675 = vst [vmem:[#allocation24_spill] sm:$0xff] %v4158_v47  ;;  %v2068_v7 = vadd.f32 %v2067_v35, %v2066_v29  ;;  %v2062_v32 = vmul.f32 %v4161_v55, %v4161_v55  ;;  %v2064_v28 = vmul.f32 %v4164_v12, %v4164_v12  ;;  %v2038_v29 = vmul.f32 %v4158_v47, %v4158_v47 }
 0x298   : > { %4676 = vst [vmem:[#allocation97_spill] sm:$0xff] %v4161_v55  ;;  %v2042_v4 = vadd.f32 %v2041_v57, %v2040_v58  ;;  %v2036_v16 = vmul.f32 %v4175_v39, %v4175_v39  ;;  %2315 = vmatpush.msrb.mxu0 %v3945_v59  ;;  %2250 = vmatpush.msra.mxu1 %v4185_v42 }
 0x299   : > { %4677 = vst [vmem:[#allocation25_spill] sm:$0xff] %v4164_v12  ;;  %v2069_v35 = vrot.slane %v2068_v7, 2  ;;  %v2073_v12 = vsel %vm1985_vm12, %v2064_v28, 0.0  ;;  %v2047_v58 = vsel %vm1985_vm12, %v2038_v29, 0.0  ;;  %2296 = vmatpush.msra.mxu3 %v4187_v45  ;;  %2363 = vmatpush.msrb.mxu2 %v3975_v26 }
 0x29a   : > { %v2074_v27 = vadd.f32 %v2073_v12, %v2062_v32  ;;  %v2043_v51 = vrot.slane %v2042_v4, 2  ;;  %v2048_v55 = vadd.f32 %v2047_v58, %v2036_v16  ;;  %2316 = vmatpush.msrb.mxu0 %v3958_v11  ;;  %2336 = vmatpush.msrb.mxu1 %v3960_v2 }
 0x29b   : > { %v2070_v57 = vadd.f32 %v2069_v35, %v2068_v7  ;;  %2382 = vmatpush.msrb.mxu3 %v3967_v0  ;;  %2364 = vmatpush.msrb.mxu2 %v3988_v22 }
 0x29c   : > { %v2075_v47 = vrot.slane %v2074_v27, 4  ;;  %v2044_v28 = vadd.f32 %v2043_v51, %v2042_v4  ;;  %v2049_v59 = vrot.slane %v2048_v55, 4  ;;  %2317 = vmatpush.msrb.mxu0 %v3971_v25  ;;  %2337 = vmatpush.msrb.mxu1 %v3973_v10  ;;  %v4691_v51 = vld [vmem:[#allocation16_spill] sm:$0xff] }
 0x29d   : > { %v2071_v12 = vrot.slane %v2070_v57, 1  ;;  %2383 = vmatpush.msrb.mxu3 %v3979_v5  ;;  %2365 = vmatpush.msrb.mxu2 %v4005_v49  ;;  %v4678_v49 = vld [vmem:[#allocation8_spill] sm:$0xff] }
 0x29e   : > { %v2076_v41 = vadd.f32 %v2075_v47, %v2074_v27  ;;  %v2045_v7 = vrot.slane %v2044_v28, 1  ;;  %v2050_v11 = vadd.f32 %v2049_v59, %v2048_v55  ;;  %2318 = vmatpush.msrb.mxu0 %v3984_v20  ;;  %2338 = vmatpush.msrb.mxu1 %v3986_v21  ;;  %v1139_v47 = vld [vmem:[%s4361_s7] sm:$0x3] }
 0x29f   : > { %v2072_v32 = vadd.f32 %v2071_v12, %v2070_v57  ;;  %2384 = vmatpush.msrb.mxu3 %v3994_v3  ;;  %2366 = vmatpush.msrb.mxu2 %v4020_v52  ;;  %v2108_v55 = vperm.slane %v1139_v47, 0  ;;  %v2109_v29 = vperm.slane %v1139_v47, 1  ;;  %v4692_v57 = vld [vmem:[#allocation17_spill] sm:$0xff] }
 0x2a0   : > { %v2077_v2 = vrot.slane %v2076_v41, 2  ;;  %v2046_v34 = vadd.f32 %v2045_v7, %v2044_v28  ;;  %v2051_v0 = vrot.slane %v2050_v11, 2  ;;  %2319 = vmatpush.msrb.mxu0 %v4001_v38  ;;  %2339 = vmatpush.msrb.mxu1 %v4003_v33 }
 0x2a1   : > { %2385 = vmatpush.msrb.mxu3 %v4011_v48  ;;  %2367 = vmatpush.msrb.mxu2 %v4033_v9  ;;  %v4683_v9 = vld [vmem:[#allocation13_spill] sm:$0xff] }
 0x2a2   : > { %v2078_v25 = vadd.f32 %v2077_v2, %v2076_v41  ;;  %v2081_v10 = vadd.f32 %v2072_v32, %v2046_v34  ;;  %v2052_v26 = vadd.f32 %v2051_v0, %v2050_v11  ;;  %2320 = vmatpush.msrb.mxu0 %v4016_v31  ;;  %2340 = vmatpush.msrb.mxu1 %v4018_v61  ;;  %v4679_v31 = vld [vmem:[#allocation9_spill] sm:$0xff]  ;;  %v4680_v61 = vld [vmem:[#allocation10_spill] sm:$0xff]  ;;  %v4694_v2 = vld [vmem:[#allocation24_spill] sm:$0xff] }
 0x2a3   : > { %2386 = vmatpush.msrb.mxu3 %v4024_v56  ;;  %2368 = vmatpush.msrb.mxu2 %v4046_v54  ;;  %v4681_v56 = vld [vmem:[#allocation11_spill] sm:$0xff]  ;;  %v4695_v0 = vld [vmem:[#allocation97_spill] sm:$0xff] }
 0x2a4   : > { %v2079_v5 = vrot.slane %v2078_v25, 1  ;;  %v2083_v20 = vmul.f32 %v2081_v10, %v4063_v18  ;;  %v2053_v21 = vrot.slane %v2052_v26, 1  ;;  %2321 = vmatpush.msrb.mxu0 %v4029_v8  ;;  %2341 = vmatpush.msrb.mxu1 %v4031_v50  ;;  %v4682_v8 = vld [vmem:[#allocation12_spill] sm:$0xff]  ;;  %v4696_v10 = vld [vmem:[#allocation25_spill] sm:$0xff] }
 0x2a5   : > { %2387 = vmatpush.msrb.mxu3 %v4038_v19  ;;  %2369 = vmatpush.msrb.mxu2 %v4056_v6  ;;  %v4684_v19 = vld [vmem:[#allocation14_spill] sm:$0xff] }
 0x2a6   : > { %v2080_v22 = vadd.f32 %v2079_v5, %v2078_v25  ;;  %v2085_v3 = vadd.f32 1e-05, %v2083_v20  ;;  %v2054_v38 = vadd.f32 %v2053_v21, %v2052_v26  ;;  %2322 = vmatpush.msrb.mxu0 %v4040_v62  ;;  %2342 = vmatpush.msrb.mxu1 %v4042_v23  ;;  %v4685_v23 = vld [vmem:[#allocation15_spill] sm:$0xff]  ;;  %v4689_v6 = vld [vmem:[#allocation22_spill] sm:$0xff] }
 0x2a7   : > { %2388 = vmatpush.msrb.mxu3 %v4048_v30  ;;  %2370 = vmatpush.msrb.mxu2 %v4681_v56  ;;  %v4686_v30 = vld [vmem:[#allocation19_spill] sm:$0xff] }
 0x2a8   : > { %2764 = vrsqrt.f32 %v2085_v3  ;;  %v2082_v33 = vadd.f32 %v2080_v22, %v2054_v38  ;;  %2323 = vmatpush.msrb.mxu0 %v4050_v1  ;;  %2343 = vmatpush.msrb.mxu1 %v4054_v14  ;;  %v4687_v1 = vld [vmem:[#allocation20_spill] sm:$0xff]  ;;  %v4688_v14 = vld [vmem:[#allocation21_spill] sm:$0xff]  ;;  %vm2093_vm15 = vweird.f32 %v2085_v3 }
 0x2a9   : > { %2389 = vmatpush.msrb.mxu3 %v4678_v49  ;;  %2371 = vmatpush.msrb.mxu2 %v4086_v44 }
 0x2aa   : > { %v2084_v48 = vmul.f32 %v2082_v33, %v4063_v18  ;;  %2324 = vmatpush.msrb.mxu0 %v4679_v31  ;;  %2344 = vmatpush.msrb.mxu1 %v4680_v61 }
 0x2ab   : > { %2390 = vmatpush.msrb.mxu3 %v4682_v8  ;;  %2372 = vmatpush.msrb.mxu2 %v4686_v30 }
 0x2ac   : > { %v2086_v52 = vadd.f32 1e-05, %v2084_v48  ;;  %2325 = vmatpush.msrb.mxu0 %v4683_v9  ;;  %2345 = vmatpush.msrb.mxu1 %v4684_v19 }
 0x2ad   : > { %2391 = vmatpush.msrb.mxu3 %v4088_v60  ;;  %2373 = vmatpush.msrb.mxu2 %v4126_v15 }
 0x2ae   : > { %v2765_v50 = vpop.eup %2764  ;;  %2766 = vrsqrt.f32 %v2086_v52  ;;  %2326 = vmatpush.msrb.mxu0 %v4092_v37  ;;  %2346 = vmatpush.msrb.mxu1 %v4685_v23  ;;  %vm2103_vm2 = vweird.f32 %v2086_v52 }
 0x2af   : > { %v2088_v62 = vmul.f32 %v2765_v50, %v2085_v3  ;;  %2392 = vmatpush.msrb.mxu3 %v4687_v1  ;;  %vm2094_vm14 = vweird.f32 %v2765_v50  ;;  %2374 = vmatpush.msrb.mxu2 %v4143_v13 }
 0x2b0   : > { %2327 = vmatpush.msrb.mxu0 %v4688_v14  ;;  %2347 = vmatpush.msrb.mxu1 %v4689_v6  ;;  %vm2095_vm0 = vmor %vm2093_vm15, %vm2094_vm14 }
 0x2b1   : > { %v2089_v54 = vmul.f32 %v2765_v50, %v2088_v62  ;;  %2393 = vmatpush.msrb.mxu3 %v4128_v46  ;;  %v1140_v46 = vld [vmem:[%s4362_s8] sm:$0x3] }
 0x2b2   : > { %2328 = vmatpush.msrb.mxu0 %v4134_v63  ;;  %2348 = vmatpush.msrb.mxu1 %v4136_v43  ;;  %v2122_v32 = vperm.slane %v1140_v46, 1  ;;  %v2209_v62 = vld [vmem:[%s4364_s10] sm:$0x3] }
 0x2b3   : > { %v2090_v44 = vmul.f32 0.5, %v2089_v54  ;;  %2394 = vmatpush.msrb.mxu3 %v4145_v17  ;;  %v2305_v30 = vperm.slane %v2209_v62, 0 }
 0x2b4   : > { %v2767_v60 = vpop.eup %2766  ;;  %2349 = vmatpush.msrb.mxu1 %v4153_v53  ;;  %v2121_v53 = vperm.slane %v1140_v46, 0 }
 0x2b5   : > { %v2091_v37 = vsub.f32 1.5, %v2090_v44  ;;  %v2098_v4 = vmul.f32 %v2767_v60, %v2086_v52  ;;  %2395 = vmatpush.msrb.mxu3 %v4155_v24  ;;  %vm2104_vm1 = vweird.f32 %v2767_v60 }
 0x2b6   : > { %2350 = vmatpush.msrb.mxu1 %v4170_v36  ;;  %v4690_v36 = vld [vmem:[#allocation23_spill] sm:$0xff]  ;;  %vm2105_vm3 = vmor %vm2103_vm2, %vm2104_vm1 }
 0x2b7   : > { %v2092_v16 = vmul.f32 %v2765_v50, %v2091_v37  ;;  %v2099_v15 = vmul.f32 %v2767_v60, %v2098_v4  ;;  %2396 = vmatpush.msrb.mxu3 %v4172_v40  ;;  %v4693_v40 = vld [vmem:[#allocation18_spill] sm:$0xff] }
 0x2b8   : > { %2351 = vmatpush.msrb.mxu1 %v4185_v42 }
 0x2b9   : > { %v2096_v63 = vsel %vm2095_vm0, %v2765_v50, %v2092_v16  ;;  %v2100_v43 = vmul.f32 0.5, %v2099_v15  ;;  %2397 = vmatpush.msrb.mxu3 %v4187_v45  ;;  %v2306_v16 = vperm.slane %v2209_v62, 1 }
 0x2ba   : > { %v2112_v13 = vmul.f32 %v2108_v55, %v2096_v63 }
 0x2bb   : > { %v2101_v24 = vsub.f32 1.5, %v2100_v43 }
 0x2bc   : > { %v2114_v17 = vperm.slane %v2112_v13, 0 }
 0x2bd   : > { %v2102_v27 = vmul.f32 %v2767_v60, %v2101_v24 }
 0x2be   : > { %v2116_v35 = vmul.f32 %v2114_v17, %v4690_v36  ;;  %v2118_v58 = vmul.f32 %v2114_v17, %v4691_v51  ;;  %v2133_v28 = vmul.f32 %v2114_v17, %v4692_v57  ;;  %v2135_v12 = vmul.f32 %v2114_v17, %v4693_v40 }
 0x2bf   : > { %v2106_v42 = vsel %vm2105_vm3, %v2767_v60, %v2102_v27 }
 0x2c0   : > { %v2125_v59 = vadd.f32 %v2121_v53, %v2116_v35  ;;  %v2113_v41 = vmul.f32 %v2109_v29, %v2106_v42  ;;  %v2127_v5 = vadd.f32 %v2121_v53, %v2118_v58  ;;  %v2137_v38 = vadd.f32 %v2133_v28, %v2121_v53 }
 0x2c1   : > { %v2139_v48 = vadd.f32 %v2135_v12, %v2121_v53 }
 0x2c2   : > { %v2129_v45 = vmax.f32 %v2125_v59, 0.0  ;;  %v2115_v7 = vperm.slane %v2113_v41, 0  ;;  %v2131_v22 = vmax.f32 %v2127_v5, 0.0  ;;  %v2141_v49 = vmax.f32 %v2137_v38, 0.0 }
 0x2c3   : > { %v2143_v61 = vmax.f32 %v2139_v48, 0.0 }
 0x2c4   : > { %2228 = vmatmul.f32.vlgmr.msra.gmra.mxu0 %v2129_v45  ;;  %2274 = vmatmul.f32.vlgmr.msra.gmra.mxu2 %v2129_v45  ;;  %v2117_v11 = vmul.f32 %v2115_v7, %v4175_v39  ;;  %v2119_v34 = vmul.f32 %v2115_v7, %v4694_v2  ;;  %v2134_v25 = vmul.f32 %v2115_v7, %v4695_v0 }
 0x2c5   : > { %v2136_v26 = vmul.f32 %v2115_v7, %v4696_v10 }
 0x2c6   : > { %v2126_v20 = vadd.f32 %v2122_v32, %v2117_v11  ;;  %v2128_v3 = vadd.f32 %v2122_v32, %v2119_v34  ;;  %v2138_v39 = vadd.f32 %v2134_v25, %v2122_v32 }
 0x2c7   : > { %v2140_v52 = vadd.f32 %v2136_v26, %v2122_v32 }
 0x2c8   : > { %v2130_v21 = vmax.f32 %v2126_v20, 0.0  ;;  %v2132_v33 = vmax.f32 %v2128_v3, 0.0  ;;  %v2142_v31 = vmax.f32 %v2138_v39, 0.0 }
 0x2c9   : > { %v2144_v56 = vmax.f32 %v2140_v52, 0.0 }
 0x2ca   : > { %2251 = vmatmul.f32.vlgmr.msra.gmra.mxu1 %v2130_v21  ;;  %2297 = vmatmul.f32.vlgmr.msra.gmra.mxu3 %v2130_v21 }
 0x2cc   : > { %2231 = vmatmul.f32.gmra.mxu0 %v2131_v22  ;;  %2277 = vmatmul.f32.gmra.mxu2 %v2131_v22 }
 0x2d2   : > { %2254 = vmatmul.f32.gmra.mxu1 %v2132_v33  ;;  %2300 = vmatmul.f32.gmra.mxu3 %v2132_v33 }
 0x2d4   : > { %2329 = vmatmul.f32.vlgmr.msrb.gmra.mxu0 %v2141_v49  ;;  %2375 = vmatmul.f32.vlgmr.msrb.gmra.mxu2 %v2141_v49 }
 0x2da   : > { %2352 = vmatmul.f32.vlgmr.msrb.gmra.mxu1 %v2142_v31  ;;  %2398 = vmatmul.f32.vlgmr.msrb.gmra.mxu3 %v2142_v31 }
 0x2dc   : > { %2332 = vmatmul.f32.gmra.mxu0 %v2143_v61  ;;  %2378 = vmatmul.f32.gmra.mxu2 %v2143_v61 }
 0x2e2   : > { %2355 = vmatmul.f32.gmra.mxu1 %v2144_v56  ;;  %2401 = vmatmul.f32.gmra.mxu3 %v2144_v56 }
 0x341   : > { %v2229_v8 = vpop.f32.mrf.mxu0 }
 0x347   : > { %v2252_v50 = vpop.f32.mrf.mxu1  ;;  %v2275_v9 = vpop.f32.mrf.mxu2 }
 0x348   : > { %v2253_v47 = vadd.f32 %v2252_v50, %v2229_v8 }
 0x349   : > { %v2232_v19 = vpop.f32.mrf.mxu0 }
 0x34a   : > { %v2309_v4 = vadd.f32 %v2305_v30, %v2253_v47 }
 0x34d   : > { %v2298_v23 = vpop.f32.mrf.mxu3 }
 0x34e   : > { %v2299_v13 = vadd.f32 %v2298_v23, %v2275_v9 }
 0x34f   : > { %v2255_v54 = vpop.f32.mrf.mxu1  ;;  %v2278_v14 = vpop.f32.mrf.mxu2 }
 0x350   : > { %v2256_v1 = vadd.f32 %v2255_v54, %v2232_v19  ;;  %v2310_v29 = vadd.f32 %v2306_v16, %v2299_v13 }
 0x351   : > { %v2330_v44 = vpop.f32.mrf.mxu0 }
 0x352   : > { %v2311_v6 = vadd.f32 %v2305_v30, %v2256_v1 }
 0x354   : > { %v2409_v37 = vsel %vm1985_vm12, %v2311_v6, 0.0 }
 0x355   : > { %v2301_v60 = vpop.f32.mrf.mxu3  ;;  %v2410_v46 = vadd.f32 %v2409_v37, %v2309_v4 }
 0x356   : > { %v2302_v55 = vadd.f32 %v2301_v60, %v2278_v14 }
 0x357   : > { %v2353_v15 = vpop.f32.mrf.mxu1  ;;  %v2376_v43 = vpop.f32.mrf.mxu2  ;;  %v2411_v17 = vrot.slane %v2410_v46, 4 }
 0x358   : > { %v4279_v63 = vadd.f32 %v2306_v16, %v2302_v55  ;;  %v2354_v36 = vadd.f32 %v2353_v15, %v2330_v44 }
 0x359   : > { %v2333_v35 = vpop.f32.mrf.mxu0  ;;  %v2412_v57 = vadd.f32 %v2411_v17, %v2410_v46 }
 0x35a   : > { %v2417_v53 = vsel %vm1985_vm12, %v4279_v63, 0.0  ;;  %v2405_v40 = vadd.f32 %v2354_v36, %v2305_v30 }
 0x35b   : > { %v2418_v51 = vadd.f32 %v2417_v53, %v2310_v29  ;;  %v2413_v42 = vrot.slane %v2412_v57, 2 }
 0x35d   : > { %v2399_v24 = vpop.f32.mrf.mxu3  ;;  %v2419_v12 = vrot.slane %v2418_v51, 4  ;;  %v2414_v25 = vadd.f32 %v2413_v42, %v2412_v57 }
 0x35e   : > { %v2400_v41 = vadd.f32 %v2399_v24, %v2376_v43 }
 0x35f   : > { %v2356_v27 = vpop.f32.mrf.mxu1  ;;  %v2379_v7 = vpop.f32.mrf.mxu2  ;;  %v2420_v34 = vadd.f32 %v2419_v12, %v2418_v51  ;;  %v2415_v3 = vrot.slane %v2414_v25, 1 }
 0x360   : > { %v2357_v58 = vadd.f32 %v2356_v27, %v2333_v35  ;;  %v2406_v10 = vadd.f32 %v2400_v41, %v2306_v16 }
 0x361   : > { %v2421_v22 = vrot.slane %v2420_v34, 2  ;;  %v2416_v31 = vadd.f32 %v2415_v3, %v2414_v25 }
 0x362   : > { %v2407_v28 = vadd.f32 %v2357_v58, %v2305_v30 }
 0x363   : > { %v2422_v48 = vadd.f32 %v2421_v22, %v2420_v34 }
 0x364   : > { %v2427_v59 = vsel %vm1985_vm12, %v2407_v28, 0.0 }
 0x365   : > { %v2428_v45 = vadd.f32 %v2427_v59, %v2405_v40  ;;  %v2402_v32 = vpop.f32.mrf.mxu3  ;;  %v2423_v50 = vrot.slane %v2422_v48, 1 }
 0x366   : > { %v2403_v11 = vadd.f32 %v2402_v32, %v2379_v7 }
 0x367   : > { %v2429_v2 = vrot.slane %v2428_v45, 4  ;;  %v2424_v1 = vadd.f32 %v2423_v50, %v2422_v48 }
 0x368   : > { %v2408_v0 = vadd.f32 %v2403_v11, %v2306_v16 }
 0x369   : > { %v2430_v26 = vadd.f32 %v2429_v2, %v2428_v45 }
 0x36a   : > { %v2435_v5 = vsel %vm1985_vm12, %v2408_v0, 0.0 }
 0x36b   : > { %v2431_v20 = vrot.slane %v2430_v26, 2  ;;  %v2436_v21 = vadd.f32 %v2435_v5, %v2406_v10 }
 0x36d   : > { %v2432_v38 = vadd.f32 %v2431_v20, %v2430_v26  ;;  %v2437_v33 = vrot.slane %v2436_v21, 4 }
 0x36f   : > { %v2433_v49 = vrot.slane %v2432_v38, 1  ;;  %v2438_v39 = vadd.f32 %v2437_v33, %v2436_v21 }
 0x371   : > { %v2434_v61 = vadd.f32 %v2433_v49, %v2432_v38  ;;  %v2439_v52 = vrot.slane %v2438_v39, 2 }
 0x373   : > { %v2443_v56 = vadd.f32 %v2434_v61, %v2416_v31  ;;  %v2440_v8 = vadd.f32 %v2439_v52, %v2438_v39 }
 0x375   : > { %v2445_v9 = vmul.f32 %v2443_v56, %v4063_v18  ;;  %v2441_v19 = vrot.slane %v2440_v8, 1 }
 0x377   : > { %v4286_v62 = vsub.f32 %v2309_v4, %v2445_v9  ;;  %v4288_v23 = vsub.f32 %v2311_v6, %v2445_v9  ;;  %v4290_v54 = vsub.f32 %v2405_v40, %v2445_v9  ;;  %v4292_v30 = vsub.f32 %v2407_v28, %v2445_v9  ;;  %v2210_v9 = vld [vmem:[%s4365_s11] sm:$0x3] }
 0x378   : > { %v2442_v14 = vadd.f32 %v2441_v19, %v2440_v8 }
 0x379   : > { %v2451_v47 = vmul.f32 %v4286_v62, %v4286_v62  ;;  %v2453_v44 = vmul.f32 %v4288_v23, %v4288_v23  ;;  %v2477_v60 = vmul.f32 %v4290_v54, %v4290_v54  ;;  %v2479_v37 = vmul.f32 %v4292_v30, %v4292_v30 }
 0x37a   : > { %v2444_v6 = vadd.f32 %v2442_v14, %v2424_v1  ;;  %v2524_v14 = vperm.slane %v2210_v9, 0 }
 0x37b   : > { %v2455_v55 = vsel %vm1985_vm12, %v2453_v44, 0.0  ;;  %v2481_v4 = vsel %vm1985_vm12, %v2479_v37, 0.0 }
 0x37c   : > { %v2456_v16 = vadd.f32 %v2455_v55, %v2451_v47  ;;  %v2482_v15 = vadd.f32 %v2481_v4, %v2477_v60  ;;  %v2446_v46 = vmul.f32 %v2444_v6, %v4063_v18 }
 0x37e   : > { %v2457_v13 = vrot.slane %v2456_v16, 4  ;;  %v2483_v43 = vrot.slane %v2482_v15, 4  ;;  %v4305_v17 = vsub.f32 %v2310_v29, %v2446_v46  ;;  %v4308_v53 = vsub.f32 %v4279_v63, %v2446_v46 }
 0x37f   : > { %v4310_v24 = vsub.f32 %v2406_v10, %v2446_v46  ;;  %v4312_v36 = vsub.f32 %v2408_v0, %v2446_v46 }
 0x380   : > { %v2458_v35 = vadd.f32 %v2457_v13, %v2456_v16  ;;  %v2484_v27 = vadd.f32 %v2483_v43, %v2482_v15  ;;  %v2452_v51 = vmul.f32 %v4305_v17, %v4305_v17  ;;  %v2454_v58 = vmul.f32 %v4308_v53, %v4308_v53 }
 0x381   : > { %v2478_v57 = vmul.f32 %v4310_v24, %v4310_v24  ;;  %v2480_v29 = vmul.f32 %v4312_v36, %v4312_v36 }
 0x382   : > { %v2459_v63 = vrot.slane %v2458_v35, 2  ;;  %v2485_v28 = vrot.slane %v2484_v27, 2  ;;  %v2463_v40 = vsel %vm1985_vm12, %v2454_v58, 0.0  ;;  %v2525_v58 = vperm.slane %v2210_v9, 1 }
 0x383   : > { %v2489_v12 = vsel %vm1985_vm12, %v2480_v29, 0.0  ;;  %v2464_v41 = vadd.f32 %v2463_v40, %v2452_v51 }
 0x384   : > { %v2460_v59 = vadd.f32 %v2459_v63, %v2458_v35  ;;  %v2486_v42 = vadd.f32 %v2485_v28, %v2484_v27  ;;  %v2490_v45 = vadd.f32 %v2489_v12, %v2478_v57  ;;  %v2984_v27 = vmov 9.0  }
 0x385   : > { %v2465_v11 = vrot.slane %v2464_v41, 4 }
 0x386   : > { %v2461_v7 = vrot.slane %v2460_v59, 1  ;;  %v2487_v32 = vrot.slane %v2486_v42, 1  ;;  %v2491_v2 = vrot.slane %v2490_v45, 4 }
 0x387   : > { %v2466_v25 = vadd.f32 %v2465_v11, %v2464_v41 }
 0x388   : > { %v2462_v34 = vadd.f32 %v2461_v7, %v2460_v59  ;;  %v2488_v0 = vadd.f32 %v2487_v32, %v2486_v42  ;;  %v2492_v10 = vadd.f32 %v2491_v2, %v2490_v45 }
 0x389   : > { %v2467_v5 = vrot.slane %v2466_v25, 2 }
 0x38a   : > { %v2497_v26 = vadd.f32 %v2488_v0, %v2462_v34  ;;  %v2493_v20 = vrot.slane %v2492_v10, 2 }
 0x38b   : > { %v2468_v22 = vadd.f32 %v2467_v5, %v2466_v25 }
 0x38c   : > { %v2499_v21 = vmul.f32 %v2497_v26, %v4063_v18  ;;  %v2494_v3 = vadd.f32 %v2493_v20, %v2492_v10 }
 0x38d   : > { %v2469_v33 = vrot.slane %v2468_v22, 1 }
 0x38e   : > { %v2501_v38 = vadd.f32 1e-05, %v2499_v21  ;;  %v2495_v49 = vrot.slane %v2494_v3, 1 }
 0x38f   : > { %v2470_v39 = vadd.f32 %v2469_v33, %v2468_v22 }
 0x390   : > { %2768 = vrsqrt.f32 %v2501_v38  ;;  %v2496_v48 = vadd.f32 %v2495_v49, %v2494_v3  ;;  %vm2509_vm5 = vweird.f32 %v2501_v38 }
 0x392   : > { %v2498_v31 = vadd.f32 %v2496_v48, %v2470_v39 }
 0x394   : > { %v2500_v61 = vmul.f32 %v2498_v31, %v4063_v18  ;;  %v2211_v18 = vld [vmem:[%s4366_s12] sm:$0x3] }
 0x395   : > { %v2537_v16 = vperm.slane %v2211_v18, 0  ;;  %v2538_v2 = vperm.slane %v2211_v18, 1 }
 0x396   : > { %v2769_v52 = vpop.eup %2768  ;;  %v2502_v8 = vadd.f32 1e-05, %v2500_v61 }
 0x397   : > { %v2504_v56 = vmul.f32 %v2769_v52, %v2501_v38  ;;  %vm2510_vm4 = vweird.f32 %v2769_v52 }
 0x398   : > { %2770 = vrsqrt.f32 %v2502_v8  ;;  %vm2511_vm6 = vmor %vm2509_vm5, %vm2510_vm4  ;;  %vm2519_vm8 = vweird.f32 %v2502_v8 }
 0x399   : > { %v2505_v50 = vmul.f32 %v2769_v52, %v2504_v56  ;;  %2772 = vrcp.f32 %v2984_v27 }
 0x39b   : > { %v2506_v19 = vmul.f32 0.5, %v2505_v50 }
 0x39d   : > { %v2507_v1 = vsub.f32 1.5, %v2506_v19 }
 0x39e   : > { %v2771_v47 = vpop.eup %2770 }
 0x39f   : > { %v2508_v44 = vmul.f32 %v2769_v52, %v2507_v1  ;;  %v2514_v60 = vmul.f32 %v2771_v47, %v2502_v8  ;;  %vm2520_vm7 = vweird.f32 %v2771_v47  ;;  %v2773_v45 = vpop.eup %2772 }
 0x3a0   : > { %vm2521_vm10 = vmor %vm2519_vm8, %vm2520_vm7  ;;  %v2578_v21 = vmul.f32 9.0, %v2773_v45  ;;  %vm2582_vm11 = vweird.f32 %v2773_v45 }
 0x3a1   : > { %v2512_v37 = vsel %vm2511_vm6, %v2769_v52, %v2508_v44  ;;  %v2515_v55 = vmul.f32 %v2771_v47, %v2514_v60 }
 0x3a2   : > { %v2528_v6 = vmul.f32 %v2524_v14, %v2512_v37 }
 0x3a3   : > { %v2516_v15 = vmul.f32 0.5, %v2515_v55 }
 0x3a4   : > { %v2530_v4 = vperm.slane %v2528_v6, 0 }
 0x3a5   : > { %v2517_v51 = vsub.f32 1.5, %v2516_v15 }
 0x3a6   : > { %v2532_v46 = vmul.f32 %v2530_v4, %v4286_v62  ;;  %v2534_v13 = vmul.f32 %v2530_v4, %v4288_v23  ;;  %v2549_v43 = vmul.f32 %v2530_v4, %v4290_v54  ;;  %v2551_v35 = vmul.f32 %v2530_v4, %v4292_v30 }
 0x3a7   : > { %v2518_v40 = vmul.f32 %v2771_v47, %v2517_v51 }
 0x3a8   : > { %v2541_v57 = vadd.f32 %v2537_v16, %v2532_v46  ;;  %v2543_v29 = vadd.f32 %v2537_v16, %v2534_v13  ;;  %v2553_v63 = vadd.f32 %v2549_v43, %v2537_v16  ;;  %v2555_v28 = vadd.f32 %v2551_v35, %v2537_v16 }
 0x3a9   : > { %v2522_v23 = vsel %vm2521_vm10, %v2771_v47, %v2518_v40 }
 0x3aa   : > { %v2545_v12 = vmax.f32 %v2541_v57, 0.0  ;;  %v2547_v59 = vmax.f32 %v2543_v29, 0.0  ;;  %v2557_v62 = vmax.f32 %v2553_v63, 0.0  ;;  %v2559_v42 = vmax.f32 %v2555_v28, 0.0 }
 0x3ab   : > { %v2529_v41 = vmul.f32 %v2525_v58, %v2522_v23 }
 0x3ac   : > { %v2561_v54 = vsel %vm1985_vm12, %v2547_v59, 0.0  ;;  %v2586_v30 = vsel %vm1985_vm12, %v2559_v42, 0.0 }
 0x3ad   : > { %v2562_v7 = vadd.f32 %v2561_v54, %v2545_v12  ;;  %v2587_v32 = vadd.f32 %v2586_v30, %v2557_v62  ;;  %v2531_v11 = vperm.slane %v2529_v41, 0 }
 0x3af   : > { %v2563_v34 = vrot.slane %v2562_v7, 4  ;;  %v2588_v0 = vrot.slane %v2587_v32, 4  ;;  %v2533_v25 = vmul.f32 %v2531_v11, %v4305_v17  ;;  %v2535_v10 = vmul.f32 %v2531_v11, %v4308_v53 }
 0x3b0   : > { %v2550_v26 = vmul.f32 %v2531_v11, %v4310_v24  ;;  %v2552_v5 = vmul.f32 %v2531_v11, %v4312_v36  ;;  %v2579_v17 = vsub.f32 1.0, %v2578_v21 }
 0x3b1   : > { %v2564_v20 = vadd.f32 %v2563_v34, %v2562_v7  ;;  %v2589_v22 = vadd.f32 %v2588_v0, %v2587_v32  ;;  %v2542_v3 = vadd.f32 %v2538_v2, %v2533_v25  ;;  %v2544_v38 = vadd.f32 %v2538_v2, %v2535_v10 }
 0x3b2   : > { %v2554_v33 = vadd.f32 %v2550_v26, %v2538_v2  ;;  %v2556_v49 = vadd.f32 %v2552_v5, %v2538_v2  ;;  %v2580_v14 = vmul.f32 %v2773_v45, %v2579_v17 }
 0x3b3   : > { %v2546_v39 = vmax.f32 %v2542_v3, 0.0  ;;  %v2548_v48 = vmax.f32 %v2544_v38, 0.0  ;;  %v2565_v52 = vrot.slane %v2564_v20, 2  ;;  %v2590_v56 = vrot.slane %v2589_v22, 2 }
 0x3b4   : > { %v2558_v31 = vmax.f32 %v2554_v33, 0.0  ;;  %v2560_v61 = vmax.f32 %v2556_v49, 0.0  ;;  %v2581_v55 = vadd.f32 %v2773_v45, %v2580_v14 }
 0x3b5   : > { %v2569_v53 = vsel %vm1985_vm12, %v2548_v48, 0.0  ;;  %v2566_v50 = vadd.f32 %v2565_v52, %v2564_v20  ;;  %v2591_v9 = vadd.f32 %v2590_v56, %v2589_v22 }
 0x3b6   : > { %v2594_v24 = vsel %vm1985_vm12, %v2560_v61, 0.0  ;;  %v2570_v8 = vadd.f32 %v2569_v53, %v2546_v39  ;;  %v2583_v35 = vsel %vm2582_vm11, %v2773_v45, %v2581_v55 }
 0x3b7   : > { %v2595_v36 = vadd.f32 %v2594_v24, %v2558_v31  ;;  %v2567_v60 = vrot.slane %v2566_v50, 1  ;;  %v2592_v18 = vrot.slane %v2591_v9, 1 }
 0x3b8   : > { %v2571_v19 = vrot.slane %v2570_v8, 4 }
 0x3b9   : > { %v2596_v1 = vrot.slane %v2595_v36, 4  ;;  %v2568_v15 = vadd.f32 %v2567_v60, %v2566_v50  ;;  %v2593_v46 = vadd.f32 %v2592_v18, %v2591_v9 }
 0x3ba   : > { %v2572_v47 = vadd.f32 %v2571_v19, %v2570_v8 }
 0x3bb   : > { %v2597_v44 = vadd.f32 %v2596_v1, %v2595_v36  ;;  %v2584_v58 = vmul.f32 %v2583_v35, %v2568_v15  ;;  %v2602_v57 = vmul.f32 %v2593_v46, %v2583_v35 }
 0x3bc   : > { %v2573_v37 = vrot.slane %v2572_v47, 2 }
 0x3bd   : > { %v2598_v6 = vrot.slane %v2597_v44, 2  ;;  %v2604_v12 = vsel %vm1985_vm12, %v2584_v58, %v2602_v57 }
 0x3be   : > { %v2574_v4 = vadd.f32 %v2573_v37, %v2572_v47 }
 0x3bf   : > { %v2599_v16 = vadd.f32 %v2598_v6, %v2597_v44 }
 0x3c0   : > { %v2575_v13 = vrot.slane %v2574_v4, 1 }
 0x3c1   : > { %v2600_v43 = vrot.slane %v2599_v16, 1 }
 0x3c2   : > { %v2576_v27 = vadd.f32 %v2575_v13, %v2574_v4 }
 0x3c3   : > { %v2601_v51 = vadd.f32 %v2600_v43, %v2599_v16 }
 0x3c4   : > { %v2585_v29 = vmul.f32 %v2583_v35, %v2576_v27 }
 0x3c5   : > { %v2603_v63 = vmul.f32 %v2601_v51, %v2583_v35 }
 0x3c7   : > { %v2605_v28 = vsel %vm1985_vm12, %v2585_v29, %v2603_v63 }
 0x3c8   : > { %v2608_v40 = vrot.slane %v2605_v28, 6 }
 0x3ca   : > { %v2609_v59 = vsel %vm1460_vm9, %v2604_v12, %v2608_v40 }
 0x3cb   : > { %2611 = vst [vmem:[%s474_s19] sm:$0xf] %v2609_v59 }
 0x3cc PF: > { %s25_s25 = sadd.s32 1, %s2976_s25  }
 0x3cd   : > { %p22_p7 = scmp.ge.s32.totalorder %s25_s25, 6  }
 0x3cf   :  { %24 = sbr.rel (!%p22_p7) target bundleno = 2 (0x2), region = 111 }
 0x3d4   :  { %2633 = vsyncpa [#allocation3], 1 }
 0x3d5   :  { %2635 = vsyncpa [#allocation3 + $0x1], 1 }
 0x3d6   :  { %2636 = vsyncpa [#allocation5], 1 }

// kernel: tdnn_lstm_forward.3
= control target key start
LH: loop header
LB: loop body
LE: loop exit
PB: predicated region body
PF: predicated region fallthrough
CT: control target
= control target key end

     0   :  { %21 = vsyncpa [#allocation3], 0  ;;  %s6235_s0 = inlined_call_operand.vmem [shape: f32[4,2,256], index: 0, kind: input, shape index: {}]   ;;  %s6236_s1 = inlined_call_operand.hbm [shape: f32[256,512], index: 1, kind: input, shape index: {}]   ;;  %s6237_s2 = inlined_call_operand.hbm [shape: f32[128,512], index: 2, kind: input, shape index: {}]   ;;  %s6238_s3 = inlined_call_operand.vmem [shape: f32[1,512], index: 3, kind: input, shape index: {}]   ;;  %s6239_s4 = inlined_call_operand.hbm [shape: f32[128,512], index: 4, kind: input, shape index: {}]   ;;  %s6240_s5 = inlined_call_operand.hbm [shape: f32[128,512], index: 5, kind: input, shape index: {}]   ;;  %s6241_s6 = inlined_call_operand.vmem [shape: f32[1,512], index: 6, kind: input, shape index: {}]   ;;  %s6242_s7 = inlined_call_operand.vmem [shape: f32[128,32], index: 7, kind: input, shape index: {}]   ;;  %s6243_s8 = inlined_call_operand.vmem [shape: f32[1,32], index: 8, kind: input, shape index: {}]   ;;  %s6244_s9 = inlined_call_operand.vmem [shape: f32[32,32], index: 9, kind: input, shape index: {}]   ;;  %s6245_s10 = inlined_call_operand.vmem [shape: f32[1,32], index: 10, kind: input, shape index: {}]   ;;  %s6246_s11 = inlined_call_operand.vmem [shape: f32[32,8], index: 11, kind: input, shape index: {}]   ;;  %s6247_s12 = inlined_call_operand.vmem [shape: f32[1,8], index: 12, kind: input, shape index: {}]   ;;  %s6248_s13 = inlined_call_operand.hbm [shape: f32[2,8], index: 13, kind: output, shape index: {0}]   ;;  %s6249_s14 = inlined_call_operand.hbm [shape: f32[2,2,128], index: 14, kind: output, shape index: {1}]   ;;  %s6250_s15 = inlined_call_operand.hbm [shape: f32[2,2,128], index: 15, kind: output, shape index: {2}]  }
   0x1   :  { %22 = vsyncpa [#allocation6], 0 }
   0x2   :  { %23 = vsyncpa [#allocation9], 0 }
   0x3   :  { %24 = vsyncpa [#allocation4], 0 }
   0x4   :  { %25 = vsyncpa [#allocation12], 0  ;;  %s45_s20 = sshll.u32 %s6237_s2, 4  ;;  %s3423_s21 = smov [#allocation5]   ;;  %s46_s20 = int_to_ptr.hbm [resolvable:$true] %s45_s20 }
   0x5   :  { %s47_s22 = sshll.u32 %s3423_s21, 4  ;;  %s32_s25 = sshll.u32 %s6236_s1, 4  ;;  %s48_s22 = int_to_ptr.vmem [resolvable:$true] %s47_s22  ;;  %s33_s25 = int_to_ptr.hbm [resolvable:$true] %s32_s25 }
   0x6   :  { %s3424_s26 = smov 512   ;;  %s3425_s27 = smov 32  }
   0x7   :  { %53 = dma.hbm_to_vmem [thread:$0]  %s46_s20, 8192, %s48_s22, [#allocation6], %s3424_s26, %s3424_s26, %s3425_s27  }
   0x8   :  { %s3426_s28 = smov [#allocation2]   ;;  %s60_s17 = sshll.u32 %s6239_s4, 4  ;;  %s61_s17 = int_to_ptr.hbm [resolvable:$true] %s60_s17 }
   0x9   :  { %s34_s29 = sshll.u32 %s3426_s28, 4  ;;  %s73_s19 = sshll.u32 %s6240_s5, 4  ;;  %s35_s29 = int_to_ptr.vmem [resolvable:$true] %s34_s29  ;;  %s74_s19 = int_to_ptr.hbm [resolvable:$true] %s73_s19 }
   0xa   :  { %40 = dma.hbm_to_vmem [thread:$0]  %s33_s25, 16384, %s35_s29, [#allocation3], %s3424_s26, %s3424_s26, %s3425_s27  }
   0xb   :  { %s3427_s1 = smov [#allocation7]   ;;  %s3428_s20 = smov [#allocation8]  }
   0xc   :  { %s62_s21 = sshll.u32 %s3427_s1, 4  ;;  %s75_s22 = sshll.u32 %s3428_s20, 4  ;;  %s63_s21 = int_to_ptr.vmem [resolvable:$true] %s62_s21  ;;  %s76_s22 = int_to_ptr.vmem [resolvable:$true] %s75_s22 }
   0xd   :  { %68 = dma.hbm_to_vmem [thread:$0]  %s61_s17, 8192, %s63_s21, [#allocation6], %s3424_s26, %s3424_s26, %s3425_s27  }
   0xe   :  { %81 = dma.hbm_to_vmem [thread:$0]  %s74_s19, 8192, %s76_s22, [#allocation9], %s3424_s26, %s3424_s26, %s3425_s27  }
   0xf   :  { %3413 = dma.done.wait [#allocation3], 16384  }
  0x10   :  { %3414 = vsyncadd [#allocation3], 4294950912 }
  0x11   :  { %3415 = dma.done.wait [#allocation6], 16384  }
  0x12   :  { %3416 = vsyncadd [#allocation6], 4294950912 }
  0x13   :  { %3417 = dma.done.wait [#allocation9], 8192  }
  0x14   :  { %3418 = vsyncadd [#allocation9], 4294959104  ;;  %v3530_v0 = vld [vmem:[#allocation2 + $0x1e0] sm:$0xff]  ;;  %v3534_v2 = vld [vmem:[#allocation2 + $0x1e8] sm:$0xff]  ;;  %s2785_s20 = sshll.u32 %s6249_s14, 4  ;;  %s3430_s22 = smov [#allocation11]   ;;  %s2786_s20 = int_to_ptr.hbm [resolvable:$true] %s2785_s20 }
  0x15   :  { %v3532_v1 = vld [vmem:[#allocation2 + $0x3e0] sm:$0xff]  ;;  %450 = vmatpush.msra.mxu0 %v3530_v0  ;;  %v3538_v3 = vld [vmem:[#allocation2 + $0x3e8] sm:$0xff]  ;;  %490 = vmatpush.msra.mxu2 %v3534_v2  ;;  %s2783_s4 = sshll.u32 %s3430_s22, 4  ;;  %s3431_s5 = smov 2   ;;  %s2784_s4 = int_to_ptr.vmem [resolvable:$true] %s2783_s4 }
  0x16   :  { %470 = vmatpush.msra.mxu1 %v3532_v1  ;;  %v3540_v4 = vld [vmem:[#allocation2 + $0x1c0] sm:$0xff]  ;;  %510 = vmatpush.msra.mxu3 %v3538_v3  ;;  %v3546_v6 = vld [vmem:[#allocation2 + $0x1c8] sm:$0xff]  ;;  %s2798_s26 = sshll.u32 %s6250_s15, 4  ;;  %s3433_s29 = smov [#allocation10]   ;;  %s2799_s26 = int_to_ptr.hbm [resolvable:$true] %s2798_s26 }
  0x17   :  { %v3542_v5 = vld [vmem:[#allocation2 + $0x3c0] sm:$0xff]  ;;  %v3548_v7 = vld [vmem:[#allocation2 + $0x3c8] sm:$0xff]  ;;  %451 = vmatpush.msra.mxu0 %v3540_v4  ;;  %491 = vmatpush.msra.mxu2 %v3546_v6 }
  0x18   :  { %v3550_v8 = vld [vmem:[#allocation2 + $0x1a0] sm:$0xff]  ;;  %471 = vmatpush.msra.mxu1 %v3542_v5  ;;  %v3556_v10 = vld [vmem:[#allocation2 + $0x1a8] sm:$0xff]  ;;  %511 = vmatpush.msra.mxu3 %v3548_v7 }
  0x19   :  { %v3554_v9 = vld [vmem:[#allocation2 + $0x3a0] sm:$0xff]  ;;  %v3558_v11 = vld [vmem:[#allocation2 + $0x3a8] sm:$0xff]  ;;  %452 = vmatpush.msra.mxu0 %v3550_v8  ;;  %492 = vmatpush.msra.mxu2 %v3556_v10 }
  0x1a   :  { %v3562_v12 = vld [vmem:[#allocation2 + $0x180] sm:$0xff]  ;;  %472 = vmatpush.msra.mxu1 %v3554_v9  ;;  %v3568_v14 = vld [vmem:[#allocation2 + $0x188] sm:$0xff]  ;;  %512 = vmatpush.msra.mxu3 %v3558_v11 }
  0x1b   :  { %v3564_v13 = vld [vmem:[#allocation2 + $0x380] sm:$0xff]  ;;  %v3570_v15 = vld [vmem:[#allocation2 + $0x388] sm:$0xff]  ;;  %453 = vmatpush.msra.mxu0 %v3562_v12  ;;  %493 = vmatpush.msra.mxu2 %v3568_v14 }
  0x1c   :  { %v3574_v16 = vld [vmem:[#allocation2 + $0x160] sm:$0xff]  ;;  %473 = vmatpush.msra.mxu1 %v3564_v13  ;;  %v3580_v18 = vld [vmem:[#allocation2 + $0x168] sm:$0xff]  ;;  %513 = vmatpush.msra.mxu3 %v3570_v15 }
  0x1d   :  { %v3576_v17 = vld [vmem:[#allocation2 + $0x360] sm:$0xff]  ;;  %v3582_v19 = vld [vmem:[#allocation2 + $0x368] sm:$0xff]  ;;  %454 = vmatpush.msra.mxu0 %v3574_v16  ;;  %494 = vmatpush.msra.mxu2 %v3580_v18 }
  0x1e   :  { %v3586_v20 = vld [vmem:[#allocation2 + $0x140] sm:$0xff]  ;;  %474 = vmatpush.msra.mxu1 %v3576_v17  ;;  %v3592_v22 = vld [vmem:[#allocation2 + $0x148] sm:$0xff]  ;;  %514 = vmatpush.msra.mxu3 %v3582_v19 }
  0x1f   :  { %v3588_v21 = vld [vmem:[#allocation2 + $0x340] sm:$0xff]  ;;  %v3594_v23 = vld [vmem:[#allocation2 + $0x348] sm:$0xff]  ;;  %455 = vmatpush.msra.mxu0 %v3586_v20  ;;  %495 = vmatpush.msra.mxu2 %v3592_v22 }
  0x20   :  { %v3598_v24 = vld [vmem:[#allocation2 + $0x120] sm:$0xff]  ;;  %475 = vmatpush.msra.mxu1 %v3588_v21  ;;  %v3604_v26 = vld [vmem:[#allocation2 + $0x128] sm:$0xff]  ;;  %515 = vmatpush.msra.mxu3 %v3594_v23 }
  0x21   :  { %v3600_v25 = vld [vmem:[#allocation2 + $0x320] sm:$0xff]  ;;  %v3606_v27 = vld [vmem:[#allocation2 + $0x328] sm:$0xff]  ;;  %456 = vmatpush.msra.mxu0 %v3598_v24  ;;  %496 = vmatpush.msra.mxu2 %v3604_v26 }
  0x22   :  { %v3610_v28 = vld [vmem:[#allocation2 + $0x100] sm:$0xff]  ;;  %476 = vmatpush.msra.mxu1 %v3600_v25  ;;  %v3616_v30 = vld [vmem:[#allocation2 + $0x108] sm:$0xff]  ;;  %516 = vmatpush.msra.mxu3 %v3606_v27 }
  0x23   :  { %v3612_v29 = vld [vmem:[#allocation2 + $0x300] sm:$0xff]  ;;  %v3618_v31 = vld [vmem:[#allocation2 + $0x308] sm:$0xff]  ;;  %457 = vmatpush.msra.mxu0 %v3610_v28  ;;  %497 = vmatpush.msra.mxu2 %v3616_v30 }
  0x24   :  { %v3622_v32 = vld [vmem:[#allocation2 + $0xe0] sm:$0xff]  ;;  %477 = vmatpush.msra.mxu1 %v3612_v29  ;;  %v3628_v34 = vld [vmem:[#allocation2 + $0xe8] sm:$0xff]  ;;  %517 = vmatpush.msra.mxu3 %v3618_v31 }
  0x25   :  { %v3624_v33 = vld [vmem:[#allocation2 + $0x2e0] sm:$0xff]  ;;  %v3630_v35 = vld [vmem:[#allocation2 + $0x2e8] sm:$0xff]  ;;  %458 = vmatpush.msra.mxu0 %v3622_v32  ;;  %498 = vmatpush.msra.mxu2 %v3628_v34 }
  0x26   :  { %v3634_v36 = vld [vmem:[#allocation2 + $0xc0] sm:$0xff]  ;;  %478 = vmatpush.msra.mxu1 %v3624_v33  ;;  %v3640_v38 = vld [vmem:[#allocation2 + $0xc8] sm:$0xff]  ;;  %518 = vmatpush.msra.mxu3 %v3630_v35 }
  0x27   :  { %v3636_v37 = vld [vmem:[#allocation2 + $0x2c0] sm:$0xff]  ;;  %v3642_v39 = vld [vmem:[#allocation2 + $0x2c8] sm:$0xff]  ;;  %459 = vmatpush.msra.mxu0 %v3634_v36  ;;  %499 = vmatpush.msra.mxu2 %v3640_v38 }
  0x28   :  { %v3646_v40 = vld [vmem:[#allocation2 + $0xa0] sm:$0xff]  ;;  %479 = vmatpush.msra.mxu1 %v3636_v37  ;;  %v3652_v42 = vld [vmem:[#allocation2 + $0xa8] sm:$0xff]  ;;  %519 = vmatpush.msra.mxu3 %v3642_v39 }
  0x29   :  { %6717 = vst [vmem:[#allocation19_spill] sm:$0xff] %v3646_v40  ;;  %v3648_v41 = vld [vmem:[#allocation2 + $0x2a0] sm:$0xff]  ;;  %v3654_v43 = vld [vmem:[#allocation2 + $0x2a8] sm:$0xff]  ;;  %460 = vmatpush.msra.mxu0 %v3646_v40  ;;  %500 = vmatpush.msra.mxu2 %v3652_v42 }
  0x2a   :  { %6718 = vst [vmem:[#allocation20_spill] sm:$0xff] %v3648_v41  ;;  %v3658_v44 = vld [vmem:[#allocation2 + $0x80] sm:$0xff]  ;;  %480 = vmatpush.msra.mxu1 %v3648_v41  ;;  %v3664_v46 = vld [vmem:[#allocation2 + $0x88] sm:$0xff]  ;;  %520 = vmatpush.msra.mxu3 %v3654_v43 }
  0x2b   :  { %6719 = vst [vmem:[#allocation21_spill] sm:$0xff] %v3652_v42  ;;  %v3660_v45 = vld [vmem:[#allocation2 + $0x280] sm:$0xff]  ;;  %v3666_v47 = vld [vmem:[#allocation2 + $0x288] sm:$0xff]  ;;  %461 = vmatpush.msra.mxu0 %v3658_v44  ;;  %501 = vmatpush.msra.mxu2 %v3664_v46 }
  0x2c   :  { %6720 = vst [vmem:[#allocation22_spill] sm:$0xff] %v3654_v43  ;;  %v3670_v48 = vld [vmem:[#allocation2 + $0x60] sm:$0xff]  ;;  %481 = vmatpush.msra.mxu1 %v3660_v45  ;;  %v3676_v50 = vld [vmem:[#allocation2 + $0x68] sm:$0xff]  ;;  %521 = vmatpush.msra.mxu3 %v3666_v47 }
  0x2d   :  { %6721 = vst [vmem:[#allocation23_spill] sm:$0xff] %v3658_v44  ;;  %v3672_v49 = vld [vmem:[#allocation2 + $0x260] sm:$0xff]  ;;  %v3678_v51 = vld [vmem:[#allocation2 + $0x268] sm:$0xff]  ;;  %462 = vmatpush.msra.mxu0 %v3670_v48  ;;  %502 = vmatpush.msra.mxu2 %v3676_v50 }
  0x2e   :  { %6722 = vst [vmem:[#allocation24_spill] sm:$0xff] %v3660_v45  ;;  %v3682_v52 = vld [vmem:[#allocation2 + $0x40] sm:$0xff]  ;;  %482 = vmatpush.msra.mxu1 %v3672_v49  ;;  %v3688_v54 = vld [vmem:[#allocation2 + $0x48] sm:$0xff]  ;;  %522 = vmatpush.msra.mxu3 %v3678_v51 }
  0x2f   :  { %6723 = vst [vmem:[#allocation25_spill] sm:$0xff] %v3664_v46  ;;  %v3684_v53 = vld [vmem:[#allocation2 + $0x240] sm:$0xff]  ;;  %v3690_v55 = vld [vmem:[#allocation2 + $0x248] sm:$0xff]  ;;  %463 = vmatpush.msra.mxu0 %v3682_v52  ;;  %503 = vmatpush.msra.mxu2 %v3688_v54 }
  0x30   :  { %6724 = vst [vmem:[#allocation26_spill] sm:$0xff] %v3666_v47  ;;  %v3694_v56 = vld [vmem:[#allocation2 + $0x20] sm:$0xff]  ;;  %483 = vmatpush.msra.mxu1 %v3684_v53  ;;  %v3700_v58 = vld [vmem:[#allocation2 + $0x28] sm:$0xff]  ;;  %523 = vmatpush.msra.mxu3 %v3690_v55 }
  0x31   :  { %6725 = vst [vmem:[#allocation27_spill] sm:$0xff] %v3670_v48  ;;  %v3696_v57 = vld [vmem:[#allocation2 + $0x220] sm:$0xff]  ;;  %v3702_v59 = vld [vmem:[#allocation2 + $0x228] sm:$0xff]  ;;  %464 = vmatpush.msra.mxu0 %v3694_v56  ;;  %504 = vmatpush.msra.mxu2 %v3700_v58 }
  0x32   :  { %6726 = vst [vmem:[#allocation28_spill] sm:$0xff] %v3672_v49  ;;  %v3706_v60 = vld [vmem:[#allocation2] sm:$0xff]  ;;  %484 = vmatpush.msra.mxu1 %v3696_v57  ;;  %v3712_v62 = vld [vmem:[#allocation2 + $0x8] sm:$0xff]  ;;  %524 = vmatpush.msra.mxu3 %v3702_v59 }
  0x33   :  { %6727 = vst [vmem:[#allocation29_spill] sm:$0xff] %v3676_v50  ;;  %v3708_v61 = vld [vmem:[#allocation2 + $0x200] sm:$0xff]  ;;  %v3714_v63 = vld [vmem:[#allocation2 + $0x208] sm:$0xff]  ;;  %465 = vmatpush.msra.mxu0 %v3706_v60  ;;  %505 = vmatpush.msra.mxu2 %v3712_v62 }
  0x34   :  { %6728 = vst [vmem:[#allocation30_spill] sm:$0xff] %v3678_v51  ;;  %485 = vmatpush.msra.mxu1 %v3708_v61  ;;  %525 = vmatpush.msra.mxu3 %v3714_v63  ;;  %v3838_v51 = vld [vmem:[#allocation2 + $0x2d8] sm:$0xff] }
  0x35   :  { %6729 = vst [vmem:[#allocation31_spill] sm:$0xff] %v3682_v52  ;;  %v3797_v52 = vld [vmem:[#allocation2 + $0x138] sm:$0xff] }
  0x36   :  { %6730 = vst [vmem:[#allocation32_spill] sm:$0xff] %v3684_v53  ;;  %v3718_v53 = vld [vmem:[#allocation2 + $0x1f0] sm:$0xff] }
  0x37   :  { %6731 = vst [vmem:[#allocation33_spill] sm:$0xff] %v3688_v54  ;;  %v3720_v54 = vld [vmem:[#allocation2 + $0x3f0] sm:$0xff]  ;;  %530 = vmatpush.msrb.mxu0 %v3718_v53 }
  0x38   :  { %6732 = vst [vmem:[#allocation34_spill] sm:$0xff] %v3690_v55  ;;  %v3724_v55 = vld [vmem:[#allocation2 + $0x1f8] sm:$0xff]  ;;  %550 = vmatpush.msrb.mxu1 %v3720_v54 }
  0x39   :  { %6733 = vst [vmem:[#allocation35_spill] sm:$0xff] %v3694_v56  ;;  %v3726_v56 = vld [vmem:[#allocation2 + $0x3f8] sm:$0xff]  ;;  %570 = vmatpush.msrb.mxu2 %v3724_v55 }
  0x3a   :  { %6734 = vst [vmem:[#allocation36_spill] sm:$0xff] %v3696_v57  ;;  %v3730_v57 = vld [vmem:[#allocation2 + $0x1d0] sm:$0xff]  ;;  %590 = vmatpush.msrb.mxu3 %v3726_v56 }
  0x3b   :  { %6735 = vst [vmem:[#allocation37_spill] sm:$0xff] %v3700_v58  ;;  %v3732_v58 = vld [vmem:[#allocation2 + $0x3d0] sm:$0xff]  ;;  %531 = vmatpush.msrb.mxu0 %v3730_v57 }
  0x3c   :  { %6736 = vst [vmem:[#allocation38_spill] sm:$0xff] %v3702_v59  ;;  %v3736_v59 = vld [vmem:[#allocation2 + $0x1d8] sm:$0xff]  ;;  %551 = vmatpush.msrb.mxu1 %v3732_v58 }
  0x3d   :  { %6737 = vst [vmem:[#allocation39_spill] sm:$0xff] %v3706_v60  ;;  %v3738_v60 = vld [vmem:[#allocation2 + $0x3d8] sm:$0xff]  ;;  %571 = vmatpush.msrb.mxu2 %v3736_v59 }
  0x3e   :  { %6738 = vst [vmem:[#allocation40_spill] sm:$0xff] %v3708_v61  ;;  %v3742_v61 = vld [vmem:[#allocation2 + $0x1b0] sm:$0xff]  ;;  %591 = vmatpush.msrb.mxu3 %v3738_v60 }
  0x3f   :  { %6739 = vst [vmem:[#allocation41_spill] sm:$0xff] %v3712_v62  ;;  %v3744_v62 = vld [vmem:[#allocation2 + $0x3b0] sm:$0xff]  ;;  %532 = vmatpush.msrb.mxu0 %v3742_v61 }
  0x40   :  { %6740 = vst [vmem:[#allocation42_spill] sm:$0xff] %v3714_v63  ;;  %v3748_v63 = vld [vmem:[#allocation2 + $0x1b8] sm:$0xff]  ;;  %552 = vmatpush.msrb.mxu1 %v3744_v62 }
  0x41   :  { %6741 = vst [vmem:[#allocation43_spill] sm:$0xff] %v3718_v53  ;;  %v3750_v53 = vld [vmem:[#allocation2 + $0x3b8] sm:$0xff]  ;;  %572 = vmatpush.msrb.mxu2 %v3748_v63 }
  0x42   :  { %6742 = vst [vmem:[#allocation44_spill] sm:$0xff] %v3720_v54  ;;  %v3754_v54 = vld [vmem:[#allocation2 + $0x190] sm:$0xff]  ;;  %592 = vmatpush.msrb.mxu3 %v3750_v53 }
  0x43   :  { %6743 = vst [vmem:[#allocation45_spill] sm:$0xff] %v3724_v55  ;;  %v3756_v55 = vld [vmem:[#allocation2 + $0x390] sm:$0xff]  ;;  %533 = vmatpush.msrb.mxu0 %v3754_v54 }
  0x44   :  { %6744 = vst [vmem:[#allocation46_spill] sm:$0xff] %v3726_v56  ;;  %v3760_v56 = vld [vmem:[#allocation2 + $0x198] sm:$0xff]  ;;  %553 = vmatpush.msrb.mxu1 %v3756_v55 }
  0x45   :  { %6745 = vst [vmem:[#allocation47_spill] sm:$0xff] %v3730_v57  ;;  %v3762_v57 = vld [vmem:[#allocation2 + $0x398] sm:$0xff]  ;;  %573 = vmatpush.msrb.mxu2 %v3760_v56 }
  0x46   :  { %6746 = vst [vmem:[#allocation48_spill] sm:$0xff] %v3732_v58  ;;  %v3766_v58 = vld [vmem:[#allocation2 + $0x170] sm:$0xff]  ;;  %593 = vmatpush.msrb.mxu3 %v3762_v57 }
  0x47   :  { %6747 = vst [vmem:[#allocation49_spill] sm:$0xff] %v3736_v59  ;;  %v3768_v59 = vld [vmem:[#allocation2 + $0x370] sm:$0xff]  ;;  %534 = vmatpush.msrb.mxu0 %v3766_v58 }
  0x48   :  { %6748 = vst [vmem:[#allocation50_spill] sm:$0xff] %v3738_v60  ;;  %v3772_v60 = vld [vmem:[#allocation2 + $0x178] sm:$0xff]  ;;  %554 = vmatpush.msrb.mxu1 %v3768_v59 }
  0x49   :  { %6749 = vst [vmem:[#allocation51_spill] sm:$0xff] %v3742_v61  ;;  %v3774_v61 = vld [vmem:[#allocation2 + $0x378] sm:$0xff]  ;;  %574 = vmatpush.msrb.mxu2 %v3772_v60 }
  0x4a   :  { %6750 = vst [vmem:[#allocation52_spill] sm:$0xff] %v3744_v62  ;;  %v3778_v62 = vld [vmem:[#allocation2 + $0x150] sm:$0xff]  ;;  %594 = vmatpush.msrb.mxu3 %v3774_v61 }
  0x4b   :  { %6751 = vst [vmem:[#allocation53_spill] sm:$0xff] %v3748_v63  ;;  %v3780_v63 = vld [vmem:[#allocation2 + $0x350] sm:$0xff]  ;;  %535 = vmatpush.msrb.mxu0 %v3778_v62 }
  0x4c   :  { %6752 = vst [vmem:[#allocation54_spill] sm:$0xff] %v3750_v53  ;;  %v3784_v53 = vld [vmem:[#allocation2 + $0x158] sm:$0xff]  ;;  %555 = vmatpush.msrb.mxu1 %v3780_v63 }
  0x4d   :  { %6753 = vst [vmem:[#allocation55_spill] sm:$0xff] %v3754_v54  ;;  %v3786_v54 = vld [vmem:[#allocation2 + $0x358] sm:$0xff]  ;;  %575 = vmatpush.msrb.mxu2 %v3784_v53 }
  0x4e   :  { %6754 = vst [vmem:[#allocation56_spill] sm:$0xff] %v3756_v55  ;;  %v434_v55 = vld [vmem:[%s6235_s0] sm:$0xf]  ;;  %595 = vmatpush.msrb.mxu3 %v3786_v54 }
  0x4f   :  { %6755 = vst [vmem:[#allocation57_spill] sm:$0xff] %v3760_v56  ;;  %v3795_v56 = vld [vmem:[#allocation2 + $0x330] sm:$0xff]  ;;  %576 = vmatpush.msrb.mxu2 %v3797_v52 }
  0x50   :  { %6756 = vst [vmem:[#allocation58_spill] sm:$0xff] %v3762_v57  ;;  %v3793_v57 = vld [vmem:[#allocation2 + $0x130] sm:$0xff]  ;;  %556 = vmatpush.msrb.mxu1 %v3795_v56 }
  0x51   :  { %6757 = vst [vmem:[#allocation59_spill] sm:$0xff] %v3766_v58  ;;  %536 = vmatpush.msrb.mxu0 %v3793_v57  ;;  %v3811_v58 = vld [vmem:[#allocation2 + $0x118] sm:$0xff] }
  0x52   :  { %6758 = vst [vmem:[#allocation60_spill] sm:$0xff] %v3768_v59  ;;  %v3801_v59 = vld [vmem:[#allocation2 + $0x338] sm:$0xff]  ;;  %577 = vmatpush.msrb.mxu2 %v3811_v58 }
  0x53   :  { %6759 = vst [vmem:[#allocation61_spill] sm:$0xff] %v3772_v60  ;;  %v3805_v60 = vld [vmem:[#allocation2 + $0x110] sm:$0xff]  ;;  %596 = vmatpush.msrb.mxu3 %v3801_v59 }
  0x54   :  { %6760 = vst [vmem:[#allocation62_spill] sm:$0xff] %v3774_v61  ;;  %v3807_v61 = vld [vmem:[#allocation2 + $0x310] sm:$0xff]  ;;  %537 = vmatpush.msrb.mxu0 %v3805_v60 }
  0x55   :  { %6761 = vst [vmem:[#allocation63_spill] sm:$0xff] %v3778_v62  ;;  %557 = vmatpush.msrb.mxu1 %v3807_v61  ;;  %v3836_v62 = vld [vmem:[#allocation2 + $0xd8] sm:$0xff] }
  0x56   :  { %6762 = vst [vmem:[#allocation64_spill] sm:$0xff] %v3780_v63  ;;  %v3817_v63 = vld [vmem:[#allocation2 + $0xf0] sm:$0xff] }
  0x57   :  { %6763 = vst [vmem:[#allocation65_spill] sm:$0xff] %v3784_v53  ;;  %v3819_v53 = vld [vmem:[#allocation2 + $0x2f0] sm:$0xff]  ;;  %538 = vmatpush.msrb.mxu0 %v3817_v63 }
  0x58   :  { %6764 = vst [vmem:[#allocation66_spill] sm:$0xff] %v3786_v54  ;;  %v3821_v54 = vld [vmem:[#allocation2 + $0xf8] sm:$0xff]  ;;  %558 = vmatpush.msrb.mxu1 %v3819_v53 }
  0x59   :  { %6765 = vst [vmem:[#allocation67_spill] sm:$0xff] %v3793_v57  ;;  %v3825_v57 = vld [vmem:[#allocation2 + $0x2f8] sm:$0xff]  ;;  %578 = vmatpush.msrb.mxu2 %v3821_v54 }
  0x5a   :  { %6766 = vst [vmem:[#allocation68_spill] sm:$0xff] %v3795_v56  ;;  %v3827_v56 = vld [vmem:[#allocation2 + $0xd0] sm:$0xff] }
  0x5b   :  { %6767 = vst [vmem:[#allocation69_spill] sm:$0xff] %v3797_v52  ;;  %v2822_v52 = vld [vmem:[%s6235_s0 + $0x4] sm:$0xf]  ;;  %539 = vmatpush.msrb.mxu0 %v3827_v56  ;;  %579 = vmatpush.msrb.mxu2 %v3836_v62 }
  0x5c   :  { %445 = vst [vmem:[#allocation1] ss:$4 sm:$0xff] %v434_v55  ;;  %v3813_v55 = vld [vmem:[#allocation2 + $0x318] sm:$0xff] }
  0x5d   :  { %6768 = vst [vmem:[#allocation70_spill] sm:$0xff] %v3801_v59  ;;  %597 = vmatpush.msrb.mxu3 %v3813_v55  ;;  %v3834_v59 = vld [vmem:[#allocation2 + $0x2d0] sm:$0xff] }
  0x5e   :  { %6769 = vst [vmem:[#allocation71_spill] sm:$0xff] %v3805_v60  ;;  %559 = vmatpush.msrb.mxu1 %v3834_v59 }
  0x5f   :  { %6770 = vst [vmem:[#allocation72_spill] sm:$0xff] %v3807_v61  ;;  %598 = vmatpush.msrb.mxu3 %v3825_v57 }
  0x60   :  { %6771 = vst [vmem:[#allocation73_spill] sm:$0xff] %v3811_v58  ;;  %v3848_v58 = vld [vmem:[#allocation2 + $0xb0] sm:$0xff] }
  0x61   :  { %6772 = vst [vmem:[#allocation74_spill] sm:$0xff] %v3813_v55  ;;  %v3850_v55 = vld [vmem:[#allocation2 + $0x2b0] sm:$0xff]  ;;  %599 = vmatpush.msrb.mxu3 %v3838_v51  ;;  %540 = vmatpush.msrb.mxu0 %v3848_v58 }
  0x62   :  { %6773 = vst [vmem:[#allocation75_spill] sm:$0xff] %v3817_v63  ;;  %v3854_v63 = vld [vmem:[#allocation2 + $0xb8] sm:$0xff]  ;;  %560 = vmatpush.msrb.mxu1 %v3850_v55 }
  0x63   :  { %6774 = vst [vmem:[#allocation76_spill] sm:$0xff] %v3819_v53  ;;  %v3842_v61 = vld.sshfl [vmem:[#allocation1] sm:$0xff pattern:$0x73625140]  ;;  %580 = vmatpush.msrb.mxu2 %v3854_v63 }
  0x64   :  { %6775 = vst [vmem:[#allocation77_spill] sm:$0xff] %v3821_v54  ;;  %v3844_v60 = vld.sshfl [vmem:[#allocation1 + $0x8] sm:$0xff pattern:$0x73625140]  ;;  %v3856_v53 = vld [vmem:[#allocation2 + $0x2b8] sm:$0xff]  ;;  %v3860_v54 = vld [vmem:[#allocation2 + $0x90] sm:$0xff]  ;;  %466 = vmatmul.f32.vlgmr.msra.gmra.mxu0 %v3842_v61  ;;  %506 = vmatmul.f32.vlgmr.msra.gmra.mxu2 %v3842_v61 }
  0x65   :  { %6776 = vst [vmem:[#allocation78_spill] sm:$0xff] %v3825_v57  ;;  %v3862_v57 = vld [vmem:[#allocation2 + $0x290] sm:$0xff]  ;;  %600 = vmatpush.msrb.mxu3 %v3856_v53  ;;  %541 = vmatpush.msrb.mxu0 %v3860_v54 }
  0x66   :  { %6777 = vst [vmem:[#allocation79_spill] sm:$0xff] %v3827_v56  ;;  %v3868_v56 = vld [vmem:[#allocation2 + $0x298] sm:$0xff]  ;;  %561 = vmatpush.msrb.mxu1 %v3862_v57  ;;  %526 = vmatmul.f32.vlgmr.msra.gmra.mxu3 %v3844_v60 }
  0x67   :  { %6778 = vst [vmem:[#allocation80_spill] sm:$0xff] %v3834_v59  ;;  %v3872_v59 = vld [vmem:[#allocation2 + $0x70] sm:$0xff]  ;;  %601 = vmatpush.msrb.mxu3 %v3868_v56  ;;  %486 = vmatmul.f32.vlgmr.msra.gmra.mxu1 %v3844_v60 }
  0x68   :  { %6779 = vst [vmem:[#allocation81_spill] sm:$0xff] %v3836_v62  ;;  %v3874_v62 = vld [vmem:[#allocation2 + $0x270] sm:$0xff]  ;;  %542 = vmatpush.msrb.mxu0 %v3872_v59 }
  0x69   :  { %6780 = vst [vmem:[#allocation82_spill] sm:$0xff] %v3838_v51  ;;  %v3878_v51 = vld [vmem:[#allocation2 + $0x78] sm:$0xff]  ;;  %562 = vmatpush.msrb.mxu1 %v3874_v62 }
  0x6a   :  { %6781 = vst [vmem:[#allocation83_spill] sm:$0xff] %v3848_v58  ;;  %v3880_v58 = vld [vmem:[#allocation2 + $0x278] sm:$0xff] }
  0x6b   :  { %6782 = vst [vmem:[#allocation84_spill] sm:$0xff] %v3850_v55  ;;  %v3884_v55 = vld [vmem:[#allocation2 + $0x50] sm:$0xff]  ;;  %602 = vmatpush.msrb.mxu3 %v3880_v58 }
  0x6c   :  { %613 = vst [vmem:[#allocation1] ss:$4 sm:$0xff] %v2822_v52  ;;  %v3866_v52 = vld [vmem:[#allocation2 + $0x98] sm:$0xff]  ;;  %543 = vmatpush.msrb.mxu0 %v3884_v55 }
  0x6d   :  { %6783 = vst [vmem:[#allocation85_spill] sm:$0xff] %v3854_v63  ;;  %581 = vmatpush.msrb.mxu2 %v3866_v52  ;;  %v3886_v63 = vld [vmem:[#allocation2 + $0x250] sm:$0xff] }
  0x6e   :  { %6784 = vst [vmem:[#allocation86_spill] sm:$0xff] %v3856_v53  ;;  %v3890_v53 = vld [vmem:[#allocation2 + $0x58] sm:$0xff]  ;;  %563 = vmatpush.msrb.mxu1 %v3886_v63 }
  0x6f   :  { %6785 = vst [vmem:[#allocation87_spill] sm:$0xff] %v3860_v54  ;;  %v3892_v54 = vld [vmem:[#allocation2 + $0x258] sm:$0xff]  ;;  %582 = vmatpush.msrb.mxu2 %v3878_v51 }
  0x70   :  { %6786 = vst [vmem:[#allocation88_spill] sm:$0xff] %v3862_v57  ;;  %v3896_v57 = vld [vmem:[#allocation2 + $0x30] sm:$0xff]  ;;  %603 = vmatpush.msrb.mxu3 %v3892_v54 }
  0x71   :  { %6787 = vst [vmem:[#allocation89_spill] sm:$0xff] %v3866_v52  ;;  %v3898_v52 = vld [vmem:[#allocation2 + $0x230] sm:$0xff]  ;;  %583 = vmatpush.msrb.mxu2 %v3890_v53  ;;  %544 = vmatpush.msrb.mxu0 %v3896_v57 }
  0x72   :  { %6788 = vst [vmem:[#allocation90_spill] sm:$0xff] %v3868_v56  ;;  %v3902_v56 = vld [vmem:[#allocation2 + $0x38] sm:$0xff]  ;;  %564 = vmatpush.msrb.mxu1 %v3898_v52 }
  0x73   :  { %6789 = vst [vmem:[#allocation91_spill] sm:$0xff] %v3872_v59  ;;  %v3904_v59 = vld [vmem:[#allocation2 + $0x238] sm:$0xff]  ;;  %584 = vmatpush.msrb.mxu2 %v3902_v56 }
  0x74   :  { %6790 = vst [vmem:[#allocation92_spill] sm:$0xff] %v3874_v62  ;;  %v3908_v62 = vld [vmem:[#allocation2 + $0x210] sm:$0xff]  ;;  %604 = vmatpush.msrb.mxu3 %v3904_v59 }
  0x75   :  { %6791 = vst [vmem:[#allocation93_spill] sm:$0xff] %v3878_v51  ;;  %v3914_v51 = vld [vmem:[#allocation2 + $0x18] sm:$0xff]  ;;  %565 = vmatpush.msrb.mxu1 %v3908_v62 }
  0x76   :  { %6792 = vst [vmem:[#allocation94_spill] sm:$0xff] %v3880_v58  ;;  %v3912_v58 = vld [vmem:[#allocation2 + $0x10] sm:$0xff]  ;;  %585 = vmatpush.msrb.mxu2 %v3914_v51  ;;  %566 = vmatmul.f32.vlgmr.msrb.gmra.mxu1 %v3844_v60 }
  0x77   :  { %6793 = vst [vmem:[#allocation95_spill] sm:$0xff] %v3884_v55  ;;  %545 = vmatpush.msrb.mxu0 %v3912_v58  ;;  %638 = vmatpush.msra.mxu1 %v3532_v1 }
  0x78   :  { %6794 = vst [vmem:[#allocation96_spill] sm:$0xff] %v3886_v63  ;;  %v3918_v63 = vld [vmem:[#allocation2 + $0x218] sm:$0xff]  ;;  %658 = vmatpush.msra.mxu2 %v3534_v2  ;;  %546 = vmatmul.f32.vlgmr.msrb.gmra.mxu0 %v3842_v61 }
  0x79   :  { %6795 = vst [vmem:[#allocation97_spill] sm:$0xff] %v3890_v53  ;;  %605 = vmatpush.msrb.mxu3 %v3918_v63  ;;  %618 = vmatpush.msra.mxu0 %v3530_v0 }
  0x7a   :  { %6796 = vst [vmem:[#allocation98_spill] sm:$0xff] %v3892_v54  ;;  %639 = vmatpush.msra.mxu1 %v3542_v5  ;;  %659 = vmatpush.msra.mxu2 %v3546_v6 }
  0x7b   :  { %6797 = vst [vmem:[#allocation99_spill] sm:$0xff] %v3896_v57  ;;  %678 = vmatpush.msra.mxu3 %v3538_v3  ;;  %619 = vmatpush.msra.mxu0 %v3540_v4 }
  0x7c   :  { %6798 = vst [vmem:[#allocation100_spill] sm:$0xff] %v3898_v52  ;;  %640 = vmatpush.msra.mxu1 %v3554_v9  ;;  %660 = vmatpush.msra.mxu2 %v3556_v10 }
  0x7d   :  { %6799 = vst [vmem:[#allocation101_spill] sm:$0xff] %v3902_v56  ;;  %679 = vmatpush.msra.mxu3 %v3548_v7  ;;  %620 = vmatpush.msra.mxu0 %v3550_v8 }
  0x7e   :  { %6800 = vst [vmem:[#allocation102_spill] sm:$0xff] %v3904_v59  ;;  %641 = vmatpush.msra.mxu1 %v3564_v13  ;;  %661 = vmatpush.msra.mxu2 %v3568_v14 }
  0x7f   :  { %6801 = vst [vmem:[#allocation103_spill] sm:$0xff] %v3908_v62  ;;  %680 = vmatpush.msra.mxu3 %v3558_v11  ;;  %621 = vmatpush.msra.mxu0 %v3562_v12 }
  0x80   :  { %6802 = vst [vmem:[#allocation104_spill] sm:$0xff] %v3912_v58  ;;  %642 = vmatpush.msra.mxu1 %v3576_v17  ;;  %662 = vmatpush.msra.mxu2 %v3580_v18 }
  0x81   :  { %6803 = vst [vmem:[#allocation105_spill] sm:$0xff] %v3914_v51  ;;  %681 = vmatpush.msra.mxu3 %v3570_v15  ;;  %622 = vmatpush.msra.mxu0 %v3574_v16 }
  0x82   :  { %6804 = vst [vmem:[#allocation106_spill] sm:$0xff] %v3918_v63  ;;  %643 = vmatpush.msra.mxu1 %v3588_v21  ;;  %663 = vmatpush.msra.mxu2 %v3592_v22 }
  0x83   :  { %682 = vmatpush.msra.mxu3 %v3582_v19  ;;  %623 = vmatpush.msra.mxu0 %v3586_v20 }
  0x84   :  { %644 = vmatpush.msra.mxu1 %v3600_v25  ;;  %664 = vmatpush.msra.mxu2 %v3604_v26 }
  0x85   :  { %683 = vmatpush.msra.mxu3 %v3594_v23  ;;  %624 = vmatpush.msra.mxu0 %v3598_v24 }
  0x86   :  { %645 = vmatpush.msra.mxu1 %v3612_v29  ;;  %665 = vmatpush.msra.mxu2 %v3616_v30 }
  0x87   :  { %684 = vmatpush.msra.mxu3 %v3606_v27  ;;  %625 = vmatpush.msra.mxu0 %v3610_v28 }
  0x88   :  { %646 = vmatpush.msra.mxu1 %v3624_v33  ;;  %666 = vmatpush.msra.mxu2 %v3628_v34 }
  0x89   :  { %685 = vmatpush.msra.mxu3 %v3618_v31  ;;  %626 = vmatpush.msra.mxu0 %v3622_v32 }
  0x8a   :  { %647 = vmatpush.msra.mxu1 %v3636_v37  ;;  %667 = vmatpush.msra.mxu2 %v3640_v38 }
  0x8b   :  { %686 = vmatpush.msra.mxu3 %v3630_v35  ;;  %627 = vmatpush.msra.mxu0 %v3634_v36 }
  0x8c   :  { %648 = vmatpush.msra.mxu1 %v3648_v41  ;;  %668 = vmatpush.msra.mxu2 %v3652_v42  ;;  %v6806_v41 = vld [vmem:[#allocation31_spill] sm:$0xff]  ;;  %v6807_v42 = vld [vmem:[#allocation32_spill] sm:$0xff] }
  0x8d   :  { %687 = vmatpush.msra.mxu3 %v3642_v39  ;;  %628 = vmatpush.msra.mxu0 %v3646_v40  ;;  %v6805_v40 = vld [vmem:[#allocation30_spill] sm:$0xff] }
  0x8e   :  { %649 = vmatpush.msra.mxu1 %v3660_v45  ;;  %669 = vmatpush.msra.mxu2 %v3664_v46  ;;  %v6810_v45 = vld [vmem:[#allocation35_spill] sm:$0xff]  ;;  %v6811_v46 = vld [vmem:[#allocation36_spill] sm:$0xff] }
  0x8f   :  { %688 = vmatpush.msra.mxu3 %v3654_v43  ;;  %629 = vmatpush.msra.mxu0 %v3658_v44  ;;  %v6808_v43 = vld [vmem:[#allocation33_spill] sm:$0xff]  ;;  %v6809_v44 = vld [vmem:[#allocation34_spill] sm:$0xff] }
  0x90   :  { %650 = vmatpush.msra.mxu1 %v3672_v49  ;;  %670 = vmatpush.msra.mxu2 %v3676_v50  ;;  %v6814_v50 = vld [vmem:[#allocation40_spill] sm:$0xff]  ;;  %v6829_v49 = vld [vmem:[#allocation54_spill] sm:$0xff] }
  0x91   :  { %689 = vmatpush.msra.mxu3 %v3666_v47  ;;  %630 = vmatpush.msra.mxu0 %v3670_v48  ;;  %v6812_v47 = vld [vmem:[#allocation37_spill] sm:$0xff]  ;;  %v6813_v48 = vld [vmem:[#allocation38_spill] sm:$0xff] }
  0x92   :  { %651 = vmatpush.msra.mxu1 %v6807_v42  ;;  %671 = vmatpush.msra.mxu2 %v6808_v43  ;;  %v6817_v42 = vld [vmem:[#allocation42_spill] sm:$0xff]  ;;  %v6828_v43 = vld [vmem:[#allocation53_spill] sm:$0xff] }
  0x93   :  { %690 = vmatpush.msra.mxu3 %v6805_v40  ;;  %631 = vmatpush.msra.mxu0 %v6806_v41  ;;  %v6815_v40 = vld [vmem:[#allocation39_spill] sm:$0xff]  ;;  %v6816_v41 = vld [vmem:[#allocation41_spill] sm:$0xff] }
  0x94   :  { %652 = vmatpush.msra.mxu1 %v6811_v46  ;;  %672 = vmatpush.msra.mxu2 %v6812_v47  ;;  %v3996_v46 = vld.sshfl [vmem:[#allocation1] sm:$0xff pattern:$0x73625140]  ;;  %v6818_v47 = vld [vmem:[#allocation43_spill] sm:$0xff] }
  0x95   :  { %691 = vmatpush.msra.mxu3 %v6809_v44  ;;  %632 = vmatpush.msra.mxu0 %v6810_v45  ;;  %v4000_v45 = vld.sshfl [vmem:[#allocation1 + $0x8] sm:$0xff pattern:$0x73625140]  ;;  %v6827_v44 = vld [vmem:[#allocation52_spill] sm:$0xff] }
  0x96   :  { %653 = vmatpush.msra.mxu1 %v6814_v50  ;;  %673 = vmatpush.msra.mxu2 %v6816_v41  ;;  %v2823_v41 = vld [vmem:[%s6235_s0 + $0x8] sm:$0xf] }
  0x97   :  { %692 = vmatpush.msra.mxu3 %v6813_v48  ;;  %633 = vmatpush.msra.mxu0 %v6815_v40  ;;  %v6819_v48 = vld [vmem:[#allocation44_spill] sm:$0xff]  ;;  %v6820_v40 = vld [vmem:[#allocation45_spill] sm:$0xff]  ;;  %781 = vst [vmem:[#allocation1] ss:$4 sm:$0xff] %v2823_v41 }
  0x98   :  { %586 = vmatmul.f32.vlgmr.msrb.gmra.mxu2 %v3842_v61  ;;  %606 = vmatmul.f32.vlgmr.msrb.gmra.mxu3 %v3844_v60  ;;  %v6822_v61 = vld [vmem:[#allocation47_spill] sm:$0xff]  ;;  %v6823_v60 = vld [vmem:[#allocation48_spill] sm:$0xff]  ;;  %v6824_v50 = vld [vmem:[#allocation49_spill] sm:$0xff] }
  0x99   :  { %693 = vmatpush.msra.mxu3 %v6817_v42  ;;  %698 = vmatpush.msrb.mxu0 %v6818_v47  ;;  %v6821_v42 = vld [vmem:[#allocation46_spill] sm:$0xff]  ;;  %v6832_v41 = vld [vmem:[#allocation57_spill] sm:$0xff] }
  0x9a   :  { %718 = vmatpush.msrb.mxu1 %v6819_v48  ;;  %738 = vmatpush.msrb.mxu2 %v6820_v40  ;;  %v6825_v47 = vld [vmem:[#allocation50_spill] sm:$0xff]  ;;  %v6826_v48 = vld [vmem:[#allocation51_spill] sm:$0xff] }
  0x9b   :  { %758 = vmatpush.msrb.mxu3 %v6821_v42  ;;  %699 = vmatpush.msrb.mxu0 %v6822_v61  ;;  %v6830_v40 = vld [vmem:[#allocation55_spill] sm:$0xff]  ;;  %v6831_v42 = vld [vmem:[#allocation56_spill] sm:$0xff]  ;;  %v6833_v61 = vld [vmem:[#allocation58_spill] sm:$0xff] }
  0x9c   :  { %719 = vmatpush.msrb.mxu1 %v6823_v60  ;;  %739 = vmatpush.msrb.mxu2 %v6824_v50  ;;  %v6834_v60 = vld [vmem:[#allocation59_spill] sm:$0xff]  ;;  %v6835_v50 = vld [vmem:[#allocation60_spill] sm:$0xff] }
  0x9d   :  { %759 = vmatpush.msrb.mxu3 %v6825_v47  ;;  %700 = vmatpush.msrb.mxu0 %v6826_v48  ;;  %v6836_v47 = vld [vmem:[#allocation61_spill] sm:$0xff]  ;;  %v6837_v48 = vld [vmem:[#allocation62_spill] sm:$0xff] }
  0x9e   :  { %720 = vmatpush.msrb.mxu1 %v6827_v44  ;;  %740 = vmatpush.msrb.mxu2 %v6828_v43  ;;  %v6838_v44 = vld [vmem:[#allocation63_spill] sm:$0xff]  ;;  %v6839_v43 = vld [vmem:[#allocation64_spill] sm:$0xff] }
  0x9f   :  { %760 = vmatpush.msrb.mxu3 %v6829_v49  ;;  %701 = vmatpush.msrb.mxu0 %v6830_v40  ;;  %v6840_v49 = vld [vmem:[#allocation65_spill] sm:$0xff]  ;;  %v6841_v40 = vld [vmem:[#allocation66_spill] sm:$0xff] }
  0xa0   :  { %721 = vmatpush.msrb.mxu1 %v6831_v42  ;;  %741 = vmatpush.msrb.mxu2 %v6832_v41  ;;  %v6842_v42 = vld [vmem:[#allocation67_spill] sm:$0xff]  ;;  %v6843_v41 = vld [vmem:[#allocation68_spill] sm:$0xff] }
  0xa1   :  { %761 = vmatpush.msrb.mxu3 %v6833_v61  ;;  %702 = vmatpush.msrb.mxu0 %v6834_v60  ;;  %v6844_v61 = vld [vmem:[#allocation69_spill] sm:$0xff]  ;;  %v6845_v60 = vld [vmem:[#allocation70_spill] sm:$0xff] }
  0xa2   :  { %722 = vmatpush.msrb.mxu1 %v6835_v50  ;;  %742 = vmatpush.msrb.mxu2 %v6836_v47  ;;  %v6846_v50 = vld [vmem:[#allocation71_spill] sm:$0xff]  ;;  %v6847_v47 = vld [vmem:[#allocation72_spill] sm:$0xff] }
  0xa3   :  { %762 = vmatpush.msrb.mxu3 %v6837_v48  ;;  %703 = vmatpush.msrb.mxu0 %v6838_v44  ;;  %v6848_v48 = vld [vmem:[#allocation73_spill] sm:$0xff]  ;;  %v6849_v44 = vld [vmem:[#allocation74_spill] sm:$0xff] }
  0xa4   :  { %723 = vmatpush.msrb.mxu1 %v6839_v43  ;;  %743 = vmatpush.msrb.mxu2 %v6840_v49  ;;  %v6850_v43 = vld [vmem:[#allocation75_spill] sm:$0xff]  ;;  %v6851_v49 = vld [vmem:[#allocation76_spill] sm:$0xff] }
  0xa5   :  { %763 = vmatpush.msrb.mxu3 %v6841_v40  ;;  %704 = vmatpush.msrb.mxu0 %v6842_v42  ;;  %v6852_v40 = vld [vmem:[#allocation77_spill] sm:$0xff]  ;;  %v6853_v42 = vld [vmem:[#allocation78_spill] sm:$0xff] }
  0xa6   :  { %724 = vmatpush.msrb.mxu1 %v6843_v41  ;;  %744 = vmatpush.msrb.mxu2 %v6844_v61  ;;  %v6854_v41 = vld [vmem:[#allocation79_spill] sm:$0xff]  ;;  %v6855_v61 = vld [vmem:[#allocation80_spill] sm:$0xff] }
  0xa7   :  { %764 = vmatpush.msrb.mxu3 %v6845_v60  ;;  %705 = vmatpush.msrb.mxu0 %v6846_v50  ;;  %v6856_v60 = vld [vmem:[#allocation81_spill] sm:$0xff]  ;;  %v6857_v50 = vld [vmem:[#allocation82_spill] sm:$0xff] }
  0xa8   :  { %725 = vmatpush.msrb.mxu1 %v6847_v47  ;;  %745 = vmatpush.msrb.mxu2 %v6848_v48  ;;  %v6858_v47 = vld [vmem:[#allocation83_spill] sm:$0xff]  ;;  %v6859_v48 = vld [vmem:[#allocation84_spill] sm:$0xff] }
  0xa9   :  { %765 = vmatpush.msrb.mxu3 %v6849_v44  ;;  %706 = vmatpush.msrb.mxu0 %v6850_v43  ;;  %v6860_v44 = vld [vmem:[#allocation85_spill] sm:$0xff]  ;;  %v6861_v43 = vld [vmem:[#allocation86_spill] sm:$0xff] }
  0xaa   :  { %726 = vmatpush.msrb.mxu1 %v6851_v49  ;;  %746 = vmatpush.msrb.mxu2 %v6852_v40  ;;  %v6862_v49 = vld [vmem:[#allocation87_spill] sm:$0xff]  ;;  %v6863_v40 = vld [vmem:[#allocation88_spill] sm:$0xff] }
  0xab   :  { %766 = vmatpush.msrb.mxu3 %v6853_v42  ;;  %707 = vmatpush.msrb.mxu0 %v6854_v41  ;;  %v6864_v42 = vld [vmem:[#allocation89_spill] sm:$0xff]  ;;  %v6865_v41 = vld [vmem:[#allocation90_spill] sm:$0xff] }
  0xac   :  { %727 = vmatpush.msrb.mxu1 %v6855_v61  ;;  %747 = vmatpush.msrb.mxu2 %v6856_v60  ;;  %v6866_v61 = vld [vmem:[#allocation91_spill] sm:$0xff]  ;;  %v6867_v60 = vld [vmem:[#allocation92_spill] sm:$0xff] }
  0xad   :  { %767 = vmatpush.msrb.mxu3 %v6857_v50  ;;  %708 = vmatpush.msrb.mxu0 %v6858_v47  ;;  %v6868_v50 = vld [vmem:[#allocation93_spill] sm:$0xff]  ;;  %v6869_v47 = vld [vmem:[#allocation94_spill] sm:$0xff] }
  0xae   :  { %728 = vmatpush.msrb.mxu1 %v6859_v48  ;;  %748 = vmatpush.msrb.mxu2 %v6860_v44  ;;  %v6870_v44 = vld [vmem:[#allocation96_spill] sm:$0xff] }
  0xaf   :  { %768 = vmatpush.msrb.mxu3 %v6861_v43  ;;  %709 = vmatpush.msrb.mxu0 %v6862_v49 }
  0xb0   :  { %729 = vmatpush.msrb.mxu1 %v6863_v40  ;;  %749 = vmatpush.msrb.mxu2 %v6864_v42 }
  0xb1   :  { %769 = vmatpush.msrb.mxu3 %v6865_v41  ;;  %710 = vmatpush.msrb.mxu0 %v6866_v61 }
  0xb2   :  { %730 = vmatpush.msrb.mxu1 %v6867_v60  ;;  %750 = vmatpush.msrb.mxu2 %v6868_v50 }
  0xb3   :  { %770 = vmatpush.msrb.mxu3 %v6869_v47  ;;  %711 = vmatpush.msrb.mxu0 %v3884_v55 }
  0xb4   :  { %731 = vmatpush.msrb.mxu1 %v6870_v44  ;;  %751 = vmatpush.msrb.mxu2 %v3890_v53 }
  0xb5   :  { %771 = vmatpush.msrb.mxu3 %v3892_v54  ;;  %712 = vmatpush.msrb.mxu0 %v3896_v57 }
  0xb6   :  { %732 = vmatpush.msrb.mxu1 %v3898_v52  ;;  %752 = vmatpush.msrb.mxu2 %v3902_v56 }
  0xb7   :  { %772 = vmatpush.msrb.mxu3 %v3904_v59  ;;  %634 = vmatmul.f32.vlgmr.msra.gmra.mxu0 %v3996_v46 }
  0xb8   :  { %733 = vmatpush.msrb.mxu1 %v3908_v62  ;;  %713 = vmatpush.msrb.mxu0 %v3912_v58 }
  0xb9   :  { %753 = vmatpush.msrb.mxu2 %v3914_v51  ;;  %773 = vmatpush.msrb.mxu3 %v3918_v63 }
  0xba   :  { %654 = vmatmul.f32.vlgmr.msra.gmra.mxu1 %v4000_v45  ;;  %674 = vmatmul.f32.vlgmr.msra.gmra.mxu2 %v3996_v46 }
  0xbb   :  { %694 = vmatmul.f32.vlgmr.msra.gmra.mxu3 %v4000_v45  ;;  %786 = vmatpush.msra.mxu0 %v3530_v0  ;;  %v6871_v0 = vld [vmem:[#allocation19_spill] sm:$0xff] }
  0xbc   :  { %806 = vmatpush.msra.mxu1 %v3532_v1  ;;  %826 = vmatpush.msra.mxu2 %v3534_v2  ;;  %v6872_v1 = vld [vmem:[#allocation20_spill] sm:$0xff]  ;;  %v6873_v2 = vld [vmem:[#allocation21_spill] sm:$0xff] }
  0xbd   :  { %846 = vmatpush.msra.mxu3 %v3538_v3  ;;  %787 = vmatpush.msra.mxu0 %v3540_v4  ;;  %v6874_v3 = vld [vmem:[#allocation22_spill] sm:$0xff]  ;;  %v6875_v4 = vld [vmem:[#allocation23_spill] sm:$0xff] }
  0xbe   :  { %807 = vmatpush.msra.mxu1 %v3542_v5  ;;  %827 = vmatpush.msra.mxu2 %v3546_v6  ;;  %v6876_v5 = vld [vmem:[#allocation24_spill] sm:$0xff]  ;;  %v6877_v6 = vld [vmem:[#allocation25_spill] sm:$0xff] }
  0xbf   :  { %847 = vmatpush.msra.mxu3 %v3548_v7  ;;  %788 = vmatpush.msra.mxu0 %v3550_v8  ;;  %v6878_v7 = vld [vmem:[#allocation26_spill] sm:$0xff]  ;;  %v6879_v8 = vld [vmem:[#allocation27_spill] sm:$0xff] }
  0xc0   :  { %808 = vmatpush.msra.mxu1 %v3554_v9  ;;  %828 = vmatpush.msra.mxu2 %v3556_v10  ;;  %v6880_v9 = vld [vmem:[#allocation28_spill] sm:$0xff]  ;;  %v6881_v10 = vld [vmem:[#allocation29_spill] sm:$0xff] }
  0xc1   :  { %848 = vmatpush.msra.mxu3 %v3558_v11  ;;  %789 = vmatpush.msra.mxu0 %v3562_v12  ;;  %v6882_v11 = vld [vmem:[#allocation30_spill] sm:$0xff]  ;;  %v6883_v12 = vld [vmem:[#allocation31_spill] sm:$0xff] }
  0xc2   :  { %809 = vmatpush.msra.mxu1 %v3564_v13  ;;  %829 = vmatpush.msra.mxu2 %v3568_v14  ;;  %v6884_v13 = vld [vmem:[#allocation32_spill] sm:$0xff]  ;;  %v6885_v14 = vld [vmem:[#allocation33_spill] sm:$0xff] }
  0xc3   :  { %849 = vmatpush.msra.mxu3 %v3570_v15  ;;  %790 = vmatpush.msra.mxu0 %v3574_v16  ;;  %v6886_v15 = vld [vmem:[#allocation34_spill] sm:$0xff]  ;;  %v6887_v16 = vld [vmem:[#allocation35_spill] sm:$0xff] }
  0xc4   :  { %810 = vmatpush.msra.mxu1 %v3576_v17  ;;  %830 = vmatpush.msra.mxu2 %v3580_v18  ;;  %v6888_v17 = vld [vmem:[#allocation36_spill] sm:$0xff]  ;;  %v6889_v18 = vld [vmem:[#allocation37_spill] sm:$0xff] }
  0xc5   :  { %850 = vmatpush.msra.mxu3 %v3582_v19  ;;  %791 = vmatpush.msra.mxu0 %v3586_v20  ;;  %v6890_v19 = vld [vmem:[#allocation38_spill] sm:$0xff]  ;;  %v6891_v20 = vld [vmem:[#allocation40_spill] sm:$0xff] }
  0xc6   :  { %811 = vmatpush.msra.mxu1 %v3588_v21  ;;  %831 = vmatpush.msra.mxu2 %v3592_v22  ;;  %v6892_v21 = vld [vmem:[#allocation39_spill] sm:$0xff]  ;;  %v6893_v22 = vld [vmem:[#allocation41_spill] sm:$0xff] }
  0xc7   :  { %851 = vmatpush.msra.mxu3 %v3594_v23  ;;  %792 = vmatpush.msra.mxu0 %v3598_v24  ;;  %v6894_v23 = vld [vmem:[#allocation42_spill] sm:$0xff]  ;;  %v4139_v24 = vld.sshfl [vmem:[#allocation1] sm:$0xff pattern:$0x73625140] }
  0xc8   :  { %812 = vmatpush.msra.mxu1 %v3600_v25  ;;  %832 = vmatpush.msra.mxu2 %v3604_v26  ;;  %v6895_v25 = vld [vmem:[#allocation43_spill] sm:$0xff]  ;;  %v6896_v26 = vld [vmem:[#allocation44_spill] sm:$0xff] }
  0xc9   :  { %852 = vmatpush.msra.mxu3 %v3606_v27  ;;  %793 = vmatpush.msra.mxu0 %v3610_v28  ;;  %v4143_v27 = vld.sshfl [vmem:[#allocation1 + $0x8] sm:$0xff pattern:$0x73625140] }
  0xca   :  { %813 = vmatpush.msra.mxu1 %v3612_v29  ;;  %833 = vmatpush.msra.mxu2 %v3616_v30  ;;  %v2824_v28 = vld [vmem:[%s6235_s0 + $0xc] sm:$0xf]  ;;  %v6897_v29 = vld [vmem:[#allocation45_spill] sm:$0xff]  ;;  %s2773_s0 = sshll.u32 %s3433_s29, 4  ;;  %s2774_s0 = int_to_ptr.vmem [resolvable:$true] %s2773_s0 }
  0xcb   :  { %853 = vmatpush.msra.mxu3 %v3618_v31  ;;  %794 = vmatpush.msra.mxu0 %v3622_v32  ;;  %v6898_v30 = vld [vmem:[#allocation46_spill] sm:$0xff]  ;;  %949 = vst [vmem:[#allocation1] ss:$4 sm:$0xff] %v2824_v28  ;;  %v6899_v31 = vld [vmem:[#allocation47_spill] sm:$0xff]  ;;  %v6900_v32 = vld [vmem:[#allocation48_spill] sm:$0xff] }
  0xcc   :  { %814 = vmatpush.msra.mxu1 %v3624_v33  ;;  %834 = vmatpush.msra.mxu2 %v3628_v34  ;;  %v6901_v33 = vld [vmem:[#allocation49_spill] sm:$0xff]  ;;  %v6902_v34 = vld [vmem:[#allocation50_spill] sm:$0xff]  ;;  %v6920_v28 = vld [vmem:[#allocation68_spill] sm:$0xff] }
  0xcd   :  { %854 = vmatpush.msra.mxu3 %v3630_v35  ;;  %795 = vmatpush.msra.mxu0 %v3634_v36  ;;  %v6903_v35 = vld [vmem:[#allocation51_spill] sm:$0xff]  ;;  %v6904_v36 = vld [vmem:[#allocation52_spill] sm:$0xff] }
  0xce   :  { %815 = vmatpush.msra.mxu1 %v3636_v37  ;;  %835 = vmatpush.msra.mxu2 %v3640_v38  ;;  %v6905_v37 = vld [vmem:[#allocation53_spill] sm:$0xff]  ;;  %v6906_v38 = vld [vmem:[#allocation54_spill] sm:$0xff] }
  0xcf   :  { %855 = vmatpush.msra.mxu3 %v3642_v39  ;;  %796 = vmatpush.msra.mxu0 %v6871_v0  ;;  %v6907_v39 = vld [vmem:[#allocation55_spill] sm:$0xff]  ;;  %v6910_v0 = vld [vmem:[#allocation58_spill] sm:$0xff] }
  0xd0   :  { %816 = vmatpush.msra.mxu1 %v6872_v1  ;;  %836 = vmatpush.msra.mxu2 %v6873_v2  ;;  %v6911_v1 = vld [vmem:[#allocation59_spill] sm:$0xff]  ;;  %v6912_v2 = vld [vmem:[#allocation60_spill] sm:$0xff] }
  0xd1   :  { %856 = vmatpush.msra.mxu3 %v6874_v3  ;;  %797 = vmatpush.msra.mxu0 %v6875_v4  ;;  %v6913_v3 = vld [vmem:[#allocation61_spill] sm:$0xff]  ;;  %v6914_v4 = vld [vmem:[#allocation62_spill] sm:$0xff] }
  0xd2   :  { %817 = vmatpush.msra.mxu1 %v6876_v5  ;;  %837 = vmatpush.msra.mxu2 %v6877_v6  ;;  %v6915_v5 = vld [vmem:[#allocation63_spill] sm:$0xff]  ;;  %v6916_v6 = vld [vmem:[#allocation64_spill] sm:$0xff] }
  0xd3   :  { %857 = vmatpush.msra.mxu3 %v6878_v7  ;;  %798 = vmatpush.msra.mxu0 %v6879_v8  ;;  %v6917_v7 = vld [vmem:[#allocation65_spill] sm:$0xff]  ;;  %v6918_v8 = vld [vmem:[#allocation66_spill] sm:$0xff] }
  0xd4   :  { %818 = vmatpush.msra.mxu1 %v6880_v9  ;;  %838 = vmatpush.msra.mxu2 %v6881_v10  ;;  %v6919_v9 = vld [vmem:[#allocation67_spill] sm:$0xff] }
  0xd5   :  { %858 = vmatpush.msra.mxu3 %v6882_v11  ;;  %799 = vmatpush.msra.mxu0 %v6883_v12 }
  0xd6   :  { %819 = vmatpush.msra.mxu1 %v6884_v13  ;;  %839 = vmatpush.msra.mxu2 %v6885_v14 }
  0xd7   :  { %859 = vmatpush.msra.mxu3 %v6886_v15  ;;  %800 = vmatpush.msra.mxu0 %v6887_v16 }
  0xd8   :  { %820 = vmatpush.msra.mxu1 %v6888_v17  ;;  %840 = vmatpush.msra.mxu2 %v6889_v18 }
  0xd9   :  { %860 = vmatpush.msra.mxu3 %v6890_v19  ;;  %714 = vmatmul.f32.vlgmr.msrb.gmra.mxu0 %v3996_v46 }
  0xda   :  { %821 = vmatpush.msra.mxu1 %v6891_v20  ;;  %801 = vmatpush.msra.mxu0 %v6892_v21 }
  0xdb   :  { %841 = vmatpush.msra.mxu2 %v6893_v22  ;;  %861 = vmatpush.msra.mxu3 %v6894_v23 }
  0xdc   :  { %734 = vmatmul.f32.vlgmr.msrb.gmra.mxu1 %v4000_v45  ;;  %754 = vmatmul.f32.vlgmr.msrb.gmra.mxu2 %v3996_v46  ;;  %v6909_v46 = vld [vmem:[#allocation57_spill] sm:$0xff] }
  0xdd   :  { %774 = vmatmul.f32.vlgmr.msrb.gmra.mxu3 %v4000_v45  ;;  %866 = vmatpush.msrb.mxu0 %v6895_v25  ;;  %v6908_v45 = vld [vmem:[#allocation56_spill] sm:$0xff] }
  0xde   :  { %886 = vmatpush.msrb.mxu1 %v6896_v26  ;;  %906 = vmatpush.msrb.mxu2 %v6897_v29 }
  0xdf   :  { %926 = vmatpush.msrb.mxu3 %v6898_v30  ;;  %867 = vmatpush.msrb.mxu0 %v6899_v31 }
  0xe0   :  { %887 = vmatpush.msrb.mxu1 %v6900_v32  ;;  %907 = vmatpush.msrb.mxu2 %v6901_v33 }
  0xe1   :  { %927 = vmatpush.msrb.mxu3 %v6902_v34  ;;  %868 = vmatpush.msrb.mxu0 %v6903_v35 }
  0xe2   :  { %888 = vmatpush.msrb.mxu1 %v6904_v36  ;;  %908 = vmatpush.msrb.mxu2 %v6905_v37 }
  0xe3   :  { %928 = vmatpush.msrb.mxu3 %v6906_v38  ;;  %869 = vmatpush.msrb.mxu0 %v6907_v39 }
  0xe4   :  { %889 = vmatpush.msrb.mxu1 %v6908_v45  ;;  %909 = vmatpush.msrb.mxu2 %v6909_v46 }
  0xe5   :  { %929 = vmatpush.msrb.mxu3 %v6910_v0  ;;  %870 = vmatpush.msrb.mxu0 %v6911_v1  ;;  %v6921_v0 = vld [vmem:[#allocation69_spill] sm:$0xff]  ;;  %v6922_v1 = vld [vmem:[#allocation70_spill] sm:$0xff] }
  0xe6   :  { %890 = vmatpush.msrb.mxu1 %v6912_v2  ;;  %910 = vmatpush.msrb.mxu2 %v6913_v3  ;;  %v6923_v2 = vld [vmem:[#allocation71_spill] sm:$0xff]  ;;  %v6924_v3 = vld [vmem:[#allocation72_spill] sm:$0xff] }
  0xe7   :  { %930 = vmatpush.msrb.mxu3 %v6914_v4  ;;  %871 = vmatpush.msrb.mxu0 %v6915_v5  ;;  %v6925_v4 = vld [vmem:[#allocation73_spill] sm:$0xff]  ;;  %v6926_v5 = vld [vmem:[#allocation74_spill] sm:$0xff] }
  0xe8   :  { %891 = vmatpush.msrb.mxu1 %v6916_v6  ;;  %911 = vmatpush.msrb.mxu2 %v6917_v7  ;;  %v6927_v6 = vld [vmem:[#allocation75_spill] sm:$0xff]  ;;  %v6928_v7 = vld [vmem:[#allocation76_spill] sm:$0xff] }
  0xe9   :  { %931 = vmatpush.msrb.mxu3 %v6918_v8  ;;  %872 = vmatpush.msrb.mxu0 %v6919_v9  ;;  %v6929_v8 = vld [vmem:[#allocation77_spill] sm:$0xff]  ;;  %v6930_v9 = vld [vmem:[#allocation78_spill] sm:$0xff] }
  0xea   :  { %892 = vmatpush.msrb.mxu1 %v6920_v28  ;;  %912 = vmatpush.msrb.mxu2 %v6921_v0  ;;  %v6931_v28 = vld [vmem:[#allocation79_spill] sm:$0xff]  ;;  %v6932_v0 = vld [vmem:[#allocation80_spill] sm:$0xff] }
  0xeb   :  { %932 = vmatpush.msrb.mxu3 %v6922_v1  ;;  %873 = vmatpush.msrb.mxu0 %v6923_v2  ;;  %v6933_v1 = vld [vmem:[#allocation81_spill] sm:$0xff]  ;;  %v6934_v2 = vld [vmem:[#allocation82_spill] sm:$0xff] }
  0xec   :  { %893 = vmatpush.msrb.mxu1 %v6924_v3  ;;  %913 = vmatpush.msrb.mxu2 %v6925_v4  ;;  %v6935_v3 = vld [vmem:[#allocation83_spill] sm:$0xff] }
  0xed   :  { %933 = vmatpush.msrb.mxu3 %v6926_v5  ;;  %874 = vmatpush.msrb.mxu0 %v6927_v6  ;;  %v6936_v5 = vld [vmem:[#allocation85_spill] sm:$0xff] }
  0xee   :  { %894 = vmatpush.msrb.mxu1 %v6928_v7  ;;  %914 = vmatpush.msrb.mxu2 %v6929_v8 }
  0xef   :  { %934 = vmatpush.msrb.mxu3 %v6930_v9  ;;  %875 = vmatpush.msrb.mxu0 %v6931_v28 }
  0xf0   :  { %895 = vmatpush.msrb.mxu1 %v6932_v0  ;;  %915 = vmatpush.msrb.mxu2 %v6933_v1 }
  0xf1   :  { %935 = vmatpush.msrb.mxu3 %v6934_v2  ;;  %876 = vmatpush.msrb.mxu0 %v6935_v3 }
  0xf2   :  { %896 = vmatpush.msrb.mxu1 %v6859_v48  ;;  %916 = vmatpush.msrb.mxu2 %v6936_v5 }
  0xf3   :  { %936 = vmatpush.msrb.mxu3 %v6861_v43  ;;  %877 = vmatpush.msrb.mxu0 %v6862_v49 }
  0xf4   :  { %897 = vmatpush.msrb.mxu1 %v6863_v40  ;;  %917 = vmatpush.msrb.mxu2 %v6864_v42 }
  0xf5   :  { %937 = vmatpush.msrb.mxu3 %v6865_v41  ;;  %878 = vmatpush.msrb.mxu0 %v6866_v61 }
  0xf6   :  { %898 = vmatpush.msrb.mxu1 %v6867_v60  ;;  %918 = vmatpush.msrb.mxu2 %v6868_v50  ;;  %v3047_v50 = vld [vmem:[#allocation2 + $0x80] sm:$0xff] }
  0xf7   :  { %938 = vmatpush.msrb.mxu3 %v6869_v47  ;;  %879 = vmatpush.msrb.mxu0 %v3884_v55  ;;  %v3043_v55 = vld [vmem:[#allocation2 + $0xa0] sm:$0xff]  ;;  %v3045_v47 = vld [vmem:[#allocation2 + $0xa8] sm:$0xff] }
  0xf8   :  { %899 = vmatpush.msrb.mxu1 %v6870_v44  ;;  %919 = vmatpush.msrb.mxu2 %v3890_v53  ;;  %v3012_v53 = vld [vmem:[#allocation2 + $0x3a0] sm:$0xff]  ;;  %v3013_v44 = vld [vmem:[#allocation2 + $0x1a8] sm:$0xff] }
  0xf9   :  { %939 = vmatpush.msrb.mxu3 %v3892_v54  ;;  %880 = vmatpush.msrb.mxu0 %v3896_v57  ;;  %v3006_v57 = vld [vmem:[#allocation2 + $0x3e8] sm:$0xff]  ;;  %v3011_v54 = vld [vmem:[#allocation2 + $0x1a0] sm:$0xff] }
  0xfa   :  { %900 = vmatpush.msrb.mxu1 %v3898_v52  ;;  %920 = vmatpush.msrb.mxu2 %v3902_v56  ;;  %v3003_v52 = vld [vmem:[#allocation2 + $0x1e0] sm:$0xff] }
  0xfb   :  { %940 = vmatpush.msrb.mxu3 %v3904_v59  ;;  %802 = vmatmul.f32.vlgmr.msra.gmra.mxu0 %v4139_v24  ;;  %v3004_v56 = vld [vmem:[#allocation2 + $0x3e0] sm:$0xff]  ;;  %v3005_v59 = vld [vmem:[#allocation2 + $0x1e8] sm:$0xff] }
  0xfc   :  { %901 = vmatpush.msrb.mxu1 %v3908_v62  ;;  %881 = vmatpush.msrb.mxu0 %v3912_v58  ;;  %v3007_v62 = vld [vmem:[#allocation2 + $0x1c0] sm:$0xff] }
  0xfd   :  { %921 = vmatpush.msrb.mxu2 %v3914_v51  ;;  %941 = vmatpush.msrb.mxu3 %v3918_v63  ;;  %v3008_v58 = vld [vmem:[#allocation2 + $0x3c0] sm:$0xff]  ;;  %v3009_v51 = vld [vmem:[#allocation2 + $0x1c8] sm:$0xff] }
  0xfe   :  { %822 = vmatmul.f32.vlgmr.msra.gmra.mxu1 %v4143_v27  ;;  %842 = vmatmul.f32.vlgmr.msra.gmra.mxu2 %v4139_v24  ;;  %v3010_v63 = vld [vmem:[#allocation2 + $0x3c8] sm:$0xff] }
  0xff   :  { %862 = vmatmul.f32.vlgmr.msra.gmra.mxu3 %v4143_v27  ;;  %954 = vmatpush.msra.mxu0 %v3003_v52  ;;  %v3014_v52 = vld [vmem:[#allocation2 + $0x3a8] sm:$0xff] }
 0x100   :  { %974 = vmatpush.msra.mxu1 %v3004_v56  ;;  %994 = vmatpush.msra.mxu2 %v3005_v59  ;;  %v3015_v56 = vld [vmem:[#allocation2 + $0x180] sm:$0xff] }
 0x101   :  { %1014 = vmatpush.msra.mxu3 %v3006_v57  ;;  %955 = vmatpush.msra.mxu0 %v3007_v62  ;;  %v3016_v59 = vld [vmem:[#allocation2 + $0x380] sm:$0xff]  ;;  %v3017_v57 = vld [vmem:[#allocation2 + $0x188] sm:$0xff] }
 0x102   :  { %975 = vmatpush.msra.mxu1 %v3008_v58  ;;  %995 = vmatpush.msra.mxu2 %v3009_v51  ;;  %v3018_v62 = vld [vmem:[#allocation2 + $0x388] sm:$0xff]  ;;  %v3019_v58 = vld [vmem:[#allocation2 + $0x160] sm:$0xff] }
 0x103   :  { %1015 = vmatpush.msra.mxu3 %v3010_v63  ;;  %956 = vmatpush.msra.mxu0 %v3011_v54  ;;  %v3020_v51 = vld [vmem:[#allocation2 + $0x360] sm:$0xff]  ;;  %v3021_v63 = vld [vmem:[#allocation2 + $0x168] sm:$0xff] }
 0x104   :  { %976 = vmatpush.msra.mxu1 %v3012_v53  ;;  %996 = vmatpush.msra.mxu2 %v3013_v44  ;;  %v3022_v54 = vld [vmem:[#allocation2 + $0x368] sm:$0xff]  ;;  %v3023_v53 = vld [vmem:[#allocation2 + $0x140] sm:$0xff] }
 0x105   :  { %1016 = vmatpush.msra.mxu3 %v3014_v52  ;;  %957 = vmatpush.msra.mxu0 %v3015_v56  ;;  %v3024_v44 = vld [vmem:[#allocation2 + $0x340] sm:$0xff]  ;;  %v4214_v52 = vpop.f32.mrf.mxu0  ;;  %v3025_v56 = vld [vmem:[#allocation2 + $0x148] sm:$0xff] }
 0x106   :  { %977 = vmatpush.msra.mxu1 %v3016_v59  ;;  %997 = vmatpush.msra.mxu2 %v3017_v57  ;;  %6937 = vst [vmem:[#allocation84_spill] sm:$0xff] %v4214_v52  ;;  %v3026_v59 = vld [vmem:[#allocation2 + $0x348] sm:$0xff]  ;;  %v3027_v57 = vld [vmem:[#allocation2 + $0x120] sm:$0xff] }
 0x107   :  { %1017 = vmatpush.msra.mxu3 %v3018_v62  ;;  %958 = vmatpush.msra.mxu0 %v3019_v58  ;;  %v3028_v62 = vld [vmem:[#allocation2 + $0x320] sm:$0xff]  ;;  %v4216_v58 = vpop.f32.mrf.mxu1  ;;  %v3041_v52 = vld [vmem:[#allocation2 + $0xc8] sm:$0xff] }
 0x108   :  { %978 = vmatpush.msra.mxu1 %v3020_v51  ;;  %998 = vmatpush.msra.mxu2 %v3021_v63  ;;  %6938 = vst [vmem:[#allocation86_spill] sm:$0xff] %v4216_v58  ;;  %v3029_v51 = vld [vmem:[#allocation2 + $0x128] sm:$0xff]  ;;  %v3040_v58 = vld [vmem:[#allocation2 + $0x2c0] sm:$0xff] }
 0x109   :  { %1018 = vmatpush.msra.mxu3 %v3022_v54  ;;  %959 = vmatpush.msra.mxu0 %v3023_v53  ;;  %v3030_v63 = vld [vmem:[#allocation2 + $0x328] sm:$0xff]  ;;  %v3031_v54 = vld [vmem:[#allocation2 + $0x100] sm:$0xff] }
 0x10a   :  { %979 = vmatpush.msra.mxu1 %v3024_v44  ;;  %999 = vmatpush.msra.mxu2 %v3025_v56  ;;  %v3032_v53 = vld [vmem:[#allocation2 + $0x300] sm:$0xff]  ;;  %v4221_v44 = vld [vmem:[%s6238_s3] sm:$0xf]  ;;  %v3033_v56 = vld [vmem:[#allocation2 + $0x108] sm:$0xff] }
 0x10b   :  { %1019 = vmatpush.msra.mxu3 %v3026_v59  ;;  %960 = vmatpush.msra.mxu0 %v3027_v57  ;;  %v3034_v59 = vld [vmem:[#allocation2 + $0x308] sm:$0xff]  ;;  %v3035_v57 = vld [vmem:[#allocation2 + $0xe0] sm:$0xff] }
 0x10c   :  { %980 = vmatpush.msra.mxu1 %v3028_v62  ;;  %1000 = vmatpush.msra.mxu2 %v3029_v51  ;;  %v3036_v62 = vld [vmem:[#allocation2 + $0x2e0] sm:$0xff]  ;;  %v4224_v51 = vperm.slane %v4221_v44, 2 }
 0x10d   :  { %1020 = vmatpush.msra.mxu3 %v3030_v63  ;;  %961 = vmatpush.msra.mxu0 %v3031_v54  ;;  %v3037_v63 = vld [vmem:[#allocation2 + $0xe8] sm:$0xff] }
 0x10e   :  { %981 = vmatpush.msra.mxu1 %v3032_v53  ;;  %1001 = vmatpush.msra.mxu2 %v3033_v56  ;;  %v3038_v54 = vld [vmem:[#allocation2 + $0x2e8] sm:$0xff]  ;;  %v3039_v53 = vld [vmem:[#allocation2 + $0xc0] sm:$0xff] }
 0x10f   :  { %1021 = vmatpush.msra.mxu3 %v3034_v59  ;;  %962 = vmatpush.msra.mxu0 %v3035_v57  ;;  %v3042_v56 = vld [vmem:[#allocation2 + $0x2c8] sm:$0xff]  ;;  %v547_v59 = vpop.f32.mrf.mxu0  ;;  %v3044_v57 = vld [vmem:[#allocation2 + $0x2a0] sm:$0xff] }
 0x110   :  { %982 = vmatpush.msra.mxu1 %v3036_v62  ;;  %1002 = vmatpush.msra.mxu2 %v3037_v63  ;;  %v548_v62 = vadd.f32 %v547_v59, %v4224_v51  ;;  %v3046_v63 = vld [vmem:[#allocation2 + $0x2a8] sm:$0xff]  ;;  %v4353_v59 = vld [vmem:[#allocation5 + $0x1d0] sm:$0xff] }
 0x111   :  { %1022 = vmatpush.msra.mxu3 %v3038_v54  ;;  %963 = vmatpush.msra.mxu0 %v3039_v53  ;;  %v567_v54 = vpop.f32.mrf.mxu1  ;;  %v3048_v53 = vld [vmem:[#allocation2 + $0x280] sm:$0xff] }
 0x112   :  { %983 = vmatpush.msra.mxu1 %v3040_v58  ;;  %1003 = vmatpush.msra.mxu2 %v3041_v52  ;;  %v4227_v58 = vadd.f32 %v567_v54, %v548_v62  ;;  %v3049_v52 = vld [vmem:[#allocation2 + $0x88] sm:$0xff]  ;;  %v4355_v62 = vld [vmem:[#allocation5 + $0x1d8] sm:$0xff] }
 0x113   :  { %1023 = vmatpush.msra.mxu3 %v3042_v56  ;;  %964 = vmatpush.msra.mxu0 %v3043_v55  ;;  %v3050_v56 = vld [vmem:[#allocation2 + $0x288] sm:$0xff]  ;;  %v3051_v55 = vld [vmem:[#allocation2 + $0x60] sm:$0xff] }
 0x114   :  { %984 = vmatpush.msra.mxu1 %v3044_v57  ;;  %1004 = vmatpush.msra.mxu2 %v3045_v47  ;;  %6939 = vst [vmem:[#allocation87_spill] sm:$0xff] %v4227_v58  ;;  %v3052_v57 = vld [vmem:[#allocation2 + $0x260] sm:$0xff]  ;;  %v4361_v54 = vld [vmem:[#allocation5 + $0x1a8] sm:$0xff]  ;;  %v4492_v58 = vld [vmem:[#allocation5 + $0x70] sm:$0xff] }
 0x115   :  { %1024 = vmatpush.msra.mxu3 %v3046_v63  ;;  %965 = vmatpush.msra.mxu0 %v3047_v50  ;;  %v6940_v47 = vld [vmem:[#allocation58_spill] sm:$0xff]  ;;  %v6941_v50 = vld [vmem:[#allocation59_spill] sm:$0xff]  ;;  %6981 = vst [vmem:[#allocation25_spill] sm:$0xff] %v4492_v58 }
 0x116   :  { %985 = vmatpush.msra.mxu1 %v3048_v53  ;;  %1005 = vmatpush.msra.mxu2 %v3049_v52  ;;  %v4359_v63 = vld [vmem:[#allocation5 + $0x1a0] sm:$0xff]  ;;  %v4365_v53 = vld [vmem:[#allocation5 + $0x1b0] sm:$0xff]  ;;  %v4367_v52 = vld [vmem:[#allocation5 + $0x1b8] sm:$0xff] }
 0x117   :  { %1025 = vmatpush.msra.mxu3 %v3050_v56  ;;  %966 = vmatpush.msra.mxu0 %v3051_v55  ;;  %v4371_v56 = vld [vmem:[#allocation5 + $0x180] sm:$0xff]  ;;  %v4373_v55 = vld [vmem:[#allocation5 + $0x188] sm:$0xff] }
 0x118   :  { %986 = vmatpush.msra.mxu1 %v3052_v57  ;;  %1006 = vmatpush.msra.mxu2 %v6881_v10  ;;  %v6942_v10 = vld [vmem:[#allocation60_spill] sm:$0xff] }
 0x119   :  { %1026 = vmatpush.msra.mxu3 %v6882_v11  ;;  %967 = vmatpush.msra.mxu0 %v6883_v12  ;;  %v6943_v11 = vld [vmem:[#allocation61_spill] sm:$0xff]  ;;  %v6944_v12 = vld [vmem:[#allocation62_spill] sm:$0xff]  ;;  %v4377_v57 = vld [vmem:[#allocation5 + $0x190] sm:$0xff] }
 0x11a   :  { %987 = vmatpush.msra.mxu1 %v6884_v13  ;;  %1007 = vmatpush.msra.mxu2 %v6885_v14  ;;  %v6945_v13 = vld [vmem:[#allocation63_spill] sm:$0xff]  ;;  %v6946_v14 = vld [vmem:[#allocation64_spill] sm:$0xff] }
 0x11b   :  { %1027 = vmatpush.msra.mxu3 %v6886_v15  ;;  %968 = vmatpush.msra.mxu0 %v6887_v16  ;;  %v6947_v15 = vld [vmem:[#allocation65_spill] sm:$0xff]  ;;  %v6948_v16 = vld [vmem:[#allocation66_spill] sm:$0xff] }
 0x11c   :  { %988 = vmatpush.msra.mxu1 %v6888_v17  ;;  %1008 = vmatpush.msra.mxu2 %v6889_v18  ;;  %v4271_v17 = vpop.f32.mrf.mxu2  ;;  %v4273_v18 = vpop.f32.mrf.mxu3 }
 0x11d   :  { %1028 = vmatpush.msra.mxu3 %v6890_v19  ;;  %882 = vmatmul.f32.vlgmr.msrb.gmra.mxu0 %v4139_v24  ;;  %v6949_v19 = vld [vmem:[#allocation67_spill] sm:$0xff] }
 0x11e   :  { %989 = vmatpush.msra.mxu1 %v6891_v20  ;;  %969 = vmatpush.msra.mxu0 %v6892_v21  ;;  %v6950_v20 = vld [vmem:[#allocation68_spill] sm:$0xff]  ;;  %v6951_v21 = vld [vmem:[#allocation69_spill] sm:$0xff] }
 0x11f   :  { %1009 = vmatpush.msra.mxu2 %v6893_v22  ;;  %1029 = vmatpush.msra.mxu3 %v6894_v23  ;;  %v6952_v22 = vld [vmem:[#allocation70_spill] sm:$0xff]  ;;  %v6953_v23 = vld [vmem:[#allocation71_spill] sm:$0xff] }
 0x120   :  { %902 = vmatmul.f32.vlgmr.msrb.gmra.mxu1 %v4143_v27  ;;  %922 = vmatmul.f32.vlgmr.msrb.gmra.mxu2 %v4139_v24  ;;  %v6954_v24 = vld [vmem:[#allocation72_spill] sm:$0xff] }
 0x121   :  { %942 = vmatmul.f32.vlgmr.msrb.gmra.mxu3 %v4143_v27  ;;  %1034 = vmatpush.msrb.mxu0 %v6895_v25  ;;  %v6955_v25 = vld [vmem:[#allocation74_spill] sm:$0xff] }
 0x122   :  { %1054 = vmatpush.msrb.mxu1 %v6896_v26  ;;  %1074 = vmatpush.msrb.mxu2 %v6897_v29  ;;  %v4288_v26 = vperm.slane %v4221_v44, 0 }
 0x123   :  { %1094 = vmatpush.msrb.mxu3 %v6898_v30  ;;  %1035 = vmatpush.msrb.mxu0 %v6899_v31 }
 0x124   :  { %1055 = vmatpush.msrb.mxu1 %v6900_v32  ;;  %1075 = vmatpush.msrb.mxu2 %v6901_v33  ;;  %v4294_v29 = vpop.f32.mrf.mxu2  ;;  %v4296_v30 = vpop.f32.mrf.mxu3 }
 0x125   :  { %1095 = vmatpush.msrb.mxu3 %v6902_v34  ;;  %1036 = vmatpush.msrb.mxu0 %v6903_v35  ;;  %v6958_v34 = vld [vmem:[#allocation94_spill] sm:$0xff]  ;;  %v6960_v35 = vld [vmem:[#allocation96_spill] sm:$0xff] }
 0x126   :  { %1056 = vmatpush.msrb.mxu1 %v6904_v36  ;;  %1076 = vmatpush.msrb.mxu2 %v6905_v37 }
 0x127   :  { %1096 = vmatpush.msrb.mxu3 %v6906_v38  ;;  %1037 = vmatpush.msrb.mxu0 %v6907_v39  ;;  %v6965_v38 = vld [vmem:[#allocation101_spill] sm:$0xff]  ;;  %v6966_v39 = vld [vmem:[#allocation102_spill] sm:$0xff] }
 0x128   :  { %1057 = vmatpush.msrb.mxu1 %v6908_v45  ;;  %1077 = vmatpush.msrb.mxu2 %v6909_v46  ;;  %v4326_v45 = vld.sshfl [vmem:[#allocation1 + $0x8] sm:$0xff pattern:$0x73625140] }
 0x129   :  { %1097 = vmatpush.msrb.mxu3 %v6940_v47  ;;  %1038 = vmatpush.msrb.mxu0 %v6941_v50  ;;  %v4379_v47 = vld [vmem:[#allocation5 + $0x198] sm:$0xff]  ;;  %v4383_v50 = vld [vmem:[#allocation5 + $0x160] sm:$0xff] }
 0x12a   :  { %1058 = vmatpush.msrb.mxu1 %v6942_v10  ;;  %1078 = vmatpush.msrb.mxu2 %v6943_v11  ;;  %v4385_v10 = vld [vmem:[#allocation5 + $0x168] sm:$0xff]  ;;  %v4389_v11 = vld [vmem:[#allocation5 + $0x170] sm:$0xff] }
 0x12b   :  { %1098 = vmatpush.msrb.mxu3 %v6944_v12  ;;  %1039 = vmatpush.msrb.mxu0 %v6945_v13  ;;  %v4391_v12 = vld [vmem:[#allocation5 + $0x178] sm:$0xff]  ;;  %v4395_v13 = vld [vmem:[#allocation5 + $0x140] sm:$0xff] }
 0x12c   :  { %1059 = vmatpush.msrb.mxu1 %v6946_v14  ;;  %1079 = vmatpush.msrb.mxu2 %v6947_v15  ;;  %v4397_v14 = vld [vmem:[#allocation5 + $0x148] sm:$0xff]  ;;  %v4401_v15 = vld [vmem:[#allocation5 + $0x150] sm:$0xff] }
 0x12d   :  { %1099 = vmatpush.msrb.mxu3 %v6948_v16  ;;  %1040 = vmatpush.msrb.mxu0 %v6949_v19  ;;  %v4403_v16 = vld [vmem:[#allocation5 + $0x158] sm:$0xff]  ;;  %v4407_v19 = vld [vmem:[#allocation5 + $0x120] sm:$0xff] }
 0x12e   :  { %1060 = vmatpush.msrb.mxu1 %v6950_v20  ;;  %1080 = vmatpush.msrb.mxu2 %v6951_v21  ;;  %v4409_v20 = vld [vmem:[#allocation5 + $0x128] sm:$0xff]  ;;  %v4413_v21 = vld [vmem:[#allocation5 + $0x130] sm:$0xff] }
 0x12f   :  { %1100 = vmatpush.msrb.mxu3 %v6952_v22  ;;  %1041 = vmatpush.msrb.mxu0 %v6953_v23  ;;  %v4415_v22 = vld [vmem:[#allocation5 + $0x138] sm:$0xff]  ;;  %v4419_v23 = vld [vmem:[#allocation5 + $0x100] sm:$0xff] }
 0x130   :  { %1061 = vmatpush.msrb.mxu1 %v6954_v24  ;;  %1081 = vmatpush.msrb.mxu2 %v6925_v4  ;;  %v4335_v4 = vld [vmem:[#allocation5 + $0x1e8] sm:$0xff] }
 0x131   :  { %1101 = vmatpush.msrb.mxu3 %v6955_v25  ;;  %1042 = vmatpush.msrb.mxu0 %v6927_v6  ;;  %v6971_v6 = vld [vmem:[#allocation106_spill] sm:$0xff]  ;;  %v4425_v25 = vld [vmem:[#allocation5 + $0x110] sm:$0xff] }
 0x132   :  { %1062 = vmatpush.msrb.mxu1 %v6928_v7  ;;  %1082 = vmatpush.msrb.mxu2 %v6929_v8  ;;  %v4341_v7 = vld [vmem:[#allocation5 + $0x1f0] sm:$0xff]  ;;  %v4343_v8 = vld [vmem:[#allocation5 + $0x1f8] sm:$0xff]  ;;  %v4421_v24 = vld [vmem:[#allocation5 + $0x108] sm:$0xff] }
 0x133   :  { %1102 = vmatpush.msrb.mxu3 %v6930_v9  ;;  %1043 = vmatpush.msrb.mxu0 %v6931_v28  ;;  %v4347_v9 = vld [vmem:[#allocation5 + $0x1c0] sm:$0xff]  ;;  %v4349_v28 = vld [vmem:[#allocation5 + $0x1c8] sm:$0xff] }
 0x134   :  { %1063 = vmatpush.msrb.mxu1 %v6932_v0  ;;  %1083 = vmatpush.msrb.mxu2 %v6933_v1  ;;  %v635_v27 = vpop.f32.mrf.mxu0  ;;  %v6967_v0 = vld [vmem:[#allocation103_spill] sm:$0xff]  ;;  %v6968_v1 = vld [vmem:[#allocation104_spill] sm:$0xff] }
 0x135   :  { %1103 = vmatpush.msrb.mxu3 %v6934_v2  ;;  %1044 = vmatpush.msrb.mxu0 %v6935_v3  ;;  %v636_v31 = vadd.f32 %v635_v27, %v4288_v26  ;;  %v6969_v2 = vld [vmem:[#allocation105_spill] sm:$0xff] }
 0x136   :  { %1064 = vmatpush.msrb.mxu1 %v6859_v48  ;;  %1084 = vmatpush.msrb.mxu2 %v6936_v5  ;;  %v6957_v48 = vld [vmem:[#allocation93_spill] sm:$0xff] }
 0x137   :  { %1104 = vmatpush.msrb.mxu3 %v6861_v43  ;;  %v655_v32 = vpop.f32.mrf.mxu1  ;;  %1045 = vmatpush.msrb.mxu0 %v6862_v49  ;;  %v6959_v43 = vld [vmem:[#allocation95_spill] sm:$0xff]  ;;  %v6961_v49 = vld [vmem:[#allocation97_spill] sm:$0xff] }
 0x138   :  { %1065 = vmatpush.msrb.mxu1 %v6863_v40  ;;  %v4305_v33 = vadd.f32 %v655_v32, %v636_v31  ;;  %1085 = vmatpush.msrb.mxu2 %v6864_v42  ;;  %v4316_v40 = vperm.slane %v4221_v44, 1  ;;  %v6962_v42 = vld [vmem:[#allocation98_spill] sm:$0xff]  ;;  %v4427_v27 = vld [vmem:[#allocation5 + $0x118] sm:$0xff] }
 0x139   :  { %1105 = vmatpush.msrb.mxu3 %v6865_v41  ;;  %1046 = vmatpush.msrb.mxu0 %v6866_v61  ;;  %v4320_v41 = vld.sshfl [vmem:[#allocation1] sm:$0xff pattern:$0x73625140]  ;;  %v6963_v61 = vld [vmem:[#allocation99_spill] sm:$0xff]  ;;  %v4333_v3 = vld [vmem:[#allocation5 + $0x1e0] sm:$0xff] }
 0x13a   :  { %6956 = vst [vmem:[#allocation88_spill] sm:$0xff] %v4305_v33  ;;  %1066 = vmatpush.msrb.mxu1 %v6867_v60  ;;  %1086 = vmatpush.msrb.mxu2 %v6957_v48  ;;  %v6964_v60 = vld [vmem:[#allocation100_spill] sm:$0xff]  ;;  %v4431_v31 = vld [vmem:[#allocation5 + $0xe0] sm:$0xff]  ;;  %v4433_v32 = vld [vmem:[#allocation5 + $0xe8] sm:$0xff] }
 0x13b   :  { %1106 = vmatpush.msrb.mxu3 %v6958_v34  ;;  %1047 = vmatpush.msrb.mxu0 %v6959_v43  ;;  %v4437_v48 = vld [vmem:[#allocation5 + $0xf0] sm:$0xff]  ;;  %v4439_v34 = vld [vmem:[#allocation5 + $0xf8] sm:$0xff]  ;;  %v4443_v43 = vld [vmem:[#allocation5 + $0xc0] sm:$0xff] }
 0x13c   :  { %1067 = vmatpush.msrb.mxu1 %v6960_v35  ;;  %1087 = vmatpush.msrb.mxu2 %v6961_v49  ;;  %v4445_v35 = vld [vmem:[#allocation5 + $0xc8] sm:$0xff]  ;;  %v4449_v49 = vld [vmem:[#allocation5 + $0xd0] sm:$0xff]  ;;  %v4486_v33 = vld [vmem:[#allocation5 + $0x60] sm:$0xff] }
 0x13d   :  { %1107 = vmatpush.msrb.mxu3 %v6962_v42  ;;  %1048 = vmatpush.msrb.mxu0 %v6963_v61  ;;  %v675_v36 = vpop.f32.mrf.mxu2  ;;  %v4451_v42 = vld [vmem:[#allocation5 + $0xd8] sm:$0xff]  ;;  %v4455_v61 = vld [vmem:[#allocation5 + $0xa0] sm:$0xff]  ;;  %6979 = vst [vmem:[#allocation23_spill] sm:$0xff] %v4486_v33 }
 0x13e   :  { %1068 = vmatpush.msrb.mxu1 %v6964_v60  ;;  %v695_v37 = vpop.f32.mrf.mxu3  ;;  %1088 = vmatpush.msrb.mxu2 %v6965_v38  ;;  %v676_v46 = vadd.f32 %v675_v36, %v4316_v40  ;;  %v4457_v60 = vld [vmem:[#allocation5 + $0xa8] sm:$0xff]  ;;  %v4461_v36 = vld [vmem:[#allocation5 + $0xb0] sm:$0xff] }
 0x13f   :  { %1108 = vmatpush.msrb.mxu3 %v6966_v39  ;;  %970 = vmatmul.f32.vlgmr.msra.gmra.mxu0 %v4320_v41  ;;  %6972 = vst [vmem:[#allocation90_spill] sm:$0xff] %v4461_v36  ;;  %v4467_v38 = vld [vmem:[#allocation5 + $0x88] sm:$0xff] }
 0x140   :  { %1069 = vmatpush.msrb.mxu1 %v6967_v0  ;;  %1049 = vmatpush.msrb.mxu0 %v6968_v1  ;;  %v4337_v5 = vadd.f32 %v695_v37, %v676_v46  ;;  %v4463_v37 = vld [vmem:[#allocation5 + $0xb8] sm:$0xff]  ;;  %6974 = vst [vmem:[#allocation92_spill] sm:$0xff] %v4467_v38  ;;  %v4471_v46 = vld [vmem:[#allocation5 + $0x80] sm:$0xff]  ;;  %v4473_v0 = vld [vmem:[#allocation5 + $0x90] sm:$0xff] }
 0x141   :  { %1089 = vmatpush.msrb.mxu2 %v6969_v2  ;;  %1109 = vmatpush.msrb.mxu3 %v6971_v6  ;;  %6973 = vst [vmem:[#allocation91_spill] sm:$0xff] %v4463_v37  ;;  %v4478_v2 = vld [vmem:[#allocation5 + $0x98] sm:$0xff] }
 0x142   :  { %6970 = vst [vmem:[#allocation89_spill] sm:$0xff] %v4337_v5  ;;  %990 = vmatmul.f32.vlgmr.msra.gmra.mxu1 %v4326_v45  ;;  %1010 = vmatmul.f32.vlgmr.msra.gmra.mxu2 %v4320_v41 }
 0x143   :  { %1030 = vmatmul.f32.vlgmr.msra.gmra.mxu3 %v4326_v45  ;;  %1114 = vmatpush.msra.mxu0 %v4333_v3  ;;  %6975 = vst [vmem:[#allocation19_spill] sm:$0xff] %v4471_v46 }
 0x144   :  { %1134 = vmatpush.msra.mxu1 %v4335_v4  ;;  %1154 = vmatpush.msra.mxu2 %v4341_v7  ;;  %6976 = vst [vmem:[#allocation20_spill] sm:$0xff] %v4473_v0 }
 0x145   :  { %1174 = vmatpush.msra.mxu3 %v4343_v8  ;;  %1115 = vmatpush.msra.mxu0 %v4347_v9  ;;  %6977 = vst [vmem:[#allocation21_spill] sm:$0xff] %v4478_v2 }
 0x146   :  { %1135 = vmatpush.msra.mxu1 %v4349_v28  ;;  %1155 = vmatpush.msra.mxu2 %v4353_v59 }
 0x147   :  { %1175 = vmatpush.msra.mxu3 %v4355_v62  ;;  %1116 = vmatpush.msra.mxu0 %v4359_v63 }
 0x148   :  { %1136 = vmatpush.msra.mxu1 %v4361_v54  ;;  %1156 = vmatpush.msra.mxu2 %v4365_v53 }
 0x149   :  { %1176 = vmatpush.msra.mxu3 %v4367_v52  ;;  %1117 = vmatpush.msra.mxu0 %v4371_v56 }
 0x14a   :  { %1137 = vmatpush.msra.mxu1 %v4373_v55  ;;  %1157 = vmatpush.msra.mxu2 %v4377_v57 }
 0x14b   :  { %1177 = vmatpush.msra.mxu3 %v4379_v47  ;;  %1118 = vmatpush.msra.mxu0 %v4383_v50 }
 0x14c   :  { %1138 = vmatpush.msra.mxu1 %v4385_v10  ;;  %1158 = vmatpush.msra.mxu2 %v4389_v11 }
 0x14d   :  { %1178 = vmatpush.msra.mxu3 %v4391_v12  ;;  %1119 = vmatpush.msra.mxu0 %v4395_v13 }
 0x14e   :  { %1139 = vmatpush.msra.mxu1 %v4397_v14  ;;  %1159 = vmatpush.msra.mxu2 %v4401_v15 }
 0x14f   :  { %1179 = vmatpush.msra.mxu3 %v4403_v16  ;;  %1120 = vmatpush.msra.mxu0 %v4407_v19 }
 0x150   :  { %1140 = vmatpush.msra.mxu1 %v4409_v20  ;;  %1160 = vmatpush.msra.mxu2 %v4413_v21 }
 0x151   :  { %1180 = vmatpush.msra.mxu3 %v4415_v22  ;;  %1121 = vmatpush.msra.mxu0 %v4419_v23 }
 0x152   :  { %1141 = vmatpush.msra.mxu1 %v4421_v24  ;;  %1161 = vmatpush.msra.mxu2 %v4425_v25 }
 0x153   :  { %1181 = vmatpush.msra.mxu3 %v4427_v27  ;;  %1122 = vmatpush.msra.mxu0 %v4431_v31 }
 0x154   :  { %1142 = vmatpush.msra.mxu1 %v4433_v32  ;;  %1162 = vmatpush.msra.mxu2 %v4437_v48 }
 0x155   :  { %1182 = vmatpush.msra.mxu3 %v4439_v34  ;;  %1123 = vmatpush.msra.mxu0 %v4443_v43 }
 0x156   :  { %1143 = vmatpush.msra.mxu1 %v4445_v35  ;;  %1163 = vmatpush.msra.mxu2 %v4449_v49  ;;  %v715_v39 = vpop.f32.mrf.mxu0 }
 0x157   :  { %1183 = vmatpush.msra.mxu3 %v4451_v42  ;;  %1124 = vmatpush.msra.mxu0 %v4455_v61  ;;  %v716_v1 = vadd.f32 %v715_v39, %v4224_v51  ;;  %v4488_v39 = vld [vmem:[#allocation5 + $0x68] sm:$0xff] }
 0x158   :  { %1144 = vmatpush.msra.mxu1 %v4457_v60  ;;  %1164 = vmatpush.msra.mxu2 %v4461_v36  ;;  %6980 = vst [vmem:[#allocation24_spill] sm:$0xff] %v4488_v39 }
 0x159   :  { %1184 = vmatpush.msra.mxu3 %v4463_v37  ;;  %v735_v6 = vpop.f32.mrf.mxu1  ;;  %1050 = vmatmul.f32.vlgmr.msrb.gmra.mxu0 %v4320_v41  ;;  %v4494_v37 = vld [vmem:[#allocation5 + $0x78] sm:$0xff] }
 0x15a   :  { %1145 = vmatpush.msra.mxu1 %v4467_v38  ;;  %v4482_v5 = vadd.f32 %v735_v6, %v716_v1  ;;  %1125 = vmatpush.msra.mxu0 %v4471_v46  ;;  %6982 = vst [vmem:[#allocation26_spill] sm:$0xff] %v4494_v37  ;;  %v4498_v1 = vld [vmem:[#allocation5 + $0x40] sm:$0xff]  ;;  %v4500_v6 = vld [vmem:[#allocation5 + $0x48] sm:$0xff] }
 0x15b   :  { %1165 = vmatpush.msra.mxu2 %v4473_v0  ;;  %1185 = vmatpush.msra.mxu3 %v4478_v2  ;;  %6983 = vst [vmem:[#allocation27_spill] sm:$0xff] %v4498_v1  ;;  %v4506_v2 = vld [vmem:[#allocation5 + $0x58] sm:$0xff]  ;;  %v4509_v0 = vperm.slane %v4221_v44, 3  ;;  %v4525_v44 = vld [vmem:[#allocation5] sm:$0xff] }
 0x15c   :  { %6978 = vst [vmem:[#allocation22_spill] sm:$0xff] %v4482_v5  ;;  %1070 = vmatmul.f32.vlgmr.msrb.gmra.mxu1 %v4326_v45  ;;  %1090 = vmatmul.f32.vlgmr.msrb.gmra.mxu2 %v4320_v41  ;;  %v4504_v5 = vld [vmem:[#allocation5 + $0x50] sm:$0xff]  ;;  %v4513_v41 = vld [vmem:[#allocation5 + $0x20] sm:$0xff] }
 0x15d   :  { %1110 = vmatmul.f32.vlgmr.msrb.gmra.mxu3 %v4326_v45  ;;  %6984 = vst [vmem:[#allocation28_spill] sm:$0xff] %v4500_v6  ;;  %1126 = vmatpush.msra.mxu0 %v4486_v33  ;;  %v4515_v45 = vld [vmem:[#allocation5 + $0x28] sm:$0xff]  ;;  %v4521_v33 = vld [vmem:[#allocation5 + $0x38] sm:$0xff] }
 0x15e   :  { %1146 = vmatpush.msra.mxu1 %v4488_v39  ;;  %6985 = vst [vmem:[#allocation29_spill] sm:$0xff] %v4504_v5  ;;  %1166 = vmatpush.msra.mxu2 %v4492_v58  ;;  %v4519_v39 = vld [vmem:[#allocation5 + $0x30] sm:$0xff] }
 0x15f   :  { %6986 = vst [vmem:[#allocation30_spill] sm:$0xff] %v4506_v2  ;;  %1186 = vmatpush.msra.mxu3 %v4494_v37  ;;  %1127 = vmatpush.msra.mxu0 %v4498_v1  ;;  %v755_v38 = vpop.f32.mrf.mxu2  ;;  %v4527_v37 = vld [vmem:[#allocation5 + $0x8] sm:$0xff]  ;;  %v4534_v1 = vld [vmem:[#allocation5 + $0x18] sm:$0xff] }
 0x160   :  { %6987 = vst [vmem:[#allocation31_spill] sm:$0xff] %v4513_v41  ;;  %1147 = vmatpush.msra.mxu1 %v4500_v6  ;;  %v775_v46 = vpop.f32.mrf.mxu3  ;;  %1167 = vmatpush.msra.mxu2 %v4504_v5  ;;  %v756_v58 = vadd.f32 %v755_v38, %v4509_v0  ;;  %v4532_v6 = vld [vmem:[#allocation5 + $0x10] sm:$0xff]  ;;  %v6429_v38 = vmov 0.0  }
 0x161   :  { %6988 = vst [vmem:[#allocation32_spill] sm:$0xff] %v4515_v45  ;;  %1187 = vmatpush.msra.mxu3 %v4506_v2  ;;  %1128 = vmatpush.msra.mxu0 %v4513_v41  ;;  %v4558_v41 = vld [vmem:[#allocation8 + $0x1f0] sm:$0xff]  ;;  %v4658_v2 = vld [vmem:[#allocation8 + $0xf8] sm:$0xff] }
 0x162   :  { %6989 = vst [vmem:[#allocation33_spill] sm:$0xff] %v4519_v39  ;;  %1148 = vmatpush.msra.mxu1 %v4515_v45  ;;  %1168 = vmatpush.msra.mxu2 %v4519_v39  ;;  %v4538_v5 = vadd.f32 %v775_v46, %v756_v58  ;;  %v4554_v39 = vld [vmem:[#allocation8 + $0x1e0] sm:$0xff]  ;;  %v4556_v45 = vld [vmem:[#allocation8 + $0x1e8] sm:$0xff] }
 0x163   :  { %6990 = vst [vmem:[#allocation34_spill] sm:$0xff] %v4521_v33  ;;  %1188 = vmatpush.msra.mxu3 %v4521_v33  ;;  %1129 = vmatpush.msra.mxu0 %v4525_v44 }
 0x164   :  { %6991 = vst [vmem:[#allocation35_spill] sm:$0xff] %v4525_v44  ;;  %1149 = vmatpush.msra.mxu1 %v4527_v37  ;;  %1169 = vmatpush.msra.mxu2 %v4532_v6 }
 0x165   :  { %6992 = vst [vmem:[#allocation36_spill] sm:$0xff] %v4527_v37  ;;  %1189 = vmatpush.msra.mxu3 %v4534_v1  ;;  %1130 = vmatmul.f32.vlgmr.msra.gmra.mxu0 %v6429_v38 }
 0x166   :  { %6993 = vst [vmem:[#allocation37_spill] sm:$0xff] %v4532_v6  ;;  %1150 = vmatmul.f32.vlgmr.msra.gmra.mxu1 %v6429_v38  ;;  %1170 = vmatmul.f32.vlgmr.msra.gmra.mxu2 %v6429_v38 }
 0x167   :  { %6994 = vst [vmem:[#allocation38_spill] sm:$0xff] %v4534_v1  ;;  %1190 = vmatmul.f32.vlgmr.msra.gmra.mxu3 %v6429_v38  ;;  %1261 = vmatpush.msrb.mxu0 %v4554_v39  ;;  %v4578_v38 = vld [vmem:[#allocation8 + $0x1a8] sm:$0xff] }
 0x168   :  { %6995 = vst [vmem:[#allocation40_spill] sm:$0xff] %v4538_v5  ;;  %1281 = vmatpush.msrb.mxu1 %v4556_v45  ;;  %1301 = vmatpush.msrb.mxu2 %v4558_v41 }
 0x169   :  { %6998 = vst [vmem:[#allocation42_spill] sm:$0xff] %v4554_v39  ;;  %v4607_v39 = vld [vmem:[#allocation8 + $0x168] sm:$0xff] }
 0x16a   :  { %6999 = vst [vmem:[#allocation43_spill] sm:$0xff] %v4556_v45  ;;  %v4605_v45 = vld [vmem:[#allocation8 + $0x160] sm:$0xff] }
 0x16b   :  { %7000 = vst [vmem:[#allocation44_spill] sm:$0xff] %v4558_v41  ;;  %v4588_v41 = vld [vmem:[#allocation8 + $0x188] sm:$0xff] }
 0x16c   :  { %7007 = vst [vmem:[#allocation51_spill] sm:$0xff] %v4578_v38 }
 0x16d   :  { %7011 = vst [vmem:[#allocation55_spill] sm:$0xff] %v4588_v41 }
 0x16e   :  { %7015 = vst [vmem:[#allocation75_spill] sm:$0xff] %v4605_v45 }
 0x16f   :  { %7016 = vst [vmem:[#allocation76_spill] sm:$0xff] %v4607_v39 }
 0x170   :  { %7032 = vst [vmem:[#allocation65_spill] sm:$0xff] %v4658_v2 }
 0x178   :  { %v803_v33 = vpop.f32.mrf.mxu0 }
 0x179   :  { %v804_v58 = vadd.f32 %v803_v33, %v4288_v26  ;;  %v4562_v33 = vld [vmem:[#allocation8 + $0x1f8] sm:$0xff] }
 0x17a   :  { %7001 = vst [vmem:[#allocation45_spill] sm:$0xff] %v4562_v33  ;;  %1321 = vmatpush.msrb.mxu3 %v4562_v33  ;;  %v4586_v33 = vld [vmem:[#allocation8 + $0x180] sm:$0xff] }
 0x17b   :  { %v823_v46 = vpop.f32.mrf.mxu1  ;;  %7010 = vst [vmem:[#allocation54_spill] sm:$0xff] %v4586_v33 }
 0x17c   :  { %v4549_v5 = vadd.f32 %v823_v46, %v804_v58  ;;  %v4564_v58 = vld [vmem:[#allocation8 + $0x1c0] sm:$0xff]  ;;  %v4566_v46 = vld [vmem:[#allocation8 + $0x1c8] sm:$0xff] }
 0x17d   :  { %7002 = vst [vmem:[#allocation46_spill] sm:$0xff] %v4564_v58  ;;  %1262 = vmatpush.msrb.mxu0 %v4564_v58  ;;  %1282 = vmatpush.msrb.mxu1 %v4566_v46  ;;  %v4592_v58 = vld [vmem:[#allocation8 + $0x190] sm:$0xff] }
 0x17e   :  { %6996 = vst [vmem:[#allocation39_spill] sm:$0xff] %v4549_v5  ;;  %v4582_v5 = vld [vmem:[#allocation8 + $0x1b8] sm:$0xff] }
 0x17f   :  { %7003 = vst [vmem:[#allocation47_spill] sm:$0xff] %v4566_v46  ;;  %1283 = vmatpush.msrb.mxu1 %v4578_v38  ;;  %v4594_v46 = vld [vmem:[#allocation8 + $0x198] sm:$0xff] }
 0x180   :  { %7009 = vst [vmem:[#allocation53_spill] sm:$0xff] %v4582_v5 }
 0x181   :  { %v843_v37 = vpop.f32.mrf.mxu2  ;;  %7012 = vst [vmem:[#allocation56_spill] sm:$0xff] %v4592_v58  ;;  %1284 = vmatpush.msrb.mxu1 %v4588_v41  ;;  %v4613_v41 = vld [vmem:[#allocation8 + $0x178] sm:$0xff] }
 0x182   :  { %v863_v44 = vpop.f32.mrf.mxu3  ;;  %v844_v6 = vadd.f32 %v843_v37, %v4316_v40  ;;  %v4570_v37 = vld [vmem:[#allocation8 + $0x1d0] sm:$0xff]  ;;  %7013 = vst [vmem:[#allocation57_spill] sm:$0xff] %v4594_v46 }
 0x183   :  { %7004 = vst [vmem:[#allocation48_spill] sm:$0xff] %v4570_v37  ;;  %1302 = vmatpush.msrb.mxu2 %v4570_v37  ;;  %1285 = vmatpush.msrb.mxu1 %v4607_v39  ;;  %v4629_v39 = vld [vmem:[#allocation8 + $0x128] sm:$0xff] }
 0x184   :  { %v4552_v1 = vadd.f32 %v863_v44, %v844_v6  ;;  %v4572_v6 = vld [vmem:[#allocation8 + $0x1d8] sm:$0xff]  ;;  %v4574_v44 = vld [vmem:[#allocation8 + $0x1a0] sm:$0xff]  ;;  %7018 = vst [vmem:[#allocation78_spill] sm:$0xff] %v4613_v41 }
 0x185   :  { %7005 = vst [vmem:[#allocation49_spill] sm:$0xff] %v4572_v6  ;;  %1322 = vmatpush.msrb.mxu3 %v4572_v6  ;;  %1263 = vmatpush.msrb.mxu0 %v4574_v44 }
 0x186   :  { %6997 = vst [vmem:[#allocation41_spill] sm:$0xff] %v4552_v1  ;;  %v4580_v1 = vld [vmem:[#allocation8 + $0x1b0] sm:$0xff] }
 0x187   :  { %7006 = vst [vmem:[#allocation50_spill] sm:$0xff] %v4574_v44  ;;  %1303 = vmatpush.msrb.mxu2 %v4580_v1  ;;  %1323 = vmatpush.msrb.mxu3 %v4582_v5  ;;  %v4651_v5 = vld [vmem:[#allocation8 + $0xe8] sm:$0xff] }
 0x188   :  { %7008 = vst [vmem:[#allocation52_spill] sm:$0xff] %v4580_v1  ;;  %1264 = vmatpush.msrb.mxu0 %v4586_v33  ;;  %v4609_v1 = vld [vmem:[#allocation8 + $0x170] sm:$0xff] }
 0x189   :  { %1304 = vmatpush.msrb.mxu2 %v4592_v58  ;;  %1324 = vmatpush.msrb.mxu3 %v4594_v46  ;;  %7017 = vst [vmem:[#allocation77_spill] sm:$0xff] %v4609_v1  ;;  %v4637_v46 = vld [vmem:[#allocation8 + $0x100] sm:$0xff]  ;;  %v4645_v58 = vld [vmem:[#allocation8 + $0x118] sm:$0xff] }
 0x18a   :  { %1265 = vmatpush.msrb.mxu0 %v4605_v45  ;;  %v4627_v45 = vld [vmem:[#allocation8 + $0x120] sm:$0xff]  ;;  %7024 = vst [vmem:[#allocation85_spill] sm:$0xff] %v4629_v39 }
 0x18b   :  { %1305 = vmatpush.msrb.mxu2 %v4609_v1  ;;  %1325 = vmatpush.msrb.mxu3 %v4613_v41  ;;  %7023 = vst [vmem:[#allocation83_spill] sm:$0xff] %v4627_v45  ;;  %v4633_v41 = vld [vmem:[#allocation8 + $0x130] sm:$0xff]  ;;  %v4635_v1 = vld [vmem:[#allocation8 + $0x138] sm:$0xff] }
 0x18c   :  { %7025 = vst [vmem:[#allocation58_spill] sm:$0xff] %v4633_v41 }
 0x18d   :  { %7026 = vst [vmem:[#allocation59_spill] sm:$0xff] %v4635_v1 }
 0x18e   :  { %7029 = vst [vmem:[#allocation62_spill] sm:$0xff] %v4645_v58 }
 0x18f   :  { %7030 = vst [vmem:[#allocation63_spill] sm:$0xff] %v4651_v5 }
 0x19a   :  { %v883_v6 = vpop.f32.mrf.mxu0 }
 0x19b   :  { %v884_v44 = vadd.f32 %v883_v6, %v4224_v51  ;;  %v4617_v6 = vld [vmem:[#allocation8 + $0x140] sm:$0xff] }
 0x19c   :  { %7019 = vst [vmem:[#allocation79_spill] sm:$0xff] %v4617_v6  ;;  %1266 = vmatpush.msrb.mxu0 %v4617_v6  ;;  %v4643_v6 = vld [vmem:[#allocation8 + $0x110] sm:$0xff] }
 0x19d   :  { %v903_v38 = vpop.f32.mrf.mxu1  ;;  %7028 = vst [vmem:[#allocation61_spill] sm:$0xff] %v4643_v6 }
 0x19e   :  { %v4603_v37 = vadd.f32 %v903_v38, %v884_v44  ;;  %v4619_v38 = vld [vmem:[#allocation8 + $0x148] sm:$0xff]  ;;  %v4621_v44 = vld [vmem:[#allocation8 + $0x150] sm:$0xff]  ;;  %1267 = vmatpush.msrb.mxu0 %v4627_v45 }
 0x19f   :  { %7020 = vst [vmem:[#allocation80_spill] sm:$0xff] %v4619_v38  ;;  %1286 = vmatpush.msrb.mxu1 %v4619_v38  ;;  %1306 = vmatpush.msrb.mxu2 %v4621_v44  ;;  %v4641_v38 = vld [vmem:[#allocation8 + $0x108] sm:$0xff] }
 0x1a0   :  { %7014 = vst [vmem:[#allocation73_spill] sm:$0xff] %v4603_v37  ;;  %v4625_v37 = vld [vmem:[#allocation8 + $0x158] sm:$0xff]  ;;  %1268 = vmatpush.msrb.mxu0 %v4637_v46 }
 0x1a1   :  { %7021 = vst [vmem:[#allocation81_spill] sm:$0xff] %v4621_v44  ;;  %1326 = vmatpush.msrb.mxu3 %v4625_v37  ;;  %1287 = vmatpush.msrb.mxu1 %v4629_v39  ;;  %v4656_v39 = vld [vmem:[#allocation8 + $0xf0] sm:$0xff] }
 0x1a2   :  { %7022 = vst [vmem:[#allocation82_spill] sm:$0xff] %v4625_v37  ;;  %1307 = vmatpush.msrb.mxu2 %v4633_v41  ;;  %v4649_v37 = vld [vmem:[#allocation8 + $0xe0] sm:$0xff] }
 0x1a3   :  { %7027 = vst [vmem:[#allocation60_spill] sm:$0xff] %v4641_v38  ;;  %v923_v33 = vpop.f32.mrf.mxu2  ;;  %1327 = vmatpush.msrb.mxu3 %v4635_v1  ;;  %1288 = vmatpush.msrb.mxu1 %v4641_v38  ;;  %v4662_v41 = vld [vmem:[#allocation8 + $0xc0] sm:$0xff]  ;;  %v4664_v1 = vld [vmem:[#allocation8 + $0xc8] sm:$0xff]  ;;  %v4672_v38 = vld [vmem:[#allocation8 + $0xd8] sm:$0xff] }
 0x1a4   :  { %v943_v44 = vpop.f32.mrf.mxu3  ;;  %v924_v45 = vadd.f32 %v923_v33, %v4509_v0  ;;  %7031 = vst [vmem:[#allocation64_spill] sm:$0xff] %v4656_v39  ;;  %1308 = vmatpush.msrb.mxu2 %v4643_v6  ;;  %1269 = vmatpush.msrb.mxu0 %v4649_v37  ;;  %v4670_v33 = vld [vmem:[#allocation8 + $0xd0] sm:$0xff]  ;;  %v4676_v6 = vld [vmem:[#allocation8 + $0xa0] sm:$0xff] }
 0x1a5   :  { %1328 = vmatpush.msrb.mxu3 %v4645_v58  ;;  %7033 = vst [vmem:[#allocation66_spill] sm:$0xff] %v4662_v41  ;;  %1289 = vmatpush.msrb.mxu1 %v4651_v5  ;;  %v4678_v58 = vld [vmem:[#allocation8 + $0xa8] sm:$0xff] }
 0x1a6   :  { %7034 = vst [vmem:[#allocation67_spill] sm:$0xff] %v4664_v1  ;;  %v4666_v36 = vadd.f32 %v943_v44, %v924_v45  ;;  %1309 = vmatpush.msrb.mxu2 %v4656_v39  ;;  %1270 = vmatpush.msrb.mxu0 %v4662_v41  ;;  %v4682_v45 = vld [vmem:[#allocation8 + $0xb0] sm:$0xff]  ;;  %v4684_v44 = vld [vmem:[#allocation8 + $0xb8] sm:$0xff]  ;;  %v4690_v39 = vld [vmem:[#allocation8 + $0x88] sm:$0xff] }
 0x1a7   :  { %7036 = vst [vmem:[#allocation69_spill] sm:$0xff] %v4670_v33  ;;  %1329 = vmatpush.msrb.mxu3 %v4658_v2  ;;  %1290 = vmatpush.msrb.mxu1 %v4664_v1  ;;  %v4694_v2 = vld [vmem:[#allocation8 + $0x90] sm:$0xff]  ;;  %v4696_v41 = vld [vmem:[#allocation8 + $0x98] sm:$0xff]  ;;  %v4700_v1 = vld [vmem:[#allocation8 + $0x60] sm:$0xff] }
 0x1a8   :  { %7035 = vst [vmem:[#allocation68_spill] sm:$0xff] %v4666_v36  ;;  %1310 = vmatpush.msrb.mxu2 %v4670_v33  ;;  %v4688_v36 = vld [vmem:[#allocation8 + $0x80] sm:$0xff]  ;;  %1271 = vmatpush.msrb.mxu0 %v4676_v6  ;;  %v4702_v33 = vld [vmem:[#allocation8 + $0x68] sm:$0xff] }
 0x1a9   :  { %7037 = vst [vmem:[#allocation70_spill] sm:$0xff] %v4672_v38  ;;  %1330 = vmatpush.msrb.mxu3 %v4672_v38  ;;  %1291 = vmatpush.msrb.mxu1 %v4678_v58  ;;  %v4706_v38 = vld [vmem:[#allocation8 + $0x70] sm:$0xff]  ;;  %v4809_v5 = vld [vmem:[#allocation7 + $0x168] sm:$0xff] }
 0x1aa   :  { %7038 = vst [vmem:[#allocation71_spill] sm:$0xff] %v4676_v6  ;;  %1311 = vmatpush.msrb.mxu2 %v4682_v45  ;;  %1272 = vmatpush.msrb.mxu0 %v4688_v36  ;;  %v4708_v6 = vld [vmem:[#allocation8 + $0x78] sm:$0xff] }
 0x1ab   :  { %7039 = vst [vmem:[#allocation72_spill] sm:$0xff] %v4678_v58  ;;  %1331 = vmatpush.msrb.mxu3 %v4684_v44  ;;  %1292 = vmatpush.msrb.mxu1 %v4690_v39  ;;  %v4712_v58 = vld [vmem:[#allocation8 + $0x40] sm:$0xff] }
 0x1ac   :  { %7040 = vst [vmem:[#allocation74_spill] sm:$0xff] %v4682_v45  ;;  %1312 = vmatpush.msrb.mxu2 %v4694_v2  ;;  %v4714_v45 = vld [vmem:[#allocation8 + $0x48] sm:$0xff]  ;;  %1273 = vmatpush.msrb.mxu0 %v4700_v1 }
 0x1ad   :  { %7041 = vst [vmem:[#allocation93_spill] sm:$0xff] %v4684_v44  ;;  %1332 = vmatpush.msrb.mxu3 %v4696_v41  ;;  %1293 = vmatpush.msrb.mxu1 %v4702_v33  ;;  %v4718_v44 = vld [vmem:[#allocation8 + $0x50] sm:$0xff] }
 0x1ae   :  { %7042 = vst [vmem:[#allocation94_spill] sm:$0xff] %v4688_v36  ;;  %v4720_v36 = vld [vmem:[#allocation8 + $0x58] sm:$0xff]  ;;  %1313 = vmatpush.msrb.mxu2 %v4706_v38  ;;  %1274 = vmatpush.msrb.mxu0 %v4712_v58 }
 0x1af   :  { %7043 = vst [vmem:[#allocation95_spill] sm:$0xff] %v4690_v39  ;;  %1333 = vmatpush.msrb.mxu3 %v4708_v6  ;;  %v4724_v39 = vld [vmem:[#allocation8 + $0x20] sm:$0xff]  ;;  %1294 = vmatpush.msrb.mxu1 %v4714_v45 }
 0x1b0   :  { %7044 = vst [vmem:[#allocation96_spill] sm:$0xff] %v4694_v2  ;;  %v4726_v2 = vld [vmem:[#allocation8 + $0x28] sm:$0xff]  ;;  %1314 = vmatpush.msrb.mxu2 %v4718_v44  ;;  %1275 = vmatpush.msrb.mxu0 %v4724_v39 }
 0x1b1   :  { %7045 = vst [vmem:[#allocation97_spill] sm:$0xff] %v4696_v41  ;;  %v4730_v41 = vld [vmem:[#allocation8 + $0x30] sm:$0xff]  ;;  %1334 = vmatpush.msrb.mxu3 %v4720_v36  ;;  %1295 = vmatpush.msrb.mxu1 %v4726_v2 }
 0x1b2   :  { %7046 = vst [vmem:[#allocation98_spill] sm:$0xff] %v4700_v1  ;;  %v4732_v1 = vld [vmem:[#allocation8 + $0x38] sm:$0xff]  ;;  %1315 = vmatpush.msrb.mxu2 %v4730_v41 }
 0x1b3   :  { %7047 = vst [vmem:[#allocation99_spill] sm:$0xff] %v4702_v33  ;;  %v4736_v33 = vld [vmem:[#allocation8] sm:$0xff]  ;;  %1335 = vmatpush.msrb.mxu3 %v4732_v1 }
 0x1b4   :  { %7048 = vst [vmem:[#allocation100_spill] sm:$0xff] %v4706_v38  ;;  %v4738_v38 = vld [vmem:[#allocation8 + $0x8] sm:$0xff]  ;;  %1276 = vmatpush.msrb.mxu0 %v4736_v33 }
 0x1b5   :  { %7049 = vst [vmem:[#allocation101_spill] sm:$0xff] %v4708_v6  ;;  %v4742_v6 = vld [vmem:[#allocation8 + $0x10] sm:$0xff]  ;;  %1296 = vmatpush.msrb.mxu1 %v4738_v38 }
 0x1b6   :  { %7050 = vst [vmem:[#allocation102_spill] sm:$0xff] %v4712_v58  ;;  %v4744_v58 = vld [vmem:[#allocation8 + $0x18] sm:$0xff]  ;;  %1316 = vmatpush.msrb.mxu2 %v4742_v6 }
 0x1b7   :  { %7051 = vst [vmem:[#allocation103_spill] sm:$0xff] %v4714_v45  ;;  %1336 = vmatpush.msrb.mxu3 %v4744_v58  ;;  %v4796_v45 = vld [vmem:[#allocation7 + $0x198] sm:$0xff] }
 0x1b8   :  { %7052 = vst [vmem:[#allocation104_spill] sm:$0xff] %v4718_v44  ;;  %v4758_v44 = vld [vmem:[#allocation7 + $0x1f0] sm:$0xff] }
 0x1b9   :  { %7053 = vst [vmem:[#allocation105_spill] sm:$0xff] %v4720_v36  ;;  %v7062_v36 = vmov 0.0   ;;  %1381 = vmatpush.msra.mxu2 %v4758_v44 }
 0x1ba   :  { %7054 = vst [vmem:[#allocation106_spill] sm:$0xff] %v4724_v39  ;;  %1277 = vmatmul.f32.vlgmr.msrb.gmra.mxu0 %v7062_v36  ;;  %1297 = vmatmul.f32.vlgmr.msrb.gmra.mxu1 %v7062_v36  ;;  %v4756_v39 = vld [vmem:[#allocation7 + $0x1e8] sm:$0xff] }
 0x1bb   :  { %7055 = vst [vmem:[#allocation107_spill] sm:$0xff] %v4726_v2  ;;  %v4754_v2 = vld [vmem:[#allocation7 + $0x1e0] sm:$0xff]  ;;  %1317 = vmatmul.f32.vlgmr.msrb.gmra.mxu2 %v7062_v36  ;;  %1337 = vmatmul.f32.vlgmr.msrb.gmra.mxu3 %v7062_v36  ;;  %v4776_v36 = vld [vmem:[#allocation7 + $0x1d8] sm:$0xff] }
 0x1bc   :  { %7056 = vst [vmem:[#allocation108_spill] sm:$0xff] %v4730_v41  ;;  %1341 = vmatpush.msra.mxu0 %v4754_v2  ;;  %1361 = vmatpush.msra.mxu1 %v4756_v39  ;;  %v971_v41 = vpop.f32.mrf.mxu0 }
 0x1bd   :  { %7057 = vst [vmem:[#allocation109_spill] sm:$0xff] %v4732_v1  ;;  %v4788_v1 = vld [vmem:[#allocation7 + $0x180] sm:$0xff] }
 0x1be   :  { %7058 = vst [vmem:[#allocation110_spill] sm:$0xff] %v4736_v33  ;;  %v4772_v33 = vld [vmem:[#allocation7 + $0x1d0] sm:$0xff] }
 0x1bf   :  { %7059 = vst [vmem:[#allocation111_spill] sm:$0xff] %v4738_v38  ;;  %v4770_v38 = vld [vmem:[#allocation7 + $0x1c8] sm:$0xff]  ;;  %1382 = vmatpush.msra.mxu2 %v4772_v33 }
 0x1c0   :  { %7060 = vst [vmem:[#allocation112_spill] sm:$0xff] %v4742_v6  ;;  %v4764_v6 = vld [vmem:[#allocation7 + $0x1f8] sm:$0xff]  ;;  %1362 = vmatpush.msra.mxu1 %v4770_v38 }
 0x1c1   :  { %7061 = vst [vmem:[#allocation113_spill] sm:$0xff] %v4744_v58  ;;  %1401 = vmatpush.msra.mxu3 %v4764_v6  ;;  %v4768_v58 = vld [vmem:[#allocation7 + $0x1c0] sm:$0xff] }
 0x1c2   :  { %7063 = vst [vmem:[#allocation114_spill] sm:$0xff] %v4754_v2  ;;  %1342 = vmatpush.msra.mxu0 %v4768_v58  ;;  %v4778_v2 = vld [vmem:[#allocation7 + $0x1a0] sm:$0xff] }
 0x1c3   :  { %7064 = vst [vmem:[#allocation115_spill] sm:$0xff] %v4756_v39  ;;  %v4780_v39 = vld [vmem:[#allocation7 + $0x1a8] sm:$0xff]  ;;  %1402 = vmatpush.msra.mxu3 %v4776_v36 }
 0x1c4   :  { %7065 = vst [vmem:[#allocation116_spill] sm:$0xff] %v4758_v44  ;;  %v4786_v44 = vld [vmem:[#allocation7 + $0x1b8] sm:$0xff]  ;;  %1343 = vmatpush.msra.mxu0 %v4778_v2  ;;  %1363 = vmatpush.msra.mxu1 %v4780_v39 }
 0x1c5   :  { %7066 = vst [vmem:[#allocation117_spill] sm:$0xff] %v4764_v6  ;;  %v4784_v6 = vld [vmem:[#allocation7 + $0x1b0] sm:$0xff]  ;;  %1403 = vmatpush.msra.mxu3 %v4786_v44 }
 0x1c6   :  { %7067 = vst [vmem:[#allocation118_spill] sm:$0xff] %v4768_v58  ;;  %v4794_v58 = vld [vmem:[#allocation7 + $0x190] sm:$0xff]  ;;  %1383 = vmatpush.msra.mxu2 %v4784_v6  ;;  %1344 = vmatpush.msra.mxu0 %v4788_v1 }
 0x1c7   :  { %7068 = vst [vmem:[#allocation119_spill] sm:$0xff] %v4770_v38  ;;  %v4792_v38 = vld [vmem:[#allocation7 + $0x188] sm:$0xff]  ;;  %1404 = vmatpush.msra.mxu3 %v4796_v45 }
 0x1c8   :  { %7069 = vst [vmem:[#allocation120_spill] sm:$0xff] %v4772_v33  ;;  %v972_v33 = vadd.f32 %v971_v41, %v4288_v26  ;;  %1364 = vmatpush.msra.mxu1 %v4792_v38  ;;  %1384 = vmatpush.msra.mxu2 %v4794_v58  ;;  %v4811_v41 = vld [vmem:[#allocation7 + $0x170] sm:$0xff] }
 0x1c9   :  { %7070 = vst [vmem:[#allocation121_spill] sm:$0xff] %v4776_v36  ;;  %v991_v36 = vpop.f32.mrf.mxu1 }
 0x1ca   :  { %7071 = vst [vmem:[#allocation122_spill] sm:$0xff] %v4778_v2  ;;  %v4803_v2 = vadd.f32 %v991_v36, %v972_v33  ;;  %1365 = vmatpush.msra.mxu1 %v4809_v5  ;;  %1385 = vmatpush.msra.mxu2 %v4811_v41  ;;  %v4819_v33 = vld [vmem:[#allocation7 + $0x140] sm:$0xff]  ;;  %v4821_v36 = vld [vmem:[#allocation7 + $0x148] sm:$0xff] }
 0x1cb   :  { %7072 = vst [vmem:[#allocation123_spill] sm:$0xff] %v4780_v39  ;;  %v4807_v39 = vld [vmem:[#allocation7 + $0x160] sm:$0xff] }
 0x1cc   :  { %7073 = vst [vmem:[#allocation124_spill] sm:$0xff] %v4786_v44  ;;  %1345 = vmatpush.msra.mxu0 %v4807_v39  ;;  %v4815_v44 = vld [vmem:[#allocation7 + $0x178] sm:$0xff]  ;;  %1366 = vmatpush.msra.mxu1 %v4821_v36 }
 0x1cd   :  { %7074 = vst [vmem:[#allocation125_spill] sm:$0xff] %v4792_v38  ;;  %1405 = vmatpush.msra.mxu3 %v4815_v44  ;;  %v4848_v38 = vld [vmem:[#allocation7 + $0x110] sm:$0xff] }
 0x1ce   :  { %7075 = vst [vmem:[#allocation126_spill] sm:$0xff] %v4794_v58  ;;  %1346 = vmatpush.msra.mxu0 %v4819_v33  ;;  %v1031_v58 = vpop.f32.mrf.mxu3 }
 0x1cf   :  { %7076 = vst [vmem:[#allocation127_spill] sm:$0xff] %v4796_v45  ;;  %v4827_v45 = vld [vmem:[#allocation7 + $0x158] sm:$0xff] }
 0x1d0   :  { %7077 = vst [vmem:[#allocation128_spill] sm:$0xff] %v4803_v2  ;;  %v4823_v2 = vld [vmem:[#allocation7 + $0x150] sm:$0xff]  ;;  %1406 = vmatpush.msra.mxu3 %v4827_v45 }
 0x1d1   :  { %7078 = vst [vmem:[#allocation129_spill] sm:$0xff] %v4807_v39  ;;  %1386 = vmatpush.msra.mxu2 %v4823_v2  ;;  %v1011_v39 = vpop.f32.mrf.mxu2 }
 0x1d2   :  { %7079 = vst [vmem:[#allocation130_spill] sm:$0xff] %v4809_v5  ;;  %v4831_v5 = vld [vmem:[#allocation7 + $0x120] sm:$0xff] }
 0x1d3   :  { %7080 = vst [vmem:[#allocation131_spill] sm:$0xff] %v4811_v41  ;;  %v4833_v41 = vld [vmem:[#allocation7 + $0x128] sm:$0xff]  ;;  %1347 = vmatpush.msra.mxu0 %v4831_v5 }
 0x1d4   :  { %7081 = vst [vmem:[#allocation132_spill] sm:$0xff] %v4815_v44  ;;  %v4835_v44 = vld [vmem:[#allocation7 + $0x130] sm:$0xff]  ;;  %1367 = vmatpush.msra.mxu1 %v4833_v41 }
 0x1d5   :  { %7082 = vst [vmem:[#allocation133_spill] sm:$0xff] %v4819_v33  ;;  %v4839_v33 = vld [vmem:[#allocation7 + $0x138] sm:$0xff]  ;;  %1387 = vmatpush.msra.mxu2 %v4835_v44 }
 0x1d6   :  { %7083 = vst [vmem:[#allocation134_spill] sm:$0xff] %v4821_v36  ;;  %v1012_v36 = vadd.f32 %v1011_v39, %v4316_v40  ;;  %1407 = vmatpush.msra.mxu3 %v4839_v33  ;;  %v4858_v39 = vld [vmem:[#allocation7 + $0xe0] sm:$0xff] }
 0x1d7   :  { %7084 = vst [vmem:[#allocation135_spill] sm:$0xff] %v4823_v2  ;;  %v4846_v2 = vld [vmem:[#allocation7 + $0x108] sm:$0xff]  ;;  %1388 = vmatpush.msra.mxu2 %v4848_v38 }
 0x1d8   :  { %7085 = vst [vmem:[#allocation136_spill] sm:$0xff] %v4827_v45  ;;  %v4844_v45 = vld [vmem:[#allocation7 + $0x100] sm:$0xff]  ;;  %1368 = vmatpush.msra.mxu1 %v4846_v2 }
 0x1d9   :  { %7086 = vst [vmem:[#allocation137_spill] sm:$0xff] %v4831_v5  ;;  %1348 = vmatpush.msra.mxu0 %v4844_v45  ;;  %v4852_v5 = vld [vmem:[#allocation7 + $0x118] sm:$0xff] }
 0x1da   :  { %7087 = vst [vmem:[#allocation138_spill] sm:$0xff] %v4833_v41  ;;  %v4854_v41 = vadd.f32 %v1031_v58, %v1012_v36  ;;  %1408 = vmatpush.msra.mxu3 %v4852_v5  ;;  %v4870_v58 = vld [vmem:[#allocation7 + $0xc0] sm:$0xff]  ;;  %v4872_v36 = vld [vmem:[#allocation7 + $0xc8] sm:$0xff] }
 0x1db   :  { %7088 = vst [vmem:[#allocation139_spill] sm:$0xff] %v4835_v44  ;;  %v4862_v44 = vld [vmem:[#allocation7 + $0xf0] sm:$0xff]  ;;  %1349 = vmatpush.msra.mxu0 %v4858_v39 }
 0x1dc   :  { %7089 = vst [vmem:[#allocation140_spill] sm:$0xff] %v4839_v33  ;;  %v4860_v33 = vld [vmem:[#allocation7 + $0xe8] sm:$0xff]  ;;  %1389 = vmatpush.msra.mxu2 %v4862_v44 }
 0x1dd   :  { %7090 = vst [vmem:[#allocation141_spill] sm:$0xff] %v4844_v45  ;;  %1369 = vmatpush.msra.mxu1 %v4860_v33  ;;  %v4866_v45 = vld [vmem:[#allocation7 + $0xf8] sm:$0xff]  ;;  %1350 = vmatpush.msra.mxu0 %v4870_v58 }
 0x1de   :  { %7091 = vst [vmem:[#allocation142_spill] sm:$0xff] %v4846_v2  ;;  %1409 = vmatpush.msra.mxu3 %v4866_v45  ;;  %v1071_v2 = vpop.f32.mrf.mxu1 }
 0x1df   :  { %7092 = vst [vmem:[#allocation143_spill] sm:$0xff] %v4848_v38  ;;  %1370 = vmatpush.msra.mxu1 %v4872_v36  ;;  %v4947_v38 = vld [vmem:[#allocation7 + $0x10] sm:$0xff] }
 0x1e0   :  { %7093 = vst [vmem:[#allocation144_spill] sm:$0xff] %v4852_v5  ;;  %v4878_v5 = vld [vmem:[#allocation7 + $0xd8] sm:$0xff] }
 0x1e1   :  { %7094 = vst [vmem:[#allocation145_spill] sm:$0xff] %v4854_v41  ;;  %v4874_v41 = vld [vmem:[#allocation7 + $0xd0] sm:$0xff]  ;;  %1410 = vmatpush.msra.mxu3 %v4878_v5 }
 0x1e2   :  { %7095 = vst [vmem:[#allocation146_spill] sm:$0xff] %v4858_v39  ;;  %1390 = vmatpush.msra.mxu2 %v4874_v41  ;;  %v4890_v39 = vld [vmem:[#allocation7 + $0xb8] sm:$0xff] }
 0x1e3   :  { %7096 = vst [vmem:[#allocation147_spill] sm:$0xff] %v4860_v33  ;;  %v4882_v33 = vld [vmem:[#allocation7 + $0xa0] sm:$0xff]  ;;  %1411 = vmatpush.msra.mxu3 %v4890_v39 }
 0x1e4   :  { %7097 = vst [vmem:[#allocation148_spill] sm:$0xff] %v4862_v44  ;;  %v4884_v44 = vld [vmem:[#allocation7 + $0xa8] sm:$0xff]  ;;  %1351 = vmatpush.msra.mxu0 %v4882_v33 }
 0x1e5   :  { %7098 = vst [vmem:[#allocation149_spill] sm:$0xff] %v4866_v45  ;;  %v4886_v45 = vld [vmem:[#allocation7 + $0xb0] sm:$0xff]  ;;  %1371 = vmatpush.msra.mxu1 %v4884_v44 }
 0x1e6   :  { %7099 = vst [vmem:[#allocation150_spill] sm:$0xff] %v4870_v58  ;;  %1391 = vmatpush.msra.mxu2 %v4886_v45  ;;  %v4902_v58 = vld [vmem:[#allocation7 + $0x98] sm:$0xff] }
 0x1e7   :  { %7100 = vst [vmem:[#allocation151_spill] sm:$0xff] %v4872_v36  ;;  %v4894_v36 = vld [vmem:[#allocation7 + $0x80] sm:$0xff]  ;;  %1412 = vmatpush.msra.mxu3 %v4902_v58 }
 0x1e8   :  { %7101 = vst [vmem:[#allocation152_spill] sm:$0xff] %v4874_v41  ;;  %v4896_v41 = vld [vmem:[#allocation7 + $0x88] sm:$0xff]  ;;  %1352 = vmatpush.msra.mxu0 %v4894_v36 }
 0x1e9   :  { %7102 = vst [vmem:[#allocation153_spill] sm:$0xff] %v4878_v5  ;;  %v4898_v5 = vld [vmem:[#allocation7 + $0x90] sm:$0xff]  ;;  %1372 = vmatpush.msra.mxu1 %v4896_v41 }
 0x1ea   :  { %7103 = vst [vmem:[#allocation154_spill] sm:$0xff] %v4882_v33  ;;  %1392 = vmatpush.msra.mxu2 %v4898_v5  ;;  %v4914_v33 = vld [vmem:[#allocation7 + $0x78] sm:$0xff] }
 0x1eb   :  { %7104 = vst [vmem:[#allocation155_spill] sm:$0xff] %v4884_v44  ;;  %v4906_v44 = vld [vmem:[#allocation7 + $0x60] sm:$0xff]  ;;  %1413 = vmatpush.msra.mxu3 %v4914_v33 }
 0x1ec   :  { %7105 = vst [vmem:[#allocation156_spill] sm:$0xff] %v4886_v45  ;;  %v4908_v45 = vld [vmem:[#allocation7 + $0x68] sm:$0xff]  ;;  %1353 = vmatpush.msra.mxu0 %v4906_v44 }
 0x1ed   :  { %7106 = vst [vmem:[#allocation157_spill] sm:$0xff] %v4890_v39  ;;  %v4910_v39 = vld [vmem:[#allocation7 + $0x70] sm:$0xff]  ;;  %1373 = vmatpush.msra.mxu1 %v4908_v45 }
 0x1ee   :  { %7107 = vst [vmem:[#allocation158_spill] sm:$0xff] %v4894_v36  ;;  %1393 = vmatpush.msra.mxu2 %v4910_v39  ;;  %v4926_v36 = vld [vmem:[#allocation7 + $0x58] sm:$0xff] }
 0x1ef   :  { %7108 = vst [vmem:[#allocation159_spill] sm:$0xff] %v4896_v41  ;;  %v4918_v41 = vld [vmem:[#allocation7 + $0x40] sm:$0xff]  ;;  %1414 = vmatpush.msra.mxu3 %v4926_v36 }
 0x1f0   :  { %7109 = vst [vmem:[#allocation160_spill] sm:$0xff] %v4898_v5  ;;  %v4920_v5 = vld [vmem:[#allocation7 + $0x48] sm:$0xff]  ;;  %1354 = vmatpush.msra.mxu0 %v4918_v41 }
 0x1f1   :  { %7110 = vst [vmem:[#allocation161_spill] sm:$0xff] %v4902_v58  ;;  %v4922_v58 = vld [vmem:[#allocation7 + $0x50] sm:$0xff]  ;;  %1374 = vmatpush.msra.mxu1 %v4920_v5 }
 0x1f2   :  { %7111 = vst [vmem:[#allocation162_spill] sm:$0xff] %v4906_v44  ;;  %1394 = vmatpush.msra.mxu2 %v4922_v58  ;;  %v1051_v44 = vpop.f32.mrf.mxu0 }
 0x1f3   :  { %7112 = vst [vmem:[#allocation163_spill] sm:$0xff] %v4908_v45  ;;  %v4930_v45 = vld [vmem:[#allocation7 + $0x20] sm:$0xff] }
 0x1f4   :  { %7113 = vst [vmem:[#allocation164_spill] sm:$0xff] %v4910_v39  ;;  %v4932_v39 = vld [vmem:[#allocation7 + $0x28] sm:$0xff]  ;;  %1355 = vmatpush.msra.mxu0 %v4930_v45 }
 0x1f5   :  { %7114 = vst [vmem:[#allocation165_spill] sm:$0xff] %v4914_v33  ;;  %v4934_v33 = vld [vmem:[#allocation7 + $0x30] sm:$0xff]  ;;  %1375 = vmatpush.msra.mxu1 %v4932_v39 }
 0x1f6   :  { %7115 = vst [vmem:[#allocation166_spill] sm:$0xff] %v4918_v41  ;;  %v4938_v41 = vld [vmem:[#allocation7 + $0x38] sm:$0xff]  ;;  %1395 = vmatpush.msra.mxu2 %v4934_v33 }
 0x1f7   :  { %7116 = vst [vmem:[#allocation167_spill] sm:$0xff] %v4920_v5  ;;  %v1052_v5 = vadd.f32 %v1051_v44, %v4224_v51  ;;  %1415 = vmatpush.msra.mxu3 %v4938_v41  ;;  %v7122_v51 = vld [vmem:[#allocation84_spill] sm:$0xff]  ;;  %v7144_v44 = vld [vmem:[#allocation35_spill] sm:$0xff] }
 0x1f8   :  { %7117 = vst [vmem:[#allocation168_spill] sm:$0xff] %v4922_v58  ;;  %v4945_v58 = vld [vmem:[#allocation7 + $0x8] sm:$0xff]  ;;  %1396 = vmatpush.msra.mxu2 %v4947_v38 }
 0x1f9   :  { %7118 = vst [vmem:[#allocation169_spill] sm:$0xff] %v4926_v36  ;;  %v4943_v36 = vld [vmem:[#allocation7] sm:$0xff]  ;;  %1376 = vmatpush.msra.mxu1 %v4945_v58 }
 0x1fa   :  { %7119 = vst [vmem:[#allocation170_spill] sm:$0xff] %v4930_v45  ;;  %1356 = vmatpush.msra.mxu0 %v4943_v36  ;;  %v4953_v45 = vadd.f32 %v1071_v2, %v1052_v5  ;;  %1537 = vmatpush.msrb.mxu2 %v4341_v7  ;;  %v468_v5 = vadd.f32 %v7122_v51, %v4288_v26  ;;  %v7145_v51 = vld [vmem:[#allocation36_spill] sm:$0xff] }
 0x1fb   :  { %7120 = vst [vmem:[#allocation171_spill] sm:$0xff] %v4932_v39  ;;  %v4951_v39 = vld [vmem:[#allocation7 + $0x18] sm:$0xff]  ;;  %1517 = vmatpush.msrb.mxu1 %v4335_v4  ;;  %v508_v2 = vadd.f32 %v4271_v17, %v4316_v40  ;;  %v1111_v4 = vpop.f32.mrf.mxu3  ;;  %v7123_v17 = vld [vmem:[#allocation86_spill] sm:$0xff] }
 0x1fc   :  { %7121 = vst [vmem:[#allocation172_spill] sm:$0xff] %v4953_v45  ;;  %1416 = vmatpush.msra.mxu3 %v4951_v39  ;;  %1497 = vmatpush.msrb.mxu0 %v4333_v3  ;;  %v1091_v3 = vpop.f32.mrf.mxu2  ;;  %v488_v26 = vadd.f32 %v7123_v17, %v468_v5  ;;  %v5431_v45 = vld [vmem:[#allocation5 + $0x58] sm:$0xff] }
 0x1fd   :  { %1518 = vmatpush.msrb.mxu1 %v4349_v28  ;;  %1538 = vmatpush.msrb.mxu2 %v4353_v59  ;;  %v1092_v7 = vadd.f32 %v1091_v3, %v4509_v0  ;;  %v528_v40 = vadd.f32 %v4273_v18, %v508_v2  ;;  %v1151_v28 = vpop.f32.mrf.mxu1  ;;  %v588_v18 = vadd.f32 %v4294_v29, %v4509_v0  ;;  %v7146_v2 = vld [vmem:[#allocation37_spill] sm:$0xff]  ;;  %v7147_v3 = vld [vmem:[#allocation38_spill] sm:$0xff] }
 0x1fe   :  { %1557 = vmatpush.msrb.mxu3 %v4343_v8  ;;  %1498 = vmatpush.msrb.mxu0 %v4347_v9  ;;  %v1131_v9 = vpop.f32.mrf.mxu0 }
 0x1ff   :  { %1519 = vmatpush.msrb.mxu1 %v4361_v54  ;;  %1539 = vmatpush.msrb.mxu2 %v4365_v53  ;;  %v4980_v8 = vadd.f32 %v1111_v4, %v1092_v7  ;;  %v1194_v59 = vadd.f32 %v1131_v9, %v488_v26  ;;  %v608_v29 = vadd.f32 %v4296_v30, %v588_v18 }
 0x200   :  { %1558 = vmatpush.msrb.mxu3 %v4355_v62  ;;  %1499 = vmatpush.msrb.mxu0 %v4359_v63  ;;  %v1195_v62 = vadd.f32 %v1151_v28, %v528_v40 }
 0x201   :  { %1520 = vmatpush.msrb.mxu1 %v4373_v55  ;;  %1540 = vmatpush.msrb.mxu2 %v4377_v57  ;;  %7124 = vst [vmem:[#allocation84_spill] sm:$0xff] %v4980_v8  ;;  %v2825_v63 = vmul.f32 -1.442695, %v1194_v59  ;;  %v5434_v8 = vld [vmem:[#allocation5 + $0x20] sm:$0xff] }
 0x202   :  { %1559 = vmatpush.msrb.mxu3 %v4367_v52  ;;  %1500 = vmatpush.msrb.mxu0 %v4371_v56  ;;  %v2826_v54 = vmul.f32 -1.442695, %v1195_v62 }
 0x203   :  { %1521 = vmatpush.msrb.mxu1 %v4385_v10  ;;  %1541 = vmatpush.msrb.mxu2 %v4389_v11  ;;  %2867 = vpow2.f32 %v2825_v63  ;;  %v1191_v53 = vpop.f32.mrf.mxu3  ;;  %v7126_v10 = vld [vmem:[#allocation91_spill] sm:$0xff] }
 0x204   :  { %1560 = vmatpush.msrb.mxu3 %v4379_v47  ;;  %1501 = vmatpush.msrb.mxu0 %v4383_v50  ;;  %2869 = vpow2.f32 %v2826_v54  ;;  %v1197_v52 = vadd.f32 %v1191_v53, %v608_v29  ;;  %v7125_v50 = vld [vmem:[#allocation90_spill] sm:$0xff]  ;;  %v7127_v11 = vld [vmem:[#allocation19_spill] sm:$0xff] }
 0x205   :  { %1522 = vmatpush.msrb.mxu1 %v4397_v14  ;;  %1542 = vmatpush.msrb.mxu2 %v4401_v15  ;;  %v7130_v14 = vld [vmem:[#allocation21_spill] sm:$0xff]  ;;  %v7131_v15 = vld [vmem:[#allocation23_spill] sm:$0xff] }
 0x206   :  { %1561 = vmatpush.msrb.mxu3 %v4391_v12  ;;  %1502 = vmatpush.msrb.mxu0 %v4395_v13  ;;  %v2827_v30 = vmul.f32 -1.442695, %v1197_v52  ;;  %v7128_v12 = vld [vmem:[#allocation92_spill] sm:$0xff] }
 0x207   :  { %1523 = vmatpush.msrb.mxu1 %v4409_v20  ;;  %1543 = vmatpush.msrb.mxu2 %v4413_v21  ;;  %v7129_v13 = vld [vmem:[#allocation20_spill] sm:$0xff]  ;;  %v7133_v20 = vld [vmem:[#allocation25_spill] sm:$0xff]  ;;  %v7134_v21 = vld [vmem:[#allocation26_spill] sm:$0xff] }
 0x208   :  { %1562 = vmatpush.msrb.mxu3 %v4403_v16  ;;  %1503 = vmatpush.msrb.mxu0 %v4407_v19  ;;  %2871 = vpow2.f32 %v2827_v30  ;;  %v7132_v16 = vld [vmem:[#allocation24_spill] sm:$0xff]  ;;  %v1171_v19 = vpop.f32.mrf.mxu2 }
 0x209   :  { %1524 = vmatpush.msrb.mxu1 %v4421_v24  ;;  %1544 = vmatpush.msrb.mxu2 %v4425_v25  ;;  %v2868_v56 = vpop.eup %2867  ;;  %v7136_v24 = vld [vmem:[#allocation28_spill] sm:$0xff] }
 0x20a   :  { %1563 = vmatpush.msrb.mxu3 %v4415_v22  ;;  %1504 = vmatpush.msrb.mxu0 %v4419_v23  ;;  %v2870_v55 = vpop.eup %2869  ;;  %v1201_v57 = vadd.f32 1.0, %v2868_v56  ;;  %v7135_v23 = vld [vmem:[#allocation27_spill] sm:$0xff] }
 0x20b   :  { %1525 = vmatpush.msrb.mxu1 %v4433_v32  ;;  %1545 = vmatpush.msrb.mxu2 %v4437_v48  ;;  %v1220_v47 = vadd.f32 1.0, %v2870_v55  ;;  %v7139_v48 = vld [vmem:[#allocation87_spill] sm:$0xff] }
 0x20c   :  { %1564 = vmatpush.msrb.mxu3 %v4427_v27  ;;  %1505 = vmatpush.msrb.mxu0 %v4431_v31  ;;  %2873 = vrcp.f32 %v1201_v57  ;;  %v7137_v27 = vld [vmem:[#allocation29_spill] sm:$0xff]  ;;  %v7138_v31 = vld [vmem:[#allocation30_spill] sm:$0xff]  ;;  %v1213_v7 = vand.u32 2147483648, %v1201_v57  ;;  %v1211_v40 = vand.u32 2147483647, %v1201_v57  ;;  %vm1207_vm2 = vweird.f32 %v1201_v57 }
 0x20d   :  { %1526 = vmatpush.msrb.mxu1 %v4445_v35  ;;  %1546 = vmatpush.msrb.mxu2 %v4449_v49  ;;  %2875 = vrcp.f32 %v1220_v47  ;;  %v7141_v35 = vld [vmem:[#allocation32_spill] sm:$0xff]  ;;  %v1232_v17 = vand.u32 2147483648, %v1220_v47  ;;  %v1230_v28 = vand.u32 2147483647, %v1220_v47  ;;  %vm1226_vm3 = vweird.f32 %v1220_v47 }
 0x20e   :  { %1565 = vmatpush.msrb.mxu3 %v4439_v34  ;;  %1506 = vmatpush.msrb.mxu0 %v4443_v43  ;;  %v2872_v22 = vpop.eup %2871  ;;  %v1196_v34 = vadd.f32 %v1171_v19, %v7139_v48  ;;  %v7140_v43 = vld [vmem:[#allocation31_spill] sm:$0xff]  ;;  %v1214_v18 = vor.u32 1.1754944e-38, %v1213_v7  ;;  %vm1212_vm5 = vcmp.eq.f32.partialorder %v1211_v40, 8.507059e+37  ;;  %v7155_v48 = vld [vmem:[#allocation49_spill] sm:$0xff] }
 0x20f   :  { %1527 = vmatpush.msrb.mxu1 %v4457_v60  ;;  %1547 = vmatpush.msrb.mxu2 %v7125_v50  ;;  %v1240_v25 = vadd.f32 1.0, %v2872_v22  ;;  %v7143_v60 = vld [vmem:[#allocation34_spill] sm:$0xff]  ;;  %v1233_v29 = vor.u32 1.1754944e-38, %v1232_v17  ;;  %vm1231_vm7 = vcmp.eq.f32.partialorder %v1230_v28, 8.507059e+37  ;;  %v7170_v7 = vld [vmem:[#allocation81_spill] sm:$0xff]  ;;  %v7175_v28 = vld [vmem:[#allocation59_spill] sm:$0xff] }
 0x210   :  { %1566 = vmatpush.msrb.mxu3 %v4451_v42  ;;  %1507 = vmatpush.msrb.mxu0 %v4455_v61  ;;  %v7142_v61 = vld [vmem:[#allocation33_spill] sm:$0xff]  ;;  %v7148_v22 = vld [vmem:[#allocation42_spill] sm:$0xff] }
 0x211   :  { %1528 = vmatpush.msrb.mxu1 %v7128_v12  ;;  %1548 = vmatpush.msrb.mxu2 %v7129_v13  ;;  %2877 = vrcp.f32 %v1240_v25  ;;  %vm1246_vm9 = vweird.f32 %v1240_v25  ;;  %v7171_v17 = vld [vmem:[#allocation82_spill] sm:$0xff]  ;;  %v7173_v40 = vld [vmem:[#allocation85_spill] sm:$0xff] }
 0x212   :  { %1567 = vmatpush.msrb.mxu3 %v7126_v10  ;;  %1508 = vmatpush.msrb.mxu0 %v7127_v11  ;;  %v2874_v32 = vpop.eup %2873  ;;  %2879 = vtanh.f32 %v1196_v34  ;;  %v7156_v34 = vld [vmem:[#allocation50_spill] sm:$0xff] }
 0x213   :  { %1529 = vmatpush.msrb.mxu1 %v7132_v16  ;;  %1549 = vmatpush.msrb.mxu2 %v7133_v20  ;;  %v2876_v49 = vpop.eup %2875  ;;  %v1203_v42 = vmul.f32 %v2874_v32, %v1201_v57  ;;  %vm1208_vm0 = vweird.f32 %v2874_v32 }
 0x214   :  { %1568 = vmatpush.msrb.mxu3 %v7130_v14  ;;  %1509 = vmatpush.msrb.mxu0 %v7131_v15  ;;  %v1222_v0 = vmul.f32 %v2876_v49, %v1220_v47  ;;  %vm1227_vm1 = vweird.f32 %v2876_v49  ;;  %vm1209_vm4 = vmor %vm1207_vm2, %vm1208_vm0  ;;  %v1252_v47 = vand.u32 2147483648, %v1240_v25  ;;  %v1250_v14 = vand.u32 2147483647, %v1240_v25 }
 0x215   :  { %1530 = vmatpush.msrb.mxu1 %v7136_v24  ;;  %1550 = vmatpush.msrb.mxu2 %v7137_v27  ;;  %v1204_v5 = vsub.f32 1.0, %v1203_v42  ;;  %vm1228_vm6 = vmor %vm1226_vm3, %vm1227_vm1  ;;  %v7150_v24 = vld [vmem:[#allocation44_spill] sm:$0xff]  ;;  %v7151_v27 = vld [vmem:[#allocation45_spill] sm:$0xff] }
 0x216   :  { %1569 = vmatpush.msrb.mxu3 %v7134_v21  ;;  %1510 = vmatpush.msrb.mxu0 %v7135_v23  ;;  %v1223_v4 = vsub.f32 1.0, %v1222_v0  ;;  %v1253_v16 = vor.u32 1.1754944e-38, %v1252_v47  ;;  %vm1251_vm11 = vcmp.eq.f32.partialorder %v1250_v14, 8.507059e+37  ;;  %v7149_v23 = vld [vmem:[#allocation43_spill] sm:$0xff]  ;;  %v7160_v42 = vld [vmem:[#allocation54_spill] sm:$0xff]  ;;  %v7163_v0 = vld [vmem:[#allocation57_spill] sm:$0xff] }
 0x217   :  { %1531 = vmatpush.msrb.mxu1 %v7141_v35  ;;  %1551 = vmatpush.msrb.mxu2 %v7142_v61  ;;  %v1205_v26 = vmul.f32 %v2874_v32, %v1204_v5  ;;  %v2878_v59 = vpop.eup %2877  ;;  %v7158_v35 = vld [vmem:[#allocation52_spill] sm:$0xff]  ;;  %v7161_v61 = vld [vmem:[#allocation55_spill] sm:$0xff]  ;;  %v7166_v5 = vld [vmem:[#allocation77_spill] sm:$0xff]  ;;  %7303 = vst [vmem:[#allocation43_spill] sm:$0xff] %v5431_v45 }
 0x218   :  { %1570 = vmatpush.msrb.mxu3 %v7138_v31  ;;  %1511 = vmatpush.msrb.mxu0 %v7140_v43  ;;  %v1224_v9 = vmul.f32 %v2876_v49, %v1223_v4  ;;  %v1242_v54 = vmul.f32 %v2878_v59, %v1240_v25  ;;  %v2880_v52 = vpop.eup %2879  ;;  %vm1247_vm8 = vweird.f32 %v2878_v59  ;;  %v7152_v25 = vld [vmem:[#allocation46_spill] sm:$0xff]  ;;  %v7153_v31 = vld [vmem:[#allocation47_spill] sm:$0xff]  ;;  %v7169_v4 = vld [vmem:[#allocation80_spill] sm:$0xff]  ;;  %7304 = vst [vmem:[#allocation44_spill] sm:$0xff] %v5434_v8 }
 0x219   :  { %1532 = vmatpush.msrb.mxu1 %v7145_v51  ;;  %1552 = vmatpush.msrb.mxu2 %v7146_v2  ;;  %v1206_v62 = vadd.f32 %v2874_v32, %v1205_v26  ;;  %vm1248_vm10 = vmor %vm1246_vm9, %vm1247_vm8  ;;  %v7157_v43 = vld [vmem:[#allocation51_spill] sm:$0xff]  ;;  %v7165_v51 = vld [vmem:[#allocation76_spill] sm:$0xff] }
 0x21a   :  { %1571 = vmatpush.msrb.mxu3 %v7143_v60  ;;  %1512 = vmatpush.msrb.mxu0 %v7144_v44  ;;  %v1225_v63 = vadd.f32 %v2876_v49, %v1224_v9  ;;  %v1243_v55 = vsub.f32 1.0, %v1242_v54  ;;  %v7162_v60 = vld [vmem:[#allocation56_spill] sm:$0xff]  ;;  %v7164_v44 = vld [vmem:[#allocation75_spill] sm:$0xff]  ;;  %v7167_v2 = vld [vmem:[#allocation78_spill] sm:$0xff] }
 0x21b   :  { %v1210_v53 = vsel %vm1209_vm4, %v2874_v32, %v1206_v62  ;;  %v7154_v32 = vld [vmem:[#allocation48_spill] sm:$0xff]  ;;  %v7172_v26 = vld [vmem:[#allocation83_spill] sm:$0xff]  ;;  %v7174_v9 = vld [vmem:[#allocation58_spill] sm:$0xff] }
 0x21c   :  { %1572 = vmatpush.msrb.mxu3 %v7147_v3  ;;  %v1215_v30 = vsel %vm1212_vm5, %v1214_v18, %v1210_v53  ;;  %v1229_v56 = vsel %vm1228_vm6, %v2876_v49, %v1225_v63  ;;  %v1244_v12 = vmul.f32 %v2878_v59, %v1243_v55  ;;  %v7159_v49 = vld [vmem:[#allocation53_spill] sm:$0xff]  ;;  %v7168_v3 = vld [vmem:[#allocation79_spill] sm:$0xff]  ;;  %v7178_v18 = vld [vmem:[#allocation62_spill] sm:$0xff] }
 0x21d   :  { %v1234_v50 = vsel %vm1231_vm7, %v1233_v29, %v1229_v56  ;;  %v1257_v10 = vmul.f32 %v2880_v52, %v1215_v30  ;;  %v7177_v62 = vld [vmem:[#allocation61_spill] sm:$0xff]  ;;  %v7179_v63 = vld [vmem:[#allocation63_spill] sm:$0xff]  ;;  %v7180_v54 = vld [vmem:[#allocation64_spill] sm:$0xff] }
 0x21e   :  { %v1256_v11 = vmul.f32 0.0, %v1234_v50  ;;  %v1245_v57 = vadd.f32 %v2878_v59, %v1244_v12  ;;  %v7181_v29 = vld [vmem:[#allocation65_spill] sm:$0xff]  ;;  %v7182_v53 = vld [vmem:[#allocation66_spill] sm:$0xff]  ;;  %v7183_v52 = vld [vmem:[#allocation67_spill] sm:$0xff] }
 0x21f   :  { %v7184_v30 = vld [vmem:[#allocation69_spill] sm:$0xff]  ;;  %v7186_v56 = vld [vmem:[#allocation71_spill] sm:$0xff]  ;;  %v7187_v55 = vld [vmem:[#allocation72_spill] sm:$0xff] }
 0x220   :  { %v5034_v13 = vadd.f32 %v1257_v10, %v1256_v11  ;;  %v1249_v15 = vsel %vm1248_vm10, %v2878_v59, %v1245_v57  ;;  %v7176_v59 = vld [vmem:[#allocation60_spill] sm:$0xff]  ;;  %v7188_v50 = vld [vmem:[#allocation74_spill] sm:$0xff]  ;;  %v7191_v11 = vld [vmem:[#allocation95_spill] sm:$0xff] }
 0x221   :  { %v1254_v20 = vsel %vm1251_vm11, %v1253_v16, %v1249_v15  ;;  %v7190_v10 = vld [vmem:[#allocation94_spill] sm:$0xff]  ;;  %v7192_v12 = vld [vmem:[#allocation96_spill] sm:$0xff]  ;;  %v7193_v57 = vld [vmem:[#allocation97_spill] sm:$0xff] }
 0x222   :  { %2881 = vtanh.f32 %v5034_v13  ;;  %v7194_v47 = vld [vmem:[#allocation98_spill] sm:$0xff]  ;;  %v7195_v14 = vld [vmem:[#allocation99_spill] sm:$0xff]  ;;  %v7196_v15 = vld [vmem:[#allocation100_spill] sm:$0xff] }
 0x223   :  { %v7197_v16 = vld [vmem:[#allocation101_spill] sm:$0xff] }
 0x228   :  { %v2882_v19 = vpop.eup %2881 }
 0x229   :  { %v1260_v21 = vmul.f32 %v2882_v19, %v1254_v20  ;;  %v7198_v19 = vld [vmem:[#allocation102_spill] sm:$0xff]  ;;  %v7199_v20 = vld [vmem:[#allocation103_spill] sm:$0xff] }
 0x22b   :  { %1357 = vmatmul.f32.vlgmr.msra.gmra.mxu0 %v1260_v21  ;;  %1377 = vmatmul.f32.vlgmr.msra.gmra.mxu1 %v1260_v21 }
 0x22c   :  { %1397 = vmatmul.f32.vlgmr.msra.gmra.mxu2 %v1260_v21  ;;  %1417 = vmatmul.f32.vlgmr.msra.gmra.mxu3 %v1260_v21 }
 0x22d   :  { %1644 = vmatpush.msra.mxu0 %v7148_v22  ;;  %1664 = vmatpush.msra.mxu1 %v7149_v23  ;;  %v7201_v22 = vld [vmem:[#allocation105_spill] sm:$0xff]  ;;  %v7202_v23 = vld [vmem:[#allocation106_spill] sm:$0xff] }
 0x22e   :  { %1684 = vmatpush.msra.mxu2 %v7150_v24  ;;  %1704 = vmatpush.msra.mxu3 %v7151_v27  ;;  %v7203_v24 = vld [vmem:[#allocation107_spill] sm:$0xff]  ;;  %v7204_v27 = vld [vmem:[#allocation108_spill] sm:$0xff] }
 0x22f   :  { %1645 = vmatpush.msra.mxu0 %v7152_v25  ;;  %1665 = vmatpush.msra.mxu1 %v7153_v31  ;;  %v7205_v25 = vld [vmem:[#allocation109_spill] sm:$0xff]  ;;  %v7206_v31 = vld [vmem:[#allocation110_spill] sm:$0xff] }
 0x230   :  { %1685 = vmatpush.msra.mxu2 %v7154_v32  ;;  %1705 = vmatpush.msra.mxu3 %v7155_v48  ;;  %v7207_v32 = vld [vmem:[#allocation111_spill] sm:$0xff]  ;;  %v7208_v48 = vld [vmem:[#allocation112_spill] sm:$0xff] }
 0x231   :  { %1646 = vmatpush.msra.mxu0 %v7156_v34  ;;  %1666 = vmatpush.msra.mxu1 %v7157_v43  ;;  %v7209_v34 = vld [vmem:[#allocation113_spill] sm:$0xff]  ;;  %v7210_v43 = vld [vmem:[#allocation114_spill] sm:$0xff] }
 0x232   :  { %1686 = vmatpush.msra.mxu2 %v7158_v35  ;;  %1706 = vmatpush.msra.mxu3 %v7159_v49  ;;  %v7211_v35 = vld [vmem:[#allocation115_spill] sm:$0xff]  ;;  %v7212_v49 = vld [vmem:[#allocation116_spill] sm:$0xff] }
 0x233   :  { %1513 = vmatmul.f32.vlgmr.msrb.gmra.mxu0 %v1260_v21  ;;  %1533 = vmatmul.f32.vlgmr.msrb.gmra.mxu1 %v1260_v21 }
 0x234   :  { %1553 = vmatmul.f32.vlgmr.msrb.gmra.mxu2 %v1260_v21  ;;  %1573 = vmatmul.f32.vlgmr.msrb.gmra.mxu3 %v1260_v21  ;;  %v7200_v21 = vld [vmem:[#allocation104_spill] sm:$0xff] }
 0x235   :  { %1647 = vmatpush.msra.mxu0 %v7160_v42  ;;  %1667 = vmatpush.msra.mxu1 %v7161_v61  ;;  %v7213_v42 = vld [vmem:[#allocation117_spill] sm:$0xff]  ;;  %v7214_v61 = vld [vmem:[#allocation118_spill] sm:$0xff] }
 0x236   :  { %1687 = vmatpush.msra.mxu2 %v7162_v60  ;;  %1707 = vmatpush.msra.mxu3 %v7163_v0  ;;  %v7215_v60 = vld [vmem:[#allocation119_spill] sm:$0xff]  ;;  %v7216_v0 = vld [vmem:[#allocation120_spill] sm:$0xff] }
 0x237   :  { %1648 = vmatpush.msra.mxu0 %v7164_v44  ;;  %1668 = vmatpush.msra.mxu1 %v7165_v51  ;;  %v7217_v44 = vld [vmem:[#allocation121_spill] sm:$0xff]  ;;  %v7218_v51 = vld [vmem:[#allocation122_spill] sm:$0xff] }
 0x238   :  { %1688 = vmatpush.msra.mxu2 %v7166_v5  ;;  %1708 = vmatpush.msra.mxu3 %v7167_v2  ;;  %v7219_v5 = vld [vmem:[#allocation123_spill] sm:$0xff]  ;;  %v7220_v2 = vld [vmem:[#allocation124_spill] sm:$0xff] }
 0x239   :  { %1649 = vmatpush.msra.mxu0 %v7168_v3  ;;  %1669 = vmatpush.msra.mxu1 %v7169_v4  ;;  %v7221_v3 = vld [vmem:[#allocation125_spill] sm:$0xff]  ;;  %v7222_v4 = vld [vmem:[#allocation126_spill] sm:$0xff] }
 0x23a   :  { %1689 = vmatpush.msra.mxu2 %v7170_v7  ;;  %1709 = vmatpush.msra.mxu3 %v7171_v17  ;;  %v7223_v7 = vld [vmem:[#allocation127_spill] sm:$0xff]  ;;  %v7224_v17 = vld [vmem:[#allocation129_spill] sm:$0xff] }
 0x23b   :  { %1650 = vmatpush.msra.mxu0 %v7172_v26  ;;  %1670 = vmatpush.msra.mxu1 %v7173_v40  ;;  %v7225_v26 = vld [vmem:[#allocation130_spill] sm:$0xff]  ;;  %v7226_v40 = vld [vmem:[#allocation131_spill] sm:$0xff] }
 0x23c   :  { %1690 = vmatpush.msra.mxu2 %v7174_v9  ;;  %1710 = vmatpush.msra.mxu3 %v7175_v28  ;;  %v7227_v9 = vld [vmem:[#allocation132_spill] sm:$0xff]  ;;  %v7228_v28 = vld [vmem:[#allocation133_spill] sm:$0xff] }
 0x23d   :  { %1651 = vmatpush.msra.mxu0 %v4637_v46  ;;  %1671 = vmatpush.msra.mxu1 %v7176_v59  ;;  %v7185_v46 = vld [vmem:[#allocation70_spill] sm:$0xff]  ;;  %v7230_v59 = vld [vmem:[#allocation135_spill] sm:$0xff] }
 0x23e   :  { %1691 = vmatpush.msra.mxu2 %v7177_v62  ;;  %1711 = vmatpush.msra.mxu3 %v7178_v18  ;;  %v7232_v62 = vld [vmem:[#allocation137_spill] sm:$0xff]  ;;  %v7233_v18 = vld [vmem:[#allocation138_spill] sm:$0xff] }
 0x23f   :  { %1652 = vmatpush.msra.mxu0 %v4649_v37  ;;  %1672 = vmatpush.msra.mxu1 %v7179_v63  ;;  %v7189_v37 = vld [vmem:[#allocation93_spill] sm:$0xff]  ;;  %v7234_v63 = vld [vmem:[#allocation139_spill] sm:$0xff] }
 0x240   :  { %1692 = vmatpush.msra.mxu2 %v7180_v54  ;;  %1712 = vmatpush.msra.mxu3 %v7181_v29  ;;  %v7235_v54 = vld [vmem:[#allocation140_spill] sm:$0xff]  ;;  %v7236_v29 = vld [vmem:[#allocation141_spill] sm:$0xff] }
 0x241   :  { %1653 = vmatpush.msra.mxu0 %v7182_v53  ;;  %1673 = vmatpush.msra.mxu1 %v7183_v52  ;;  %v7237_v53 = vld [vmem:[#allocation142_spill] sm:$0xff]  ;;  %v7238_v52 = vld [vmem:[#allocation143_spill] sm:$0xff] }
 0x242   :  { %1693 = vmatpush.msra.mxu2 %v7184_v30  ;;  %1713 = vmatpush.msra.mxu3 %v7185_v46  ;;  %v7239_v30 = vld [vmem:[#allocation144_spill] sm:$0xff]  ;;  %v7240_v46 = vld [vmem:[#allocation146_spill] sm:$0xff] }
 0x243   :  { %1654 = vmatpush.msra.mxu0 %v7186_v56  ;;  %1674 = vmatpush.msra.mxu1 %v7187_v55  ;;  %v7241_v56 = vld [vmem:[#allocation147_spill] sm:$0xff]  ;;  %v7242_v55 = vld [vmem:[#allocation148_spill] sm:$0xff] }
 0x244   :  { %1694 = vmatpush.msra.mxu2 %v7188_v50  ;;  %1714 = vmatpush.msra.mxu3 %v7189_v37  ;;  %v7243_v50 = vld [vmem:[#allocation149_spill] sm:$0xff]  ;;  %v7244_v37 = vld [vmem:[#allocation150_spill] sm:$0xff] }
 0x245   :  { %1655 = vmatpush.msra.mxu0 %v7190_v10  ;;  %1675 = vmatpush.msra.mxu1 %v7191_v11  ;;  %v7245_v10 = vld [vmem:[#allocation151_spill] sm:$0xff]  ;;  %v7246_v11 = vld [vmem:[#allocation152_spill] sm:$0xff] }
 0x246   :  { %1695 = vmatpush.msra.mxu2 %v7192_v12  ;;  %1715 = vmatpush.msra.mxu3 %v7193_v57  ;;  %v7247_v12 = vld [vmem:[#allocation153_spill] sm:$0xff]  ;;  %v7248_v57 = vld [vmem:[#allocation154_spill] sm:$0xff] }
 0x247   :  { %1656 = vmatpush.msra.mxu0 %v7194_v47  ;;  %1676 = vmatpush.msra.mxu1 %v7195_v14  ;;  %v7249_v47 = vld [vmem:[#allocation155_spill] sm:$0xff]  ;;  %v7250_v14 = vld [vmem:[#allocation156_spill] sm:$0xff] }
 0x248   :  { %1696 = vmatpush.msra.mxu2 %v7196_v15  ;;  %1716 = vmatpush.msra.mxu3 %v7197_v16  ;;  %v7251_v15 = vld [vmem:[#allocation157_spill] sm:$0xff]  ;;  %v7252_v16 = vld [vmem:[#allocation158_spill] sm:$0xff] }
 0x249   :  { %1657 = vmatpush.msra.mxu0 %v7198_v19  ;;  %1677 = vmatpush.msra.mxu1 %v7199_v20  ;;  %v7253_v19 = vld [vmem:[#allocation159_spill] sm:$0xff]  ;;  %v7254_v20 = vld [vmem:[#allocation160_spill] sm:$0xff] }
 0x24a   :  { %1697 = vmatpush.msra.mxu2 %v7200_v21  ;;  %1717 = vmatpush.msra.mxu3 %v7201_v22  ;;  %v7255_v21 = vld [vmem:[#allocation161_spill] sm:$0xff]  ;;  %v7256_v22 = vld [vmem:[#allocation162_spill] sm:$0xff] }
 0x24b   :  { %1658 = vmatpush.msra.mxu0 %v7202_v23  ;;  %1678 = vmatpush.msra.mxu1 %v7203_v24  ;;  %v7257_v23 = vld [vmem:[#allocation163_spill] sm:$0xff]  ;;  %v7258_v24 = vld [vmem:[#allocation164_spill] sm:$0xff] }
 0x24c   :  { %1698 = vmatpush.msra.mxu2 %v7204_v27  ;;  %1718 = vmatpush.msra.mxu3 %v7205_v25  ;;  %v7259_v27 = vld [vmem:[#allocation165_spill] sm:$0xff]  ;;  %v7260_v25 = vld [vmem:[#allocation166_spill] sm:$0xff] }
 0x24d   :  { %1659 = vmatpush.msra.mxu0 %v7206_v31  ;;  %1679 = vmatpush.msra.mxu1 %v7207_v32  ;;  %v7261_v31 = vld [vmem:[#allocation167_spill] sm:$0xff]  ;;  %v7262_v32 = vld [vmem:[#allocation168_spill] sm:$0xff] }
 0x24e   :  { %1699 = vmatpush.msra.mxu2 %v7208_v48  ;;  %1719 = vmatpush.msra.mxu3 %v7209_v34  ;;  %v7263_v48 = vld [vmem:[#allocation169_spill] sm:$0xff]  ;;  %v7264_v34 = vld [vmem:[#allocation170_spill] sm:$0xff] }
 0x24f   :  { %1724 = vmatpush.msrb.mxu0 %v7210_v43  ;;  %1744 = vmatpush.msrb.mxu1 %v7211_v35  ;;  %v7265_v43 = vld [vmem:[#allocation171_spill] sm:$0xff]  ;;  %v1278_v35 = vpop.f32.mrf.mxu0 }
 0x250   :  { %1764 = vmatpush.msrb.mxu2 %v7212_v49  ;;  %1784 = vmatpush.msrb.mxu3 %v7213_v42  ;;  %v1298_v49 = vpop.f32.mrf.mxu1  ;;  %v304_v42 = vld [vmem:[%s6241_s6] sm:$0xf] }
 0x251   :  { %1725 = vmatpush.msrb.mxu0 %v7214_v61  ;;  %1745 = vmatpush.msrb.mxu1 %v7215_v60  ;;  %v1338_v61 = vpop.f32.mrf.mxu3  ;;  %v5168_v60 = vperm.slane %v304_v42, 0 }
 0x252   :  { %1765 = vmatpush.msrb.mxu2 %v7216_v0  ;;  %1785 = vmatpush.msrb.mxu3 %v7217_v44 }
 0x253   :  { %1726 = vmatpush.msrb.mxu0 %v7218_v51  ;;  %1746 = vmatpush.msrb.mxu1 %v7219_v5  ;;  %7266 = vst [vmem:[#allocation86_spill] sm:$0xff] %v5168_v60 }
 0x254   :  { %1766 = vmatpush.msrb.mxu2 %v4784_v6  ;;  %1786 = vmatpush.msrb.mxu3 %v7220_v2  ;;  %v7229_v6 = vld [vmem:[#allocation134_spill] sm:$0xff]  ;;  %v5174_v2 = vperm.slane %v304_v42, 3 }
 0x255   :  { %1727 = vmatpush.msrb.mxu0 %v4788_v1  ;;  %1747 = vmatpush.msrb.mxu1 %v7221_v3  ;;  %v7231_v1 = vld [vmem:[#allocation136_spill] sm:$0xff] }
 0x256   :  { %1767 = vmatpush.msrb.mxu2 %v7222_v4  ;;  %1787 = vmatpush.msrb.mxu3 %v7223_v7  ;;  %7268 = vst [vmem:[#allocation91_spill] sm:$0xff] %v5174_v2 }
 0x257   :  { %1728 = vmatpush.msrb.mxu0 %v7224_v17  ;;  %1748 = vmatpush.msrb.mxu1 %v7225_v26  ;;  %v7269_v26 = vld [vmem:[#allocation88_spill] sm:$0xff] }
 0x258   :  { %1768 = vmatpush.msrb.mxu2 %v7226_v40  ;;  %1788 = vmatpush.msrb.mxu3 %v7227_v9  ;;  %v7270_v9 = vld [vmem:[#allocation89_spill] sm:$0xff] }
 0x259   :  { %1729 = vmatpush.msrb.mxu0 %v7228_v28  ;;  %1749 = vmatpush.msrb.mxu1 %v7229_v6 }
 0x25a   :  { %1769 = vmatpush.msrb.mxu2 %v7230_v59  ;;  %1789 = vmatpush.msrb.mxu3 %v7231_v1 }
 0x25b   :  { %1730 = vmatpush.msrb.mxu0 %v7232_v62  ;;  %1750 = vmatpush.msrb.mxu1 %v7233_v18 }
 0x25c   :  { %1770 = vmatpush.msrb.mxu2 %v7234_v63  ;;  %1790 = vmatpush.msrb.mxu3 %v7235_v54 }
 0x25d   :  { %1731 = vmatpush.msrb.mxu0 %v7236_v29  ;;  %1751 = vmatpush.msrb.mxu1 %v7237_v53 }
 0x25e   :  { %1771 = vmatpush.msrb.mxu2 %v7238_v52  ;;  %1791 = vmatpush.msrb.mxu3 %v7239_v30 }
 0x25f   :  { %1732 = vmatpush.msrb.mxu0 %v7240_v46  ;;  %1752 = vmatpush.msrb.mxu1 %v7241_v56  ;;  %v5179_v46 = vperm.slane %v304_v42, 2  ;;  %v7272_v56 = vld [vmem:[#allocation40_spill] sm:$0xff] }
 0x260   :  { %1772 = vmatpush.msrb.mxu2 %v7242_v55  ;;  %1792 = vmatpush.msrb.mxu3 %v7243_v50 }
 0x261   :  { %1733 = vmatpush.msrb.mxu0 %v7244_v37  ;;  %1753 = vmatpush.msrb.mxu1 %v7245_v10  ;;  %7271 = vst [vmem:[#allocation19_spill] sm:$0xff] %v5179_v46 }
 0x262   :  { %1773 = vmatpush.msrb.mxu2 %v7246_v11  ;;  %1793 = vmatpush.msrb.mxu3 %v7247_v12 }
 0x263   :  { %1734 = vmatpush.msrb.mxu0 %v7248_v57  ;;  %1754 = vmatpush.msrb.mxu1 %v7249_v47 }
 0x264   :  { %1774 = vmatpush.msrb.mxu2 %v7250_v14  ;;  %1794 = vmatpush.msrb.mxu3 %v7251_v15 }
 0x265   :  { %1735 = vmatpush.msrb.mxu0 %v7252_v16  ;;  %1755 = vmatpush.msrb.mxu1 %v7253_v19 }
 0x266   :  { %1775 = vmatpush.msrb.mxu2 %v7254_v20  ;;  %1795 = vmatpush.msrb.mxu3 %v7255_v21 }
 0x267   :  { %1736 = vmatpush.msrb.mxu0 %v7256_v22  ;;  %1756 = vmatpush.msrb.mxu1 %v7257_v23 }
 0x268   :  { %1776 = vmatpush.msrb.mxu2 %v7258_v24  ;;  %1796 = vmatpush.msrb.mxu3 %v7259_v27 }
 0x269   :  { %1737 = vmatpush.msrb.mxu0 %v7260_v25  ;;  %1757 = vmatpush.msrb.mxu1 %v7261_v31  ;;  %v7273_v25 = vld [vmem:[#allocation22_spill] sm:$0xff] }
 0x26a   :  { %1777 = vmatpush.msrb.mxu2 %v7262_v32  ;;  %1797 = vmatpush.msrb.mxu3 %v7263_v48 }
 0x26b   :  { %1738 = vmatpush.msrb.mxu0 %v7264_v34  ;;  %1758 = vmatpush.msrb.mxu1 %v7265_v43 }
 0x26c   :  { %1778 = vmatpush.msrb.mxu2 %v4934_v33  ;;  %1798 = vmatpush.msrb.mxu3 %v4938_v41  ;;  %v5170_v33 = vperm.slane %v304_v42, 1 }
 0x26d   :  { %1739 = vmatpush.msrb.mxu0 %v4943_v36  ;;  %1759 = vmatpush.msrb.mxu1 %v4945_v58  ;;  %v1318_v36 = vpop.f32.mrf.mxu2 }
 0x26e   :  { %1779 = vmatpush.msrb.mxu2 %v4947_v38  ;;  %1799 = vmatpush.msrb.mxu3 %v4951_v39  ;;  %7267 = vst [vmem:[#allocation90_spill] sm:$0xff] %v5170_v33 }
 0x2a8   :  { %v1358_v41 = vpop.f32.mrf.mxu0  ;;  %v1378_v0 = vpop.f32.mrf.mxu1 }
 0x2a9   :  { %v1359_v44 = vadd.f32 %v1358_v41, %v1278_v35  ;;  %v1379_v58 = vadd.f32 %v1378_v0, %v1298_v49  ;;  %v5416_v41 = vld [vmem:[#allocation5 + $0x70] sm:$0xff] }
 0x2aa   :  { %7298 = vst [vmem:[#allocation35_spill] sm:$0xff] %v5416_v41 }
 0x2ab   :  { %v1430_v38 = vadd.f32 %v5168_v60, %v1359_v44  ;;  %v1431_v39 = vadd.f32 %v5170_v33, %v1379_v58 }
 0x2ad   :  { %v2828_v51 = vmul.f32 -1.442695, %v1430_v38  ;;  %v2829_v5 = vmul.f32 -1.442695, %v1431_v39 }
 0x2af   :  { %2883 = vpow2.f32 %v2828_v51  ;;  %v1418_v3 = vpop.f32.mrf.mxu3  ;;  %v1398_v59 = vpop.f32.mrf.mxu2 }
 0x2b0   :  { %2885 = vpow2.f32 %v2829_v5  ;;  %v1419_v4 = vadd.f32 %v1418_v3, %v1338_v61  ;;  %v1514_v7 = vpop.f32.mrf.mxu0  ;;  %v1534_v17 = vpop.f32.mrf.mxu1  ;;  %v1399_v30 = vadd.f32 %v1398_v59, %v1318_v36 }
 0x2b1   :  { %v1577_v40 = vadd.f32 %v1514_v7, %v7269_v26  ;;  %v1578_v28 = vadd.f32 %v1534_v17, %v7270_v9 }
 0x2b2   :  { %v1433_v6 = vadd.f32 %v5174_v2, %v1419_v4  ;;  %v1432_v12 = vadd.f32 %v5179_v46, %v1399_v30 }
 0x2b3   :  { %v2831_v1 = vmul.f32 -1.442695, %v1577_v40  ;;  %v2832_v62 = vmul.f32 -1.442695, %v1578_v28 }
 0x2b4   :  { %v2830_v18 = vmul.f32 -1.442695, %v1433_v6 }
 0x2b5   :  { %v2884_v63 = vpop.eup %2883  ;;  %2887 = vpow2.f32 %v2831_v1 }
 0x2b6   :  { %v2886_v54 = vpop.eup %2885  ;;  %v1437_v29 = vadd.f32 1.0, %v2884_v63  ;;  %2889 = vpow2.f32 %v2830_v18 }
 0x2b7   :  { %v1456_v53 = vadd.f32 1.0, %v2886_v54  ;;  %2891 = vpow2.f32 %v2832_v62  ;;  %v1574_v52 = vpop.f32.mrf.mxu3  ;;  %v1554_v47 = vpop.f32.mrf.mxu2 }
 0x2b8   :  { %2893 = vrcp.f32 %v1437_v29  ;;  %v1580_v55 = vadd.f32 %v1574_v52, %v7272_v56  ;;  %v1447_v15 = vand.u32 2147483647, %v1437_v29  ;;  %v1449_v23 = vand.u32 2147483648, %v1437_v29 }
 0x2b9   :  { %2895 = vrcp.f32 %v1456_v53  ;;  %v1468_v22 = vand.u32 2147483648, %v1456_v53  ;;  %v1466_v27 = vand.u32 2147483647, %v1456_v53  ;;  %v1579_v31 = vadd.f32 %v1554_v47, %v7273_v25 }
 0x2ba   :  { %v2833_v19 = vmul.f32 -1.442695, %v1580_v55  ;;  %vm1443_vm12 = vweird.f32 %v1437_v29  ;;  %vm1462_vm13 = vweird.f32 %v1456_v53  ;;  %vm5193_vm14 = vcmp.eq.f32.partialorder %v1447_v15, 8.507059e+37 }
 0x2bb   :  { %v2888_v50 = vpop.eup %2887  ;;  %v1469_v43 = vor.u32 1.1754944e-38, %v1468_v22  ;;  %v1450_v49 = vor.u32 1.1754944e-38, %v1449_v23  ;;  %vm5197_vm1 = vcmp.eq.f32.partialorder %v1466_v27, 8.507059e+37 }
 0x2bc   :  { %v2890_v37 = vpop.eup %2889  ;;  %v5182_v10 = vadd.f32 1.0, %v2888_v50 }
 0x2bd   :  { %v2892_v11 = vpop.eup %2891  ;;  %v5185_v57 = vadd.f32 1.0, %v2890_v37 }
 0x2be   :  { %v2894_v14 = vpop.eup %2893  ;;  %2897 = vrcp.f32 %v5182_v10  ;;  %v5188_v16 = vadd.f32 1.0, %v2892_v11  ;;  %vm1590_vm2 = vweird.f32 %v5182_v10  ;;  %v1594_v58 = vand.u32 2147483647, %v5182_v10 }
 0x2bf   :  { %v2896_v20 = vpop.eup %2895  ;;  %v1439_v21 = vmul.f32 %v2894_v14, %v1437_v29  ;;  %2899 = vrcp.f32 %v5185_v57  ;;  %vm1444_vm15 = vweird.f32 %v2894_v14  ;;  %v1596_v5 = vand.u32 2147483648, %v5182_v10  ;;  %v5326_v29 = vld [vmem:[#allocation5 + $0x140] sm:$0xff] }
 0x2c0   :  { %v1458_v24 = vmul.f32 %v2896_v20, %v1456_v53  ;;  %2901 = vrcp.f32 %v5188_v16  ;;  %vm1463_vm0 = vweird.f32 %v2896_v20  ;;  %vm1445_vm3 = vmor %vm1443_vm12, %vm1444_vm15  ;;  %vm1609_vm4 = vweird.f32 %v5188_v16 }
 0x2c1   :  { %v1440_v32 = vsub.f32 1.0, %v1439_v21  ;;  %2903 = vtanh.f32 %v1432_v12  ;;  %vm1464_vm5 = vmor %vm1462_vm13, %vm1463_vm0  ;;  %v1615_v26 = vand.u32 2147483648, %v5188_v16  ;;  %vm5219_vm7 = vcmp.eq.f32.partialorder %v1594_v58, 8.507059e+37  ;;  %v5272_v58 = vld [vmem:[#allocation5 + $0x1c0] sm:$0xff] }
 0x2c2   :  { %v1459_v48 = vsub.f32 1.0, %v1458_v24  ;;  %2905 = vpow2.f32 %v2833_v19  ;;  %v1613_v55 = vand.u32 2147483647, %v5188_v16  ;;  %v1597_v37 = vor.u32 1.1754944e-38, %v1596_v5  ;;  %v5278_v5 = vld [vmem:[#allocation5 + $0x1d0] sm:$0xff] }
 0x2c3   :  { %v1441_v35 = vmul.f32 %v2894_v14, %v1440_v32  ;;  %2907 = vtanh.f32 %v1579_v31  ;;  %vm1482_vm10 = vweird.f32 %v5185_v57  ;;  %v1488_v15 = vand.u32 2147483648, %v5185_v57 }
 0x2c4   :  { %v2898_v42 = vpop.eup %2897  ;;  %v1460_v61 = vmul.f32 %v2896_v20, %v1459_v48  ;;  %vm1614_vm13 = vcmp.eq.f32.partialorder %v1613_v55, 8.507059e+37  ;;  %v1486_v21 = vand.u32 2147483647, %v5185_v57  ;;  %v5341_v55 = vld [vmem:[#allocation5 + $0x128] sm:$0xff] }
 0x2c5   :  { %v5201_v0 = vpop.eup %2899  ;;  %v1442_v36 = vadd.f32 %v2894_v14, %v1441_v35  ;;  %v1586_v44 = vmul.f32 %v2898_v42, %v5182_v10  ;;  %vm1591_vm6 = vweird.f32 %v2898_v42  ;;  %v1489_v27 = vor.u32 1.1754944e-38, %v1488_v15  ;;  %v5362_v15 = vld [vmem:[#allocation5 + $0xe0] sm:$0xff] }
 0x2c6   :  { %v2902_v38 = vpop.eup %2901  ;;  %v1461_v39 = vadd.f32 %v2896_v20, %v1460_v61  ;;  %v1478_v51 = vmul.f32 %v5201_v0, %v5185_v57  ;;  %vm1592_vm9 = vmor %vm1590_vm2, %vm1591_vm6  ;;  %vm1483_vm11 = vweird.f32 %v5201_v0  ;;  %vm1487_vm15 = vcmp.eq.f32.partialorder %v1486_v21, 8.507059e+37  ;;  %v5257_v61 = vld [vmem:[#allocation5 + $0x1e8] sm:$0xff]  ;;  %v5371_v21 = vld [vmem:[#allocation5 + $0xf8] sm:$0xff] }
 0x2c7   :  { %v2904_v3 = vpop.eup %2903  ;;  %v1446_v4 = vsel %vm1445_vm3, %v2894_v14, %v1442_v36  ;;  %v1587_v7 = vsub.f32 1.0, %v1586_v44  ;;  %v1605_v17 = vmul.f32 %v2902_v38, %v5188_v16  ;;  %vm1610_vm8 = vweird.f32 %v2902_v38  ;;  %v5267_v36 = vld [vmem:[#allocation5 + $0x1f8] sm:$0xff]  ;;  %7283 = vst [vmem:[#allocation20_spill] sm:$0xff] %v5371_v21 }
 0x2c8   :  { %v2906_v40 = vpop.eup %2905  ;;  %v1451_v9 = vsel %vm5193_vm14, %v1450_v49, %v1446_v4  ;;  %v1465_v28 = vsel %vm1464_vm5, %v2896_v20, %v1461_v39  ;;  %v1479_v6 = vsub.f32 1.0, %v1478_v51  ;;  %vm1611_vm12 = vmor %vm1609_vm4, %vm1610_vm8  ;;  %v1616_v14 = vor.u32 1.1754944e-38, %v1615_v26  ;;  %v5284_v4 = vld [vmem:[#allocation5 + $0x1a0] sm:$0xff]  ;;  %v5290_v26 = vld [vmem:[#allocation5 + $0x1b0] sm:$0xff] }
 0x2c9   :  { %v1470_v59 = vsel %vm5197_vm1, %v1469_v43, %v1465_v28  ;;  %v1493_v1 = vmul.f32 %v2904_v3, %v1451_v9  ;;  %v1606_v62 = vsub.f32 1.0, %v1605_v17  ;;  %v1588_v18 = vmul.f32 %v2898_v42, %v1587_v7  ;;  %v2908_v63 = vpop.eup %2907  ;;  %vm1484_vm14 = vmor %vm1482_vm10, %vm1483_vm11  ;;  %v5281_v3 = vld [vmem:[#allocation5 + $0x1d8] sm:$0xff]  ;;  %v5287_v7 = vld [vmem:[#allocation5 + $0x1a8] sm:$0xff] }
 0x2ca   :  { %v1492_v54 = vmul.f32 0.0, %v1470_v59  ;;  %v5223_v53 = vadd.f32 1.0, %v2906_v40  ;;  %v1480_v52 = vmul.f32 %v5201_v0, %v1479_v6  ;;  %v5293_v40 = vld [vmem:[#allocation5 + $0x1b8] sm:$0xff]  ;;  %v5298_v28 = vld [vmem:[#allocation5 + $0x180] sm:$0xff]  ;;  %v5301_v6 = vld [vmem:[#allocation5 + $0x188] sm:$0xff] }
 0x2cb   :  { %v1607_v30 = vmul.f32 %v2902_v38, %v1606_v62  ;;  %v1589_v56 = vadd.f32 %v2898_v42, %v1588_v18  ;;  %v5304_v59 = vld [vmem:[#allocation5 + $0x190] sm:$0xff]  ;;  %v5314_v62 = vld [vmem:[#allocation5 + $0x160] sm:$0xff]  ;;  %v5317_v18 = vld [vmem:[#allocation5 + $0x168] sm:$0xff] }
 0x2cc   :  { %v5227_v50 = vadd.f32 %v1493_v1, %v1492_v54  ;;  %2909 = vrcp.f32 %v5223_v53  ;;  %v1481_v47 = vadd.f32 %v5201_v0, %v1480_v52  ;;  %vm1629_vm1 = vweird.f32 %v5223_v53  ;;  %v5307_v1 = vld [vmem:[#allocation5 + $0x198] sm:$0xff]  ;;  %v5332_v52 = vld [vmem:[#allocation5 + $0x150] sm:$0xff] }
 0x2cd   :  { %v1593_v11 = vsel %vm1592_vm9, %v2898_v42, %v1589_v56  ;;  %v1608_v12 = vadd.f32 %v2902_v38, %v1607_v30  ;;  %v1633_v49 = vand.u32 2147483647, %v5223_v53  ;;  %v5254_v42 = vld [vmem:[#allocation5 + $0x1e0] sm:$0xff]  ;;  %v5323_v54 = vld [vmem:[#allocation5 + $0x178] sm:$0xff] }
 0x2ce   :  { %2911 = vtanh.f32 %v5227_v50  ;;  %v1598_v10 = vsel %vm5219_vm7, %v1597_v37, %v1593_v11  ;;  %v1485_v16 = vsel %vm1484_vm14, %v5201_v0, %v1481_v47  ;;  %v5264_v0 = vld [vmem:[#allocation5 + $0x1f0] sm:$0xff]  ;;  %v5335_v30 = vld [vmem:[#allocation5 + $0x158] sm:$0xff]  ;;  %v5338_v56 = vld [vmem:[#allocation5 + $0x120] sm:$0xff] }
 0x2cf   :  { %v1612_v19 = vsel %vm1611_vm12, %v2902_v38, %v1608_v12  ;;  %v1640_v20 = vmul.f32 %v2908_v63, %v1598_v10  ;;  %v1490_v48 = vsel %vm1487_vm15, %v1489_v27, %v1485_v16  ;;  %v5275_v38 = vld [vmem:[#allocation5 + $0x1c8] sm:$0xff]  ;;  %vm1634_vm3 = vcmp.eq.f32.partialorder %v1633_v49, 8.507059e+37  ;;  %v5320_v63 = vld [vmem:[#allocation5 + $0x170] sm:$0xff]  ;;  %v5347_v11 = vld [vmem:[#allocation5 + $0x138] sm:$0xff] }
 0x2d0   :  { %v1617_v22 = vsel %vm1614_vm13, %v1616_v14, %v1612_v19  ;;  %v5344_v37 = vld [vmem:[#allocation5 + $0x130] sm:$0xff]  ;;  %v5350_v12 = vld [vmem:[#allocation5 + $0x100] sm:$0xff]  ;;  %v5353_v47 = vld [vmem:[#allocation5 + $0x108] sm:$0xff] }
 0x2d1   :  { %v1639_v23 = vmul.f32 %v1617_v22, %v5034_v13  ;;  %v1635_v13 = vand.u32 2147483648, %v5223_v53  ;;  %v5356_v14 = vld [vmem:[#allocation5 + $0x110] sm:$0xff]  ;;  %v5359_v10 = vld [vmem:[#allocation5 + $0x118] sm:$0xff]  ;;  %v5365_v19 = vld [vmem:[#allocation5 + $0xe8] sm:$0xff] }
 0x2d2   :  { %v2910_v24 = vpop.eup %2909  ;;  %v5374_v22 = vld [vmem:[#allocation5 + $0xc0] sm:$0xff]  ;;  %v5380_v16 = vld [vmem:[#allocation5 + $0xd0] sm:$0xff]  ;;  %v5413_v49 = vld [vmem:[#allocation5 + $0x68] sm:$0xff] }
 0x2d3   :  { %v5247_v25 = vadd.f32 %v1640_v20, %v1639_v23  ;;  %v1625_v31 = vmul.f32 %v2910_v24, %v5223_v53  ;;  %vm1630_vm0 = vweird.f32 %v2910_v24  ;;  %v1636_v51 = vor.u32 1.1754944e-38, %v1635_v13  ;;  %v5329_v53 = vld [vmem:[#allocation5 + $0x148] sm:$0xff]  ;;  %v5368_v20 = vld [vmem:[#allocation5 + $0xf0] sm:$0xff]  ;;  %7284 = vst [vmem:[#allocation21_spill] sm:$0xff] %v5374_v22  ;;  %v5386_v27 = vld [vmem:[#allocation5 + $0xa0] sm:$0xff] }
 0x2d4   :  { %v2912_v32 = vpop.eup %2911  ;;  %vm5260_vm2 = vmor %vm1629_vm1, %vm1630_vm0  ;;  %7282 = vst [vmem:[#allocation92_spill] sm:$0xff] %v5368_v20  ;;  %v5377_v23 = vld [vmem:[#allocation5 + $0xc8] sm:$0xff]  ;;  %v5407_v13 = vld [vmem:[#allocation5 + $0x98] sm:$0xff] }
 0x2d5   :  { %v1626_v34 = vsub.f32 1.0, %v1625_v31  ;;  %v1496_v43 = vmul.f32 %v2912_v32, %v1490_v48  ;;  %2913 = vtanh.f32 %v5247_v25  ;;  %7285 = vst [vmem:[#allocation23_spill] sm:$0xff] %v5377_v23  ;;  %v5389_v31 = vld [vmem:[#allocation5 + $0xa8] sm:$0xff]  ;;  %v5392_v32 = vld [vmem:[#allocation5 + $0xb0] sm:$0xff]  ;;  %v5395_v48 = vld [vmem:[#allocation5 + $0xb8] sm:$0xff] }
 0x2d6   :  { %7286 = vst [vmem:[#allocation24_spill] sm:$0xff] %v5380_v16 }
 0x2d7   :  { %v1627_v35 = vmul.f32 %v2910_v24, %v1626_v34  ;;  %1660 = vmatmul.f32.vlgmr.msra.gmra.mxu0 %v1496_v43  ;;  %1680 = vmatmul.f32.vlgmr.msra.gmra.mxu1 %v1496_v43  ;;  %7288 = vst [vmem:[#allocation26_spill] sm:$0xff] %v5386_v27  ;;  %v5398_v34 = vld [vmem:[#allocation5 + $0x80] sm:$0xff] }
 0x2d8   :  { %1700 = vmatmul.f32.vlgmr.msra.gmra.mxu2 %v1496_v43  ;;  %1720 = vmatmul.f32.vlgmr.msra.gmra.mxu3 %v1496_v43  ;;  %7289 = vst [vmem:[#allocation27_spill] sm:$0xff] %v5389_v31  ;;  %v5401_v43 = vld [vmem:[#allocation5 + $0x88] sm:$0xff] }
 0x2d9   :  { %v1628_v57 = vadd.f32 %v2910_v24, %v1627_v35  ;;  %1871 = vmatpush.msra.mxu0 %v5254_v42  ;;  %1891 = vmatpush.msra.mxu1 %v5257_v61  ;;  %7290 = vst [vmem:[#allocation28_spill] sm:$0xff] %v5392_v32  ;;  %v5404_v35 = vld [vmem:[#allocation5 + $0x90] sm:$0xff] }
 0x2da   :  { %1911 = vmatpush.msra.mxu2 %v5264_v0  ;;  %1931 = vmatpush.msra.mxu3 %v5267_v36  ;;  %7291 = vst [vmem:[#allocation29_spill] sm:$0xff] %v5395_v48 }
 0x2db   :  { %v1632_v44 = vsel %vm5260_vm2, %v2910_v24, %v1628_v57  ;;  %1872 = vmatpush.msra.mxu0 %v5272_v58  ;;  %1892 = vmatpush.msra.mxu1 %v5275_v38  ;;  %v2914_v39 = vpop.eup %2913  ;;  %v5383_v24 = vld [vmem:[#allocation5 + $0xd8] sm:$0xff]  ;;  %7292 = vst [vmem:[#allocation30_spill] sm:$0xff] %v5398_v34  ;;  %v5410_v57 = vld [vmem:[#allocation5 + $0x60] sm:$0xff] }
 0x2dc   :  { %1912 = vmatpush.msra.mxu2 %v5278_v5  ;;  %1932 = vmatpush.msra.mxu3 %v5281_v3  ;;  %v1637_v17 = vsel %vm1634_vm3, %v1636_v51, %v1632_v44  ;;  %7287 = vst [vmem:[#allocation25_spill] sm:$0xff] %v5383_v24  ;;  %v5419_v44 = vld [vmem:[#allocation5 + $0x78] sm:$0xff]  ;;  %v5425_v51 = vld [vmem:[#allocation5 + $0x48] sm:$0xff] }
 0x2dd   :  { %1873 = vmatpush.msra.mxu0 %v5284_v4  ;;  %1893 = vmatpush.msra.mxu1 %v5287_v7  ;;  %v5296_v9 = vmul.f32 %v2914_v39, %v1637_v17  ;;  %7293 = vst [vmem:[#allocation87_spill] sm:$0xff] %v5401_v43  ;;  %v5422_v39 = vld [vmem:[#allocation5 + $0x40] sm:$0xff]  ;;  %v5428_v17 = vld [vmem:[#allocation5 + $0x50] sm:$0xff] }
 0x2de   :  { %1913 = vmatpush.msra.mxu2 %v5290_v26  ;;  %1933 = vmatpush.msra.mxu3 %v5293_v40  ;;  %7294 = vst [vmem:[#allocation31_spill] sm:$0xff] %v5404_v35 }
 0x2df   :  { %1874 = vmatpush.msra.mxu0 %v5298_v28  ;;  %1894 = vmatpush.msra.mxu1 %v5301_v6  ;;  %7295 = vst [vmem:[#allocation32_spill] sm:$0xff] %v5407_v13 }
 0x2e0   :  { %1914 = vmatpush.msra.mxu2 %v5304_v59  ;;  %1934 = vmatpush.msra.mxu3 %v5307_v1  ;;  %7296 = vst [vmem:[#allocation33_spill] sm:$0xff] %v5410_v57 }
 0x2e1   :  { %1740 = vmatmul.f32.vlgmr.msrb.gmra.mxu0 %v5296_v9  ;;  %1760 = vmatmul.f32.vlgmr.msrb.gmra.mxu1 %v5296_v9  ;;  %7297 = vst [vmem:[#allocation34_spill] sm:$0xff] %v5413_v49 }
 0x2e2   :  { %1780 = vmatmul.f32.vlgmr.msrb.gmra.mxu2 %v5296_v9  ;;  %1800 = vmatmul.f32.vlgmr.msrb.gmra.mxu3 %v5296_v9  ;;  %7299 = vst [vmem:[#allocation36_spill] sm:$0xff] %v5419_v44 }
 0x2e3   :  { %1875 = vmatpush.msra.mxu0 %v5314_v62  ;;  %1895 = vmatpush.msra.mxu1 %v5317_v18  ;;  %7300 = vst [vmem:[#allocation37_spill] sm:$0xff] %v5422_v39 }
 0x2e4   :  { %1915 = vmatpush.msra.mxu2 %v5320_v63  ;;  %1935 = vmatpush.msra.mxu3 %v5323_v54  ;;  %7301 = vst [vmem:[#allocation38_spill] sm:$0xff] %v5425_v51 }
 0x2e5   :  { %1876 = vmatpush.msra.mxu0 %v5326_v29  ;;  %1896 = vmatpush.msra.mxu1 %v5329_v53  ;;  %7302 = vst [vmem:[#allocation42_spill] sm:$0xff] %v5428_v17 }
 0x2e6   :  { %1916 = vmatpush.msra.mxu2 %v5332_v52  ;;  %1936 = vmatpush.msra.mxu3 %v5335_v30 }
 0x2e7   :  { %1877 = vmatpush.msra.mxu0 %v5338_v56  ;;  %1897 = vmatpush.msra.mxu1 %v5341_v55 }
 0x2e8   :  { %1917 = vmatpush.msra.mxu2 %v5344_v37  ;;  %1937 = vmatpush.msra.mxu3 %v5347_v11 }
 0x2e9   :  { %1878 = vmatpush.msra.mxu0 %v5350_v12  ;;  %1898 = vmatpush.msra.mxu1 %v5353_v47 }
 0x2ea   :  { %1918 = vmatpush.msra.mxu2 %v5356_v14  ;;  %1938 = vmatpush.msra.mxu3 %v5359_v10 }
 0x2eb   :  { %1879 = vmatpush.msra.mxu0 %v5362_v15  ;;  %1899 = vmatpush.msra.mxu1 %v5365_v19 }
 0x2ec   :  { %1919 = vmatpush.msra.mxu2 %v5368_v20  ;;  %1939 = vmatpush.msra.mxu3 %v5371_v21 }
 0x2ed   :  { %1880 = vmatpush.msra.mxu0 %v5374_v22  ;;  %1900 = vmatpush.msra.mxu1 %v5377_v23 }
 0x2ee   :  { %1920 = vmatpush.msra.mxu2 %v5380_v16  ;;  %1940 = vmatpush.msra.mxu3 %v5383_v24 }
 0x2ef   :  { %1881 = vmatpush.msra.mxu0 %v5386_v27  ;;  %1901 = vmatpush.msra.mxu1 %v5389_v31 }
 0x2f0   :  { %1921 = vmatpush.msra.mxu2 %v5392_v32  ;;  %1941 = vmatpush.msra.mxu3 %v5395_v48 }
 0x2f1   :  { %1882 = vmatpush.msra.mxu0 %v5398_v34  ;;  %1902 = vmatpush.msra.mxu1 %v5401_v43 }
 0x2f2   :  { %1922 = vmatpush.msra.mxu2 %v5404_v35  ;;  %1942 = vmatpush.msra.mxu3 %v5407_v13 }
 0x2f3   :  { %1883 = vmatpush.msra.mxu0 %v5410_v57  ;;  %1903 = vmatpush.msra.mxu1 %v5413_v49 }
 0x2f4   :  { %1923 = vmatpush.msra.mxu2 %v5416_v41  ;;  %1943 = vmatpush.msra.mxu3 %v5419_v44  ;;  %v5437_v44 = vld [vmem:[#allocation5 + $0x28] sm:$0xff] }
 0x2f5   :  { %1884 = vmatpush.msra.mxu0 %v5422_v39  ;;  %1904 = vmatpush.msra.mxu1 %v5425_v51  ;;  %7305 = vst [vmem:[#allocation45_spill] sm:$0xff] %v5437_v44  ;;  %v5440_v39 = vld [vmem:[#allocation5 + $0x30] sm:$0xff]  ;;  %v5443_v51 = vld [vmem:[#allocation5 + $0x38] sm:$0xff] }
 0x2f6   :  { %1924 = vmatpush.msra.mxu2 %v5428_v17  ;;  %1944 = vmatpush.msra.mxu3 %v5431_v45  ;;  %7306 = vst [vmem:[#allocation46_spill] sm:$0xff] %v5440_v39  ;;  %v5446_v17 = vld [vmem:[#allocation5] sm:$0xff]  ;;  %v5449_v45 = vld [vmem:[#allocation5 + $0x8] sm:$0xff] }
 0x2f7   :  { %1885 = vmatpush.msra.mxu0 %v5434_v8  ;;  %1905 = vmatpush.msra.mxu1 %v5437_v44  ;;  %7307 = vst [vmem:[#allocation47_spill] sm:$0xff] %v5443_v51  ;;  %v5452_v8 = vld [vmem:[#allocation5 + $0x10] sm:$0xff]  ;;  %v5455_v44 = vld [vmem:[#allocation5 + $0x18] sm:$0xff] }
 0x2f8   :  { %1925 = vmatpush.msra.mxu2 %v5440_v39  ;;  %1945 = vmatpush.msra.mxu3 %v5443_v51  ;;  %7308 = vst [vmem:[#allocation48_spill] sm:$0xff] %v5446_v17  ;;  %v5474_v51 = vld [vmem:[#allocation8 + $0x1c0] sm:$0xff] }
 0x2f9   :  { %1886 = vmatpush.msra.mxu0 %v5446_v17  ;;  %7309 = vst [vmem:[#allocation49_spill] sm:$0xff] %v5449_v45  ;;  %1906 = vmatpush.msra.mxu1 %v5449_v45  ;;  %v5462_v17 = vld [vmem:[#allocation8 + $0x1e0] sm:$0xff]  ;;  %v5465_v45 = vld [vmem:[#allocation8 + $0x1e8] sm:$0xff] }
 0x2fa   :  { %7310 = vst [vmem:[#allocation50_spill] sm:$0xff] %v5452_v8  ;;  %1926 = vmatpush.msra.mxu2 %v5452_v8  ;;  %1946 = vmatpush.msra.mxu3 %v5455_v44  ;;  %v5468_v8 = vld [vmem:[#allocation8 + $0x1f0] sm:$0xff] }
 0x2fb   :  { %7311 = vst [vmem:[#allocation51_spill] sm:$0xff] %v5455_v44  ;;  %1887 = vmatmul.f32.vlgmr.msra.gmra.mxu0 %v5296_v9  ;;  %1907 = vmatmul.f32.vlgmr.msra.gmra.mxu1 %v5296_v9  ;;  %v5471_v44 = vld [vmem:[#allocation8 + $0x1f8] sm:$0xff] }
 0x2fc   :  { %1927 = vmatmul.f32.vlgmr.msra.gmra.mxu2 %v5296_v9  ;;  %1947 = vmatmul.f32.vlgmr.msra.gmra.mxu3 %v5296_v9  ;;  %7312 = vst [vmem:[#allocation52_spill] sm:$0xff] %v5462_v17  ;;  %v5477_v9 = vld [vmem:[#allocation8 + $0x1c8] sm:$0xff] }
 0x2fd   :  { %2018 = vmatpush.msrb.mxu0 %v5462_v17  ;;  %7313 = vst [vmem:[#allocation53_spill] sm:$0xff] %v5465_v45  ;;  %2038 = vmatpush.msrb.mxu1 %v5465_v45  ;;  %v5480_v17 = vld [vmem:[#allocation8 + $0x1d0] sm:$0xff]  ;;  %v5483_v45 = vld [vmem:[#allocation8 + $0x1d8] sm:$0xff] }
 0x2fe   :  { %7314 = vst [vmem:[#allocation54_spill] sm:$0xff] %v5468_v8  ;;  %2058 = vmatpush.msrb.mxu2 %v5468_v8  ;;  %2078 = vmatpush.msrb.mxu3 %v5471_v44  ;;  %v5486_v8 = vld [vmem:[#allocation8 + $0x1a0] sm:$0xff] }
 0x2ff   :  { %7315 = vst [vmem:[#allocation55_spill] sm:$0xff] %v5471_v44  ;;  %2019 = vmatpush.msrb.mxu0 %v5474_v51  ;;  %2039 = vmatpush.msrb.mxu1 %v5477_v9  ;;  %v5489_v44 = vld [vmem:[#allocation8 + $0x1a8] sm:$0xff] }
 0x300   :  { %7316 = vst [vmem:[#allocation56_spill] sm:$0xff] %v5474_v51  ;;  %2059 = vmatpush.msrb.mxu2 %v5480_v17  ;;  %2079 = vmatpush.msrb.mxu3 %v5483_v45  ;;  %v5492_v51 = vld [vmem:[#allocation8 + $0x1b0] sm:$0xff] }
 0x301   :  { %7317 = vst [vmem:[#allocation57_spill] sm:$0xff] %v5477_v9  ;;  %2020 = vmatpush.msrb.mxu0 %v5486_v8  ;;  %2040 = vmatpush.msrb.mxu1 %v5489_v44  ;;  %v5495_v9 = vld [vmem:[#allocation8 + $0x1b8] sm:$0xff] }
 0x302   :  { %7318 = vst [vmem:[#allocation75_spill] sm:$0xff] %v5480_v17  ;;  %2060 = vmatpush.msrb.mxu2 %v5492_v51  ;;  %2080 = vmatpush.msrb.mxu3 %v5495_v9  ;;  %v5498_v17 = vld [vmem:[#allocation8 + $0x180] sm:$0xff] }
 0x303   :  { %7319 = vst [vmem:[#allocation76_spill] sm:$0xff] %v5483_v45  ;;  %2021 = vmatpush.msrb.mxu0 %v5498_v17  ;;  %v5501_v45 = vld [vmem:[#allocation8 + $0x188] sm:$0xff] }
 0x304   :  { %7320 = vst [vmem:[#allocation77_spill] sm:$0xff] %v5486_v8  ;;  %2041 = vmatpush.msrb.mxu1 %v5501_v45  ;;  %v5504_v8 = vld [vmem:[#allocation8 + $0x190] sm:$0xff] }
 0x305   :  { %7321 = vst [vmem:[#allocation78_spill] sm:$0xff] %v5489_v44  ;;  %2061 = vmatpush.msrb.mxu2 %v5504_v8  ;;  %v5507_v44 = vld [vmem:[#allocation8 + $0x198] sm:$0xff] }
 0x306   :  { %7322 = vst [vmem:[#allocation79_spill] sm:$0xff] %v5492_v51  ;;  %2081 = vmatpush.msrb.mxu3 %v5507_v44  ;;  %v5510_v51 = vld [vmem:[#allocation8 + $0x160] sm:$0xff] }
 0x307   :  { %7323 = vst [vmem:[#allocation80_spill] sm:$0xff] %v5495_v9  ;;  %2022 = vmatpush.msrb.mxu0 %v5510_v51  ;;  %v5513_v9 = vld [vmem:[#allocation8 + $0x168] sm:$0xff] }
 0x308   :  { %7324 = vst [vmem:[#allocation81_spill] sm:$0xff] %v5498_v17  ;;  %2042 = vmatpush.msrb.mxu1 %v5513_v9  ;;  %v5516_v17 = vld [vmem:[#allocation8 + $0x170] sm:$0xff] }
 0x309   :  { %7325 = vst [vmem:[#allocation82_spill] sm:$0xff] %v5501_v45  ;;  %2062 = vmatpush.msrb.mxu2 %v5516_v17  ;;  %v5519_v45 = vld [vmem:[#allocation8 + $0x178] sm:$0xff] }
 0x30a   :  { %7326 = vst [vmem:[#allocation83_spill] sm:$0xff] %v5504_v8  ;;  %2082 = vmatpush.msrb.mxu3 %v5519_v45  ;;  %v5522_v8 = vld [vmem:[#allocation8 + $0x140] sm:$0xff] }
 0x30b   :  { %7327 = vst [vmem:[#allocation85_spill] sm:$0xff] %v5507_v44  ;;  %2023 = vmatpush.msrb.mxu0 %v5522_v8  ;;  %v5525_v44 = vld [vmem:[#allocation8 + $0x148] sm:$0xff] }
 0x30c   :  { %7328 = vst [vmem:[#allocation58_spill] sm:$0xff] %v5510_v51  ;;  %2043 = vmatpush.msrb.mxu1 %v5525_v44  ;;  %v5528_v51 = vld [vmem:[#allocation8 + $0x150] sm:$0xff] }
 0x30d   :  { %7329 = vst [vmem:[#allocation59_spill] sm:$0xff] %v5513_v9  ;;  %2063 = vmatpush.msrb.mxu2 %v5528_v51  ;;  %v5531_v9 = vld [vmem:[#allocation8 + $0x158] sm:$0xff] }
 0x30e   :  { %7330 = vst [vmem:[#allocation60_spill] sm:$0xff] %v5516_v17  ;;  %2083 = vmatpush.msrb.mxu3 %v5531_v9  ;;  %v5534_v17 = vld [vmem:[#allocation8 + $0x120] sm:$0xff] }
 0x30f   :  { %7331 = vst [vmem:[#allocation61_spill] sm:$0xff] %v5519_v45  ;;  %2024 = vmatpush.msrb.mxu0 %v5534_v17  ;;  %v5537_v45 = vld [vmem:[#allocation8 + $0x128] sm:$0xff] }
 0x310   :  { %7332 = vst [vmem:[#allocation62_spill] sm:$0xff] %v5522_v8  ;;  %2044 = vmatpush.msrb.mxu1 %v5537_v45  ;;  %v5540_v8 = vld [vmem:[#allocation8 + $0x130] sm:$0xff] }
 0x311   :  { %7333 = vst [vmem:[#allocation63_spill] sm:$0xff] %v5525_v44  ;;  %2064 = vmatpush.msrb.mxu2 %v5540_v8  ;;  %v5543_v44 = vld [vmem:[#allocation8 + $0x138] sm:$0xff] }
 0x312   :  { %7334 = vst [vmem:[#allocation64_spill] sm:$0xff] %v5528_v51  ;;  %2084 = vmatpush.msrb.mxu3 %v5543_v44  ;;  %v5546_v51 = vld [vmem:[#allocation8 + $0x100] sm:$0xff] }
 0x313   :  { %7335 = vst [vmem:[#allocation65_spill] sm:$0xff] %v5531_v9  ;;  %2025 = vmatpush.msrb.mxu0 %v5546_v51  ;;  %v5549_v9 = vld [vmem:[#allocation8 + $0x108] sm:$0xff] }
 0x314   :  { %7336 = vst [vmem:[#allocation66_spill] sm:$0xff] %v5534_v17  ;;  %2045 = vmatpush.msrb.mxu1 %v5549_v9  ;;  %v5552_v17 = vld [vmem:[#allocation8 + $0x110] sm:$0xff] }
 0x315   :  { %7337 = vst [vmem:[#allocation67_spill] sm:$0xff] %v5537_v45  ;;  %2065 = vmatpush.msrb.mxu2 %v5552_v17  ;;  %v5555_v45 = vld [vmem:[#allocation8 + $0x118] sm:$0xff] }
 0x316   :  { %7338 = vst [vmem:[#allocation69_spill] sm:$0xff] %v5540_v8  ;;  %2085 = vmatpush.msrb.mxu3 %v5555_v45  ;;  %v5558_v8 = vld [vmem:[#allocation8 + $0xe0] sm:$0xff] }
 0x317   :  { %7339 = vst [vmem:[#allocation70_spill] sm:$0xff] %v5543_v44  ;;  %2026 = vmatpush.msrb.mxu0 %v5558_v8  ;;  %v5561_v44 = vld [vmem:[#allocation8 + $0xe8] sm:$0xff] }
 0x318   :  { %7340 = vst [vmem:[#allocation71_spill] sm:$0xff] %v5546_v51  ;;  %2046 = vmatpush.msrb.mxu1 %v5561_v44  ;;  %v5564_v51 = vld [vmem:[#allocation8 + $0xf0] sm:$0xff] }
 0x319   :  { %7341 = vst [vmem:[#allocation72_spill] sm:$0xff] %v5549_v9  ;;  %2066 = vmatpush.msrb.mxu2 %v5564_v51  ;;  %v5567_v9 = vld [vmem:[#allocation8 + $0xf8] sm:$0xff] }
 0x31a   :  { %7342 = vst [vmem:[#allocation74_spill] sm:$0xff] %v5552_v17  ;;  %2086 = vmatpush.msrb.mxu3 %v5567_v9  ;;  %v5570_v17 = vld [vmem:[#allocation8 + $0xc0] sm:$0xff] }
 0x31b   :  { %7343 = vst [vmem:[#allocation93_spill] sm:$0xff] %v5555_v45  ;;  %2027 = vmatpush.msrb.mxu0 %v5570_v17  ;;  %v5573_v45 = vld [vmem:[#allocation8 + $0xc8] sm:$0xff] }
 0x31c   :  { %7344 = vst [vmem:[#allocation94_spill] sm:$0xff] %v5558_v8  ;;  %2047 = vmatpush.msrb.mxu1 %v5573_v45  ;;  %v5576_v8 = vld [vmem:[#allocation8 + $0xd0] sm:$0xff] }
 0x31d   :  { %7345 = vst [vmem:[#allocation95_spill] sm:$0xff] %v5561_v44  ;;  %2067 = vmatpush.msrb.mxu2 %v5576_v8  ;;  %v5579_v44 = vld [vmem:[#allocation8 + $0xd8] sm:$0xff] }
 0x31e   :  { %7346 = vst [vmem:[#allocation96_spill] sm:$0xff] %v5564_v51  ;;  %2087 = vmatpush.msrb.mxu3 %v5579_v44  ;;  %v5582_v51 = vld [vmem:[#allocation8 + $0xa0] sm:$0xff] }
 0x31f   :  { %7347 = vst [vmem:[#allocation97_spill] sm:$0xff] %v5567_v9  ;;  %2028 = vmatpush.msrb.mxu0 %v5582_v51  ;;  %v5585_v9 = vld [vmem:[#allocation8 + $0xa8] sm:$0xff] }
 0x320   :  { %7348 = vst [vmem:[#allocation98_spill] sm:$0xff] %v5570_v17  ;;  %2048 = vmatpush.msrb.mxu1 %v5585_v9  ;;  %v5588_v17 = vld [vmem:[#allocation8 + $0xb0] sm:$0xff] }
 0x321   :  { %7349 = vst [vmem:[#allocation99_spill] sm:$0xff] %v5573_v45  ;;  %2068 = vmatpush.msrb.mxu2 %v5588_v17  ;;  %v5591_v45 = vld [vmem:[#allocation8 + $0xb8] sm:$0xff] }
 0x322   :  { %7350 = vst [vmem:[#allocation100_spill] sm:$0xff] %v5576_v8  ;;  %2088 = vmatpush.msrb.mxu3 %v5591_v45  ;;  %v5594_v8 = vld [vmem:[#allocation8 + $0x80] sm:$0xff] }
 0x323   :  { %7351 = vst [vmem:[#allocation101_spill] sm:$0xff] %v5579_v44  ;;  %2029 = vmatpush.msrb.mxu0 %v5594_v8  ;;  %v5597_v44 = vld [vmem:[#allocation8 + $0x88] sm:$0xff] }
 0x324   :  { %7352 = vst [vmem:[#allocation102_spill] sm:$0xff] %v5582_v51  ;;  %2049 = vmatpush.msrb.mxu1 %v5597_v44  ;;  %v5600_v51 = vld [vmem:[#allocation8 + $0x90] sm:$0xff] }
 0x325   :  { %7353 = vst [vmem:[#allocation103_spill] sm:$0xff] %v5585_v9  ;;  %2069 = vmatpush.msrb.mxu2 %v5600_v51  ;;  %v5603_v9 = vld [vmem:[#allocation8 + $0x98] sm:$0xff] }
 0x326   :  { %7354 = vst [vmem:[#allocation104_spill] sm:$0xff] %v5588_v17  ;;  %2089 = vmatpush.msrb.mxu3 %v5603_v9  ;;  %v5606_v17 = vld [vmem:[#allocation8 + $0x60] sm:$0xff] }
 0x327   :  { %7355 = vst [vmem:[#allocation105_spill] sm:$0xff] %v5591_v45  ;;  %2030 = vmatpush.msrb.mxu0 %v5606_v17  ;;  %v5609_v45 = vld [vmem:[#allocation8 + $0x68] sm:$0xff] }
 0x328   :  { %7356 = vst [vmem:[#allocation106_spill] sm:$0xff] %v5594_v8  ;;  %2050 = vmatpush.msrb.mxu1 %v5609_v45  ;;  %v5612_v8 = vld [vmem:[#allocation8 + $0x70] sm:$0xff] }
 0x329   :  { %7357 = vst [vmem:[#allocation107_spill] sm:$0xff] %v5597_v44  ;;  %2070 = vmatpush.msrb.mxu2 %v5612_v8  ;;  %v5615_v44 = vld [vmem:[#allocation8 + $0x78] sm:$0xff] }
 0x32a   :  { %7358 = vst [vmem:[#allocation108_spill] sm:$0xff] %v5600_v51  ;;  %2090 = vmatpush.msrb.mxu3 %v5615_v44  ;;  %v5618_v51 = vld [vmem:[#allocation8 + $0x40] sm:$0xff] }
 0x32b   :  { %7359 = vst [vmem:[#allocation109_spill] sm:$0xff] %v5603_v9  ;;  %2031 = vmatpush.msrb.mxu0 %v5618_v51  ;;  %v5621_v9 = vld [vmem:[#allocation8 + $0x48] sm:$0xff] }
 0x32c   :  { %7360 = vst [vmem:[#allocation110_spill] sm:$0xff] %v5606_v17  ;;  %2051 = vmatpush.msrb.mxu1 %v5621_v9  ;;  %v5624_v17 = vld [vmem:[#allocation8 + $0x50] sm:$0xff] }
 0x32d   :  { %7361 = vst [vmem:[#allocation111_spill] sm:$0xff] %v5609_v45  ;;  %2071 = vmatpush.msrb.mxu2 %v5624_v17  ;;  %v5627_v45 = vld [vmem:[#allocation8 + $0x58] sm:$0xff] }
 0x32e   :  { %7362 = vst [vmem:[#allocation112_spill] sm:$0xff] %v5612_v8  ;;  %2091 = vmatpush.msrb.mxu3 %v5627_v45  ;;  %v5630_v8 = vld [vmem:[#allocation8 + $0x20] sm:$0xff] }
 0x32f   :  { %7363 = vst [vmem:[#allocation113_spill] sm:$0xff] %v5615_v44  ;;  %2032 = vmatpush.msrb.mxu0 %v5630_v8  ;;  %v5633_v44 = vld [vmem:[#allocation8 + $0x28] sm:$0xff] }
 0x330   :  { %7364 = vst [vmem:[#allocation114_spill] sm:$0xff] %v5618_v51  ;;  %2052 = vmatpush.msrb.mxu1 %v5633_v44  ;;  %v5636_v51 = vld [vmem:[#allocation8 + $0x30] sm:$0xff] }
 0x331   :  { %7365 = vst [vmem:[#allocation115_spill] sm:$0xff] %v5621_v9  ;;  %2072 = vmatpush.msrb.mxu2 %v5636_v51  ;;  %v5639_v9 = vld [vmem:[#allocation8 + $0x38] sm:$0xff] }
 0x332   :  { %7366 = vst [vmem:[#allocation116_spill] sm:$0xff] %v5624_v17  ;;  %2092 = vmatpush.msrb.mxu3 %v5639_v9  ;;  %v5642_v17 = vld [vmem:[#allocation8] sm:$0xff] }
 0x333   :  { %7367 = vst [vmem:[#allocation117_spill] sm:$0xff] %v5627_v45  ;;  %2033 = vmatpush.msrb.mxu0 %v5642_v17  ;;  %v5645_v45 = vld [vmem:[#allocation8 + $0x8] sm:$0xff] }
 0x334   :  { %7368 = vst [vmem:[#allocation118_spill] sm:$0xff] %v5630_v8  ;;  %2053 = vmatpush.msrb.mxu1 %v5645_v45  ;;  %v5648_v8 = vld [vmem:[#allocation8 + $0x10] sm:$0xff] }
 0x335   :  { %7369 = vst [vmem:[#allocation119_spill] sm:$0xff] %v5633_v44  ;;  %2073 = vmatpush.msrb.mxu2 %v5648_v8  ;;  %v5651_v44 = vld [vmem:[#allocation8 + $0x18] sm:$0xff] }
 0x336   :  { %7370 = vst [vmem:[#allocation120_spill] sm:$0xff] %v5636_v51  ;;  %2093 = vmatpush.msrb.mxu3 %v5651_v44  ;;  %v5654_v51 = vld [vmem:[#allocation7 + $0x1e0] sm:$0xff] }
 0x337   :  { %7371 = vst [vmem:[#allocation121_spill] sm:$0xff] %v5639_v9  ;;  %2098 = vmatpush.msra.mxu0 %v5654_v51  ;;  %v5657_v9 = vld [vmem:[#allocation7 + $0x1e8] sm:$0xff] }
 0x338   :  { %7372 = vst [vmem:[#allocation122_spill] sm:$0xff] %v5642_v17  ;;  %2118 = vmatpush.msra.mxu1 %v5657_v9  ;;  %v5660_v17 = vld [vmem:[#allocation7 + $0x1f0] sm:$0xff] }
 0x339   :  { %7373 = vst [vmem:[#allocation123_spill] sm:$0xff] %v5645_v45  ;;  %2138 = vmatpush.msra.mxu2 %v5660_v17  ;;  %v5663_v45 = vld [vmem:[#allocation7 + $0x1f8] sm:$0xff] }
 0x33a   :  { %7374 = vst [vmem:[#allocation124_spill] sm:$0xff] %v5648_v8  ;;  %2158 = vmatpush.msra.mxu3 %v5663_v45  ;;  %v5666_v8 = vld [vmem:[#allocation7 + $0x1c0] sm:$0xff] }
 0x33b   :  { %7375 = vst [vmem:[#allocation125_spill] sm:$0xff] %v5651_v44  ;;  %2099 = vmatpush.msra.mxu0 %v5666_v8  ;;  %v5669_v44 = vld [vmem:[#allocation7 + $0x1c8] sm:$0xff] }
 0x33c   :  { %7376 = vst [vmem:[#allocation126_spill] sm:$0xff] %v5654_v51  ;;  %2119 = vmatpush.msra.mxu1 %v5669_v44  ;;  %v5672_v51 = vld [vmem:[#allocation7 + $0x1d0] sm:$0xff] }
 0x33d   :  { %7377 = vst [vmem:[#allocation127_spill] sm:$0xff] %v5657_v9  ;;  %2139 = vmatpush.msra.mxu2 %v5672_v51  ;;  %v5675_v9 = vld [vmem:[#allocation7 + $0x1d8] sm:$0xff] }
 0x33e   :  { %7378 = vst [vmem:[#allocation129_spill] sm:$0xff] %v5660_v17  ;;  %2159 = vmatpush.msra.mxu3 %v5675_v9  ;;  %v5678_v17 = vld [vmem:[#allocation7 + $0x1a0] sm:$0xff] }
 0x33f   :  { %7379 = vst [vmem:[#allocation130_spill] sm:$0xff] %v5663_v45  ;;  %2100 = vmatpush.msra.mxu0 %v5678_v17  ;;  %v5681_v45 = vld [vmem:[#allocation7 + $0x1a8] sm:$0xff] }
 0x340   :  { %7380 = vst [vmem:[#allocation131_spill] sm:$0xff] %v5666_v8  ;;  %2120 = vmatpush.msra.mxu1 %v5681_v45  ;;  %v5684_v8 = vld [vmem:[#allocation7 + $0x1b0] sm:$0xff] }
 0x341   :  { %7381 = vst [vmem:[#allocation132_spill] sm:$0xff] %v5669_v44  ;;  %2140 = vmatpush.msra.mxu2 %v5684_v8  ;;  %v5687_v44 = vld [vmem:[#allocation7 + $0x1b8] sm:$0xff] }
 0x342   :  { %7382 = vst [vmem:[#allocation133_spill] sm:$0xff] %v5672_v51  ;;  %2160 = vmatpush.msra.mxu3 %v5687_v44  ;;  %v5690_v51 = vld [vmem:[#allocation7 + $0x180] sm:$0xff] }
 0x343   :  { %7383 = vst [vmem:[#allocation134_spill] sm:$0xff] %v5675_v9  ;;  %2101 = vmatpush.msra.mxu0 %v5690_v51  ;;  %v5693_v9 = vld [vmem:[#allocation7 + $0x188] sm:$0xff] }
 0x344   :  { %7384 = vst [vmem:[#allocation135_spill] sm:$0xff] %v5678_v17  ;;  %2121 = vmatpush.msra.mxu1 %v5693_v9  ;;  %v5696_v17 = vld [vmem:[#allocation7 + $0x190] sm:$0xff] }
 0x345   :  { %7385 = vst [vmem:[#allocation136_spill] sm:$0xff] %v5681_v45  ;;  %2141 = vmatpush.msra.mxu2 %v5696_v17  ;;  %v5699_v45 = vld [vmem:[#allocation7 + $0x198] sm:$0xff] }
 0x346   :  { %7386 = vst [vmem:[#allocation137_spill] sm:$0xff] %v5684_v8  ;;  %2161 = vmatpush.msra.mxu3 %v5699_v45  ;;  %v5702_v8 = vld [vmem:[#allocation7 + $0x160] sm:$0xff] }
 0x347   :  { %7387 = vst [vmem:[#allocation138_spill] sm:$0xff] %v5687_v44  ;;  %2102 = vmatpush.msra.mxu0 %v5702_v8  ;;  %v5705_v44 = vld [vmem:[#allocation7 + $0x168] sm:$0xff] }
 0x348   :  { %7388 = vst [vmem:[#allocation139_spill] sm:$0xff] %v5690_v51  ;;  %2122 = vmatpush.msra.mxu1 %v5705_v44  ;;  %v5708_v51 = vld [vmem:[#allocation7 + $0x170] sm:$0xff] }
 0x349   :  { %7389 = vst [vmem:[#allocation140_spill] sm:$0xff] %v5693_v9  ;;  %2142 = vmatpush.msra.mxu2 %v5708_v51  ;;  %v5711_v9 = vld [vmem:[#allocation7 + $0x178] sm:$0xff] }
 0x34a   :  { %7390 = vst [vmem:[#allocation141_spill] sm:$0xff] %v5696_v17  ;;  %2162 = vmatpush.msra.mxu3 %v5711_v9  ;;  %v5714_v17 = vld [vmem:[#allocation7 + $0x140] sm:$0xff] }
 0x34b   :  { %7391 = vst [vmem:[#allocation142_spill] sm:$0xff] %v5699_v45  ;;  %2103 = vmatpush.msra.mxu0 %v5714_v17  ;;  %v5717_v45 = vld [vmem:[#allocation7 + $0x148] sm:$0xff] }
 0x34c   :  { %7392 = vst [vmem:[#allocation143_spill] sm:$0xff] %v5702_v8  ;;  %2123 = vmatpush.msra.mxu1 %v5717_v45  ;;  %v5720_v8 = vld [vmem:[#allocation7 + $0x150] sm:$0xff] }
 0x34d   :  { %7393 = vst [vmem:[#allocation144_spill] sm:$0xff] %v5705_v44  ;;  %2143 = vmatpush.msra.mxu2 %v5720_v8  ;;  %v5723_v44 = vld [vmem:[#allocation7 + $0x158] sm:$0xff] }
 0x34e   :  { %7394 = vst [vmem:[#allocation146_spill] sm:$0xff] %v5708_v51  ;;  %2163 = vmatpush.msra.mxu3 %v5723_v44  ;;  %v5726_v51 = vld [vmem:[#allocation7 + $0x120] sm:$0xff] }
 0x34f   :  { %7395 = vst [vmem:[#allocation147_spill] sm:$0xff] %v5711_v9  ;;  %2104 = vmatpush.msra.mxu0 %v5726_v51  ;;  %v5729_v9 = vld [vmem:[#allocation7 + $0x128] sm:$0xff] }
 0x350   :  { %7396 = vst [vmem:[#allocation148_spill] sm:$0xff] %v5714_v17  ;;  %2124 = vmatpush.msra.mxu1 %v5729_v9  ;;  %v5732_v17 = vld [vmem:[#allocation7 + $0x130] sm:$0xff] }
 0x351   :  { %7397 = vst [vmem:[#allocation149_spill] sm:$0xff] %v5717_v45  ;;  %2144 = vmatpush.msra.mxu2 %v5732_v17  ;;  %v5735_v45 = vld [vmem:[#allocation7 + $0x138] sm:$0xff] }
 0x352   :  { %7398 = vst [vmem:[#allocation150_spill] sm:$0xff] %v5720_v8  ;;  %2164 = vmatpush.msra.mxu3 %v5735_v45  ;;  %v5738_v8 = vld [vmem:[#allocation7 + $0x100] sm:$0xff] }
 0x353   :  { %7399 = vst [vmem:[#allocation151_spill] sm:$0xff] %v5723_v44  ;;  %2105 = vmatpush.msra.mxu0 %v5738_v8  ;;  %v5741_v44 = vld [vmem:[#allocation7 + $0x108] sm:$0xff] }
 0x354   :  { %7400 = vst [vmem:[#allocation152_spill] sm:$0xff] %v5726_v51  ;;  %2125 = vmatpush.msra.mxu1 %v5741_v44  ;;  %v5744_v51 = vld [vmem:[#allocation7 + $0x110] sm:$0xff]  ;;  %v1681_v39 = vpop.f32.mrf.mxu1 }
 0x355   :  { %7401 = vst [vmem:[#allocation153_spill] sm:$0xff] %v5729_v9  ;;  %2145 = vmatpush.msra.mxu2 %v5744_v51  ;;  %v5747_v9 = vld [vmem:[#allocation7 + $0x118] sm:$0xff] }
 0x356   :  { %7402 = vst [vmem:[#allocation154_spill] sm:$0xff] %v5732_v17  ;;  %2165 = vmatpush.msra.mxu3 %v5747_v9  ;;  %v5750_v17 = vld [vmem:[#allocation7 + $0xe0] sm:$0xff] }
 0x357   :  { %7403 = vst [vmem:[#allocation155_spill] sm:$0xff] %v5735_v45  ;;  %2106 = vmatpush.msra.mxu0 %v5750_v17  ;;  %v5753_v45 = vld [vmem:[#allocation7 + $0xe8] sm:$0xff] }
 0x358   :  { %7404 = vst [vmem:[#allocation156_spill] sm:$0xff] %v5738_v8  ;;  %2126 = vmatpush.msra.mxu1 %v5753_v45  ;;  %v5756_v8 = vld [vmem:[#allocation7 + $0xf0] sm:$0xff] }
 0x359   :  { %7405 = vst [vmem:[#allocation157_spill] sm:$0xff] %v5741_v44  ;;  %2146 = vmatpush.msra.mxu2 %v5756_v8  ;;  %v5759_v44 = vld [vmem:[#allocation7 + $0xf8] sm:$0xff] }
 0x35a   :  { %7406 = vst [vmem:[#allocation158_spill] sm:$0xff] %v5744_v51  ;;  %2166 = vmatpush.msra.mxu3 %v5759_v44  ;;  %v5762_v51 = vld [vmem:[#allocation7 + $0xc0] sm:$0xff] }
 0x35b   :  { %7407 = vst [vmem:[#allocation159_spill] sm:$0xff] %v5747_v9  ;;  %2107 = vmatpush.msra.mxu0 %v5762_v51  ;;  %v5765_v9 = vld [vmem:[#allocation7 + $0xc8] sm:$0xff]  ;;  %v1721_v41 = vpop.f32.mrf.mxu3 }
 0x35c   :  { %7408 = vst [vmem:[#allocation160_spill] sm:$0xff] %v5750_v17  ;;  %2127 = vmatpush.msra.mxu1 %v5765_v9  ;;  %v5768_v17 = vld [vmem:[#allocation7 + $0xd0] sm:$0xff] }
 0x35d   :  { %7409 = vst [vmem:[#allocation161_spill] sm:$0xff] %v5753_v45  ;;  %2147 = vmatpush.msra.mxu2 %v5768_v17  ;;  %v5771_v45 = vld [vmem:[#allocation7 + $0xd8] sm:$0xff] }
 0x35e   :  { %7410 = vst [vmem:[#allocation162_spill] sm:$0xff] %v5756_v8  ;;  %2167 = vmatpush.msra.mxu3 %v5771_v45  ;;  %v5774_v8 = vld [vmem:[#allocation7 + $0xa0] sm:$0xff]  ;;  %v1761_v49 = vpop.f32.mrf.mxu1 }
 0x35f   :  { %7411 = vst [vmem:[#allocation163_spill] sm:$0xff] %v5759_v44  ;;  %2108 = vmatpush.msra.mxu0 %v5774_v8  ;;  %v5777_v44 = vld [vmem:[#allocation7 + $0xa8] sm:$0xff]  ;;  %v1762_v13 = vadd.f32 %v1761_v49, %v1681_v39 }
 0x360   :  { %7412 = vst [vmem:[#allocation164_spill] sm:$0xff] %v5762_v51  ;;  %2128 = vmatpush.msra.mxu1 %v5777_v44  ;;  %v5780_v51 = vld [vmem:[#allocation7 + $0xb0] sm:$0xff] }
 0x361   :  { %7413 = vst [vmem:[#allocation165_spill] sm:$0xff] %v5765_v9  ;;  %2148 = vmatpush.msra.mxu2 %v5780_v51  ;;  %v5783_v9 = vld [vmem:[#allocation7 + $0xb8] sm:$0xff]  ;;  %v1805_v35 = vadd.f32 %v1762_v13, %v5170_v33 }
 0x362   :  { %7414 = vst [vmem:[#allocation166_spill] sm:$0xff] %v5768_v17  ;;  %2168 = vmatpush.msra.mxu3 %v5783_v9  ;;  %v5786_v17 = vld [vmem:[#allocation7 + $0x80] sm:$0xff] }
 0x363   :  { %7415 = vst [vmem:[#allocation167_spill] sm:$0xff] %v5771_v45  ;;  %2109 = vmatpush.msra.mxu0 %v5786_v17  ;;  %v5789_v45 = vld [vmem:[#allocation7 + $0x88] sm:$0xff]  ;;  %v2835_v34 = vmul.f32 -1.442695, %v1805_v35 }
 0x364   :  { %7416 = vst [vmem:[#allocation168_spill] sm:$0xff] %v5774_v8  ;;  %2129 = vmatpush.msra.mxu1 %v5789_v45  ;;  %v5792_v8 = vld [vmem:[#allocation7 + $0x90] sm:$0xff] }
 0x365   :  { %7417 = vst [vmem:[#allocation169_spill] sm:$0xff] %v5777_v44  ;;  %2149 = vmatpush.msra.mxu2 %v5792_v8  ;;  %v5795_v44 = vld [vmem:[#allocation7 + $0x98] sm:$0xff] }
 0x366   :  { %7418 = vst [vmem:[#allocation170_spill] sm:$0xff] %v5780_v51  ;;  %2169 = vmatpush.msra.mxu3 %v5795_v44  ;;  %v5798_v51 = vld [vmem:[#allocation7 + $0x60] sm:$0xff] }
 0x367   :  { %7419 = vst [vmem:[#allocation171_spill] sm:$0xff] %v5783_v9  ;;  %2110 = vmatpush.msra.mxu0 %v5798_v51  ;;  %v5801_v9 = vld [vmem:[#allocation7 + $0x68] sm:$0xff] }
 0x368   :  { %7420 = vst [vmem:[#allocation88_spill] sm:$0xff] %v5786_v17  ;;  %2130 = vmatpush.msra.mxu1 %v5801_v9  ;;  %v5804_v17 = vld [vmem:[#allocation7 + $0x70] sm:$0xff] }
 0x369   :  { %7421 = vst [vmem:[#allocation89_spill] sm:$0xff] %v5789_v45  ;;  %2150 = vmatpush.msra.mxu2 %v5804_v17  ;;  %v5807_v45 = vld [vmem:[#allocation7 + $0x78] sm:$0xff] }
 0x36a   :  { %7422 = vst [vmem:[#allocation40_spill] sm:$0xff] %v5792_v8  ;;  %2170 = vmatpush.msra.mxu3 %v5807_v45  ;;  %v5810_v8 = vld [vmem:[#allocation7 + $0x40] sm:$0xff] }
 0x36b   :  { %7423 = vst [vmem:[#allocation22_spill] sm:$0xff] %v5795_v44  ;;  %2111 = vmatpush.msra.mxu0 %v5810_v8  ;;  %v5813_v44 = vld [vmem:[#allocation7 + $0x48] sm:$0xff] }
 0x36c   :  { %7424 = vst [vmem:[#allocation173_spill] sm:$0xff] %v5798_v51  ;;  %2131 = vmatpush.msra.mxu1 %v5813_v44  ;;  %v5816_v51 = vld [vmem:[#allocation7 + $0x50] sm:$0xff] }
 0x36d   :  { %7425 = vst [vmem:[#allocation174_spill] sm:$0xff] %v5801_v9  ;;  %2151 = vmatpush.msra.mxu2 %v5816_v51  ;;  %v5819_v9 = vld [vmem:[#allocation7 + $0x58] sm:$0xff] }
 0x36e   :  { %7426 = vst [vmem:[#allocation175_spill] sm:$0xff] %v5804_v17  ;;  %2171 = vmatpush.msra.mxu3 %v5819_v9  ;;  %v5822_v17 = vld [vmem:[#allocation7 + $0x20] sm:$0xff] }
 0x36f   :  { %7427 = vst [vmem:[#allocation176_spill] sm:$0xff] %v5807_v45  ;;  %2112 = vmatpush.msra.mxu0 %v5822_v17  ;;  %v5825_v45 = vld [vmem:[#allocation7 + $0x28] sm:$0xff] }
 0x370   :  { %7428 = vst [vmem:[#allocation177_spill] sm:$0xff] %v5810_v8  ;;  %2132 = vmatpush.msra.mxu1 %v5825_v45  ;;  %v5828_v8 = vld [vmem:[#allocation7 + $0x30] sm:$0xff] }
 0x371   :  { %7429 = vst [vmem:[#allocation178_spill] sm:$0xff] %v5813_v44  ;;  %2152 = vmatpush.msra.mxu2 %v5828_v8  ;;  %v5831_v44 = vld [vmem:[#allocation7 + $0x38] sm:$0xff] }
 0x372   :  { %7430 = vst [vmem:[#allocation179_spill] sm:$0xff] %v5816_v51  ;;  %2172 = vmatpush.msra.mxu3 %v5831_v44  ;;  %v5834_v51 = vld [vmem:[#allocation7] sm:$0xff] }
 0x373   :  { %7431 = vst [vmem:[#allocation180_spill] sm:$0xff] %v5819_v9  ;;  %2113 = vmatpush.msra.mxu0 %v5834_v51  ;;  %v5837_v9 = vld [vmem:[#allocation7 + $0x8] sm:$0xff] }
 0x374   :  { %7432 = vst [vmem:[#allocation181_spill] sm:$0xff] %v5822_v17  ;;  %2133 = vmatpush.msra.mxu1 %v5837_v9  ;;  %v5840_v17 = vld [vmem:[#allocation7 + $0x10] sm:$0xff] }
 0x375   :  { %7433 = vst [vmem:[#allocation182_spill] sm:$0xff] %v5825_v45  ;;  %2153 = vmatpush.msra.mxu2 %v5840_v17  ;;  %v5843_v45 = vld [vmem:[#allocation7 + $0x18] sm:$0xff] }
 0x376   :  { %7434 = vst [vmem:[#allocation183_spill] sm:$0xff] %v5828_v8  ;;  %2173 = vmatpush.msra.mxu3 %v5843_v45  ;;  %v1661_v8 = vpop.f32.mrf.mxu0 }
 0x377   :  { %7435 = vst [vmem:[#allocation184_spill] sm:$0xff] %v5831_v44 }
 0x378   :  { %7436 = vst [vmem:[#allocation185_spill] sm:$0xff] %v5834_v51 }
 0x379   :  { %7437 = vst [vmem:[#allocation186_spill] sm:$0xff] %v5837_v9  ;;  %v1701_v9 = vpop.f32.mrf.mxu2 }
 0x37a   :  { %7438 = vst [vmem:[#allocation187_spill] sm:$0xff] %v5840_v17  ;;  %v1801_v17 = vpop.f32.mrf.mxu3 }
 0x37b   :  { %7439 = vst [vmem:[#allocation188_spill] sm:$0xff] %v5843_v45  ;;  %v1802_v48 = vadd.f32 %v1801_v17, %v1721_v41 }
 0x37d   :  { %v1807_v45 = vadd.f32 %v1802_v48, %v5174_v2 }
 0x37e   :  { %v1741_v44 = vpop.f32.mrf.mxu0 }
 0x37f   :  { %v1742_v57 = vadd.f32 %v1741_v44, %v1661_v8  ;;  %v2836_v32 = vmul.f32 -1.442695, %v1807_v45 }
 0x381   :  { %v1804_v51 = vadd.f32 %v1742_v57, %v5168_v60  ;;  %v1781_v16 = vpop.f32.mrf.mxu2 }
 0x382   :  { %v1782_v57 = vadd.f32 %v1781_v16, %v1701_v9  ;;  %v1908_v16 = vpop.f32.mrf.mxu1  ;;  %v7440_v9 = vld [vmem:[#allocation39_spill] sm:$0xff] }
 0x383   :  { %v2834_v43 = vmul.f32 -1.442695, %v1804_v51 }
 0x384   :  { %v1806_v49 = vadd.f32 %v1782_v57, %v5179_v46 }
 0x385   :  { %2915 = vpow2.f32 %v2834_v43 }
 0x386   :  { %2917 = vpow2.f32 %v2835_v34  ;;  %v1888_v51 = vpop.f32.mrf.mxu0 }
 0x387   :  { %2919 = vpow2.f32 %v2836_v32  ;;  %v1951_v57 = vadd.f32 %v1888_v51, %v7440_v9  ;;  %v1948_v9 = vpop.f32.mrf.mxu3 }
 0x389   :  { %v2837_v60 = vmul.f32 -1.442695, %v1951_v57 }
 0x38b   :  { %v2916_v31 = vpop.eup %2915 }
 0x38c   :  { %v2918_v27 = vpop.eup %2917  ;;  %v1811_v24 = vadd.f32 1.0, %v2916_v31 }
 0x38d   :  { %v1830_v8 = vadd.f32 1.0, %v2918_v27  ;;  %v2920_v13 = vpop.eup %2919 }
 0x38e   :  { %2921 = vrcp.f32 %v1811_v24  ;;  %v5850_v35 = vadd.f32 1.0, %v2920_v13  ;;  %v1821_v44 = vand.u32 2147483647, %v1811_v24  ;;  %v1823_v27 = vand.u32 2147483648, %v1811_v24  ;;  %v7441_v13 = vld [vmem:[#allocation41_spill] sm:$0xff] }
 0x38f   :  { %2923 = vrcp.f32 %v1830_v8  ;;  %v1842_v32 = vand.u32 2147483648, %v1830_v8  ;;  %v1840_v39 = vand.u32 2147483647, %v1830_v8  ;;  %v1952_v46 = vadd.f32 %v1908_v16, %v7441_v13 }
 0x390   :  { %2925 = vrcp.f32 %v5850_v35  ;;  %vm1817_vm6 = vweird.f32 %v1811_v24  ;;  %vm1836_vm7 = vweird.f32 %v1830_v8  ;;  %vm1822_vm9 = vcmp.eq.f32.partialorder %v1821_v44, 8.507059e+37  ;;  %v7442_v44 = vld [vmem:[#allocation68_spill] sm:$0xff] }
 0x391   :  { %2927 = vtanh.f32 %v1806_v49  ;;  %v2838_v49 = vmul.f32 -1.442695, %v1952_v46  ;;  %v1843_v21 = vor.u32 1.1754944e-38, %v1842_v32  ;;  %vm1841_vm11 = vcmp.eq.f32.partialorder %v1840_v39, 8.507059e+37  ;;  %v1928_v39 = vpop.f32.mrf.mxu2 }
 0x392   :  { %2929 = vpow2.f32 %v2837_v60  ;;  %vm1856_vm13 = vweird.f32 %v5850_v35 }
 0x393   :  { %2931 = vpow2.f32 %v2838_v49 }
 0x394   :  { %v2922_v43 = vpop.eup %2921 }
 0x395   :  { %v2924_v34 = vpop.eup %2923  ;;  %v1813_v41 = vmul.f32 %v2922_v43, %v1811_v24  ;;  %vm1818_vm4 = vweird.f32 %v2922_v43 }
 0x396   :  { %v1832_v45 = vmul.f32 %v2924_v34, %v1830_v8  ;;  %vm1837_vm5 = vweird.f32 %v2924_v34  ;;  %v2926_v33 = vpop.eup %2925  ;;  %vm1819_vm8 = vmor %vm1817_vm6, %vm1818_vm4 }
 0x397   :  { %v1814_v48 = vsub.f32 1.0, %v1813_v41  ;;  %v1852_v22 = vmul.f32 %v2926_v33, %v5850_v35  ;;  %vm1838_vm10 = vmor %vm1836_vm7, %vm1837_vm5  ;;  %vm1857_vm12 = vweird.f32 %v2926_v33 }
 0x398   :  { %v1833_v31 = vsub.f32 1.0, %v1832_v45  ;;  %v1824_v45 = vor.u32 1.1754944e-38, %v1823_v27  ;;  %v1954_v27 = vadd.f32 %v1948_v9, %v7442_v44  ;;  %vm1858_vm14 = vmor %vm1856_vm13, %vm1857_vm12 }
 0x399   :  { %v1815_v17 = vmul.f32 %v2922_v43, %v1814_v48  ;;  %v2928_v48 = vpop.eup %2927  ;;  %v1853_v24 = vsub.f32 1.0, %v1852_v22  ;;  %v1862_v22 = vand.u32 2147483648, %v5850_v35 }
 0x39a   :  { %v1834_v2 = vmul.f32 %v2924_v34, %v1833_v31  ;;  %v2839_v13 = vmul.f32 -1.442695, %v1954_v27  ;;  %v2930_v20 = vpop.eup %2929 }
 0x39b   :  { %v1816_v41 = vadd.f32 %v2922_v43, %v1815_v17  ;;  %v1958_v60 = vadd.f32 1.0, %v2930_v20 }
 0x39c   :  { %v1835_v23 = vadd.f32 %v2924_v34, %v1834_v2  ;;  %v1854_v2 = vmul.f32 %v2926_v33, %v1853_v24 }
 0x39d   :  { %v1820_v51 = vsel %vm1819_vm8, %v2922_v43, %v1816_v41  ;;  %v2932_v43 = vpop.eup %2931  ;;  %v1970_v9 = vand.u32 2147483648, %v1958_v60  ;;  %v1968_v27 = vand.u32 2147483647, %v1958_v60  ;;  %vm1964_vm2 = vweird.f32 %v1958_v60 }
 0x39e   :  { %v1825_v31 = vsel %vm1822_vm9, %v1824_v45, %v1820_v51  ;;  %v1839_v16 = vsel %vm1838_vm10, %v2924_v34, %v1835_v23  ;;  %v1855_v32 = vadd.f32 %v2926_v33, %v1854_v2  ;;  %v1863_v34 = vor.u32 1.1754944e-38, %v1862_v22  ;;  %v7443_v51 = vld [vmem:[#allocation73_spill] sm:$0xff] }
 0x39f   :  { %v1844_v8 = vsel %vm1841_vm11, %v1843_v21, %v1839_v16  ;;  %v1867_v17 = vmul.f32 %v2928_v48, %v1825_v31  ;;  %v5862_v21 = vadd.f32 1.0, %v2932_v43  ;;  %v1953_v31 = vadd.f32 %v1928_v39, %v7443_v51  ;;  %v7458_v22 = vld [vmem:[#allocation33_spill] sm:$0xff]  ;;  %v7463_v39 = vld [vmem:[#allocation38_spill] sm:$0xff]  ;;  %v7469_v51 = vld [vmem:[#allocation47_spill] sm:$0xff] }
 0x3a0   :  { %v1866_v46 = vmul.f32 %v1844_v8, %v5227_v50  ;;  %v1860_v50 = vand.u32 2147483647, %v5850_v35  ;;  %v1859_v23 = vsel %vm1858_vm14, %v2926_v33, %v1855_v32  ;;  %vm1969_vm6 = vcmp.eq.f32.partialorder %v1968_v27, 8.507059e+37  ;;  %v7480_v27 = vld [vmem:[#allocation75_spill] sm:$0xff] }
 0x3a1   :  { %vm1983_vm3 = vweird.f32 %v5862_v21 }
 0x3a2   :  { %v5858_v57 = vadd.f32 %v1867_v17, %v1866_v46  ;;  %vm1861_vm15 = vcmp.eq.f32.partialorder %v1860_v50, 8.507059e+37  ;;  %v1989_v46 = vand.u32 2147483648, %v5862_v21  ;;  %v7460_v50 = vld [vmem:[#allocation35_spill] sm:$0xff] }
 0x3a3   :  { %v1864_v49 = vsel %vm1861_vm15, %v1863_v34, %v1859_v23  ;;  %v7461_v23 = vld [vmem:[#allocation36_spill] sm:$0xff]  ;;  %v7462_v34 = vld [vmem:[#allocation37_spill] sm:$0xff] }
 0x3a4   :  { %2933 = vtanh.f32 %v5858_v57 }
 0x3a5   :  { %2935 = vpow2.f32 %v2839_v13 }
 0x3a6   :  { %2937 = vrcp.f32 %v1958_v60 }
 0x3a7   :  { %2939 = vrcp.f32 %v5862_v21 }
 0x3aa   :  { %v2934_v41 = vpop.eup %2933 }
 0x3ab   :  { %v2936_v20 = vpop.eup %2935  ;;  %v1870_v45 = vmul.f32 %v2934_v41, %v1864_v49  ;;  %v7464_v41 = vld [vmem:[#allocation42_spill] sm:$0xff]  ;;  %v7465_v49 = vld [vmem:[#allocation43_spill] sm:$0xff] }
 0x3ac   :  { %v2938_v48 = vpop.eup %2937  ;;  %v5868_v16 = vadd.f32 1.0, %v2936_v20  ;;  %v7466_v20 = vld [vmem:[#allocation44_spill] sm:$0xff] }
 0x3ad   :  { %v2940_v24 = vpop.eup %2939  ;;  %v1960_v8 = vmul.f32 %v2938_v48, %v1958_v60  ;;  %2034 = vmatmul.f32.vlgmr.msrb.gmra.mxu0 %v1870_v45  ;;  %2054 = vmatmul.f32.vlgmr.msrb.gmra.mxu1 %v1870_v45  ;;  %vm1965_vm0 = vweird.f32 %v2938_v48  ;;  %v7457_v60 = vld [vmem:[#allocation32_spill] sm:$0xff] }
 0x3ae   :  { %v1979_v35 = vmul.f32 %v2940_v24, %v5862_v21  ;;  %2941 = vrcp.f32 %v5868_v16  ;;  %2074 = vmatmul.f32.vlgmr.msrb.gmra.mxu2 %v1870_v45  ;;  %2094 = vmatmul.f32.vlgmr.msrb.gmra.mxu3 %v1870_v45  ;;  %vm1984_vm1 = vweird.f32 %v2940_v24  ;;  %vm1966_vm4 = vmor %vm1964_vm2, %vm1965_vm0  ;;  %vm2003_vm9 = vweird.f32 %v5868_v16  ;;  %v7467_v45 = vld [vmem:[#allocation45_spill] sm:$0xff] }
 0x3af   :  { %v1961_v33 = vsub.f32 1.0, %v1960_v8  ;;  %2245 = vmatpush.msrb.mxu0 %v5254_v42  ;;  %2265 = vmatpush.msrb.mxu1 %v5257_v61  ;;  %2943 = vtanh.f32 %v1953_v31  ;;  %v1987_v42 = vand.u32 2147483647, %v5862_v21  ;;  %vm1985_vm5 = vmor %vm1983_vm3, %vm1984_vm1  ;;  %v7459_v21 = vld [vmem:[#allocation34_spill] sm:$0xff]  ;;  %v7470_v31 = vld [vmem:[#allocation48_spill] sm:$0xff] }
 0x3b0   :  { %v1980_v17 = vsub.f32 1.0, %v1979_v35  ;;  %2285 = vmatpush.msrb.mxu2 %v5264_v0  ;;  %2305 = vmatpush.msrb.mxu3 %v5267_v36  ;;  %v1971_v36 = vor.u32 1.1754944e-38, %v1970_v9  ;;  %v7473_v8 = vld [vmem:[#allocation51_spill] sm:$0xff]  ;;  %v7474_v35 = vld [vmem:[#allocation52_spill] sm:$0xff] }
 0x3b1   :  { %v1962_v44 = vmul.f32 %v2938_v48, %v1961_v33  ;;  %2246 = vmatpush.msrb.mxu0 %v5272_v58  ;;  %2266 = vmatpush.msrb.mxu1 %v5275_v38  ;;  %v1990_v38 = vor.u32 1.1754944e-38, %v1989_v46  ;;  %vm1988_vm7 = vcmp.eq.f32.partialorder %v1987_v42, 8.507059e+37  ;;  %v7475_v33 = vld [vmem:[#allocation53_spill] sm:$0xff]  ;;  %v7477_v9 = vld [vmem:[#allocation55_spill] sm:$0xff]  ;;  %v7478_v46 = vld [vmem:[#allocation56_spill] sm:$0xff] }
 0x3b2   :  { %v1981_v2 = vmul.f32 %v2940_v24, %v1980_v17  ;;  %2286 = vmatpush.msrb.mxu2 %v5278_v5  ;;  %2306 = vmatpush.msrb.mxu3 %v5281_v3  ;;  %v7476_v17 = vld [vmem:[#allocation54_spill] sm:$0xff]  ;;  %v7482_v42 = vld [vmem:[#allocation77_spill] sm:$0xff] }
 0x3b3   :  { %v1963_v61 = vadd.f32 %v2938_v48, %v1962_v44  ;;  %2247 = vmatpush.msrb.mxu0 %v5284_v4  ;;  %2267 = vmatpush.msrb.mxu1 %v5287_v7  ;;  %v7479_v44 = vld [vmem:[#allocation57_spill] sm:$0xff] }
 0x3b4   :  { %v2942_v0 = vpop.eup %2941  ;;  %v1982_v58 = vadd.f32 %v2940_v24, %v1981_v2  ;;  %2287 = vmatpush.msrb.mxu2 %v5290_v26  ;;  %2307 = vmatpush.msrb.mxu3 %v5293_v40  ;;  %v7481_v2 = vld [vmem:[#allocation76_spill] sm:$0xff] }
 0x3b5   :  { %v1967_v5 = vsel %vm1966_vm4, %v2938_v48, %v1963_v61  ;;  %v1999_v3 = vmul.f32 %v2942_v0, %v5868_v16  ;;  %2248 = vmatpush.msrb.mxu0 %v5298_v28  ;;  %2268 = vmatpush.msrb.mxu1 %v5301_v6  ;;  %v2944_v4 = vpop.eup %2943  ;;  %vm2004_vm8 = vweird.f32 %v2942_v0  ;;  %v7468_v48 = vld [vmem:[#allocation46_spill] sm:$0xff] }
 0x3b6   :  { %v1972_v7 = vsel %vm1969_vm6, %v1971_v36, %v1967_v5  ;;  %v1986_v13 = vsel %vm1985_vm5, %v2940_v24, %v1982_v58  ;;  %2288 = vmatpush.msrb.mxu2 %v5304_v59  ;;  %2308 = vmatpush.msrb.mxu3 %v5307_v1  ;;  %v2007_v1 = vand.u32 2147483647, %v5868_v16  ;;  %vm2005_vm10 = vmor %vm2003_vm9, %vm2004_vm8  ;;  %v7472_v24 = vld [vmem:[#allocation50_spill] sm:$0xff]  ;;  %v7485_v36 = vld [vmem:[#allocation80_spill] sm:$0xff] }
 0x3b7   :  { %v1991_v26 = vsel %vm1988_vm7, %v1990_v38, %v1986_v13  ;;  %v2014_v40 = vmul.f32 %v2944_v4, %v1972_v7  ;;  %v2000_v32 = vsub.f32 1.0, %v1999_v3  ;;  %2249 = vmatpush.msrb.mxu0 %v5314_v62  ;;  %2269 = vmatpush.msrb.mxu1 %v5317_v18  ;;  %v7483_v61 = vld [vmem:[#allocation78_spill] sm:$0xff]  ;;  %v7486_v58 = vld [vmem:[#allocation81_spill] sm:$0xff]  ;;  %v7488_v5 = vld [vmem:[#allocation83_spill] sm:$0xff] }
 0x3b8   :  { %v2013_v43 = vmul.f32 %v1991_v26, %v5247_v25  ;;  %2289 = vmatpush.msrb.mxu2 %v5320_v63  ;;  %2309 = vmatpush.msrb.mxu3 %v5323_v54  ;;  %v2009_v25 = vand.u32 2147483648, %v5868_v16  ;;  %v7444_v63 = vld [vmem:[#allocation92_spill] sm:$0xff]  ;;  %vm2008_vm11 = vcmp.eq.f32.partialorder %v2007_v1, 8.507059e+37  ;;  %v7471_v16 = vld [vmem:[#allocation49_spill] sm:$0xff]  ;;  %v7487_v38 = vld [vmem:[#allocation82_spill] sm:$0xff] }
 0x3b9   :  { %v2001_v28 = vmul.f32 %v2942_v0, %v2000_v32  ;;  %2250 = vmatpush.msrb.mxu0 %v5326_v29  ;;  %2270 = vmatpush.msrb.mxu1 %v5329_v53  ;;  %v7445_v54 = vld [vmem:[#allocation20_spill] sm:$0xff]  ;;  %v7446_v29 = vld [vmem:[#allocation21_spill] sm:$0xff]  ;;  %v7447_v53 = vld [vmem:[#allocation23_spill] sm:$0xff] }
 0x3ba   :  { %v5901_v6 = vadd.f32 %v2014_v40, %v2013_v43  ;;  %2290 = vmatpush.msrb.mxu2 %v5332_v52  ;;  %2310 = vmatpush.msrb.mxu3 %v5335_v30  ;;  %v2010_v18 = vor.u32 1.1754944e-38, %v2009_v25  ;;  %v7489_v3 = vld [vmem:[#allocation85_spill] sm:$0xff]  ;;  %v7490_v4 = vld [vmem:[#allocation58_spill] sm:$0xff]  ;;  %v7491_v7 = vld [vmem:[#allocation59_spill] sm:$0xff] }
 0x3bb   :  { %v2002_v59 = vadd.f32 %v2942_v0, %v2001_v28  ;;  %2251 = vmatpush.msrb.mxu0 %v5338_v56  ;;  %2271 = vmatpush.msrb.mxu1 %v5341_v55  ;;  %v7448_v56 = vld [vmem:[#allocation24_spill] sm:$0xff]  ;;  %v7449_v55 = vld [vmem:[#allocation25_spill] sm:$0xff]  ;;  %v7494_v40 = vld [vmem:[#allocation62_spill] sm:$0xff] }
 0x3bc   :  { %2945 = vtanh.f32 %v5901_v6  ;;  %2291 = vmatpush.msrb.mxu2 %v5344_v37  ;;  %2311 = vmatpush.msrb.mxu3 %v5347_v11  ;;  %v7450_v11 = vld [vmem:[#allocation26_spill] sm:$0xff]  ;;  %v7492_v13 = vld [vmem:[#allocation60_spill] sm:$0xff]  ;;  %v7493_v26 = vld [vmem:[#allocation61_spill] sm:$0xff] }
 0x3bd   :  { %2252 = vmatpush.msrb.mxu0 %v5350_v12  ;;  %2272 = vmatpush.msrb.mxu1 %v5353_v47  ;;  %v2006_v62 = vsel %vm2005_vm10, %v2942_v0, %v2002_v59  ;;  %v7451_v12 = vld [vmem:[#allocation27_spill] sm:$0xff]  ;;  %v7452_v47 = vld [vmem:[#allocation28_spill] sm:$0xff]  ;;  %v7497_v28 = vld [vmem:[#allocation65_spill] sm:$0xff] }
 0x3be   :  { %2292 = vmatpush.msrb.mxu2 %v5356_v14  ;;  %2312 = vmatpush.msrb.mxu3 %v5359_v10  ;;  %v2011_v30 = vsel %vm2008_vm11, %v2010_v18, %v2006_v62  ;;  %v7453_v14 = vld [vmem:[#allocation29_spill] sm:$0xff]  ;;  %v7454_v10 = vld [vmem:[#allocation30_spill] sm:$0xff]  ;;  %v7484_v0 = vld [vmem:[#allocation79_spill] sm:$0xff] }
 0x3bf   :  { %2253 = vmatpush.msrb.mxu0 %v5362_v15  ;;  %2273 = vmatpush.msrb.mxu1 %v5365_v19  ;;  %v7455_v15 = vld [vmem:[#allocation87_spill] sm:$0xff]  ;;  %v7496_v43 = vld [vmem:[#allocation64_spill] sm:$0xff]  ;;  %v7498_v59 = vld [vmem:[#allocation66_spill] sm:$0xff] }
 0x3c0   :  { %2293 = vmatpush.msrb.mxu2 %v7444_v63  ;;  %2313 = vmatpush.msrb.mxu3 %v7445_v54  ;;  %v7456_v19 = vld [vmem:[#allocation31_spill] sm:$0xff]  ;;  %v7500_v1 = vld [vmem:[#allocation69_spill] sm:$0xff]  ;;  %v7501_v62 = vld [vmem:[#allocation70_spill] sm:$0xff] }
 0x3c1   :  { %2254 = vmatpush.msrb.mxu0 %v7446_v29  ;;  %2274 = vmatpush.msrb.mxu1 %v7447_v53  ;;  %v7495_v32 = vld [vmem:[#allocation63_spill] sm:$0xff]  ;;  %v7503_v63 = vld [vmem:[#allocation72_spill] sm:$0xff]  ;;  %v7504_v54 = vld [vmem:[#allocation74_spill] sm:$0xff] }
 0x3c2   :  { %v2946_v52 = vpop.eup %2945  ;;  %2294 = vmatpush.msrb.mxu2 %v7448_v56  ;;  %2314 = vmatpush.msrb.mxu3 %v7449_v55  ;;  %v7499_v25 = vld [vmem:[#allocation67_spill] sm:$0xff]  ;;  %v7505_v29 = vld [vmem:[#allocation93_spill] sm:$0xff]  ;;  %v7506_v53 = vld [vmem:[#allocation94_spill] sm:$0xff] }
 0x3c3   :  { %v2017_v37 = vmul.f32 %v2946_v52, %v2011_v30  ;;  %2255 = vmatpush.msrb.mxu0 %v7450_v11  ;;  %2275 = vmatpush.msrb.mxu1 %v7451_v12  ;;  %v7502_v18 = vld [vmem:[#allocation71_spill] sm:$0xff]  ;;  %v7508_v30 = vld [vmem:[#allocation96_spill] sm:$0xff]  ;;  %v7509_v56 = vld [vmem:[#allocation97_spill] sm:$0xff] }
 0x3c4   :  { %2295 = vmatpush.msrb.mxu2 %v7452_v47  ;;  %2315 = vmatpush.msrb.mxu3 %v7453_v14  ;;  %v7507_v52 = vld [vmem:[#allocation95_spill] sm:$0xff]  ;;  %v7510_v55 = vld [vmem:[#allocation98_spill] sm:$0xff]  ;;  %v7512_v11 = vld [vmem:[#allocation100_spill] sm:$0xff] }
 0x3c5   :  { %2114 = vmatmul.f32.vlgmr.msra.gmra.mxu0 %v2017_v37  ;;  %2134 = vmatmul.f32.vlgmr.msra.gmra.mxu1 %v2017_v37  ;;  %v7513_v12 = vld [vmem:[#allocation101_spill] sm:$0xff]  ;;  %v7514_v47 = vld [vmem:[#allocation102_spill] sm:$0xff]  ;;  %v7515_v14 = vld [vmem:[#allocation103_spill] sm:$0xff] }
 0x3c6   :  { %2154 = vmatmul.f32.vlgmr.msra.gmra.mxu2 %v2017_v37  ;;  %2174 = vmatmul.f32.vlgmr.msra.gmra.mxu3 %v2017_v37 }
 0x3c7   :  { %2256 = vmatpush.msrb.mxu0 %v7454_v10  ;;  %2276 = vmatpush.msrb.mxu1 %v7455_v15  ;;  %v7516_v10 = vld [vmem:[#allocation104_spill] sm:$0xff]  ;;  %v7517_v15 = vld [vmem:[#allocation105_spill] sm:$0xff] }
 0x3c8   :  { %2296 = vmatpush.msrb.mxu2 %v7456_v19  ;;  %2316 = vmatpush.msrb.mxu3 %v7457_v60  ;;  %v7518_v19 = vld [vmem:[#allocation106_spill] sm:$0xff]  ;;  %v7519_v60 = vld [vmem:[#allocation107_spill] sm:$0xff] }
 0x3c9   :  { %2257 = vmatpush.msrb.mxu0 %v7458_v22  ;;  %2277 = vmatpush.msrb.mxu1 %v7459_v21  ;;  %v7520_v22 = vld [vmem:[#allocation108_spill] sm:$0xff]  ;;  %v7521_v21 = vld [vmem:[#allocation109_spill] sm:$0xff] }
 0x3ca   :  { %2297 = vmatpush.msrb.mxu2 %v7460_v50  ;;  %2317 = vmatpush.msrb.mxu3 %v7461_v23  ;;  %v7522_v50 = vld [vmem:[#allocation110_spill] sm:$0xff]  ;;  %v7523_v23 = vld [vmem:[#allocation111_spill] sm:$0xff] }
 0x3cb   :  { %2258 = vmatpush.msrb.mxu0 %v7462_v34  ;;  %2278 = vmatpush.msrb.mxu1 %v7463_v39  ;;  %v7524_v34 = vld [vmem:[#allocation112_spill] sm:$0xff]  ;;  %v7525_v39 = vld [vmem:[#allocation113_spill] sm:$0xff] }
 0x3cc   :  { %2298 = vmatpush.msrb.mxu2 %v7464_v41  ;;  %2318 = vmatpush.msrb.mxu3 %v7465_v49  ;;  %v7526_v41 = vld [vmem:[#allocation114_spill] sm:$0xff]  ;;  %v7527_v49 = vld [vmem:[#allocation115_spill] sm:$0xff] }
 0x3cd   :  { %2259 = vmatpush.msrb.mxu0 %v7466_v20  ;;  %2279 = vmatpush.msrb.mxu1 %v7467_v45  ;;  %v7528_v20 = vld [vmem:[#allocation116_spill] sm:$0xff]  ;;  %v7529_v45 = vld [vmem:[#allocation117_spill] sm:$0xff] }
 0x3ce   :  { %2299 = vmatpush.msrb.mxu2 %v7468_v48  ;;  %2319 = vmatpush.msrb.mxu3 %v7469_v51  ;;  %v7530_v48 = vld [vmem:[#allocation118_spill] sm:$0xff]  ;;  %v7531_v51 = vld [vmem:[#allocation119_spill] sm:$0xff] }
 0x3cf   :  { %2260 = vmatpush.msrb.mxu0 %v7470_v31  ;;  %2280 = vmatpush.msrb.mxu1 %v7471_v16  ;;  %v7532_v31 = vld [vmem:[#allocation120_spill] sm:$0xff]  ;;  %v7533_v16 = vld [vmem:[#allocation121_spill] sm:$0xff] }
 0x3d0   :  { %2300 = vmatpush.msrb.mxu2 %v7472_v24  ;;  %2320 = vmatpush.msrb.mxu3 %v7473_v8  ;;  %v7534_v24 = vld [vmem:[#allocation122_spill] sm:$0xff]  ;;  %v7535_v8 = vld [vmem:[#allocation123_spill] sm:$0xff] }
 0x3d1   :  { %2261 = vmatmul.f32.vlgmr.msrb.gmra.mxu0 %v2017_v37  ;;  %2281 = vmatmul.f32.vlgmr.msrb.gmra.mxu1 %v2017_v37 }
 0x3d2   :  { %2301 = vmatmul.f32.vlgmr.msrb.gmra.mxu2 %v2017_v37  ;;  %2321 = vmatmul.f32.vlgmr.msrb.gmra.mxu3 %v2017_v37  ;;  %v7511_v37 = vld [vmem:[#allocation99_spill] sm:$0xff] }
 0x3d3   :  { %2392 = vmatpush.msra.mxu0 %v7474_v35  ;;  %2412 = vmatpush.msra.mxu1 %v7475_v33  ;;  %v7536_v35 = vld [vmem:[#allocation124_spill] sm:$0xff]  ;;  %v7537_v33 = vld [vmem:[#allocation125_spill] sm:$0xff] }
 0x3d4   :  { %2432 = vmatpush.msra.mxu2 %v7476_v17  ;;  %2452 = vmatpush.msra.mxu3 %v7477_v9  ;;  %v7538_v17 = vld [vmem:[#allocation126_spill] sm:$0xff]  ;;  %v7539_v9 = vld [vmem:[#allocation127_spill] sm:$0xff] }
 0x3d5   :  { %2393 = vmatpush.msra.mxu0 %v7478_v46  ;;  %2413 = vmatpush.msra.mxu1 %v7479_v44  ;;  %v7540_v46 = vld [vmem:[#allocation129_spill] sm:$0xff]  ;;  %v7541_v44 = vld [vmem:[#allocation130_spill] sm:$0xff] }
 0x3d6   :  { %2433 = vmatpush.msra.mxu2 %v7480_v27  ;;  %2453 = vmatpush.msra.mxu3 %v7481_v2  ;;  %v7542_v27 = vld [vmem:[#allocation131_spill] sm:$0xff]  ;;  %v7543_v2 = vld [vmem:[#allocation132_spill] sm:$0xff] }
 0x3d7   :  { %2394 = vmatpush.msra.mxu0 %v7482_v42  ;;  %2414 = vmatpush.msra.mxu1 %v7483_v61  ;;  %v7544_v42 = vld [vmem:[#allocation133_spill] sm:$0xff]  ;;  %v7545_v61 = vld [vmem:[#allocation134_spill] sm:$0xff] }
 0x3d8   :  { %2434 = vmatpush.msra.mxu2 %v7484_v0  ;;  %2454 = vmatpush.msra.mxu3 %v7485_v36  ;;  %v7546_v0 = vld [vmem:[#allocation135_spill] sm:$0xff]  ;;  %v7547_v36 = vld [vmem:[#allocation136_spill] sm:$0xff] }
 0x3d9   :  { %2395 = vmatpush.msra.mxu0 %v7486_v58  ;;  %2415 = vmatpush.msra.mxu1 %v7487_v38  ;;  %v7548_v58 = vld [vmem:[#allocation137_spill] sm:$0xff]  ;;  %v7549_v38 = vld [vmem:[#allocation138_spill] sm:$0xff] }
 0x3da   :  { %2435 = vmatpush.msra.mxu2 %v7488_v5  ;;  %2455 = vmatpush.msra.mxu3 %v7489_v3  ;;  %v7550_v5 = vld [vmem:[#allocation139_spill] sm:$0xff]  ;;  %v7551_v3 = vld [vmem:[#allocation140_spill] sm:$0xff] }
 0x3db   :  { %2396 = vmatpush.msra.mxu0 %v7490_v4  ;;  %2416 = vmatpush.msra.mxu1 %v7491_v7  ;;  %v7552_v4 = vld [vmem:[#allocation141_spill] sm:$0xff]  ;;  %v7553_v7 = vld [vmem:[#allocation142_spill] sm:$0xff] }
 0x3dc   :  { %2436 = vmatpush.msra.mxu2 %v7492_v13  ;;  %2456 = vmatpush.msra.mxu3 %v7493_v26  ;;  %v7554_v13 = vld [vmem:[#allocation143_spill] sm:$0xff]  ;;  %v7555_v26 = vld [vmem:[#allocation144_spill] sm:$0xff] }
 0x3dd   :  { %2397 = vmatpush.msra.mxu0 %v7494_v40  ;;  %2417 = vmatpush.msra.mxu1 %v7495_v32  ;;  %v7556_v40 = vld [vmem:[#allocation146_spill] sm:$0xff]  ;;  %v7557_v32 = vld [vmem:[#allocation147_spill] sm:$0xff] }
 0x3de   :  { %2437 = vmatpush.msra.mxu2 %v7496_v43  ;;  %2457 = vmatpush.msra.mxu3 %v7497_v28  ;;  %v7558_v43 = vld [vmem:[#allocation148_spill] sm:$0xff]  ;;  %v7559_v28 = vld [vmem:[#allocation149_spill] sm:$0xff] }
 0x3df   :  { %2398 = vmatpush.msra.mxu0 %v7498_v59  ;;  %2418 = vmatpush.msra.mxu1 %v7499_v25  ;;  %v7560_v59 = vld [vmem:[#allocation150_spill] sm:$0xff]  ;;  %v7561_v25 = vld [vmem:[#allocation151_spill] sm:$0xff] }
 0x3e0   :  { %2438 = vmatpush.msra.mxu2 %v7500_v1  ;;  %2458 = vmatpush.msra.mxu3 %v7501_v62  ;;  %v7562_v1 = vld [vmem:[#allocation152_spill] sm:$0xff]  ;;  %v7563_v62 = vld [vmem:[#allocation153_spill] sm:$0xff] }
 0x3e1   :  { %2399 = vmatpush.msra.mxu0 %v7502_v18  ;;  %2419 = vmatpush.msra.mxu1 %v7503_v63  ;;  %v7564_v18 = vld [vmem:[#allocation154_spill] sm:$0xff]  ;;  %v7565_v63 = vld [vmem:[#allocation155_spill] sm:$0xff] }
 0x3e2   :  { %2439 = vmatpush.msra.mxu2 %v7504_v54  ;;  %2459 = vmatpush.msra.mxu3 %v7505_v29  ;;  %v7566_v54 = vld [vmem:[#allocation156_spill] sm:$0xff]  ;;  %v7567_v29 = vld [vmem:[#allocation157_spill] sm:$0xff] }
 0x3e3   :  { %2400 = vmatpush.msra.mxu0 %v7506_v53  ;;  %2420 = vmatpush.msra.mxu1 %v7507_v52  ;;  %v7568_v53 = vld [vmem:[#allocation158_spill] sm:$0xff]  ;;  %v7569_v52 = vld [vmem:[#allocation159_spill] sm:$0xff] }
 0x3e4   :  { %2440 = vmatpush.msra.mxu2 %v7508_v30  ;;  %2460 = vmatpush.msra.mxu3 %v7509_v56  ;;  %v7570_v30 = vld [vmem:[#allocation160_spill] sm:$0xff]  ;;  %v7571_v56 = vld [vmem:[#allocation161_spill] sm:$0xff] }
 0x3e5   :  { %2401 = vmatpush.msra.mxu0 %v7510_v55  ;;  %2421 = vmatpush.msra.mxu1 %v7511_v37  ;;  %v7572_v55 = vld [vmem:[#allocation162_spill] sm:$0xff]  ;;  %v7573_v37 = vld [vmem:[#allocation163_spill] sm:$0xff] }
 0x3e6   :  { %2441 = vmatpush.msra.mxu2 %v7512_v11  ;;  %2461 = vmatpush.msra.mxu3 %v7513_v12  ;;  %v7574_v11 = vld [vmem:[#allocation164_spill] sm:$0xff]  ;;  %v7575_v12 = vld [vmem:[#allocation165_spill] sm:$0xff] }
 0x3e7   :  { %2402 = vmatpush.msra.mxu0 %v7514_v47  ;;  %2422 = vmatpush.msra.mxu1 %v7515_v14  ;;  %v7576_v47 = vld [vmem:[#allocation166_spill] sm:$0xff]  ;;  %v7577_v14 = vld [vmem:[#allocation167_spill] sm:$0xff] }
 0x3e8   :  { %2442 = vmatpush.msra.mxu2 %v7516_v10  ;;  %2462 = vmatpush.msra.mxu3 %v7517_v15  ;;  %v7578_v10 = vld [vmem:[#allocation168_spill] sm:$0xff]  ;;  %v7579_v15 = vld [vmem:[#allocation169_spill] sm:$0xff] }
 0x3e9   :  { %2403 = vmatpush.msra.mxu0 %v7518_v19  ;;  %2423 = vmatpush.msra.mxu1 %v7519_v60  ;;  %v7580_v19 = vld [vmem:[#allocation170_spill] sm:$0xff]  ;;  %v7581_v60 = vld [vmem:[#allocation171_spill] sm:$0xff] }
 0x3ea   :  { %2443 = vmatpush.msra.mxu2 %v7520_v22  ;;  %2463 = vmatpush.msra.mxu3 %v7521_v21  ;;  %v7582_v22 = vld [vmem:[#allocation88_spill] sm:$0xff]  ;;  %v7583_v21 = vld [vmem:[#allocation89_spill] sm:$0xff] }
 0x3eb   :  { %2404 = vmatpush.msra.mxu0 %v7522_v50  ;;  %2424 = vmatpush.msra.mxu1 %v7523_v23  ;;  %v7584_v50 = vld [vmem:[#allocation40_spill] sm:$0xff]  ;;  %v7585_v23 = vld [vmem:[#allocation22_spill] sm:$0xff] }
 0x3ec   :  { %2444 = vmatpush.msra.mxu2 %v7524_v34  ;;  %2464 = vmatpush.msra.mxu3 %v7525_v39  ;;  %v7586_v34 = vld [vmem:[#allocation173_spill] sm:$0xff]  ;;  %v7587_v39 = vld [vmem:[#allocation174_spill] sm:$0xff] }
 0x3ed   :  { %2405 = vmatpush.msra.mxu0 %v7526_v41  ;;  %2425 = vmatpush.msra.mxu1 %v7527_v49  ;;  %v7588_v41 = vld [vmem:[#allocation175_spill] sm:$0xff]  ;;  %v7589_v49 = vld [vmem:[#allocation176_spill] sm:$0xff] }
 0x3ee   :  { %2445 = vmatpush.msra.mxu2 %v7528_v20  ;;  %2465 = vmatpush.msra.mxu3 %v7529_v45  ;;  %v7590_v20 = vld [vmem:[#allocation177_spill] sm:$0xff]  ;;  %v7591_v45 = vld [vmem:[#allocation178_spill] sm:$0xff] }
 0x3ef   :  { %2406 = vmatpush.msra.mxu0 %v7530_v48  ;;  %2426 = vmatpush.msra.mxu1 %v7531_v51  ;;  %v7592_v48 = vld [vmem:[#allocation179_spill] sm:$0xff]  ;;  %v7593_v51 = vld [vmem:[#allocation180_spill] sm:$0xff] }
 0x3f0   :  { %2446 = vmatpush.msra.mxu2 %v7532_v31  ;;  %2466 = vmatpush.msra.mxu3 %v7533_v16  ;;  %v7594_v31 = vld [vmem:[#allocation181_spill] sm:$0xff]  ;;  %v7595_v16 = vld [vmem:[#allocation182_spill] sm:$0xff] }
 0x3f1   :  { %2407 = vmatpush.msra.mxu0 %v7534_v24  ;;  %2427 = vmatpush.msra.mxu1 %v7535_v8  ;;  %v7596_v24 = vld [vmem:[#allocation183_spill] sm:$0xff]  ;;  %v7597_v8 = vld [vmem:[#allocation184_spill] sm:$0xff] }
 0x3f2   :  { %2447 = vmatpush.msra.mxu2 %v7536_v35  ;;  %2467 = vmatpush.msra.mxu3 %v7537_v33  ;;  %v7598_v35 = vld [vmem:[#allocation185_spill] sm:$0xff]  ;;  %v7599_v33 = vld [vmem:[#allocation186_spill] sm:$0xff] }
 0x3f3   :  { %2472 = vmatpush.msrb.mxu0 %v7538_v17  ;;  %2492 = vmatpush.msrb.mxu1 %v7539_v9  ;;  %v7600_v17 = vld [vmem:[#allocation187_spill] sm:$0xff]  ;;  %v7601_v9 = vld [vmem:[#allocation188_spill] sm:$0xff] }
 0x3f4   :  { %2512 = vmatpush.msrb.mxu2 %v7540_v46  ;;  %2532 = vmatpush.msrb.mxu3 %v7541_v44 }
 0x3f5   :  { %2473 = vmatpush.msrb.mxu0 %v7542_v27  ;;  %2493 = vmatpush.msrb.mxu1 %v7543_v2 }
 0x3f6   :  { %2513 = vmatpush.msrb.mxu2 %v7544_v42  ;;  %2533 = vmatpush.msrb.mxu3 %v7545_v61 }
 0x3f7   :  { %2474 = vmatpush.msrb.mxu0 %v7546_v0  ;;  %2494 = vmatpush.msrb.mxu1 %v7547_v36  ;;  %v7602_v36 = vld [vmem:[#allocation86_spill] sm:$0xff] }
 0x3f8   :  { %2514 = vmatpush.msrb.mxu2 %v7548_v58  ;;  %2534 = vmatpush.msrb.mxu3 %v7549_v38  ;;  %v7603_v38 = vld [vmem:[#allocation90_spill] sm:$0xff] }
 0x3f9   :  { %2475 = vmatpush.msrb.mxu0 %v7550_v5  ;;  %2495 = vmatpush.msrb.mxu1 %v7551_v3 }
 0x3fa   :  { %2515 = vmatpush.msrb.mxu2 %v7552_v4  ;;  %2535 = vmatpush.msrb.mxu3 %v7553_v7 }
 0x3fb   :  { %2476 = vmatpush.msrb.mxu0 %v7554_v13  ;;  %2496 = vmatpush.msrb.mxu1 %v7555_v26 }
 0x3fc   :  { %2516 = vmatpush.msrb.mxu2 %v7556_v40  ;;  %2536 = vmatpush.msrb.mxu3 %v7557_v32  ;;  %v7604_v40 = vld [vmem:[#allocation91_spill] sm:$0xff] }
 0x3fd   :  { %2477 = vmatpush.msrb.mxu0 %v7558_v43  ;;  %2497 = vmatpush.msrb.mxu1 %v7559_v28 }
 0x3fe   :  { %2517 = vmatpush.msrb.mxu2 %v7560_v59  ;;  %2537 = vmatpush.msrb.mxu3 %v7561_v25 }
 0x3ff   :  { %2478 = vmatpush.msrb.mxu0 %v7562_v1  ;;  %2498 = vmatpush.msrb.mxu1 %v7563_v62  ;;  %v7605_v1 = vld [vmem:[#allocation128_spill] sm:$0xff] }
 0x400   :  { %2518 = vmatpush.msrb.mxu2 %v7564_v18  ;;  %2538 = vmatpush.msrb.mxu3 %v7565_v63  ;;  %v7606_v18 = vld [vmem:[#allocation145_spill] sm:$0xff] }
 0x401   :  { %2479 = vmatpush.msrb.mxu0 %v7566_v54  ;;  %2499 = vmatpush.msrb.mxu1 %v7567_v29 }
 0x402   :  { %2519 = vmatpush.msrb.mxu2 %v7568_v53  ;;  %2539 = vmatpush.msrb.mxu3 %v7569_v52 }
 0x403   :  { %2480 = vmatpush.msrb.mxu0 %v7570_v30  ;;  %2500 = vmatpush.msrb.mxu1 %v7571_v56 }
 0x404   :  { %2520 = vmatpush.msrb.mxu2 %v7572_v55  ;;  %2540 = vmatpush.msrb.mxu3 %v7573_v37 }
 0x405   :  { %2481 = vmatpush.msrb.mxu0 %v7574_v11  ;;  %2501 = vmatpush.msrb.mxu1 %v7575_v12  ;;  %v7607_v12 = vld [vmem:[#allocation84_spill] sm:$0xff] }
 0x406   :  { %2521 = vmatpush.msrb.mxu2 %v7576_v47  ;;  %2541 = vmatpush.msrb.mxu3 %v7577_v14  ;;  %v7608_v14 = vld [vmem:[#allocation19_spill] sm:$0xff] }
 0x407   :  { %2482 = vmatpush.msrb.mxu0 %v7578_v10  ;;  %2502 = vmatpush.msrb.mxu1 %v7579_v15 }
 0x408   :  { %2522 = vmatpush.msrb.mxu2 %v7580_v19  ;;  %2542 = vmatpush.msrb.mxu3 %v7581_v60 }
 0x409   :  { %2483 = vmatpush.msrb.mxu0 %v7582_v22  ;;  %2503 = vmatpush.msrb.mxu1 %v7583_v21 }
 0x40a   :  { %2523 = vmatpush.msrb.mxu2 %v7584_v50  ;;  %2543 = vmatpush.msrb.mxu3 %v7585_v23 }
 0x40b   :  { %2484 = vmatpush.msrb.mxu0 %v7586_v34  ;;  %2504 = vmatpush.msrb.mxu1 %v7587_v39 }
 0x40c   :  { %2524 = vmatpush.msrb.mxu2 %v7588_v41  ;;  %2544 = vmatpush.msrb.mxu3 %v7589_v49 }
 0x40d   :  { %2485 = vmatpush.msrb.mxu0 %v7590_v20  ;;  %2505 = vmatpush.msrb.mxu1 %v7591_v45 }
 0x40e   :  { %2525 = vmatpush.msrb.mxu2 %v7592_v48  ;;  %2545 = vmatpush.msrb.mxu3 %v7593_v51 }
 0x40f   :  { %2486 = vmatpush.msrb.mxu0 %v7594_v31  ;;  %2506 = vmatpush.msrb.mxu1 %v7595_v16 }
 0x410   :  { %2526 = vmatpush.msrb.mxu2 %v7596_v24  ;;  %2546 = vmatpush.msrb.mxu3 %v7597_v8 }
 0x411   :  { %2487 = vmatpush.msrb.mxu0 %v7598_v35  ;;  %2507 = vmatpush.msrb.mxu1 %v7599_v33 }
 0x412   :  { %2527 = vmatpush.msrb.mxu2 %v7600_v17  ;;  %2547 = vmatpush.msrb.mxu3 %v7601_v9 }
 0x42a   :  { %v2035_v46 = vpop.f32.mrf.mxu0  ;;  %v2055_v44 = vpop.f32.mrf.mxu1 }
 0x431   :  { %v2095_v27 = vpop.f32.mrf.mxu3  ;;  %v2075_v7 = vpop.f32.mrf.mxu2 }
 0x442   :  { %v2115_v2 = vpop.f32.mrf.mxu0  ;;  %v2135_v42 = vpop.f32.mrf.mxu1 }
 0x443   :  { %v2116_v61 = vadd.f32 %v2115_v2, %v2035_v46  ;;  %v2136_v0 = vadd.f32 %v2135_v42, %v2055_v44 }
 0x445   :  { %v2178_v58 = vadd.f32 %v2116_v61, %v7602_v36  ;;  %v2179_v5 = vadd.f32 %v2136_v0, %v7603_v38  ;;  %v7609_v61 = vld [vmem:[#allocation172_spill] sm:$0xff] }
 0x447   :  { %v2840_v3 = vmul.f32 -1.442695, %v2178_v58  ;;  %v2841_v4 = vmul.f32 -1.442695, %v2179_v5 }
 0x449   :  { %2947 = vpow2.f32 %v2840_v3  ;;  %v2175_v13 = vpop.f32.mrf.mxu3  ;;  %v2155_v53 = vpop.f32.mrf.mxu2 }
 0x44a   :  { %2949 = vpow2.f32 %v2841_v4  ;;  %v2176_v26 = vadd.f32 %v2175_v13, %v2095_v27  ;;  %v2156_v55 = vadd.f32 %v2155_v53, %v2075_v7 }
 0x44c   :  { %v2181_v32 = vadd.f32 %v2176_v26, %v7604_v40  ;;  %v2180_v10 = vadd.f32 %v2156_v55, %v7608_v14 }
 0x44e   :  { %v2842_v43 = vmul.f32 -1.442695, %v2181_v32  ;;  %v2262_v28 = vpop.f32.mrf.mxu0  ;;  %v2282_v59 = vpop.f32.mrf.mxu1 }
 0x44f   :  { %v2948_v25 = vpop.eup %2947  ;;  %v2325_v62 = vadd.f32 %v2262_v28, %v7605_v1  ;;  %v2326_v63 = vadd.f32 %v2282_v59, %v7606_v18 }
 0x450   :  { %v2950_v54 = vpop.eup %2949  ;;  %v2185_v29 = vadd.f32 1.0, %v2948_v25  ;;  %2951 = vpow2.f32 %v2842_v43 }
 0x451   :  { %v2204_v52 = vadd.f32 1.0, %v2950_v54  ;;  %v2843_v30 = vmul.f32 -1.442695, %v2325_v62  ;;  %v2844_v56 = vmul.f32 -1.442695, %v2326_v63 }
 0x452   :  { %2953 = vrcp.f32 %v2185_v29  ;;  %v2195_v20 = vand.u32 2147483647, %v2185_v29  ;;  %v2197_v45 = vand.u32 2147483648, %v2185_v29  ;;  %vm2191_vm15 = vweird.f32 %v2185_v29 }
 0x453   :  { %2955 = vrcp.f32 %v2204_v52  ;;  %v2216_v51 = vand.u32 2147483648, %v2204_v52  ;;  %v2214_v24 = vand.u32 2147483647, %v2204_v52  ;;  %vm2210_vm14 = vweird.f32 %v2204_v52 }
 0x454   :  { %2957 = vpow2.f32 %v2843_v30  ;;  %vm2196_vm1 = vcmp.eq.f32.partialorder %v2195_v20, 8.507059e+37  ;;  %v2198_v9 = vor.u32 1.1754944e-38, %v2197_v45 }
 0x455   :  { %2959 = vpow2.f32 %v2844_v56  ;;  %v2322_v37 = vpop.f32.mrf.mxu3  ;;  %v2302_v8 = vpop.f32.mrf.mxu2  ;;  %v2217_v2 = vor.u32 1.1754944e-38, %v2216_v51  ;;  %vm2215_vm3 = vcmp.eq.f32.partialorder %v2214_v24, 8.507059e+37 }
 0x456   :  { %v2952_v11 = vpop.eup %2951  ;;  %v2328_v47 = vadd.f32 %v2322_v37, %v7607_v12  ;;  %v2327_v0 = vadd.f32 %v2302_v8, %v7609_v61  ;;  %v2632_v61 = vld [vmem:[%s6242_s7 + $0x68] sm:$0xff] }
 0x457   :  { %v6084_v15 = vadd.f32 1.0, %v2952_v11 }
 0x458   :  { %v2954_v19 = vpop.eup %2953  ;;  %v2845_v60 = vmul.f32 -1.442695, %v2328_v47  ;;  %v2619_v47 = vld [vmem:[%s6242_s7] sm:$0xff] }
 0x459   :  { %v2956_v22 = vpop.eup %2955  ;;  %v2187_v21 = vmul.f32 %v2954_v19, %v2185_v29  ;;  %2961 = vrcp.f32 %v6084_v15  ;;  %vm2192_vm12 = vweird.f32 %v2954_v19  ;;  %vm2230_vm4 = vweird.f32 %v6084_v15 }
 0x45a   :  { %v2958_v50 = vpop.eup %2957  ;;  %v2206_v23 = vmul.f32 %v2956_v22, %v2204_v52  ;;  %2963 = vpow2.f32 %v2845_v60  ;;  %vm2211_vm13 = vweird.f32 %v2956_v22  ;;  %vm2193_vm0 = vmor %vm2191_vm15, %vm2192_vm12  ;;  %v2236_v63 = vand.u32 2147483648, %v6084_v15 }
 0x45b   :  { %v2960_v34 = vpop.eup %2959  ;;  %v2188_v39 = vsub.f32 1.0, %v2187_v21  ;;  %2965 = vtanh.f32 %v2180_v10  ;;  %v6087_v41 = vadd.f32 1.0, %v2958_v50  ;;  %vm2212_vm2 = vmor %vm2210_vm14, %vm2211_vm13  ;;  %v2234_v37 = vand.u32 2147483647, %v6084_v15 }
 0x45c   :  { %v2207_v49 = vsub.f32 1.0, %v2206_v23  ;;  %v6089_v48 = vadd.f32 1.0, %v2960_v34  ;;  %v2237_v34 = vor.u32 1.1754944e-38, %v2236_v63 }
 0x45d   :  { %v2189_v31 = vmul.f32 %v2954_v19, %v2188_v39  ;;  %2967 = vrcp.f32 %v6087_v41  ;;  %v2342_v18 = vand.u32 2147483647, %v6087_v41  ;;  %v2344_v29 = vand.u32 2147483648, %v6087_v41 }
 0x45e   :  { %v2208_v16 = vmul.f32 %v2956_v22, %v2207_v49  ;;  %2969 = vrcp.f32 %v6089_v48  ;;  %v2363_v53 = vand.u32 2147483648, %v6089_v48  ;;  %v2361_v55 = vand.u32 2147483647, %v6089_v48 }
 0x45f   :  { %v6093_v35 = vpop.eup %2961  ;;  %v2190_v33 = vadd.f32 %v2954_v19, %v2189_v31  ;;  %vm2357_vm8 = vweird.f32 %v6089_v48  ;;  %vm2338_vm9 = vweird.f32 %v6087_v41  ;;  %vm2343_vm12 = vcmp.eq.f32.partialorder %v2342_v18, 8.507059e+37 }
 0x460   :  { %v2964_v17 = vpop.eup %2963  ;;  %v2209_v46 = vadd.f32 %v2956_v22, %v2208_v16  ;;  %v2226_v44 = vmul.f32 %v6093_v35, %v6084_v15  ;;  %vm2231_vm5 = vweird.f32 %v6093_v35  ;;  %v2364_v21 = vor.u32 1.1754944e-38, %v2363_v53  ;;  %v2622_v53 = vld [vmem:[%s6242_s7 + $0x18] sm:$0xff] }
 0x461   :  { %v2966_v27 = vpop.eup %2965  ;;  %v2194_v42 = vsel %vm2193_vm0, %v2954_v19, %v2190_v33  ;;  %v6099_v58 = vadd.f32 1.0, %v2964_v17  ;;  %vm6123_vm10 = vmor %vm2230_vm4, %vm2231_vm5  ;;  %v2345_v19 = vor.u32 1.1754944e-38, %v2344_v29  ;;  %vm2362_vm14 = vcmp.eq.f32.partialorder %v2361_v55, 8.507059e+37  ;;  %v2624_v29 = vld [vmem:[%s6242_s7 + $0x28] sm:$0xff] }
 0x462   :  { %v2199_v5 = vsel %vm2196_vm1, %v2198_v9, %v2194_v42  ;;  %v2213_v3 = vsel %vm2212_vm2, %v2956_v22, %v2209_v46  ;;  %v2227_v4 = vsub.f32 1.0, %v2226_v44  ;;  %vm2235_vm15 = vcmp.eq.f32.partialorder %v2234_v37, 8.507059e+37  ;;  %v2634_v44 = vld [vmem:[%s6242_s7 + $0x78] sm:$0xff]  ;;  %v2620_v55 = vld [vmem:[%s6242_s7 + $0x8] sm:$0xff] }
 0x463   :  { %v2968_v7 = vpop.eup %2967  ;;  %v2218_v13 = vsel %vm2215_vm3, %v2217_v2, %v2213_v3  ;;  %v2241_v26 = vmul.f32 %v2966_v27, %v2199_v5  ;;  %2971 = vrcp.f32 %v6099_v58  ;;  %v2383_v8 = vand.u32 2147483648, %v6099_v58  ;;  %v2633_v27 = vld [vmem:[%s6242_s7 + $0x70] sm:$0xff] }
 0x464   :  { %v2970_v32 = vpop.eup %2969  ;;  %v2240_v43 = vmul.f32 %v2218_v13, %v5858_v57  ;;  %v2334_v28 = vmul.f32 %v2968_v7, %v6087_v41  ;;  %2973 = vtanh.f32 %v2327_v0  ;;  %v2228_v25 = vmul.f32 %v6093_v35, %v2227_v4  ;;  %v2631_v0 = vld [vmem:[%s6242_s7 + $0x60] sm:$0xff]  ;;  %v2629_v5 = vld [vmem:[%s6242_s7 + $0x50] sm:$0xff]  ;;  %v2628_v4 = vld [vmem:[%s6242_s7 + $0x48] sm:$0xff] }
 0x465   :  { %v2353_v59 = vmul.f32 %v2970_v32, %v6089_v48  ;;  %vm2339_vm6 = vweird.f32 %v2968_v7  ;;  %vm2358_vm7 = vweird.f32 %v2970_v32  ;;  %vm2377_vm1 = vweird.f32 %v6099_v58 }
 0x466   :  { %v6107_v1 = vadd.f32 %v2241_v26, %v2240_v43  ;;  %v2335_v62 = vsub.f32 1.0, %v2334_v28  ;;  %v2229_v57 = vadd.f32 %v6093_v35, %v2228_v25  ;;  %vm2340_vm11 = vmor %vm2338_vm9, %vm2339_vm6  ;;  %v2384_v17 = vor.u32 1.1754944e-38, %v2383_v8  ;;  %v2627_v26 = vld [vmem:[%s6242_s7 + $0x40] sm:$0xff]  ;;  %v2626_v28 = vld [vmem:[%s6242_s7 + $0x38] sm:$0xff] }
 0x467   :  { %v2354_v54 = vsub.f32 1.0, %v2353_v59  ;;  %vm2359_vm13 = vmor %vm2357_vm8, %vm2358_vm7 }
 0x468   :  { %2975 = vtanh.f32 %v6107_v1  ;;  %v2336_v52 = vmul.f32 %v2968_v7, %v2335_v62  ;;  %v2233_v22 = vsel %vm6123_vm10, %v6093_v35, %v2229_v57  ;;  %v2381_v35 = vand.u32 2147483647, %v6099_v58  ;;  %v2625_v62 = vld [vmem:[%s6242_s7 + $0x30] sm:$0xff]  ;;  %v2623_v57 = vld [vmem:[%s6242_s7 + $0x20] sm:$0xff] }
 0x469   :  { %v2972_v30 = vpop.eup %2971  ;;  %v2355_v56 = vmul.f32 %v2970_v32, %v2354_v54  ;;  %v2238_v48 = vsel %vm2235_vm15, %v2237_v34, %v2233_v22 }
 0x46a   :  { %v2337_v11 = vadd.f32 %v2968_v7, %v2336_v52  ;;  %v2373_v12 = vmul.f32 %v2972_v30, %v6099_v58  ;;  %v2974_v10 = vpop.eup %2973  ;;  %vm2378_vm0 = vweird.f32 %v2972_v30  ;;  %vm2382_vm3 = vcmp.eq.f32.partialorder %v2381_v35, 8.507059e+37  ;;  %v2630_v58 = vld [vmem:[%s6242_s7 + $0x58] sm:$0xff] }
 0x46b   :  { %v2356_v60 = vadd.f32 %v2970_v32, %v2355_v56  ;;  %vm2379_vm2 = vmor %vm2377_vm1, %vm2378_vm0 }
 0x46c   :  { %v2341_v50 = vsel %vm2340_vm11, %v2968_v7, %v2337_v11  ;;  %v2374_v23 = vsub.f32 1.0, %v2373_v12 }
 0x46d   :  { %v2346_v39 = vsel %vm2343_vm12, %v2345_v19, %v2341_v50  ;;  %v2360_v15 = vsel %vm2359_vm13, %v2970_v32, %v2356_v60 }
 0x46e   :  { %v2976_v41 = vpop.eup %2975  ;;  %v2365_v49 = vsel %vm2362_vm14, %v2364_v21, %v2360_v15  ;;  %v2388_v20 = vmul.f32 %v2974_v10, %v2346_v39  ;;  %v2375_v45 = vmul.f32 %v2972_v30, %v2374_v23 }
 0x46f   :  { %v2387_v51 = vmul.f32 %v2365_v49, %v5901_v6  ;;  %v2244_v31 = vmul.f32 %v2976_v41, %v2238_v48 }
 0x470   :  { %v2376_v24 = vadd.f32 %v2972_v30, %v2375_v45 }
 0x471   :  { %v2389_v16 = vadd.f32 %v2388_v20, %v2387_v51  ;;  %2408 = vmatmul.f32.vlgmr.msra.gmra.mxu0 %v2244_v31  ;;  %2428 = vmatmul.f32.vlgmr.msra.gmra.mxu1 %v2244_v31 }
 0x472   :  { %2448 = vmatmul.f32.vlgmr.msra.gmra.mxu2 %v2244_v31  ;;  %2468 = vmatmul.f32.vlgmr.msra.gmra.mxu3 %v2244_v31  ;;  %v2380_v33 = vsel %vm2379_vm2, %v2972_v30, %v2376_v24  ;;  %v2621_v30 = vld [vmem:[%s6242_s7 + $0x10] sm:$0xff]  ;;  %s3432_s7 = smov [#allocation13]  }
 0x473   :  { %2977 = vtanh.f32 %v2389_v16  ;;  %2765 = vst [vmem:[#allocation13] sm:$0x3] %v2389_v16  ;;  %v2385_v9 = vsel %vm2382_vm3, %v2384_v17, %v2380_v33  ;;  %2639 = vmatpush.msra.mxu0 %v2634_v44  ;;  %vm2686_vm3 = vcmask 261120   ;;  %s2796_s23 = sshll.u32 %s3432_s7, 4  ;;  %s2797_s23 = int_to_ptr.vmem [resolvable:$true] %s2796_s23 }
 0x475   :  { %2640 = vmatpush.msra.mxu0 %v2633_v27 }
 0x477   :  { %2641 = vmatpush.msra.mxu0 %v2632_v61 }
 0x479   :  { %v2978_v6 = vpop.eup %2977  ;;  %2642 = vmatpush.msra.mxu0 %v2631_v0 }
 0x47a   :  { %v2391_v46 = vmul.f32 %v2978_v6, %v2385_v9 }
 0x47b   :  { %2643 = vmatpush.msra.mxu0 %v2630_v58 }
 0x47c   :  { %2488 = vmatmul.f32.vlgmr.msrb.gmra.mxu0 %v2391_v46  ;;  %2762 = vst [vmem:[#allocation11] sm:$0x3] %v2391_v46  ;;  %2508 = vmatmul.f32.vlgmr.msrb.gmra.mxu1 %v2391_v46 }
 0x47d   :  { %2528 = vmatmul.f32.vlgmr.msrb.gmra.mxu2 %v2391_v46  ;;  %2548 = vmatmul.f32.vlgmr.msrb.gmra.mxu3 %v2391_v46 }
 0x47e   :  { %2644 = vmatpush.msra.mxu0 %v2629_v5 }
 0x480   :  { %2645 = vmatpush.msra.mxu0 %v2628_v4 }
 0x482   :  { %2646 = vmatpush.msra.mxu0 %v2627_v26 }
 0x484   :  { %2647 = vmatpush.msra.mxu0 %v2626_v28  ;;  %v2679_v28 = vld [vmem:[%s6244_s9 + $0x8] sm:$0xff] }
 0x486   :  { %2648 = vmatpush.msra.mxu0 %v2625_v62 }
 0x488   :  { %2649 = vmatpush.msra.mxu0 %v2624_v29 }
 0x48a   :  { %2650 = vmatpush.msra.mxu0 %v2623_v57 }
 0x48c   :  { %2651 = vmatpush.msra.mxu0 %v2622_v53 }
 0x48e   :  { %2652 = vmatpush.msra.mxu0 %v2621_v30 }
 0x490   :  { %2653 = vmatpush.msra.mxu0 %v2620_v55 }
 0x492   :  { %2654 = vmatpush.msra.mxu0 %v2619_v47  ;;  %v2731_v47 = vld [vmem:[%s6246_s11 + $0x10] sm:$0xff] }
 0x4ee   :  { %v2409_v2 = vpop.f32.mrf.mxu0  ;;  %v2429_v42 = vpop.f32.mrf.mxu1 }
 0x4f5   :  { %v2469_v3 = vpop.f32.mrf.mxu3  ;;  %v2449_v18 = vpop.f32.mrf.mxu2 }
 0x4f9   :  { %v2489_v7 = vpop.f32.mrf.mxu0  ;;  %v2509_v13 = vpop.f32.mrf.mxu1 }
 0x4fa   :  { %v2490_v32 = vadd.f32 %v2489_v7, %v2409_v2  ;;  %v2510_v43 = vadd.f32 %v2509_v13, %v2429_v42 }
 0x4fc   :  { %v2552_v59 = vadd.f32 %v2490_v32, %v7602_v36  ;;  %v2553_v25 = vadd.f32 %v2510_v43, %v7603_v38  ;;  %v2680_v43 = vld [vmem:[%s6244_s9 + $0x10] sm:$0xff] }
 0x4fe   :  { %v2846_v63 = vmul.f32 -1.442695, %v2552_v59  ;;  %v2847_v54 = vmul.f32 -1.442695, %v2553_v25  ;;  %v2678_v59 = vld [vmem:[%s6244_s9] sm:$0xff] }
 0x4ff   :  { %v2864_v25 = vld [vmem:[%s6243_s8] ss:$0 sm:$0xff]  ;;  %s2775_s8 = sshll.u32 %s6248_s13, 4  ;;  %s2776_s8 = int_to_ptr.hbm [resolvable:$true] %s2775_s8 }
 0x500   :  { %2979 = vpow2.f32 %v2846_v63  ;;  %v2549_v36 = vpop.f32.mrf.mxu3  ;;  %v2529_v10 = vpop.f32.mrf.mxu2 }
 0x501   :  { %2981 = vpow2.f32 %v2847_v54  ;;  %v2550_v38 = vadd.f32 %v2549_v36, %v2469_v3  ;;  %v2530_v19 = vadd.f32 %v2529_v10, %v2449_v18  ;;  %v2729_v10 = vld [vmem:[%s6246_s11] sm:$0xff] }
 0x503   :  { %v2555_v52 = vadd.f32 %v2550_v38, %v7604_v40  ;;  %v2554_v50 = vadd.f32 %v2530_v19, %v7608_v14  ;;  %v2865_v19 = vld [vmem:[%s6245_s10] ss:$0 sm:$0xff] }
 0x505   :  { %v2848_v56 = vmul.f32 -1.442695, %v2555_v52 }
 0x506   :  { %v2980_v37 = vpop.eup %2979 }
 0x507   :  { %v2982_v11 = vpop.eup %2981  ;;  %v2559_v12 = vadd.f32 1.0, %v2980_v37  ;;  %2983 = vpow2.f32 %v2848_v56 }
 0x508   :  { %v2578_v40 = vadd.f32 1.0, %v2982_v11 }
 0x509   :  { %2985 = vrcp.f32 %v2559_v12  ;;  %v2571_v49 = vand.u32 2147483648, %v2559_v12  ;;  %v2569_v48 = vand.u32 2147483647, %v2559_v12  ;;  %vm2565_vm6 = vweird.f32 %v2559_v12 }
 0x50a   :  { %2987 = vrcp.f32 %v2578_v40  ;;  %v2590_v20 = vand.u32 2147483648, %v2578_v40  ;;  %v2588_v31 = vand.u32 2147483647, %v2578_v40  ;;  %vm2584_vm7 = vweird.f32 %v2578_v40 }
 0x50b   :  { %v2572_v14 = vor.u32 1.1754944e-38, %v2571_v49  ;;  %vm2570_vm10 = vcmp.eq.f32.partialorder %v2569_v48, 8.507059e+37 }
 0x50c   :  { %v2591_v33 = vor.u32 1.1754944e-38, %v2590_v20  ;;  %vm2589_vm11 = vcmp.eq.f32.partialorder %v2588_v31, 8.507059e+37 }
 0x50d   :  { %v2984_v60 = vpop.eup %2983 }
 0x50e   :  { %v2598_v22 = vadd.f32 1.0, %v2984_v60 }
 0x50f   :  { %v2986_v21 = vpop.eup %2985 }
 0x510   :  { %v2988_v23 = vpop.eup %2987  ;;  %v2561_v34 = vmul.f32 %v2986_v21, %v2559_v12  ;;  %2989 = vrcp.f32 %v2598_v22  ;;  %vm2566_vm4 = vweird.f32 %v2986_v21  ;;  %v2610_v5 = vand.u32 2147483648, %v2598_v22  ;;  %v2732_v12 = vld [vmem:[%s6246_s11 + $0x18] sm:$0xff] }
 0x511   :  { %v2580_v39 = vmul.f32 %v2988_v23, %v2578_v40  ;;  %2991 = vtanh.f32 %v2554_v50  ;;  %vm2585_vm5 = vweird.f32 %v2988_v23  ;;  %vm2567_vm8 = vmor %vm2565_vm6, %vm2566_vm4  ;;  %vm2604_vm13 = vweird.f32 %v2598_v22  ;;  %2752 = vmatpush.msra.mxu2 %v2732_v12  ;;  %v2730_v40 = vld [vmem:[%s6246_s11 + $0x8] sm:$0xff] }
 0x512   :  { %v2562_v15 = vsub.f32 1.0, %v2561_v34  ;;  %vm2586_vm9 = vmor %vm2584_vm7, %vm2585_vm5  ;;  %v2608_v3 = vand.u32 2147483647, %v2598_v22  ;;  %v2611_v7 = vor.u32 1.1754944e-38, %v2610_v5 }
 0x513   :  { %v2581_v41 = vsub.f32 1.0, %v2580_v39  ;;  %2753 = vmatpush.msra.mxu2 %v2731_v47 }
 0x514   :  { %v2563_v45 = vmul.f32 %v2986_v21, %v2562_v15  ;;  %vm2609_vm15 = vcmp.eq.f32.partialorder %v2608_v3, 8.507059e+37 }
 0x515   :  { %v2582_v51 = vmul.f32 %v2988_v23, %v2581_v41  ;;  %2754 = vmatpush.msra.mxu2 %v2730_v40 }
 0x516   :  { %v2990_v16 = vpop.eup %2989  ;;  %v2564_v24 = vadd.f32 %v2986_v21, %v2563_v45 }
 0x517   :  { %v2583_v8 = vadd.f32 %v2988_v23, %v2582_v51  ;;  %v2600_v35 = vmul.f32 %v2990_v16, %v2598_v22  ;;  %v2992_v6 = vpop.eup %2991  ;;  %vm2605_vm12 = vweird.f32 %v2990_v16  ;;  %2755 = vmatpush.msra.mxu2 %v2729_v10 }
 0x518   :  { %v2568_v17 = vsel %vm2567_vm8, %v2986_v21, %v2564_v24  ;;  %vm2606_vm14 = vmor %vm2604_vm13, %vm2605_vm12 }
 0x519   :  { %v2573_v9 = vsel %vm2570_vm10, %v2572_v14, %v2568_v17  ;;  %v2587_v46 = vsel %vm2586_vm9, %v2988_v23, %v2583_v8  ;;  %v2601_v44 = vsub.f32 1.0, %v2600_v35  ;;  %vm2760_vm9 = vcmask 58368  }
 0x51a   :  { %v2592_v27 = vsel %vm2589_vm11, %v2591_v33, %v2587_v46  ;;  %v2615_v2 = vmul.f32 %v2992_v6, %v2573_v9 }
 0x51b   :  { %v2614_v42 = vmul.f32 %v2592_v27, %v6107_v1  ;;  %v2602_v61 = vmul.f32 %v2990_v16, %v2601_v44  ;;  %v2681_v1 = vld [vmem:[%s6244_s9 + $0x18] sm:$0xff] }
 0x51c   :  { %2702 = vmatpush.msra.mxu1 %v2681_v1 }
 0x51d   :  { %v2616_v0 = vadd.f32 %v2615_v2, %v2614_v42  ;;  %v2603_v58 = vadd.f32 %v2990_v16, %v2602_v61 }
 0x51e   :  { %2703 = vmatpush.msra.mxu1 %v2680_v43 }
 0x51f   :  { %2993 = vtanh.f32 %v2616_v0  ;;  %2767 = vst [vmem:[#allocation13 + $0x2] sm:$0x3] %v2616_v0  ;;  %v2607_v4 = vsel %vm2606_vm14, %v2990_v16, %v2603_v58  ;;  %v2866_v16 = vld [vmem:[%s6247_s12] ss:$0 sm:$0xff] }
 0x520   :  { %v2612_v26 = vsel %vm2609_vm15, %v2611_v7, %v2607_v4  ;;  %2704 = vmatpush.msra.mxu1 %v2679_v28 }
 0x522   :  { %2705 = vmatpush.msra.mxu1 %v2678_v59 }
 0x525   :  { %v2994_v13 = vpop.eup %2993 }
 0x526   :  { %v2618_v32 = vmul.f32 %v2994_v13, %v2612_v26 }
 0x528   :  { %2655 = vmatmul.f32.vlgmr.msra.gmra.mxu0 %v2618_v32  ;;  %2764 = vst [vmem:[#allocation11 + $0x2] sm:$0x3] %v2618_v32 }
 0x529   :  { %2791 = dma.vmem_to_hbm [thread:$0]  %s2784_s4, 64, %s2786_s20, [#allocation12], %s3425_s27, %s3425_s27, %s3431_s5  }
 0x52a   :  { %2804 = dma.vmem_to_hbm [thread:$0]  %s2797_s23, 64, %s2799_s26, [#allocation12], %s3425_s27, %s3425_s27, %s3431_s5  }
 0x5a5   :  { %v2656_v62 = vpop.f32.mrf.mxu0 }
 0x5a6   :  { %v2657_v18 = vadd.f32 %v2864_v25, %v2656_v62 }
 0x5a8   :  { %v2849_v63 = vmul.f32 -1.442695, %v2657_v18 }
 0x5aa   :  { %2995 = vpow2.f32 %v2849_v63 }
 0x5b0   :  { %v2996_v54 = vpop.eup %2995 }
 0x5b1   :  { %v2662_v29 = vadd.f32 1.0, %v2996_v54 }
 0x5b3   :  { %2997 = vrcp.f32 %v2662_v29  ;;  %v2674_v53 = vand.u32 2147483648, %v2662_v29  ;;  %v2672_v30 = vand.u32 2147483647, %v2662_v29  ;;  %vm2668_vm1 = vweird.f32 %v2662_v29 }
 0x5b5   :  { %v2675_v55 = vor.u32 1.1754944e-38, %v2674_v53  ;;  %vm2673_vm4 = vcmp.eq.f32.partialorder %v2672_v30, 8.507059e+37 }
 0x5b9   :  { %v2998_v57 = vpop.eup %2997 }
 0x5ba   :  { %v2664_v36 = vmul.f32 %v2998_v57, %v2662_v29  ;;  %vm2669_vm0 = vweird.f32 %v2998_v57 }
 0x5bb   :  { %vm2670_vm2 = vmor %vm2668_vm1, %vm2669_vm0 }
 0x5bc   :  { %v2665_v38 = vsub.f32 1.0, %v2664_v36 }
 0x5be   :  { %v2666_v52 = vmul.f32 %v2998_v57, %v2665_v38 }
 0x5c0   :  { %v2667_v56 = vadd.f32 %v2998_v57, %v2666_v52 }
 0x5c2   :  { %v2671_v37 = vsel %vm2670_vm2, %v2998_v57, %v2667_v56 }
 0x5c3   :  { %v2676_v11 = vsel %vm2673_vm4, %v2675_v55, %v2671_v37 }
 0x5c4   :  { %2850 = vmatmul.msk.f32.vlgmr.msra.gmra.mxu1 %vm2686_vm3, %v2676_v11 }
 0x641   :  { %v2707_v60 = vpop.f32.mrf.mxu1 }
 0x642   :  { %v2708_v22 = vadd.f32 %v2865_v19, %v2707_v60 }
 0x644   :  { %v2851_v21 = vmul.f32 -1.442695, %v2708_v22 }
 0x646   :  { %2999 = vpow2.f32 %v2851_v21 }
 0x64c   :  { %v3000_v50 = vpop.eup %2999 }
 0x64d   :  { %v2713_v23 = vadd.f32 1.0, %v3000_v50 }
 0x64f   :  { %3001 = vrcp.f32 %v2713_v23  ;;  %v2725_v41 = vand.u32 2147483648, %v2713_v23  ;;  %v2723_v20 = vand.u32 2147483647, %v2713_v23  ;;  %vm2719_vm6 = vweird.f32 %v2713_v23 }
 0x651   :  { %v2726_v48 = vor.u32 1.1754944e-38, %v2725_v41  ;;  %vm2724_vm8 = vcmp.eq.f32.partialorder %v2723_v20, 8.507059e+37 }
 0x655   :  { %v3002_v34 = vpop.eup %3001 }
 0x656   :  { %v2715_v39 = vmul.f32 %v3002_v34, %v2713_v23  ;;  %vm2720_vm5 = vweird.f32 %v3002_v34 }
 0x657   :  { %vm2721_vm7 = vmor %vm2719_vm6, %vm2720_vm5 }
 0x658   :  { %v2716_v15 = vsub.f32 1.0, %v2715_v39 }
 0x65a   :  { %v2717_v49 = vmul.f32 %v3002_v34, %v2716_v15 }
 0x65c   :  { %v2718_v45 = vadd.f32 %v3002_v34, %v2717_v49 }
 0x65e   :  { %v2722_v51 = vsel %vm2721_vm7, %v3002_v34, %v2718_v45 }
 0x65f   :  { %v2727_v31 = vsel %vm2724_vm8, %v2726_v48, %v2722_v51 }
 0x660   :  { %2852 = vmatmul.msk.f32.vlgmr.msra.gmra.mxu2 %vm2686_vm3, %v2727_v31 }
 0x6e3   :  { %v2757_v24 = vpop.f32.mrf.mxu2 }
 0x6e4   :  { %v2758_v14 = vadd.f32 %v2866_v16, %v2757_v24 }
 0x6e6   :  { %2761 = vst.msk [vmem:[#allocation10] sm:$0x3] %vm2760_vm9, %v2758_v14 }
 0x6e7   :  { %2778 = dma.vmem_to_hbm [thread:$0]  %s2774_s0, 32, %s2776_s8, [#allocation4]  }
 0x6e8   :  { %3419 = dma.done.wait [#allocation4], 32  }
 0x6e9   :  { %3420 = vsyncadd [#allocation4], 4294967264 }
 0x6ea   :  { %3421 = dma.done.wait [#allocation12], 128  }
 0x6eb   :  { %3422 = vsyncadd [#allocation12], 4294967168 }
 0x6ec   :  { %2817 = vsyncpa [#allocation3], 1 }
 0x6ed   :  { %2818 = vsyncpa [#allocation6], 1 }
 0x6ee   :  { %2819 = vsyncpa [#allocation9], 1 }
 0x6ef   :  { %2820 = vsyncpa [#allocation4], 1 }
 0x6f0   :  { %2821 = vsyncpa [#allocation12], 1 }

</bundles_post_ra>
